<compile_context>
chip_gen: v7x
topology: tpu7x:2x2x1
jax: 0.10.0
libtpu: 0.0.40
codegen_flags: <defaults>
</compile_context>

<pallas_src>
import math

import jax
import jax.numpy as jnp
from jax.experimental import pallas as pl
from jax.experimental.pallas import tpu as pltpu

EMBED_DIM = 32          # embedding_dim
HIDDEN_DIM = 32         # hidden_dim (unused in forward, kept for parity)
N_HEADS = 8
HEAD_DIM = EMBED_DIM // N_HEADS
N_LAYERS = 2            # n_encode_layers
FF_HIDDEN = 512         # GraphAttentionEncoder default feed_forward_hidden
TANH_CLIP = 10.0
BN_EPS = 1e-5
TEMP = 1.0
NEG_BIG = -1e9          # finite stand-in for -inf masking

BATCH = 2
GRAPH_SIZE = 8          # graph size (= number of decode steps for TSP)
NODE_DIM = 2            # TSP coordinates


# ----------------------------------------------------------------------------
# Fused Pallas kernel: encoder + precompute + full greedy decode
# ----------------------------------------------------------------------------
def _attention_model_kernel(
        coords_ref, init_w_ref, init_b_ref,
        attn_w_ref, bn_g_ref, bn_b_ref,
        ff_w1_ref, ff_b1_ref, ff_w2_ref, ff_b2_ref,
        wp_ref, pnode_ref, pfix_ref, pstep_ref, pout_ref,
        logp_ref, pi_ref):
    f32 = jnp.float32
    bf16 = jnp.bfloat16
    B, N, _ = logp_ref.shape
    BN = B * N
    D = EMBED_DIM
    H = N_HEADS
    dk = HEAD_DIM
    inv_sqrt_dk = 1.0 / math.sqrt(dk)
    inv_sqrt_d = 1.0 / math.sqrt(D)

    def mm(a, w):
        # bf16 MXU operands, f32 accumulation; elementwise math stays f32.
        return jnp.dot(a.astype(bf16), w.astype(bf16),
                       preferred_element_type=f32)

    def bnorm(x, g, b):
        # nn.BatchNorm1d in training mode: batch statistics over all B*N rows.
        mu = jnp.mean(x, axis=0, keepdims=True)
        xc = x - mu
        var = jnp.mean(xc * xc, axis=0, keepdims=True)
        return xc * jax.lax.rsqrt(var + BN_EPS) * g + b

    # Head-selector matrices: head h owns lanes [h*dk, (h+1)*dk). Batches all
    # heads in a single contraction (replaces the per-head python loop).
    d_i = jax.lax.broadcasted_iota(jnp.int32, (D, H), 0)
    h_i = jax.lax.broadcasted_iota(jnp.int32, (D, H), 1)
    hsel = ((d_i >= h_i * dk) & (d_i < (h_i + 1) * dk)).astype(f32)     # (D, H)
    h_j = jax.lax.broadcasted_iota(jnp.int32, (H, D), 0)
    d_j = jax.lax.broadcasted_iota(jnp.int32, (H, D), 1)
    hsel_t = ((d_j >= h_j * dk) & (d_j < (h_j + 1) * dk)).astype(f32)   # (H, D)

    def head_pool(x2):    # (R, D) -> (R, H): per-head sum over its dk lanes
        return jnp.dot(x2, hsel, preferred_element_type=f32)

    def head_expand(a2):  # (R, H) -> (R, D): replicate head weight over lanes
        return jnp.dot(a2, hsel_t, preferred_element_type=f32)

    # ---------------- init_embed (TSP: node_dim = 2) ----------------
    x = jnp.dot(coords_ref[...], init_w_ref[...],
                preferred_element_type=f32) + init_b_ref[...]           # (BN, D)

    # ---------------- GraphAttentionEncoder ----------------
    for l in range(N_LAYERS):
        aw = attn_w_ref[l]                          # (4, D, D): wq, wk, wv, wo
        q = mm(x, aw[0]) * inv_sqrt_dk              # scale folded into q once
        k = mm(x, aw[1])
        v = mm(x, aw[2])
        q3 = q.reshape(B, N, D)
        k3 = k.reshape(B, N, D)
        v3 = v.reshape(B, N, D)
        # all-heads scores (B, query n, key m, head h)
        qk = q3[:, :, None, :] * k3[:, None, :, :]                      # (B,N,M,D)
        scores = head_pool(qk.reshape(BN * N, D)).reshape(B, N, N, H)
        smx = jnp.max(scores, axis=2, keepdims=True)
        se = jnp.exp(scores - smx)
        attn = se * pl.reciprocal(jnp.sum(se, axis=2, keepdims=True),
                                  approx=True)
        attn_e = head_expand(attn.reshape(BN * N, H)).reshape(B, N, N, D)
        ctx = jnp.sum(attn_e * v3[:, None, :, :], axis=2)               # (B,N,D)
        x = x + mm(ctx.reshape(BN, D), aw[3])                           # skip
        g = bn_g_ref[l]                             # (2, D)
        b_ = bn_b_ref[l]
        x = bnorm(x, g[0:1, :], b_[0:1, :])
        h1 = jnp.maximum(mm(x, ff_w1_ref[l]) + ff_b1_ref[l], 0.0)       # (BN,FF)
        x = x + (mm(h1, ff_w2_ref[l]) + ff_b2_ref[l])                   # skip
        x = bnorm(x, g[1:2, :], b_[1:2, :])

    emb = x                                         # (BN, D)
    emb3 = emb.reshape(B, N, D)

    # ---------------- _precompute ----------------
    graph_embed = jnp.mean(emb3, axis=1)                                # (B, D)
    fixed_ctx = mm(graph_embed, pfix_ref[...])                          # (B, D)
    proj = mm(emb, pnode_ref[...])                                      # (BN,3D)
    gk3 = proj[:, 0:D].reshape(B, N, D)
    gv3 = proj[:, D:2 * D].reshape(B, N, D)
    lk3 = proj[:, 2 * D:3 * D].reshape(B, N, D)

    # ---------------- _inner: fused greedy decode (all N steps) -------------
    iota3 = jax.lax.broadcasted_iota(jnp.int32, (B, N, 1), 1)
    visited = jnp.zeros((B, N, 1), f32)             # mask never leaves VMEM
    logp_acc = jnp.zeros((B, N, 1), f32)
    pi_acc = jnp.zeros((B, N, 1), jnp.int32)
    first_oh = None
    prev_oh = None

    for i in range(N):
        if i == 0:
            step_ctx = jnp.broadcast_to(wp_ref[...], (B, 2 * D))
        else:
            ef = jnp.sum(first_oh * emb3, axis=1)                       # (B, D)
            ep = jnp.sum(prev_oh * emb3, axis=1)                        # (B, D)
            step_ctx = jnp.concatenate([ef, ep], axis=-1)               # (B,2D)
        # query = fixed_context + project_step_context(ctx); 1/sqrt(dk) folded
        q = (fixed_ctx + mm(step_ctx, pstep_ref[...])) * inv_sqrt_dk    # (B, D)

        # glimpse attention, all heads at once
        compat = head_pool((q[:, None, :] * gk3).reshape(BN, D)
                           ).reshape(B, N, H)
        compat = compat + visited * NEG_BIG                             # mask_inner
        cmx = jnp.max(compat, axis=1, keepdims=True)
        ce = jnp.exp(compat - cmx)
        cattn = ce * pl.reciprocal(jnp.sum(ce, axis=1, keepdims=True),
                                   approx=True)
        attn_e = head_expand(cattn.reshape(BN, H)).reshape(B, N, D)
        heads = jnp.sum(attn_e * gv3, axis=1)                           # (B, D)
        glimpse = mm(heads, pout_ref[...])                              # project_out

        # logits against logit_K, tanh clipping, masking, log_softmax
        logits = jnp.sum(glimpse[:, None, :] * lk3, axis=-1,
                         keepdims=True) * inv_sqrt_d                    # (B,N,1)
        logits = jnp.tanh(logits) * TANH_CLIP
        logits = logits + visited * NEG_BIG                             # mask_logits
        logits = logits * (1.0 / TEMP)
        lmx = jnp.max(logits, axis=1, keepdims=True)
        lse = jnp.log(jnp.sum(jnp.exp(logits - lmx), axis=1,
                              keepdims=True)) + lmx
        log_p = logits - lse                                            # (B,N,1)

        # greedy selection (first index attaining the max), all in-kernel
        pmx = jnp.max(log_p, axis=1, keepdims=True)
        sel = jnp.min(jnp.where(log_p >= pmx, iota3, N), axis=1,
                      keepdims=True)                                    # (B,1,1)
        sel_oh = (iota3 == sel).astype(f32)                             # (B,N,1)
        sel_lp = jnp.sum(sel_oh * log_p, axis=1, keepdims=True)         # (B,1,1)
        step_oh = (iota3 == i)
        logp_acc = logp_acc + sel_lp * step_oh.astype(f32)
        pi_acc = pi_acc + sel * step_oh.astype(jnp.int32)
        visited = jnp.maximum(visited, sel_oh)
        prev_oh = sel_oh
        if i == 0:
            first_oh = sel_oh

    logp_ref[...] = logp_acc
    pi_ref[...] = pi_acc


def attention_model_pallas(coords, params):
    """One pallas_call covering encoder + precompute + full greedy decode."""
    B, N, node_dim = coords.shape
    logp3, pi3 = pl.pallas_call(
        _attention_model_kernel,
        out_shape=(
            jax.ShapeDtypeStruct((B, N, 1), jnp.float32),
            jax.ShapeDtypeStruct((B, N, 1), jnp.int32),
        ),
        compiler_params=pltpu.CompilerParams(
            vmem_limit_bytes=32 * 1024 * 1024),
    )(coords.reshape(B * N, node_dim),
      params["init_w"], params["init_b"],
      params["attn_w"], params["bn_g"], params["bn_b"],
      params["ff_w1"], params["ff_b1"], params["ff_w2"], params["ff_b2"],
      params["w_placeholder"],
      params["proj_node_w"], params["proj_fixed_w"], params["proj_step_w"],
      params["proj_out_w"])
    return logp3[:, :, 0], pi3[:, :, 0]


# ----------------------------------------------------------------------------
# Parameters and plain-JAX glue
# ----------------------------------------------------------------------------
def init_params(key):
    D, F, L = EMBED_DIM, FF_HIDDEN, N_LAYERS
    keys = jax.random.split(key, 16)
    it = iter(keys)

    def u(shape, fan_in):
        bound = 1.0 / math.sqrt(fan_in)
        return jax.random.uniform(next(it), shape, jnp.float32, -bound, bound)

    return {
        "init_w": u((NODE_DIM, D), NODE_DIM),
        "init_b": u((1, D), NODE_DIM),
        "w_placeholder": jax.random.uniform(next(it), (1, 2 * D), jnp.float32,
                                            -1.0, 1.0),
        "proj_node_w": u((D, 3 * D), D),        # project_node_embeddings
        "proj_fixed_w": u((D, D), D),           # project_fixed_context
        "proj_step_w": u((2 * D, D), 2 * D),    # project_step_context
        "proj_out_w": u((D, D), D),             # project_out
        # per-layer stacked encoder weights
        "attn_w": u((L, 4, D, D), D),           # [wq, wk, wv, wo]
        "bn_g": jnp.ones((L, 2, D), jnp.float32),
        "bn_b": jnp.zeros((L, 2, D), jnp.float32),
        "ff_w1": u((L, D, F), D),
        "ff_b1": u((L, 1, F), D),
        "ff_w2": u((L, F, D), F),
        "ff_b2": u((L, 1, D), F),
    }


def forward(coords, params):
    """AttentionModel.forward for TSP, greedy decode. Returns (cost, ll, pi)."""
    B, N, _ = coords.shape
    sel_logp, pi = attention_model_pallas(coords, params)
    ll = jnp.sum(sel_logp, axis=1)                   # _calc_log_likelihood

    # problem.get_costs (TSP tour length) in plain JAX
    bidx = jnp.arange(B)
    d = coords[bidx[:, None], pi]                    # (B, N, 2)
    seg = jnp.sqrt(jnp.sum((d[:, 1:] - d[:, :-1]) ** 2, axis=-1)).sum(axis=1)
    ret = jnp.sqrt(jnp.sum((d[:, 0] - d[:, -1]) ** 2, axis=-1))
    cost = seg + ret
    return cost, ll, pi


if __name__ == "__main__":
    key = jax.random.PRNGKey(0)
    pkey, dkey = jax.random.split(key)
    params = init_params(pkey)
    coords = jax.random.uniform(dkey, (BATCH, GRAPH_SIZE, NODE_DIM), jnp.float32)

    cost, ll, pi = jax.jit(forward)(coords, params)
    (cost, ll, pi) = jax.block_until_ready((cost, ll, pi))

    assert cost.shape == (BATCH,) and ll.shape == (BATCH,)
    assert pi.shape == (BATCH, GRAPH_SIZE)
    assert bool(jnp.all(jnp.isfinite(cost))) and bool(jnp.all(jnp.isfinite(ll)))
    # each tour must visit every node exactly once
    assert bool(jnp.all(jnp.sort(pi, axis=1) == jnp.arange(GRAPH_SIZE)[None, :]))
    print("KERNEL_OK")
</pallas_src>

<mosaic_0001>
module attributes {stable_mosaic.version = 11 : i64} {
  func.func @_attention_model_kernel(%arg0: memref<16x2xf32, #tpu.memory_space<vmem>>, %arg1: memref<2x32xf32, #tpu.memory_space<vmem>>, %arg2: memref<1x32xf32, #tpu.memory_space<vmem>>, %arg3: memref<2x4x32x32xf32, #tpu.memory_space<vmem>>, %arg4: memref<2x2x32xf32, #tpu.memory_space<vmem>>, %arg5: memref<2x2x32xf32, #tpu.memory_space<vmem>>, %arg6: memref<2x32x512xf32, #tpu.memory_space<vmem>>, %arg7: memref<2x1x512xf32, #tpu.memory_space<vmem>>, %arg8: memref<2x512x32xf32, #tpu.memory_space<vmem>>, %arg9: memref<2x1x32xf32, #tpu.memory_space<vmem>>, %arg10: memref<1x64xf32, #tpu.memory_space<vmem>>, %arg11: memref<32x96xf32, #tpu.memory_space<vmem>>, %arg12: memref<32x32xf32, #tpu.memory_space<vmem>>, %arg13: memref<64x32xf32, #tpu.memory_space<vmem>>, %arg14: memref<32x32xf32, #tpu.memory_space<vmem>>, %arg15: memref<2x8x1xf32, #tpu.memory_space<vmem>>, %arg16: memref<2x8x1xi32, #tpu.memory_space<vmem>>) attributes {dimension_semantics = [], scalar_prefetch = 0 : i64, scratch_operands = 0 : i64, tpu.core_type = #tpu.core_type<tc>} {
    %0 = tpu.iota {dimensions = array<i32: 0>} : vector<32x8xi32>
    %1 = tpu.iota {dimensions = array<i32: 1>} : vector<32x8xi32>
    %c4_i32 = arith.constant 4 : i32
    %2 = vector.broadcast %c4_i32 : i32 to vector<32x8xi32>
    %3 = arith.muli %1, %2 : vector<32x8xi32>
    %4 = arith.cmpi sge, %0, %3 : vector<32x8xi32>
    %c1_i32 = arith.constant 1 : i32
    %5 = vector.broadcast %c1_i32 : i32 to vector<32x8xi32>
    %6 = arith.addi %1, %5 : vector<32x8xi32>
    %c4_i32_0 = arith.constant 4 : i32
    %7 = vector.broadcast %c4_i32_0 : i32 to vector<32x8xi32>
    %8 = arith.muli %6, %7 : vector<32x8xi32>
    %9 = arith.cmpi slt, %0, %8 : vector<32x8xi32>
    %10 = arith.andi %4, %9 : vector<32x8xi1>
    %11 = arith.extui %10 : vector<32x8xi1> to vector<32x8xi32>
    %12 = arith.sitofp %11 : vector<32x8xi32> to vector<32x8xf32>
    %13 = tpu.iota {dimensions = array<i32: 0>} : vector<8x32xi32>
    %14 = tpu.iota {dimensions = array<i32: 1>} : vector<8x32xi32>
    %c4_i32_1 = arith.constant 4 : i32
    %15 = vector.broadcast %c4_i32_1 : i32 to vector<8x32xi32>
    %16 = arith.muli %13, %15 : vector<8x32xi32>
    %17 = arith.cmpi sge, %14, %16 : vector<8x32xi32>
    %c1_i32_2 = arith.constant 1 : i32
    %18 = vector.broadcast %c1_i32_2 : i32 to vector<8x32xi32>
    %19 = arith.addi %13, %18 : vector<8x32xi32>
    %c4_i32_3 = arith.constant 4 : i32
    %20 = vector.broadcast %c4_i32_3 : i32 to vector<8x32xi32>
    %21 = arith.muli %19, %20 : vector<8x32xi32>
    %22 = arith.cmpi slt, %14, %21 : vector<8x32xi32>
    %23 = arith.andi %17, %22 : vector<8x32xi1>
    %24 = arith.extui %23 : vector<8x32xi1> to vector<8x32xi32>
    %25 = arith.sitofp %24 : vector<8x32xi32> to vector<8x32xf32>
    %c0 = arith.constant 0 : index
    %c0_4 = arith.constant 0 : index
    %26 = vector.load %arg0[%c0, %c0_4] : memref<16x2xf32, #tpu.memory_space<vmem>>, vector<16x2xf32>
    %c0_5 = arith.constant 0 : index
    %c0_6 = arith.constant 0 : index
    %27 = vector.load %arg1[%c0_5, %c0_6] : memref<2x32xf32, #tpu.memory_space<vmem>>, vector<2x32xf32>
    %cst = arith.constant dense<0.000000e+00> : vector<16x32xf32>
    %28 = tpu.matmul %26, %27, %cst {dimension_numbers = #tpu.dot_dimension_numbers<[1], [0], [0], [1], [0, 0, 1, 1], [], []>} : vector<16x2xf32>, vector<2x32xf32>, vector<16x32xf32> -> vector<16x32xf32>
    %c0_7 = arith.constant 0 : index
    %c0_8 = arith.constant 0 : index
    %29 = vector.load %arg2[%c0_7, %c0_8] : memref<1x32xf32, #tpu.memory_space<vmem>>, vector<1x32xf32>
    %30 = vector.broadcast %29 : vector<1x32xf32> to vector<16x32xf32>
    %31 = arith.addf %28, %30 : vector<16x32xf32>
    %c0_9 = arith.constant 0 : index
    %c0_10 = arith.constant 0 : index
    %c0_11 = arith.constant 0 : index
    %c0_12 = arith.constant 0 : index
    %32 = vector.load %arg3[%c0_9, %c0_10, %c0_11, %c0_12] : memref<2x4x32x32xf32, #tpu.memory_space<vmem>>, vector<1x4x32x32xf32>
    %33 = vector.shape_cast %32 : vector<1x4x32x32xf32> to vector<4x32x32xf32>
    %34 = vector.extract_strided_slice %33 {offsets = [0, 0, 0], sizes = [1, 32, 32], strides = [1, 1, 1]} : vector<4x32x32xf32> to vector<1x32x32xf32>
    %35 = vector.shape_cast %34 : vector<1x32x32xf32> to vector<32x32xf32>
    %36 = arith.truncf %31 : vector<16x32xf32> to vector<16x32xbf16>
    %37 = arith.truncf %35 : vector<32x32xf32> to vector<32x32xbf16>
    %cst_13 = arith.constant dense<0.000000e+00> : vector<16x32xf32>
    %38 = tpu.matmul %36, %37, %cst_13 {dimension_numbers = #tpu.dot_dimension_numbers<[1], [0], [0], [1], [0, 0, 1, 1], [], []>} : vector<16x32xbf16>, vector<32x32xbf16>, vector<16x32xf32> -> vector<16x32xf32>
    %cst_14 = arith.constant 5.000000e-01 : f32
    %39 = vector.broadcast %cst_14 : f32 to vector<16x32xf32>
    %40 = arith.mulf %38, %39 : vector<16x32xf32>
    %41 = vector.extract_strided_slice %33 {offsets = [1, 0, 0], sizes = [1, 32, 32], strides = [1, 1, 1]} : vector<4x32x32xf32> to vector<1x32x32xf32>
    %42 = vector.shape_cast %41 : vector<1x32x32xf32> to vector<32x32xf32>
    %43 = arith.truncf %31 : vector<16x32xf32> to vector<16x32xbf16>
    %44 = arith.truncf %42 : vector<32x32xf32> to vector<32x32xbf16>
    %cst_15 = arith.constant dense<0.000000e+00> : vector<16x32xf32>
    %45 = tpu.matmul %43, %44, %cst_15 {dimension_numbers = #tpu.dot_dimension_numbers<[1], [0], [0], [1], [0, 0, 1, 1], [], []>} : vector<16x32xbf16>, vector<32x32xbf16>, vector<16x32xf32> -> vector<16x32xf32>
    %46 = vector.extract_strided_slice %33 {offsets = [2, 0, 0], sizes = [1, 32, 32], strides = [1, 1, 1]} : vector<4x32x32xf32> to vector<1x32x32xf32>
    %47 = vector.shape_cast %46 : vector<1x32x32xf32> to vector<32x32xf32>
    %48 = arith.truncf %31 : vector<16x32xf32> to vector<16x32xbf16>
    %49 = arith.truncf %47 : vector<32x32xf32> to vector<32x32xbf16>
    %cst_16 = arith.constant dense<0.000000e+00> : vector<16x32xf32>
    %50 = tpu.matmul %48, %49, %cst_16 {dimension_numbers = #tpu.dot_dimension_numbers<[1], [0], [0], [1], [0, 0, 1, 1], [], []>} : vector<16x32xbf16>, vector<32x32xbf16>, vector<16x32xf32> -> vector<16x32xf32>
    %51 = vector.shape_cast %40 : vector<16x32xf32> to vector<2x8x32xf32>
    %52 = vector.shape_cast %45 : vector<16x32xf32> to vector<2x8x32xf32>
    %53 = vector.shape_cast %50 : vector<16x32xf32> to vector<2x8x32xf32>
    %54 = vector.shape_cast %51 : vector<2x8x32xf32> to vector<2x8x1x32xf32>
    %55 = vector.shape_cast %52 : vector<2x8x32xf32> to vector<2x1x8x32xf32>
    %56 = vector.broadcast %54 : vector<2x8x1x32xf32> to vector<2x8x8x32xf32>
    %57 = vector.broadcast %55 : vector<2x1x8x32xf32> to vector<2x8x8x32xf32>
    %58 = arith.mulf %56, %57 : vector<2x8x8x32xf32>
    %59 = vector.shape_cast %58 : vector<2x8x8x32xf32> to vector<128x32xf32>
    %cst_17 = arith.constant dense<0.000000e+00> : vector<128x8xf32>
    %60 = tpu.matmul %59, %12, %cst_17 {dimension_numbers = #tpu.dot_dimension_numbers<[1], [0], [0], [1], [0, 0, 1, 1], [], []>} : vector<128x32xf32>, vector<32x8xf32>, vector<128x8xf32> -> vector<128x8xf32>
    %61 = vector.shape_cast %60 : vector<128x8xf32> to vector<2x8x8x8xf32>
    %cst_18 = arith.constant dense<0xFF800000> : vector<2x8x8xf32>
    %62 = vector.multi_reduction <maximumf>, %61, %cst_18 [2] : vector<2x8x8x8xf32> to vector<2x8x8xf32>
    %63 = vector.shape_cast %62 : vector<2x8x8xf32> to vector<2x8x1x8xf32>
    %64 = vector.broadcast %63 : vector<2x8x1x8xf32> to vector<2x8x8x8xf32>
    %65 = arith.subf %61, %64 : vector<2x8x8x8xf32>
    %66 = math.exp %65 : vector<2x8x8x8xf32>
    %cst_19 = arith.constant dense<0.000000e+00> : vector<2x8x8xf32>
    %67 = vector.multi_reduction <add>, %66, %cst_19 [2] : vector<2x8x8x8xf32> to vector<2x8x8xf32>
    %68 = vector.shape_cast %67 : vector<2x8x8xf32> to vector<2x8x1x8xf32>
    %69 = tpu.reciprocal %68 {approx = true} : vector<2x8x1x8xf32> -> vector<2x8x1x8xf32>
    %70 = vector.broadcast %69 : vector<2x8x1x8xf32> to vector<2x8x8x8xf32>
    %71 = arith.mulf %66, %70 : vector<2x8x8x8xf32>
    %72 = vector.shape_cast %71 : vector<2x8x8x8xf32> to vector<128x8xf32>
    %cst_20 = arith.constant dense<0.000000e+00> : vector<128x32xf32>
    %73 = tpu.matmul %72, %25, %cst_20 {dimension_numbers = #tpu.dot_dimension_numbers<[1], [0], [0], [1], [0, 0, 1, 1], [], []>} : vector<128x8xf32>, vector<8x32xf32>, vector<128x32xf32> -> vector<128x32xf32>
    %74 = vector.shape_cast %73 : vector<128x32xf32> to vector<2x8x8x32xf32>
    %75 = vector.shape_cast %53 : vector<2x8x32xf32> to vector<2x1x8x32xf32>
    %76 = vector.broadcast %75 : vector<2x1x8x32xf32> to vector<2x8x8x32xf32>
    %77 = arith.mulf %74, %76 : vector<2x8x8x32xf32>
    %cst_21 = arith.constant dense<0.000000e+00> : vector<2x8x32xf32>
    %78 = vector.multi_reduction <add>, %77, %cst_21 [2] : vector<2x8x8x32xf32> to vector<2x8x32xf32>
    %79 = vector.shape_cast %78 : vector<2x8x32xf32> to vector<16x32xf32>
    %80 = vector.extract_strided_slice %33 {offsets = [3, 0, 0], sizes = [1, 32, 32], strides = [1, 1, 1]} : vector<4x32x32xf32> to vector<1x32x32xf32>
    %81 = vector.shape_cast %80 : vector<1x32x32xf32> to vector<32x32xf32>
    %82 = arith.truncf %79 : vector<16x32xf32> to vector<16x32xbf16>
    %83 = arith.truncf %81 : vector<32x32xf32> to vector<32x32xbf16>
    %cst_22 = arith.constant dense<0.000000e+00> : vector<16x32xf32>
    %84 = tpu.matmul %82, %83, %cst_22 {dimension_numbers = #tpu.dot_dimension_numbers<[1], [0], [0], [1], [0, 0, 1, 1], [], []>} : vector<16x32xbf16>, vector<32x32xbf16>, vector<16x32xf32> -> vector<16x32xf32>
    %85 = arith.addf %31, %84 : vector<16x32xf32>
    %c0_23 = arith.constant 0 : index
    %c0_24 = arith.constant 0 : index
    %c0_25 = arith.constant 0 : index
    %86 = vector.load %arg4[%c0_23, %c0_24, %c0_25] : memref<2x2x32xf32, #tpu.memory_space<vmem>>, vector<1x2x32xf32>
    %87 = vector.shape_cast %86 : vector<1x2x32xf32> to vector<2x32xf32>
    %c0_26 = arith.constant 0 : index
    %c0_27 = arith.constant 0 : index
    %c0_28 = arith.constant 0 : index
    %88 = vector.load %arg5[%c0_26, %c0_27, %c0_28] : memref<2x2x32xf32, #tpu.memory_space<vmem>>, vector<1x2x32xf32>
    %89 = vector.shape_cast %88 : vector<1x2x32xf32> to vector<2x32xf32>
    %90 = vector.extract_strided_slice %87 {offsets = [0, 0], sizes = [1, 32], strides = [1, 1]} : vector<2x32xf32> to vector<1x32xf32>
    %91 = vector.extract_strided_slice %89 {offsets = [0, 0], sizes = [1, 32], strides = [1, 1]} : vector<2x32xf32> to vector<1x32xf32>
    %cst_29 = arith.constant dense<0.000000e+00> : vector<32xf32>
    %92 = vector.multi_reduction <add>, %85, %cst_29 [0] : vector<16x32xf32> to vector<32xf32>
    %93 = vector.shape_cast %92 : vector<32xf32> to vector<1x32xf32>
    %cst_30 = arith.constant 1.600000e+01 : f32
    %94 = vector.broadcast %cst_30 : f32 to vector<1x32xf32>
    %95 = arith.divf %93, %94 : vector<1x32xf32>
    %96 = vector.broadcast %95 : vector<1x32xf32> to vector<16x32xf32>
    %97 = arith.subf %85, %96 : vector<16x32xf32>
    %98 = arith.mulf %97, %97 : vector<16x32xf32>
    %cst_31 = arith.constant dense<0.000000e+00> : vector<32xf32>
    %99 = vector.multi_reduction <add>, %98, %cst_31 [0] : vector<16x32xf32> to vector<32xf32>
    %100 = vector.shape_cast %99 : vector<32xf32> to vector<1x32xf32>
    %cst_32 = arith.constant 1.600000e+01 : f32
    %101 = vector.broadcast %cst_32 : f32 to vector<1x32xf32>
    %102 = arith.divf %100, %101 : vector<1x32xf32>
    %cst_33 = arith.constant 9.99999974E-6 : f32
    %103 = vector.broadcast %cst_33 : f32 to vector<1x32xf32>
    %104 = arith.addf %102, %103 : vector<1x32xf32>
    %105 = math.rsqrt %104 : vector<1x32xf32>
    %106 = vector.broadcast %105 : vector<1x32xf32> to vector<16x32xf32>
    %107 = arith.mulf %97, %106 : vector<16x32xf32>
    %108 = vector.broadcast %90 : vector<1x32xf32> to vector<16x32xf32>
    %109 = arith.mulf %107, %108 : vector<16x32xf32>
    %110 = vector.broadcast %91 : vector<1x32xf32> to vector<16x32xf32>
    %111 = arith.addf %109, %110 : vector<16x32xf32>
    %c0_34 = arith.constant 0 : index
    %c0_35 = arith.constant 0 : index
    %c0_36 = arith.constant 0 : index
    %112 = vector.load %arg6[%c0_34, %c0_35, %c0_36] : memref<2x32x512xf32, #tpu.memory_space<vmem>>, vector<1x32x512xf32>
    %113 = vector.shape_cast %112 : vector<1x32x512xf32> to vector<32x512xf32>
    %114 = arith.truncf %111 : vector<16x32xf32> to vector<16x32xbf16>
    %115 = arith.truncf %113 : vector<32x512xf32> to vector<32x512xbf16>
    %cst_37 = arith.constant dense<0.000000e+00> : vector<16x512xf32>
    %116 = tpu.matmul %114, %115, %cst_37 {dimension_numbers = #tpu.dot_dimension_numbers<[1], [0], [0], [1], [0, 0, 1, 1], [], []>} : vector<16x32xbf16>, vector<32x512xbf16>, vector<16x512xf32> -> vector<16x512xf32>
    %c0_38 = arith.constant 0 : index
    %c0_39 = arith.constant 0 : index
    %c0_40 = arith.constant 0 : index
    %117 = vector.load %arg7[%c0_38, %c0_39, %c0_40] : memref<2x1x512xf32, #tpu.memory_space<vmem>>, vector<1x1x512xf32>
    %118 = vector.shape_cast %117 : vector<1x1x512xf32> to vector<1x512xf32>
    %119 = vector.broadcast %118 : vector<1x512xf32> to vector<16x512xf32>
    %120 = arith.addf %116, %119 : vector<16x512xf32>
    %cst_41 = arith.constant 0.000000e+00 : f32
    %121 = vector.broadcast %cst_41 : f32 to vector<16x512xf32>
    %122 = arith.maximumf %120, %121 : vector<16x512xf32>
    %c0_42 = arith.constant 0 : index
    %c0_43 = arith.constant 0 : index
    %c0_44 = arith.constant 0 : index
    %123 = vector.load %arg8[%c0_42, %c0_43, %c0_44] : memref<2x512x32xf32, #tpu.memory_space<vmem>>, vector<1x512x32xf32>
    %124 = vector.shape_cast %123 : vector<1x512x32xf32> to vector<512x32xf32>
    %125 = arith.truncf %122 : vector<16x512xf32> to vector<16x512xbf16>
    %126 = arith.truncf %124 : vector<512x32xf32> to vector<512x32xbf16>
    %cst_45 = arith.constant dense<0.000000e+00> : vector<16x32xf32>
    %127 = tpu.matmul %125, %126, %cst_45 {dimension_numbers = #tpu.dot_dimension_numbers<[1], [0], [0], [1], [0, 0, 1, 1], [], []>} : vector<16x512xbf16>, vector<512x32xbf16>, vector<16x32xf32> -> vector<16x32xf32>
    %c0_46 = arith.constant 0 : index
    %c0_47 = arith.constant 0 : index
    %c0_48 = arith.constant 0 : index
    %128 = vector.load %arg9[%c0_46, %c0_47, %c0_48] : memref<2x1x32xf32, #tpu.memory_space<vmem>>, vector<1x1x32xf32>
    %129 = vector.shape_cast %128 : vector<1x1x32xf32> to vector<1x32xf32>
    %130 = vector.broadcast %129 : vector<1x32xf32> to vector<16x32xf32>
    %131 = arith.addf %127, %130 : vector<16x32xf32>
    %132 = arith.addf %111, %131 : vector<16x32xf32>
    %133 = vector.extract_strided_slice %87 {offsets = [1, 0], sizes = [1, 32], strides = [1, 1]} : vector<2x32xf32> to vector<1x32xf32>
    %134 = vector.extract_strided_slice %89 {offsets = [1, 0], sizes = [1, 32], strides = [1, 1]} : vector<2x32xf32> to vector<1x32xf32>
    %cst_49 = arith.constant dense<0.000000e+00> : vector<32xf32>
    %135 = vector.multi_reduction <add>, %132, %cst_49 [0] : vector<16x32xf32> to vector<32xf32>
    %136 = vector.shape_cast %135 : vector<32xf32> to vector<1x32xf32>
    %cst_50 = arith.constant 1.600000e+01 : f32
    %137 = vector.broadcast %cst_50 : f32 to vector<1x32xf32>
    %138 = arith.divf %136, %137 : vector<1x32xf32>
    %139 = vector.broadcast %138 : vector<1x32xf32> to vector<16x32xf32>
    %140 = arith.subf %132, %139 : vector<16x32xf32>
    %141 = arith.mulf %140, %140 : vector<16x32xf32>
    %cst_51 = arith.constant dense<0.000000e+00> : vector<32xf32>
    %142 = vector.multi_reduction <add>, %141, %cst_51 [0] : vector<16x32xf32> to vector<32xf32>
    %143 = vector.shape_cast %142 : vector<32xf32> to vector<1x32xf32>
    %cst_52 = arith.constant 1.600000e+01 : f32
    %144 = vector.broadcast %cst_52 : f32 to vector<1x32xf32>
    %145 = arith.divf %143, %144 : vector<1x32xf32>
    %cst_53 = arith.constant 9.99999974E-6 : f32
    %146 = vector.broadcast %cst_53 : f32 to vector<1x32xf32>
    %147 = arith.addf %145, %146 : vector<1x32xf32>
    %148 = math.rsqrt %147 : vector<1x32xf32>
    %149 = vector.broadcast %148 : vector<1x32xf32> to vector<16x32xf32>
    %150 = arith.mulf %140, %149 : vector<16x32xf32>
    %151 = vector.broadcast %133 : vector<1x32xf32> to vector<16x32xf32>
    %152 = arith.mulf %150, %151 : vector<16x32xf32>
    %153 = vector.broadcast %134 : vector<1x32xf32> to vector<16x32xf32>
    %154 = arith.addf %152, %153 : vector<16x32xf32>
    %c1 = arith.constant 1 : index
    %c0_54 = arith.constant 0 : index
    %c0_55 = arith.constant 0 : index
    %c0_56 = arith.constant 0 : index
    %155 = vector.load %arg3[%c1, %c0_54, %c0_55, %c0_56] : memref<2x4x32x32xf32, #tpu.memory_space<vmem>>, vector<1x4x32x32xf32>
    %156 = vector.shape_cast %155 : vector<1x4x32x32xf32> to vector<4x32x32xf32>
    %157 = vector.extract_strided_slice %156 {offsets = [0, 0, 0], sizes = [1, 32, 32], strides = [1, 1, 1]} : vector<4x32x32xf32> to vector<1x32x32xf32>
    %158 = vector.shape_cast %157 : vector<1x32x32xf32> to vector<32x32xf32>
    %159 = arith.truncf %154 : vector<16x32xf32> to vector<16x32xbf16>
    %160 = arith.truncf %158 : vector<32x32xf32> to vector<32x32xbf16>
    %cst_57 = arith.constant dense<0.000000e+00> : vector<16x32xf32>
    %161 = tpu.matmul %159, %160, %cst_57 {dimension_numbers = #tpu.dot_dimension_numbers<[1], [0], [0], [1], [0, 0, 1, 1], [], []>} : vector<16x32xbf16>, vector<32x32xbf16>, vector<16x32xf32> -> vector<16x32xf32>
    %cst_58 = arith.constant 5.000000e-01 : f32
    %162 = vector.broadcast %cst_58 : f32 to vector<16x32xf32>
    %163 = arith.mulf %161, %162 : vector<16x32xf32>
    %164 = vector.extract_strided_slice %156 {offsets = [1, 0, 0], sizes = [1, 32, 32], strides = [1, 1, 1]} : vector<4x32x32xf32> to vector<1x32x32xf32>
    %165 = vector.shape_cast %164 : vector<1x32x32xf32> to vector<32x32xf32>
    %166 = arith.truncf %154 : vector<16x32xf32> to vector<16x32xbf16>
    %167 = arith.truncf %165 : vector<32x32xf32> to vector<32x32xbf16>
    %cst_59 = arith.constant dense<0.000000e+00> : vector<16x32xf32>
    %168 = tpu.matmul %166, %167, %cst_59 {dimension_numbers = #tpu.dot_dimension_numbers<[1], [0], [0], [1], [0, 0, 1, 1], [], []>} : vector<16x32xbf16>, vector<32x32xbf16>, vector<16x32xf32> -> vector<16x32xf32>
    %169 = vector.extract_strided_slice %156 {offsets = [2, 0, 0], sizes = [1, 32, 32], strides = [1, 1, 1]} : vector<4x32x32xf32> to vector<1x32x32xf32>
    %170 = vector.shape_cast %169 : vector<1x32x32xf32> to vector<32x32xf32>
    %171 = arith.truncf %154 : vector<16x32xf32> to vector<16x32xbf16>
    %172 = arith.truncf %170 : vector<32x32xf32> to vector<32x32xbf16>
    %cst_60 = arith.constant dense<0.000000e+00> : vector<16x32xf32>
    %173 = tpu.matmul %171, %172, %cst_60 {dimension_numbers = #tpu.dot_dimension_numbers<[1], [0], [0], [1], [0, 0, 1, 1], [], []>} : vector<16x32xbf16>, vector<32x32xbf16>, vector<16x32xf32> -> vector<16x32xf32>
    %174 = vector.shape_cast %163 : vector<16x32xf32> to vector<2x8x32xf32>
    %175 = vector.shape_cast %168 : vector<16x32xf32> to vector<2x8x32xf32>
    %176 = vector.shape_cast %173 : vector<16x32xf32> to vector<2x8x32xf32>
    %177 = vector.shape_cast %174 : vector<2x8x32xf32> to vector<2x8x1x32xf32>
    %178 = vector.shape_cast %175 : vector<2x8x32xf32> to vector<2x1x8x32xf32>
    %179 = vector.broadcast %177 : vector<2x8x1x32xf32> to vector<2x8x8x32xf32>
    %180 = vector.broadcast %178 : vector<2x1x8x32xf32> to vector<2x8x8x32xf32>
    %181 = arith.mulf %179, %180 : vector<2x8x8x32xf32>
    %182 = vector.shape_cast %181 : vector<2x8x8x32xf32> to vector<128x32xf32>
    %cst_61 = arith.constant dense<0.000000e+00> : vector<128x8xf32>
    %183 = tpu.matmul %182, %12, %cst_61 {dimension_numbers = #tpu.dot_dimension_numbers<[1], [0], [0], [1], [0, 0, 1, 1], [], []>} : vector<128x32xf32>, vector<32x8xf32>, vector<128x8xf32> -> vector<128x8xf32>
    %184 = vector.shape_cast %183 : vector<128x8xf32> to vector<2x8x8x8xf32>
    %cst_62 = arith.constant dense<0xFF800000> : vector<2x8x8xf32>
    %185 = vector.multi_reduction <maximumf>, %184, %cst_62 [2] : vector<2x8x8x8xf32> to vector<2x8x8xf32>
    %186 = vector.shape_cast %185 : vector<2x8x8xf32> to vector<2x8x1x8xf32>
    %187 = vector.broadcast %186 : vector<2x8x1x8xf32> to vector<2x8x8x8xf32>
    %188 = arith.subf %184, %187 : vector<2x8x8x8xf32>
    %189 = math.exp %188 : vector<2x8x8x8xf32>
    %cst_63 = arith.constant dense<0.000000e+00> : vector<2x8x8xf32>
    %190 = vector.multi_reduction <add>, %189, %cst_63 [2] : vector<2x8x8x8xf32> to vector<2x8x8xf32>
    %191 = vector.shape_cast %190 : vector<2x8x8xf32> to vector<2x8x1x8xf32>
    %192 = tpu.reciprocal %191 {approx = true} : vector<2x8x1x8xf32> -> vector<2x8x1x8xf32>
    %193 = vector.broadcast %192 : vector<2x8x1x8xf32> to vector<2x8x8x8xf32>
    %194 = arith.mulf %189, %193 : vector<2x8x8x8xf32>
    %195 = vector.shape_cast %194 : vector<2x8x8x8xf32> to vector<128x8xf32>
    %cst_64 = arith.constant dense<0.000000e+00> : vector<128x32xf32>
    %196 = tpu.matmul %195, %25, %cst_64 {dimension_numbers = #tpu.dot_dimension_numbers<[1], [0], [0], [1], [0, 0, 1, 1], [], []>} : vector<128x8xf32>, vector<8x32xf32>, vector<128x32xf32> -> vector<128x32xf32>
    %197 = vector.shape_cast %196 : vector<128x32xf32> to vector<2x8x8x32xf32>
    %198 = vector.shape_cast %176 : vector<2x8x32xf32> to vector<2x1x8x32xf32>
    %199 = vector.broadcast %198 : vector<2x1x8x32xf32> to vector<2x8x8x32xf32>
    %200 = arith.mulf %197, %199 : vector<2x8x8x32xf32>
    %cst_65 = arith.constant dense<0.000000e+00> : vector<2x8x32xf32>
    %201 = vector.multi_reduction <add>, %200, %cst_65 [2] : vector<2x8x8x32xf32> to vector<2x8x32xf32>
    %202 = vector.shape_cast %201 : vector<2x8x32xf32> to vector<16x32xf32>
    %203 = vector.extract_strided_slice %156 {offsets = [3, 0, 0], sizes = [1, 32, 32], strides = [1, 1, 1]} : vector<4x32x32xf32> to vector<1x32x32xf32>
    %204 = vector.shape_cast %203 : vector<1x32x32xf32> to vector<32x32xf32>
    %205 = arith.truncf %202 : vector<16x32xf32> to vector<16x32xbf16>
    %206 = arith.truncf %204 : vector<32x32xf32> to vector<32x32xbf16>
    %cst_66 = arith.constant dense<0.000000e+00> : vector<16x32xf32>
    %207 = tpu.matmul %205, %206, %cst_66 {dimension_numbers = #tpu.dot_dimension_numbers<[1], [0], [0], [1], [0, 0, 1, 1], [], []>} : vector<16x32xbf16>, vector<32x32xbf16>, vector<16x32xf32> -> vector<16x32xf32>
    %208 = arith.addf %154, %207 : vector<16x32xf32>
    %c1_67 = arith.constant 1 : index
    %c0_68 = arith.constant 0 : index
    %c0_69 = arith.constant 0 : index
    %209 = vector.load %arg4[%c1_67, %c0_68, %c0_69] : memref<2x2x32xf32, #tpu.memory_space<vmem>>, vector<1x2x32xf32>
    %210 = vector.shape_cast %209 : vector<1x2x32xf32> to vector<2x32xf32>
    %c1_70 = arith.constant 1 : index
    %c0_71 = arith.constant 0 : index
    %c0_72 = arith.constant 0 : index
    %211 = vector.load %arg5[%c1_70, %c0_71, %c0_72] : memref<2x2x32xf32, #tpu.memory_space<vmem>>, vector<1x2x32xf32>
    %212 = vector.shape_cast %211 : vector<1x2x32xf32> to vector<2x32xf32>
    %213 = vector.extract_strided_slice %210 {offsets = [0, 0], sizes = [1, 32], strides = [1, 1]} : vector<2x32xf32> to vector<1x32xf32>
    %214 = vector.extract_strided_slice %212 {offsets = [0, 0], sizes = [1, 32], strides = [1, 1]} : vector<2x32xf32> to vector<1x32xf32>
    %cst_73 = arith.constant dense<0.000000e+00> : vector<32xf32>
    %215 = vector.multi_reduction <add>, %208, %cst_73 [0] : vector<16x32xf32> to vector<32xf32>
    %216 = vector.shape_cast %215 : vector<32xf32> to vector<1x32xf32>
    %cst_74 = arith.constant 1.600000e+01 : f32
    %217 = vector.broadcast %cst_74 : f32 to vector<1x32xf32>
    %218 = arith.divf %216, %217 : vector<1x32xf32>
    %219 = vector.broadcast %218 : vector<1x32xf32> to vector<16x32xf32>
    %220 = arith.subf %208, %219 : vector<16x32xf32>
    %221 = arith.mulf %220, %220 : vector<16x32xf32>
    %cst_75 = arith.constant dense<0.000000e+00> : vector<32xf32>
    %222 = vector.multi_reduction <add>, %221, %cst_75 [0] : vector<16x32xf32> to vector<32xf32>
    %223 = vector.shape_cast %222 : vector<32xf32> to vector<1x32xf32>
    %cst_76 = arith.constant 1.600000e+01 : f32
    %224 = vector.broadcast %cst_76 : f32 to vector<1x32xf32>
    %225 = arith.divf %223, %224 : vector<1x32xf32>
    %cst_77 = arith.constant 9.99999974E-6 : f32
    %226 = vector.broadcast %cst_77 : f32 to vector<1x32xf32>
    %227 = arith.addf %225, %226 : vector<1x32xf32>
    %228 = math.rsqrt %227 : vector<1x32xf32>
    %229 = vector.broadcast %228 : vector<1x32xf32> to vector<16x32xf32>
    %230 = arith.mulf %220, %229 : vector<16x32xf32>
    %231 = vector.broadcast %213 : vector<1x32xf32> to vector<16x32xf32>
    %232 = arith.mulf %230, %231 : vector<16x32xf32>
    %233 = vector.broadcast %214 : vector<1x32xf32> to vector<16x32xf32>
    %234 = arith.addf %232, %233 : vector<16x32xf32>
    %c1_78 = arith.constant 1 : index
    %c0_79 = arith.constant 0 : index
    %c0_80 = arith.constant 0 : index
    %235 = vector.load %arg6[%c1_78, %c0_79, %c0_80] : memref<2x32x512xf32, #tpu.memory_space<vmem>>, vector<1x32x512xf32>
    %236 = vector.shape_cast %235 : vector<1x32x512xf32> to vector<32x512xf32>
    %237 = arith.truncf %234 : vector<16x32xf32> to vector<16x32xbf16>
    %238 = arith.truncf %236 : vector<32x512xf32> to vector<32x512xbf16>
    %cst_81 = arith.constant dense<0.000000e+00> : vector<16x512xf32>
    %239 = tpu.matmul %237, %238, %cst_81 {dimension_numbers = #tpu.dot_dimension_numbers<[1], [0], [0], [1], [0, 0, 1, 1], [], []>} : vector<16x32xbf16>, vector<32x512xbf16>, vector<16x512xf32> -> vector<16x512xf32>
    %c1_82 = arith.constant 1 : index
    %c0_83 = arith.constant 0 : index
    %c0_84 = arith.constant 0 : index
    %240 = vector.load %arg7[%c1_82, %c0_83, %c0_84] : memref<2x1x512xf32, #tpu.memory_space<vmem>>, vector<1x1x512xf32>
    %241 = vector.shape_cast %240 : vector<1x1x512xf32> to vector<1x512xf32>
    %242 = vector.broadcast %241 : vector<1x512xf32> to vector<16x512xf32>
    %243 = arith.addf %239, %242 : vector<16x512xf32>
    %cst_85 = arith.constant 0.000000e+00 : f32
    %244 = vector.broadcast %cst_85 : f32 to vector<16x512xf32>
    %245 = arith.maximumf %243, %244 : vector<16x512xf32>
    %c1_86 = arith.constant 1 : index
    %c0_87 = arith.constant 0 : index
    %c0_88 = arith.constant 0 : index
    %246 = vector.load %arg8[%c1_86, %c0_87, %c0_88] : memref<2x512x32xf32, #tpu.memory_space<vmem>>, vector<1x512x32xf32>
    %247 = vector.shape_cast %246 : vector<1x512x32xf32> to vector<512x32xf32>
    %248 = arith.truncf %245 : vector<16x512xf32> to vector<16x512xbf16>
    %249 = arith.truncf %247 : vector<512x32xf32> to vector<512x32xbf16>
    %cst_89 = arith.constant dense<0.000000e+00> : vector<16x32xf32>
    %250 = tpu.matmul %248, %249, %cst_89 {dimension_numbers = #tpu.dot_dimension_numbers<[1], [0], [0], [1], [0, 0, 1, 1], [], []>} : vector<16x512xbf16>, vector<512x32xbf16>, vector<16x32xf32> -> vector<16x32xf32>
    %c1_90 = arith.constant 1 : index
    %c0_91 = arith.constant 0 : index
    %c0_92 = arith.constant 0 : index
    %251 = vector.load %arg9[%c1_90, %c0_91, %c0_92] : memref<2x1x32xf32, #tpu.memory_space<vmem>>, vector<1x1x32xf32>
    %252 = vector.shape_cast %251 : vector<1x1x32xf32> to vector<1x32xf32>
    %253 = vector.broadcast %252 : vector<1x32xf32> to vector<16x32xf32>
    %254 = arith.addf %250, %253 : vector<16x32xf32>
    %255 = arith.addf %234, %254 : vector<16x32xf32>
    %256 = vector.extract_strided_slice %210 {offsets = [1, 0], sizes = [1, 32], strides = [1, 1]} : vector<2x32xf32> to vector<1x32xf32>
    %257 = vector.extract_strided_slice %212 {offsets = [1, 0], sizes = [1, 32], strides = [1, 1]} : vector<2x32xf32> to vector<1x32xf32>
    %cst_93 = arith.constant dense<0.000000e+00> : vector<32xf32>
    %258 = vector.multi_reduction <add>, %255, %cst_93 [0] : vector<16x32xf32> to vector<32xf32>
    %259 = vector.shape_cast %258 : vector<32xf32> to vector<1x32xf32>
    %cst_94 = arith.constant 1.600000e+01 : f32
    %260 = vector.broadcast %cst_94 : f32 to vector<1x32xf32>
    %261 = arith.divf %259, %260 : vector<1x32xf32>
    %262 = vector.broadcast %261 : vector<1x32xf32> to vector<16x32xf32>
    %263 = arith.subf %255, %262 : vector<16x32xf32>
    %264 = arith.mulf %263, %263 : vector<16x32xf32>
    %cst_95 = arith.constant dense<0.000000e+00> : vector<32xf32>
    %265 = vector.multi_reduction <add>, %264, %cst_95 [0] : vector<16x32xf32> to vector<32xf32>
    %266 = vector.shape_cast %265 : vector<32xf32> to vector<1x32xf32>
    %cst_96 = arith.constant 1.600000e+01 : f32
    %267 = vector.broadcast %cst_96 : f32 to vector<1x32xf32>
    %268 = arith.divf %266, %267 : vector<1x32xf32>
    %cst_97 = arith.constant 9.99999974E-6 : f32
    %269 = vector.broadcast %cst_97 : f32 to vector<1x32xf32>
    %270 = arith.addf %268, %269 : vector<1x32xf32>
    %271 = math.rsqrt %270 : vector<1x32xf32>
    %272 = vector.broadcast %271 : vector<1x32xf32> to vector<16x32xf32>
    %273 = arith.mulf %263, %272 : vector<16x32xf32>
    %274 = vector.broadcast %256 : vector<1x32xf32> to vector<16x32xf32>
    %275 = arith.mulf %273, %274 : vector<16x32xf32>
    %276 = vector.broadcast %257 : vector<1x32xf32> to vector<16x32xf32>
    %277 = arith.addf %275, %276 : vector<16x32xf32>
    %278 = vector.shape_cast %277 : vector<16x32xf32> to vector<2x8x32xf32>
    %cst_98 = arith.constant dense<0.000000e+00> : vector<2x32xf32>
    %279 = vector.multi_reduction <add>, %278, %cst_98 [1] : vector<2x8x32xf32> to vector<2x32xf32>
    %cst_99 = arith.constant 8.000000e+00 : f32
    %280 = vector.broadcast %cst_99 : f32 to vector<2x32xf32>
    %281 = arith.divf %279, %280 : vector<2x32xf32>
    %c0_100 = arith.constant 0 : index
    %c0_101 = arith.constant 0 : index
    %282 = vector.load %arg12[%c0_100, %c0_101] : memref<32x32xf32, #tpu.memory_space<vmem>>, vector<32x32xf32>
    %283 = arith.truncf %281 : vector<2x32xf32> to vector<2x32xbf16>
    %284 = arith.truncf %282 : vector<32x32xf32> to vector<32x32xbf16>
    %cst_102 = arith.constant dense<0.000000e+00> : vector<2x32xf32>
    %285 = tpu.matmul %283, %284, %cst_102 {dimension_numbers = #tpu.dot_dimension_numbers<[1], [0], [0], [1], [0, 0, 1, 1], [], []>} : vector<2x32xbf16>, vector<32x32xbf16>, vector<2x32xf32> -> vector<2x32xf32>
    %c0_103 = arith.constant 0 : index
    %c0_104 = arith.constant 0 : index
    %286 = vector.load %arg11[%c0_103, %c0_104] : memref<32x96xf32, #tpu.memory_space<vmem>>, vector<32x96xf32>
    %287 = arith.truncf %277 : vector<16x32xf32> to vector<16x32xbf16>
    %288 = arith.truncf %286 : vector<32x96xf32> to vector<32x96xbf16>
    %cst_105 = arith.constant dense<0.000000e+00> : vector<16x96xf32>
    %289 = tpu.matmul %287, %288, %cst_105 {dimension_numbers = #tpu.dot_dimension_numbers<[1], [0], [0], [1], [0, 0, 1, 1], [], []>} : vector<16x32xbf16>, vector<32x96xbf16>, vector<16x96xf32> -> vector<16x96xf32>
    %290 = vector.extract_strided_slice %289 {offsets = [0, 0], sizes = [16, 32], strides = [1, 1]} : vector<16x96xf32> to vector<16x32xf32>
    %291 = vector.shape_cast %290 : vector<16x32xf32> to vector<2x8x32xf32>
    %292 = vector.extract_strided_slice %289 {offsets = [0, 32], sizes = [16, 32], strides = [1, 1]} : vector<16x96xf32> to vector<16x32xf32>
    %293 = vector.shape_cast %292 : vector<16x32xf32> to vector<2x8x32xf32>
    %294 = vector.extract_strided_slice %289 {offsets = [0, 64], sizes = [16, 32], strides = [1, 1]} : vector<16x96xf32> to vector<16x32xf32>
    %295 = vector.shape_cast %294 : vector<16x32xf32> to vector<2x8x32xf32>
    %296 = tpu.iota {dimensions = array<i32: 1>} : vector<2x8x1xi32>
    %cst_106 = arith.constant 0.000000e+00 : f32
    %297 = vector.broadcast %cst_106 : f32 to vector<2x8x1xf32>
    %cst_107 = arith.constant 0.000000e+00 : f32
    %298 = vector.broadcast %cst_107 : f32 to vector<2x8x1xf32>
    %c0_i32 = arith.constant 0 : i32
    %299 = vector.broadcast %c0_i32 : i32 to vector<2x8x1xi32>
    %c0_108 = arith.constant 0 : index
    %c0_109 = arith.constant 0 : index
    %300 = vector.load %arg10[%c0_108, %c0_109] : memref<1x64xf32, #tpu.memory_space<vmem>>, vector<1x64xf32>
    %301 = vector.shape_cast %300 : vector<1x64xf32> to vector<1x64xf32>
    %302 = vector.broadcast %301 : vector<1x64xf32> to vector<2x64xf32>
    %c0_110 = arith.constant 0 : index
    %c0_111 = arith.constant 0 : index
    %303 = vector.load %arg13[%c0_110, %c0_111] : memref<64x32xf32, #tpu.memory_space<vmem>>, vector<64x32xf32>
    %304 = arith.truncf %302 : vector<2x64xf32> to vector<2x64xbf16>
    %305 = arith.truncf %303 : vector<64x32xf32> to vector<64x32xbf16>
    %cst_112 = arith.constant dense<0.000000e+00> : vector<2x32xf32>
    %306 = tpu.matmul %304, %305, %cst_112 {dimension_numbers = #tpu.dot_dimension_numbers<[1], [0], [0], [1], [0, 0, 1, 1], [], []>} : vector<2x64xbf16>, vector<64x32xbf16>, vector<2x32xf32> -> vector<2x32xf32>
    %307 = arith.addf %285, %306 : vector<2x32xf32>
    %cst_113 = arith.constant 5.000000e-01 : f32
    %308 = vector.broadcast %cst_113 : f32 to vector<2x32xf32>
    %309 = arith.mulf %307, %308 : vector<2x32xf32>
    %310 = vector.shape_cast %309 : vector<2x32xf32> to vector<2x1x32xf32>
    %311 = vector.broadcast %310 : vector<2x1x32xf32> to vector<2x8x32xf32>
    %312 = arith.mulf %311, %291 : vector<2x8x32xf32>
    %313 = vector.shape_cast %312 : vector<2x8x32xf32> to vector<16x32xf32>
    %cst_114 = arith.constant dense<0.000000e+00> : vector<16x8xf32>
    %314 = tpu.matmul %313, %12, %cst_114 {dimension_numbers = #tpu.dot_dimension_numbers<[1], [0], [0], [1], [0, 0, 1, 1], [], []>} : vector<16x32xf32>, vector<32x8xf32>, vector<16x8xf32> -> vector<16x8xf32>
    %315 = vector.shape_cast %314 : vector<16x8xf32> to vector<2x8x8xf32>
    %cst_115 = arith.constant -1.000000e+09 : f32
    %316 = vector.broadcast %cst_115 : f32 to vector<2x8x1xf32>
    %317 = arith.mulf %297, %316 : vector<2x8x1xf32>
    %318 = vector.broadcast %317 : vector<2x8x1xf32> to vector<2x8x8xf32>
    %319 = arith.addf %315, %318 : vector<2x8x8xf32>
    %cst_116 = arith.constant dense<0xFF800000> : vector<2x8xf32>
    %320 = vector.multi_reduction <maximumf>, %319, %cst_116 [1] : vector<2x8x8xf32> to vector<2x8xf32>
    %321 = vector.shape_cast %320 : vector<2x8xf32> to vector<2x1x8xf32>
    %322 = vector.broadcast %321 : vector<2x1x8xf32> to vector<2x8x8xf32>
    %323 = arith.subf %319, %322 : vector<2x8x8xf32>
    %324 = math.exp %323 : vector<2x8x8xf32>
    %cst_117 = arith.constant dense<0.000000e+00> : vector<2x8xf32>
    %325 = vector.multi_reduction <add>, %324, %cst_117 [1] : vector<2x8x8xf32> to vector<2x8xf32>
    %326 = vector.shape_cast %325 : vector<2x8xf32> to vector<2x1x8xf32>
    %327 = tpu.reciprocal %326 {approx = true} : vector<2x1x8xf32> -> vector<2x1x8xf32>
    %328 = vector.broadcast %327 : vector<2x1x8xf32> to vector<2x8x8xf32>
    %329 = arith.mulf %324, %328 : vector<2x8x8xf32>
    %330 = vector.shape_cast %329 : vector<2x8x8xf32> to vector<16x8xf32>
    %cst_118 = arith.constant dense<0.000000e+00> : vector<16x32xf32>
    %331 = tpu.matmul %330, %25, %cst_118 {dimension_numbers = #tpu.dot_dimension_numbers<[1], [0], [0], [1], [0, 0, 1, 1], [], []>} : vector<16x8xf32>, vector<8x32xf32>, vector<16x32xf32> -> vector<16x32xf32>
    %332 = vector.shape_cast %331 : vector<16x32xf32> to vector<2x8x32xf32>
    %333 = arith.mulf %332, %293 : vector<2x8x32xf32>
    %cst_119 = arith.constant dense<0.000000e+00> : vector<2x32xf32>
    %334 = vector.multi_reduction <add>, %333, %cst_119 [1] : vector<2x8x32xf32> to vector<2x32xf32>
    %c0_120 = arith.constant 0 : index
    %c0_121 = arith.constant 0 : index
    %335 = vector.load %arg14[%c0_120, %c0_121] : memref<32x32xf32, #tpu.memory_space<vmem>>, vector<32x32xf32>
    %336 = arith.truncf %334 : vector<2x32xf32> to vector<2x32xbf16>
    %337 = arith.truncf %335 : vector<32x32xf32> to vector<32x32xbf16>
    %cst_122 = arith.constant dense<0.000000e+00> : vector<2x32xf32>
    %338 = tpu.matmul %336, %337, %cst_122 {dimension_numbers = #tpu.dot_dimension_numbers<[1], [0], [0], [1], [0, 0, 1, 1], [], []>} : vector<2x32xbf16>, vector<32x32xbf16>, vector<2x32xf32> -> vector<2x32xf32>
    %339 = vector.shape_cast %338 : vector<2x32xf32> to vector<2x1x32xf32>
    %340 = vector.broadcast %339 : vector<2x1x32xf32> to vector<2x8x32xf32>
    %341 = arith.mulf %340, %295 : vector<2x8x32xf32>
    %cst_123 = arith.constant dense<0.000000e+00> : vector<2x8xf32>
    %342 = vector.multi_reduction <add>, %341, %cst_123 [2] : vector<2x8x32xf32> to vector<2x8xf32>
    %343 = vector.shape_cast %342 : vector<2x8xf32> to vector<2x8x1xf32>
    %cst_124 = arith.constant 0.176776692 : f32
    %344 = vector.broadcast %cst_124 : f32 to vector<2x8x1xf32>
    %345 = arith.mulf %343, %344 : vector<2x8x1xf32>
    %346 = math.tanh %345 : vector<2x8x1xf32>
    %cst_125 = arith.constant 1.000000e+01 : f32
    %347 = vector.broadcast %cst_125 : f32 to vector<2x8x1xf32>
    %348 = arith.mulf %346, %347 : vector<2x8x1xf32>
    %cst_126 = arith.constant -1.000000e+09 : f32
    %349 = vector.broadcast %cst_126 : f32 to vector<2x8x1xf32>
    %350 = arith.mulf %297, %349 : vector<2x8x1xf32>
    %351 = arith.addf %348, %350 : vector<2x8x1xf32>
    %cst_127 = arith.constant 1.000000e+00 : f32
    %352 = vector.broadcast %cst_127 : f32 to vector<2x8x1xf32>
    %353 = arith.mulf %351, %352 : vector<2x8x1xf32>
    %cst_128 = arith.constant dense<0xFF800000> : vector<2x1xf32>
    %354 = vector.multi_reduction <maximumf>, %353, %cst_128 [1] : vector<2x8x1xf32> to vector<2x1xf32>
    %355 = vector.shape_cast %354 : vector<2x1xf32> to vector<2x1x1xf32>
    %356 = vector.broadcast %355 : vector<2x1x1xf32> to vector<2x8x1xf32>
    %357 = arith.subf %353, %356 : vector<2x8x1xf32>
    %358 = math.exp %357 : vector<2x8x1xf32>
    %cst_129 = arith.constant dense<0.000000e+00> : vector<2x1xf32>
    %359 = vector.multi_reduction <add>, %358, %cst_129 [1] : vector<2x8x1xf32> to vector<2x1xf32>
    %360 = vector.shape_cast %359 : vector<2x1xf32> to vector<2x1x1xf32>
    %361 = math.log %360 : vector<2x1x1xf32>
    %362 = arith.addf %361, %355 : vector<2x1x1xf32>
    %363 = vector.broadcast %362 : vector<2x1x1xf32> to vector<2x8x1xf32>
    %364 = arith.subf %353, %363 : vector<2x8x1xf32>
    %cst_130 = arith.constant dense<0xFF800000> : vector<2x1xf32>
    %365 = vector.multi_reduction <maximumf>, %364, %cst_130 [1] : vector<2x8x1xf32> to vector<2x1xf32>
    %366 = vector.shape_cast %365 : vector<2x1xf32> to vector<2x1x1xf32>
    %367 = vector.broadcast %366 : vector<2x1x1xf32> to vector<2x8x1xf32>
    %368 = arith.cmpf oge, %364, %367 : vector<2x8x1xf32>
    %c8_i32 = arith.constant 8 : i32
    %369 = vector.broadcast %c8_i32 : i32 to vector<2x8x1xi32>
    %370 = arith.select %368, %296, %369 : vector<2x8x1xi1>, vector<2x8x1xi32>
    %cst_131 = arith.constant dense<2147483647> : vector<2x1xi32>
    %371 = vector.multi_reduction <minsi>, %370, %cst_131 [1] : vector<2x8x1xi32> to vector<2x1xi32>
    %372 = vector.shape_cast %371 : vector<2x1xi32> to vector<2x1x1xi32>
    %373 = vector.broadcast %372 : vector<2x1x1xi32> to vector<2x8x1xi32>
    %374 = arith.cmpi eq, %296, %373 : vector<2x8x1xi32>
    %375 = arith.extui %374 : vector<2x8x1xi1> to vector<2x8x1xi32>
    %376 = arith.sitofp %375 : vector<2x8x1xi32> to vector<2x8x1xf32>
    %377 = arith.mulf %376, %364 : vector<2x8x1xf32>
    %cst_132 = arith.constant dense<0.000000e+00> : vector<2x1xf32>
    %378 = vector.multi_reduction <add>, %377, %cst_132 [1] : vector<2x8x1xf32> to vector<2x1xf32>
    %379 = vector.shape_cast %378 : vector<2x1xf32> to vector<2x1x1xf32>
    %c0_i32_133 = arith.constant 0 : i32
    %380 = vector.broadcast %c0_i32_133 : i32 to vector<2x8x1xi32>
    %381 = arith.cmpi eq, %296, %380 : vector<2x8x1xi32>
    %382 = arith.extui %381 : vector<2x8x1xi1> to vector<2x8x1xi32>
    %383 = arith.sitofp %382 : vector<2x8x1xi32> to vector<2x8x1xf32>
    %384 = vector.broadcast %379 : vector<2x1x1xf32> to vector<2x8x1xf32>
    %385 = arith.mulf %384, %383 : vector<2x8x1xf32>
    %386 = arith.addf %298, %385 : vector<2x8x1xf32>
    %387 = arith.extui %381 : vector<2x8x1xi1> to vector<2x8x1xi32>
    %388 = vector.broadcast %372 : vector<2x1x1xi32> to vector<2x8x1xi32>
    %389 = arith.muli %388, %387 : vector<2x8x1xi32>
    %390 = arith.addi %299, %389 : vector<2x8x1xi32>
    %391 = arith.maximumf %297, %376 : vector<2x8x1xf32>
    %392 = vector.broadcast %376 : vector<2x8x1xf32> to vector<2x8x32xf32>
    %393 = arith.mulf %392, %278 : vector<2x8x32xf32>
    %cst_134 = arith.constant dense<0.000000e+00> : vector<2x32xf32>
    %394 = vector.multi_reduction <add>, %393, %cst_134 [1] : vector<2x8x32xf32> to vector<2x32xf32>
    %395 = vector.broadcast %376 : vector<2x8x1xf32> to vector<2x8x32xf32>
    %396 = arith.mulf %395, %278 : vector<2x8x32xf32>
    %cst_135 = arith.constant dense<0.000000e+00> : vector<2x32xf32>
    %397 = vector.multi_reduction <add>, %396, %cst_135 [1] : vector<2x8x32xf32> to vector<2x32xf32>
    %398 = tpu.concatenate %394, %397 in 1 : vector<2x32xf32>, vector<2x32xf32> -> vector<2x64xf32>
    %c0_136 = arith.constant 0 : index
    %c0_137 = arith.constant 0 : index
    %399 = vector.load %arg13[%c0_136, %c0_137] : memref<64x32xf32, #tpu.memory_space<vmem>>, vector<64x32xf32>
    %400 = arith.truncf %398 : vector<2x64xf32> to vector<2x64xbf16>
    %401 = arith.truncf %399 : vector<64x32xf32> to vector<64x32xbf16>
    %cst_138 = arith.constant dense<0.000000e+00> : vector<2x32xf32>
    %402 = tpu.matmul %400, %401, %cst_138 {dimension_numbers = #tpu.dot_dimension_numbers<[1], [0], [0], [1], [0, 0, 1, 1], [], []>} : vector<2x64xbf16>, vector<64x32xbf16>, vector<2x32xf32> -> vector<2x32xf32>
    %403 = arith.addf %285, %402 : vector<2x32xf32>
    %cst_139 = arith.constant 5.000000e-01 : f32
    %404 = vector.broadcast %cst_139 : f32 to vector<2x32xf32>
    %405 = arith.mulf %403, %404 : vector<2x32xf32>
    %406 = vector.shape_cast %405 : vector<2x32xf32> to vector<2x1x32xf32>
    %407 = vector.broadcast %406 : vector<2x1x32xf32> to vector<2x8x32xf32>
    %408 = arith.mulf %407, %291 : vector<2x8x32xf32>
    %409 = vector.shape_cast %408 : vector<2x8x32xf32> to vector<16x32xf32>
    %cst_140 = arith.constant dense<0.000000e+00> : vector<16x8xf32>
    %410 = tpu.matmul %409, %12, %cst_140 {dimension_numbers = #tpu.dot_dimension_numbers<[1], [0], [0], [1], [0, 0, 1, 1], [], []>} : vector<16x32xf32>, vector<32x8xf32>, vector<16x8xf32> -> vector<16x8xf32>
    %411 = vector.shape_cast %410 : vector<16x8xf32> to vector<2x8x8xf32>
    %cst_141 = arith.constant -1.000000e+09 : f32
    %412 = vector.broadcast %cst_141 : f32 to vector<2x8x1xf32>
    %413 = arith.mulf %391, %412 : vector<2x8x1xf32>
    %414 = vector.broadcast %413 : vector<2x8x1xf32> to vector<2x8x8xf32>
    %415 = arith.addf %411, %414 : vector<2x8x8xf32>
    %cst_142 = arith.constant dense<0xFF800000> : vector<2x8xf32>
    %416 = vector.multi_reduction <maximumf>, %415, %cst_142 [1] : vector<2x8x8xf32> to vector<2x8xf32>
    %417 = vector.shape_cast %416 : vector<2x8xf32> to vector<2x1x8xf32>
    %418 = vector.broadcast %417 : vector<2x1x8xf32> to vector<2x8x8xf32>
    %419 = arith.subf %415, %418 : vector<2x8x8xf32>
    %420 = math.exp %419 : vector<2x8x8xf32>
    %cst_143 = arith.constant dense<0.000000e+00> : vector<2x8xf32>
    %421 = vector.multi_reduction <add>, %420, %cst_143 [1] : vector<2x8x8xf32> to vector<2x8xf32>
    %422 = vector.shape_cast %421 : vector<2x8xf32> to vector<2x1x8xf32>
    %423 = tpu.reciprocal %422 {approx = true} : vector<2x1x8xf32> -> vector<2x1x8xf32>
    %424 = vector.broadcast %423 : vector<2x1x8xf32> to vector<2x8x8xf32>
    %425 = arith.mulf %420, %424 : vector<2x8x8xf32>
    %426 = vector.shape_cast %425 : vector<2x8x8xf32> to vector<16x8xf32>
    %cst_144 = arith.constant dense<0.000000e+00> : vector<16x32xf32>
    %427 = tpu.matmul %426, %25, %cst_144 {dimension_numbers = #tpu.dot_dimension_numbers<[1], [0], [0], [1], [0, 0, 1, 1], [], []>} : vector<16x8xf32>, vector<8x32xf32>, vector<16x32xf32> -> vector<16x32xf32>
    %428 = vector.shape_cast %427 : vector<16x32xf32> to vector<2x8x32xf32>
    %429 = arith.mulf %428, %293 : vector<2x8x32xf32>
    %cst_145 = arith.constant dense<0.000000e+00> : vector<2x32xf32>
    %430 = vector.multi_reduction <add>, %429, %cst_145 [1] : vector<2x8x32xf32> to vector<2x32xf32>
    %c0_146 = arith.constant 0 : index
    %c0_147 = arith.constant 0 : index
    %431 = vector.load %arg14[%c0_146, %c0_147] : memref<32x32xf32, #tpu.memory_space<vmem>>, vector<32x32xf32>
    %432 = arith.truncf %430 : vector<2x32xf32> to vector<2x32xbf16>
    %433 = arith.truncf %431 : vector<32x32xf32> to vector<32x32xbf16>
    %cst_148 = arith.constant dense<0.000000e+00> : vector<2x32xf32>
    %434 = tpu.matmul %432, %433, %cst_148 {dimension_numbers = #tpu.dot_dimension_numbers<[1], [0], [0], [1], [0, 0, 1, 1], [], []>} : vector<2x32xbf16>, vector<32x32xbf16>, vector<2x32xf32> -> vector<2x32xf32>
    %435 = vector.shape_cast %434 : vector<2x32xf32> to vector<2x1x32xf32>
    %436 = vector.broadcast %435 : vector<2x1x32xf32> to vector<2x8x32xf32>
    %437 = arith.mulf %436, %295 : vector<2x8x32xf32>
    %cst_149 = arith.constant dense<0.000000e+00> : vector<2x8xf32>
    %438 = vector.multi_reduction <add>, %437, %cst_149 [2] : vector<2x8x32xf32> to vector<2x8xf32>
    %439 = vector.shape_cast %438 : vector<2x8xf32> to vector<2x8x1xf32>
    %cst_150 = arith.constant 0.176776692 : f32
    %440 = vector.broadcast %cst_150 : f32 to vector<2x8x1xf32>
    %441 = arith.mulf %439, %440 : vector<2x8x1xf32>
    %442 = math.tanh %441 : vector<2x8x1xf32>
    %cst_151 = arith.constant 1.000000e+01 : f32
    %443 = vector.broadcast %cst_151 : f32 to vector<2x8x1xf32>
    %444 = arith.mulf %442, %443 : vector<2x8x1xf32>
    %cst_152 = arith.constant -1.000000e+09 : f32
    %445 = vector.broadcast %cst_152 : f32 to vector<2x8x1xf32>
    %446 = arith.mulf %391, %445 : vector<2x8x1xf32>
    %447 = arith.addf %444, %446 : vector<2x8x1xf32>
    %cst_153 = arith.constant 1.000000e+00 : f32
    %448 = vector.broadcast %cst_153 : f32 to vector<2x8x1xf32>
    %449 = arith.mulf %447, %448 : vector<2x8x1xf32>
    %cst_154 = arith.constant dense<0xFF800000> : vector<2x1xf32>
    %450 = vector.multi_reduction <maximumf>, %449, %cst_154 [1] : vector<2x8x1xf32> to vector<2x1xf32>
    %451 = vector.shape_cast %450 : vector<2x1xf32> to vector<2x1x1xf32>
    %452 = vector.broadcast %451 : vector<2x1x1xf32> to vector<2x8x1xf32>
    %453 = arith.subf %449, %452 : vector<2x8x1xf32>
    %454 = math.exp %453 : vector<2x8x1xf32>
    %cst_155 = arith.constant dense<0.000000e+00> : vector<2x1xf32>
    %455 = vector.multi_reduction <add>, %454, %cst_155 [1] : vector<2x8x1xf32> to vector<2x1xf32>
    %456 = vector.shape_cast %455 : vector<2x1xf32> to vector<2x1x1xf32>
    %457 = math.log %456 : vector<2x1x1xf32>
    %458 = arith.addf %457, %451 : vector<2x1x1xf32>
    %459 = vector.broadcast %458 : vector<2x1x1xf32> to vector<2x8x1xf32>
    %460 = arith.subf %449, %459 : vector<2x8x1xf32>
    %cst_156 = arith.constant dense<0xFF800000> : vector<2x1xf32>
    %461 = vector.multi_reduction <maximumf>, %460, %cst_156 [1] : vector<2x8x1xf32> to vector<2x1xf32>
    %462 = vector.shape_cast %461 : vector<2x1xf32> to vector<2x1x1xf32>
    %463 = vector.broadcast %462 : vector<2x1x1xf32> to vector<2x8x1xf32>
    %464 = arith.cmpf oge, %460, %463 : vector<2x8x1xf32>
    %c8_i32_157 = arith.constant 8 : i32
    %465 = vector.broadcast %c8_i32_157 : i32 to vector<2x8x1xi32>
    %466 = arith.select %464, %296, %465 : vector<2x8x1xi1>, vector<2x8x1xi32>
    %cst_158 = arith.constant dense<2147483647> : vector<2x1xi32>
    %467 = vector.multi_reduction <minsi>, %466, %cst_158 [1] : vector<2x8x1xi32> to vector<2x1xi32>
    %468 = vector.shape_cast %467 : vector<2x1xi32> to vector<2x1x1xi32>
    %469 = vector.broadcast %468 : vector<2x1x1xi32> to vector<2x8x1xi32>
    %470 = arith.cmpi eq, %296, %469 : vector<2x8x1xi32>
    %471 = arith.extui %470 : vector<2x8x1xi1> to vector<2x8x1xi32>
    %472 = arith.sitofp %471 : vector<2x8x1xi32> to vector<2x8x1xf32>
    %473 = arith.mulf %472, %460 : vector<2x8x1xf32>
    %cst_159 = arith.constant dense<0.000000e+00> : vector<2x1xf32>
    %474 = vector.multi_reduction <add>, %473, %cst_159 [1] : vector<2x8x1xf32> to vector<2x1xf32>
    %475 = vector.shape_cast %474 : vector<2x1xf32> to vector<2x1x1xf32>
    %c1_i32_160 = arith.constant 1 : i32
    %476 = vector.broadcast %c1_i32_160 : i32 to vector<2x8x1xi32>
    %477 = arith.cmpi eq, %296, %476 : vector<2x8x1xi32>
    %478 = arith.extui %477 : vector<2x8x1xi1> to vector<2x8x1xi32>
    %479 = arith.sitofp %478 : vector<2x8x1xi32> to vector<2x8x1xf32>
    %480 = vector.broadcast %475 : vector<2x1x1xf32> to vector<2x8x1xf32>
    %481 = arith.mulf %480, %479 : vector<2x8x1xf32>
    %482 = arith.addf %386, %481 : vector<2x8x1xf32>
    %483 = arith.extui %477 : vector<2x8x1xi1> to vector<2x8x1xi32>
    %484 = vector.broadcast %468 : vector<2x1x1xi32> to vector<2x8x1xi32>
    %485 = arith.muli %484, %483 : vector<2x8x1xi32>
    %486 = arith.addi %390, %485 : vector<2x8x1xi32>
    %487 = arith.maximumf %391, %472 : vector<2x8x1xf32>
    %488 = vector.broadcast %376 : vector<2x8x1xf32> to vector<2x8x32xf32>
    %489 = arith.mulf %488, %278 : vector<2x8x32xf32>
    %cst_161 = arith.constant dense<0.000000e+00> : vector<2x32xf32>
    %490 = vector.multi_reduction <add>, %489, %cst_161 [1] : vector<2x8x32xf32> to vector<2x32xf32>
    %491 = vector.broadcast %472 : vector<2x8x1xf32> to vector<2x8x32xf32>
    %492 = arith.mulf %491, %278 : vector<2x8x32xf32>
    %cst_162 = arith.constant dense<0.000000e+00> : vector<2x32xf32>
    %493 = vector.multi_reduction <add>, %492, %cst_162 [1] : vector<2x8x32xf32> to vector<2x32xf32>
    %494 = tpu.concatenate %490, %493 in 1 : vector<2x32xf32>, vector<2x32xf32> -> vector<2x64xf32>
    %c0_163 = arith.constant 0 : index
    %c0_164 = arith.constant 0 : index
    %495 = vector.load %arg13[%c0_163, %c0_164] : memref<64x32xf32, #tpu.memory_space<vmem>>, vector<64x32xf32>
    %496 = arith.truncf %494 : vector<2x64xf32> to vector<2x64xbf16>
    %497 = arith.truncf %495 : vector<64x32xf32> to vector<64x32xbf16>
    %cst_165 = arith.constant dense<0.000000e+00> : vector<2x32xf32>
    %498 = tpu.matmul %496, %497, %cst_165 {dimension_numbers = #tpu.dot_dimension_numbers<[1], [0], [0], [1], [0, 0, 1, 1], [], []>} : vector<2x64xbf16>, vector<64x32xbf16>, vector<2x32xf32> -> vector<2x32xf32>
    %499 = arith.addf %285, %498 : vector<2x32xf32>
    %cst_166 = arith.constant 5.000000e-01 : f32
    %500 = vector.broadcast %cst_166 : f32 to vector<2x32xf32>
    %501 = arith.mulf %499, %500 : vector<2x32xf32>
    %502 = vector.shape_cast %501 : vector<2x32xf32> to vector<2x1x32xf32>
    %503 = vector.broadcast %502 : vector<2x1x32xf32> to vector<2x8x32xf32>
    %504 = arith.mulf %503, %291 : vector<2x8x32xf32>
    %505 = vector.shape_cast %504 : vector<2x8x32xf32> to vector<16x32xf32>
    %cst_167 = arith.constant dense<0.000000e+00> : vector<16x8xf32>
    %506 = tpu.matmul %505, %12, %cst_167 {dimension_numbers = #tpu.dot_dimension_numbers<[1], [0], [0], [1], [0, 0, 1, 1], [], []>} : vector<16x32xf32>, vector<32x8xf32>, vector<16x8xf32> -> vector<16x8xf32>
    %507 = vector.shape_cast %506 : vector<16x8xf32> to vector<2x8x8xf32>
    %cst_168 = arith.constant -1.000000e+09 : f32
    %508 = vector.broadcast %cst_168 : f32 to vector<2x8x1xf32>
    %509 = arith.mulf %487, %508 : vector<2x8x1xf32>
    %510 = vector.broadcast %509 : vector<2x8x1xf32> to vector<2x8x8xf32>
    %511 = arith.addf %507, %510 : vector<2x8x8xf32>
    %cst_169 = arith.constant dense<0xFF800000> : vector<2x8xf32>
    %512 = vector.multi_reduction <maximumf>, %511, %cst_169 [1] : vector<2x8x8xf32> to vector<2x8xf32>
    %513 = vector.shape_cast %512 : vector<2x8xf32> to vector<2x1x8xf32>
    %514 = vector.broadcast %513 : vector<2x1x8xf32> to vector<2x8x8xf32>
    %515 = arith.subf %511, %514 : vector<2x8x8xf32>
    %516 = math.exp %515 : vector<2x8x8xf32>
    %cst_170 = arith.constant dense<0.000000e+00> : vector<2x8xf32>
    %517 = vector.multi_reduction <add>, %516, %cst_170 [1] : vector<2x8x8xf32> to vector<2x8xf32>
    %518 = vector.shape_cast %517 : vector<2x8xf32> to vector<2x1x8xf32>
    %519 = tpu.reciprocal %518 {approx = true} : vector<2x1x8xf32> -> vector<2x1x8xf32>
    %520 = vector.broadcast %519 : vector<2x1x8xf32> to vector<2x8x8xf32>
    %521 = arith.mulf %516, %520 : vector<2x8x8xf32>
    %522 = vector.shape_cast %521 : vector<2x8x8xf32> to vector<16x8xf32>
    %cst_171 = arith.constant dense<0.000000e+00> : vector<16x32xf32>
    %523 = tpu.matmul %522, %25, %cst_171 {dimension_numbers = #tpu.dot_dimension_numbers<[1], [0], [0], [1], [0, 0, 1, 1], [], []>} : vector<16x8xf32>, vector<8x32xf32>, vector<16x32xf32> -> vector<16x32xf32>
    %524 = vector.shape_cast %523 : vector<16x32xf32> to vector<2x8x32xf32>
    %525 = arith.mulf %524, %293 : vector<2x8x32xf32>
    %cst_172 = arith.constant dense<0.000000e+00> : vector<2x32xf32>
    %526 = vector.multi_reduction <add>, %525, %cst_172 [1] : vector<2x8x32xf32> to vector<2x32xf32>
    %c0_173 = arith.constant 0 : index
    %c0_174 = arith.constant 0 : index
    %527 = vector.load %arg14[%c0_173, %c0_174] : memref<32x32xf32, #tpu.memory_space<vmem>>, vector<32x32xf32>
    %528 = arith.truncf %526 : vector<2x32xf32> to vector<2x32xbf16>
    %529 = arith.truncf %527 : vector<32x32xf32> to vector<32x32xbf16>
    %cst_175 = arith.constant dense<0.000000e+00> : vector<2x32xf32>
    %530 = tpu.matmul %528, %529, %cst_175 {dimension_numbers = #tpu.dot_dimension_numbers<[1], [0], [0], [1], [0, 0, 1, 1], [], []>} : vector<2x32xbf16>, vector<32x32xbf16>, vector<2x32xf32> -> vector<2x32xf32>
    %531 = vector.shape_cast %530 : vector<2x32xf32> to vector<2x1x32xf32>
    %532 = vector.broadcast %531 : vector<2x1x32xf32> to vector<2x8x32xf32>
    %533 = arith.mulf %532, %295 : vector<2x8x32xf32>
    %cst_176 = arith.constant dense<0.000000e+00> : vector<2x8xf32>
    %534 = vector.multi_reduction <add>, %533, %cst_176 [2] : vector<2x8x32xf32> to vector<2x8xf32>
    %535 = vector.shape_cast %534 : vector<2x8xf32> to vector<2x8x1xf32>
    %cst_177 = arith.constant 0.176776692 : f32
    %536 = vector.broadcast %cst_177 : f32 to vector<2x8x1xf32>
    %537 = arith.mulf %535, %536 : vector<2x8x1xf32>
    %538 = math.tanh %537 : vector<2x8x1xf32>
    %cst_178 = arith.constant 1.000000e+01 : f32
    %539 = vector.broadcast %cst_178 : f32 to vector<2x8x1xf32>
    %540 = arith.mulf %538, %539 : vector<2x8x1xf32>
    %cst_179 = arith.constant -1.000000e+09 : f32
    %541 = vector.broadcast %cst_179 : f32 to vector<2x8x1xf32>
    %542 = arith.mulf %487, %541 : vector<2x8x1xf32>
    %543 = arith.addf %540, %542 : vector<2x8x1xf32>
    %cst_180 = arith.constant 1.000000e+00 : f32
    %544 = vector.broadcast %cst_180 : f32 to vector<2x8x1xf32>
    %545 = arith.mulf %543, %544 : vector<2x8x1xf32>
    %cst_181 = arith.constant dense<0xFF800000> : vector<2x1xf32>
    %546 = vector.multi_reduction <maximumf>, %545, %cst_181 [1] : vector<2x8x1xf32> to vector<2x1xf32>
    %547 = vector.shape_cast %546 : vector<2x1xf32> to vector<2x1x1xf32>
    %548 = vector.broadcast %547 : vector<2x1x1xf32> to vector<2x8x1xf32>
    %549 = arith.subf %545, %548 : vector<2x8x1xf32>
    %550 = math.exp %549 : vector<2x8x1xf32>
    %cst_182 = arith.constant dense<0.000000e+00> : vector<2x1xf32>
    %551 = vector.multi_reduction <add>, %550, %cst_182 [1] : vector<2x8x1xf32> to vector<2x1xf32>
    %552 = vector.shape_cast %551 : vector<2x1xf32> to vector<2x1x1xf32>
    %553 = math.log %552 : vector<2x1x1xf32>
    %554 = arith.addf %553, %547 : vector<2x1x1xf32>
    %555 = vector.broadcast %554 : vector<2x1x1xf32> to vector<2x8x1xf32>
    %556 = arith.subf %545, %555 : vector<2x8x1xf32>
    %cst_183 = arith.constant dense<0xFF800000> : vector<2x1xf32>
    %557 = vector.multi_reduction <maximumf>, %556, %cst_183 [1] : vector<2x8x1xf32> to vector<2x1xf32>
    %558 = vector.shape_cast %557 : vector<2x1xf32> to vector<2x1x1xf32>
    %559 = vector.broadcast %558 : vector<2x1x1xf32> to vector<2x8x1xf32>
    %560 = arith.cmpf oge, %556, %559 : vector<2x8x1xf32>
    %c8_i32_184 = arith.constant 8 : i32
    %561 = vector.broadcast %c8_i32_184 : i32 to vector<2x8x1xi32>
    %562 = arith.select %560, %296, %561 : vector<2x8x1xi1>, vector<2x8x1xi32>
    %cst_185 = arith.constant dense<2147483647> : vector<2x1xi32>
    %563 = vector.multi_reduction <minsi>, %562, %cst_185 [1] : vector<2x8x1xi32> to vector<2x1xi32>
    %564 = vector.shape_cast %563 : vector<2x1xi32> to vector<2x1x1xi32>
    %565 = vector.broadcast %564 : vector<2x1x1xi32> to vector<2x8x1xi32>
    %566 = arith.cmpi eq, %296, %565 : vector<2x8x1xi32>
    %567 = arith.extui %566 : vector<2x8x1xi1> to vector<2x8x1xi32>
    %568 = arith.sitofp %567 : vector<2x8x1xi32> to vector<2x8x1xf32>
    %569 = arith.mulf %568, %556 : vector<2x8x1xf32>
    %cst_186 = arith.constant dense<0.000000e+00> : vector<2x1xf32>
    %570 = vector.multi_reduction <add>, %569, %cst_186 [1] : vector<2x8x1xf32> to vector<2x1xf32>
    %571 = vector.shape_cast %570 : vector<2x1xf32> to vector<2x1x1xf32>
    %c2_i32 = arith.constant 2 : i32
    %572 = vector.broadcast %c2_i32 : i32 to vector<2x8x1xi32>
    %573 = arith.cmpi eq, %296, %572 : vector<2x8x1xi32>
    %574 = arith.extui %573 : vector<2x8x1xi1> to vector<2x8x1xi32>
    %575 = arith.sitofp %574 : vector<2x8x1xi32> to vector<2x8x1xf32>
    %576 = vector.broadcast %571 : vector<2x1x1xf32> to vector<2x8x1xf32>
    %577 = arith.mulf %576, %575 : vector<2x8x1xf32>
    %578 = arith.addf %482, %577 : vector<2x8x1xf32>
    %579 = arith.extui %573 : vector<2x8x1xi1> to vector<2x8x1xi32>
    %580 = vector.broadcast %564 : vector<2x1x1xi32> to vector<2x8x1xi32>
    %581 = arith.muli %580, %579 : vector<2x8x1xi32>
    %582 = arith.addi %486, %581 : vector<2x8x1xi32>
    %583 = arith.maximumf %487, %568 : vector<2x8x1xf32>
    %584 = vector.broadcast %376 : vector<2x8x1xf32> to vector<2x8x32xf32>
    %585 = arith.mulf %584, %278 : vector<2x8x32xf32>
    %cst_187 = arith.constant dense<0.000000e+00> : vector<2x32xf32>
    %586 = vector.multi_reduction <add>, %585, %cst_187 [1] : vector<2x8x32xf32> to vector<2x32xf32>
    %587 = vector.broadcast %568 : vector<2x8x1xf32> to vector<2x8x32xf32>
    %588 = arith.mulf %587, %278 : vector<2x8x32xf32>
    %cst_188 = arith.constant dense<0.000000e+00> : vector<2x32xf32>
    %589 = vector.multi_reduction <add>, %588, %cst_188 [1] : vector<2x8x32xf32> to vector<2x32xf32>
    %590 = tpu.concatenate %586, %589 in 1 : vector<2x32xf32>, vector<2x32xf32> -> vector<2x64xf32>
    %c0_189 = arith.constant 0 : index
    %c0_190 = arith.constant 0 : index
    %591 = vector.load %arg13[%c0_189, %c0_190] : memref<64x32xf32, #tpu.memory_space<vmem>>, vector<64x32xf32>
    %592 = arith.truncf %590 : vector<2x64xf32> to vector<2x64xbf16>
    %593 = arith.truncf %591 : vector<64x32xf32> to vector<64x32xbf16>
    %cst_191 = arith.constant dense<0.000000e+00> : vector<2x32xf32>
    %594 = tpu.matmul %592, %593, %cst_191 {dimension_numbers = #tpu.dot_dimension_numbers<[1], [0], [0], [1], [0, 0, 1, 1], [], []>} : vector<2x64xbf16>, vector<64x32xbf16>, vector<2x32xf32> -> vector<2x32xf32>
    %595 = arith.addf %285, %594 : vector<2x32xf32>
    %cst_192 = arith.constant 5.000000e-01 : f32
    %596 = vector.broadcast %cst_192 : f32 to vector<2x32xf32>
    %597 = arith.mulf %595, %596 : vector<2x32xf32>
    %598 = vector.shape_cast %597 : vector<2x32xf32> to vector<2x1x32xf32>
    %599 = vector.broadcast %598 : vector<2x1x32xf32> to vector<2x8x32xf32>
    %600 = arith.mulf %599, %291 : vector<2x8x32xf32>
    %601 = vector.shape_cast %600 : vector<2x8x32xf32> to vector<16x32xf32>
    %cst_193 = arith.constant dense<0.000000e+00> : vector<16x8xf32>
    %602 = tpu.matmul %601, %12, %cst_193 {dimension_numbers = #tpu.dot_dimension_numbers<[1], [0], [0], [1], [0, 0, 1, 1], [], []>} : vector<16x32xf32>, vector<32x8xf32>, vector<16x8xf32> -> vector<16x8xf32>
    %603 = vector.shape_cast %602 : vector<16x8xf32> to vector<2x8x8xf32>
    %cst_194 = arith.constant -1.000000e+09 : f32
    %604 = vector.broadcast %cst_194 : f32 to vector<2x8x1xf32>
    %605 = arith.mulf %583, %604 : vector<2x8x1xf32>
    %606 = vector.broadcast %605 : vector<2x8x1xf32> to vector<2x8x8xf32>
    %607 = arith.addf %603, %606 : vector<2x8x8xf32>
    %cst_195 = arith.constant dense<0xFF800000> : vector<2x8xf32>
    %608 = vector.multi_reduction <maximumf>, %607, %cst_195 [1] : vector<2x8x8xf32> to vector<2x8xf32>
    %609 = vector.shape_cast %608 : vector<2x8xf32> to vector<2x1x8xf32>
    %610 = vector.broadcast %609 : vector<2x1x8xf32> to vector<2x8x8xf32>
    %611 = arith.subf %607, %610 : vector<2x8x8xf32>
    %612 = math.exp %611 : vector<2x8x8xf32>
    %cst_196 = arith.constant dense<0.000000e+00> : vector<2x8xf32>
    %613 = vector.multi_reduction <add>, %612, %cst_196 [1] : vector<2x8x8xf32> to vector<2x8xf32>
    %614 = vector.shape_cast %613 : vector<2x8xf32> to vector<2x1x8xf32>
    %615 = tpu.reciprocal %614 {approx = true} : vector<2x1x8xf32> -> vector<2x1x8xf32>
    %616 = vector.broadcast %615 : vector<2x1x8xf32> to vector<2x8x8xf32>
    %617 = arith.mulf %612, %616 : vector<2x8x8xf32>
    %618 = vector.shape_cast %617 : vector<2x8x8xf32> to vector<16x8xf32>
    %cst_197 = arith.constant dense<0.000000e+00> : vector<16x32xf32>
    %619 = tpu.matmul %618, %25, %cst_197 {dimension_numbers = #tpu.dot_dimension_numbers<[1], [0], [0], [1], [0, 0, 1, 1], [], []>} : vector<16x8xf32>, vector<8x32xf32>, vector<16x32xf32> -> vector<16x32xf32>
    %620 = vector.shape_cast %619 : vector<16x32xf32> to vector<2x8x32xf32>
    %621 = arith.mulf %620, %293 : vector<2x8x32xf32>
    %cst_198 = arith.constant dense<0.000000e+00> : vector<2x32xf32>
    %622 = vector.multi_reduction <add>, %621, %cst_198 [1] : vector<2x8x32xf32> to vector<2x32xf32>
    %c0_199 = arith.constant 0 : index
    %c0_200 = arith.constant 0 : index
    %623 = vector.load %arg14[%c0_199, %c0_200] : memref<32x32xf32, #tpu.memory_space<vmem>>, vector<32x32xf32>
    %624 = arith.truncf %622 : vector<2x32xf32> to vector<2x32xbf16>
    %625 = arith.truncf %623 : vector<32x32xf32> to vector<32x32xbf16>
    %cst_201 = arith.constant dense<0.000000e+00> : vector<2x32xf32>
    %626 = tpu.matmul %624, %625, %cst_201 {dimension_numbers = #tpu.dot_dimension_numbers<[1], [0], [0], [1], [0, 0, 1, 1], [], []>} : vector<2x32xbf16>, vector<32x32xbf16>, vector<2x32xf32> -> vector<2x32xf32>
    %627 = vector.shape_cast %626 : vector<2x32xf32> to vector<2x1x32xf32>
    %628 = vector.broadcast %627 : vector<2x1x32xf32> to vector<2x8x32xf32>
    %629 = arith.mulf %628, %295 : vector<2x8x32xf32>
    %cst_202 = arith.constant dense<0.000000e+00> : vector<2x8xf32>
    %630 = vector.multi_reduction <add>, %629, %cst_202 [2] : vector<2x8x32xf32> to vector<2x8xf32>
    %631 = vector.shape_cast %630 : vector<2x8xf32> to vector<2x8x1xf32>
    %cst_203 = arith.constant 0.176776692 : f32
    %632 = vector.broadcast %cst_203 : f32 to vector<2x8x1xf32>
    %633 = arith.mulf %631, %632 : vector<2x8x1xf32>
    %634 = math.tanh %633 : vector<2x8x1xf32>
    %cst_204 = arith.constant 1.000000e+01 : f32
    %635 = vector.broadcast %cst_204 : f32 to vector<2x8x1xf32>
    %636 = arith.mulf %634, %635 : vector<2x8x1xf32>
    %cst_205 = arith.constant -1.000000e+09 : f32
    %637 = vector.broadcast %cst_205 : f32 to vector<2x8x1xf32>
    %638 = arith.mulf %583, %637 : vector<2x8x1xf32>
    %639 = arith.addf %636, %638 : vector<2x8x1xf32>
    %cst_206 = arith.constant 1.000000e+00 : f32
    %640 = vector.broadcast %cst_206 : f32 to vector<2x8x1xf32>
    %641 = arith.mulf %639, %640 : vector<2x8x1xf32>
    %cst_207 = arith.constant dense<0xFF800000> : vector<2x1xf32>
    %642 = vector.multi_reduction <maximumf>, %641, %cst_207 [1] : vector<2x8x1xf32> to vector<2x1xf32>
    %643 = vector.shape_cast %642 : vector<2x1xf32> to vector<2x1x1xf32>
    %644 = vector.broadcast %643 : vector<2x1x1xf32> to vector<2x8x1xf32>
    %645 = arith.subf %641, %644 : vector<2x8x1xf32>
    %646 = math.exp %645 : vector<2x8x1xf32>
    %cst_208 = arith.constant dense<0.000000e+00> : vector<2x1xf32>
    %647 = vector.multi_reduction <add>, %646, %cst_208 [1] : vector<2x8x1xf32> to vector<2x1xf32>
    %648 = vector.shape_cast %647 : vector<2x1xf32> to vector<2x1x1xf32>
    %649 = math.log %648 : vector<2x1x1xf32>
    %650 = arith.addf %649, %643 : vector<2x1x1xf32>
    %651 = vector.broadcast %650 : vector<2x1x1xf32> to vector<2x8x1xf32>
    %652 = arith.subf %641, %651 : vector<2x8x1xf32>
    %cst_209 = arith.constant dense<0xFF800000> : vector<2x1xf32>
    %653 = vector.multi_reduction <maximumf>, %652, %cst_209 [1] : vector<2x8x1xf32> to vector<2x1xf32>
    %654 = vector.shape_cast %653 : vector<2x1xf32> to vector<2x1x1xf32>
    %655 = vector.broadcast %654 : vector<2x1x1xf32> to vector<2x8x1xf32>
    %656 = arith.cmpf oge, %652, %655 : vector<2x8x1xf32>
    %c8_i32_210 = arith.constant 8 : i32
    %657 = vector.broadcast %c8_i32_210 : i32 to vector<2x8x1xi32>
    %658 = arith.select %656, %296, %657 : vector<2x8x1xi1>, vector<2x8x1xi32>
    %cst_211 = arith.constant dense<2147483647> : vector<2x1xi32>
    %659 = vector.multi_reduction <minsi>, %658, %cst_211 [1] : vector<2x8x1xi32> to vector<2x1xi32>
    %660 = vector.shape_cast %659 : vector<2x1xi32> to vector<2x1x1xi32>
    %661 = vector.broadcast %660 : vector<2x1x1xi32> to vector<2x8x1xi32>
    %662 = arith.cmpi eq, %296, %661 : vector<2x8x1xi32>
    %663 = arith.extui %662 : vector<2x8x1xi1> to vector<2x8x1xi32>
    %664 = arith.sitofp %663 : vector<2x8x1xi32> to vector<2x8x1xf32>
    %665 = arith.mulf %664, %652 : vector<2x8x1xf32>
    %cst_212 = arith.constant dense<0.000000e+00> : vector<2x1xf32>
    %666 = vector.multi_reduction <add>, %665, %cst_212 [1] : vector<2x8x1xf32> to vector<2x1xf32>
    %667 = vector.shape_cast %666 : vector<2x1xf32> to vector<2x1x1xf32>
    %c3_i32 = arith.constant 3 : i32
    %668 = vector.broadcast %c3_i32 : i32 to vector<2x8x1xi32>
    %669 = arith.cmpi eq, %296, %668 : vector<2x8x1xi32>
    %670 = arith.extui %669 : vector<2x8x1xi1> to vector<2x8x1xi32>
    %671 = arith.sitofp %670 : vector<2x8x1xi32> to vector<2x8x1xf32>
    %672 = vector.broadcast %667 : vector<2x1x1xf32> to vector<2x8x1xf32>
    %673 = arith.mulf %672, %671 : vector<2x8x1xf32>
    %674 = arith.addf %578, %673 : vector<2x8x1xf32>
    %675 = arith.extui %669 : vector<2x8x1xi1> to vector<2x8x1xi32>
    %676 = vector.broadcast %660 : vector<2x1x1xi32> to vector<2x8x1xi32>
    %677 = arith.muli %676, %675 : vector<2x8x1xi32>
    %678 = arith.addi %582, %677 : vector<2x8x1xi32>
    %679 = arith.maximumf %583, %664 : vector<2x8x1xf32>
    %680 = vector.broadcast %376 : vector<2x8x1xf32> to vector<2x8x32xf32>
    %681 = arith.mulf %680, %278 : vector<2x8x32xf32>
    %cst_213 = arith.constant dense<0.000000e+00> : vector<2x32xf32>
    %682 = vector.multi_reduction <add>, %681, %cst_213 [1] : vector<2x8x32xf32> to vector<2x32xf32>
    %683 = vector.broadcast %664 : vector<2x8x1xf32> to vector<2x8x32xf32>
    %684 = arith.mulf %683, %278 : vector<2x8x32xf32>
    %cst_214 = arith.constant dense<0.000000e+00> : vector<2x32xf32>
    %685 = vector.multi_reduction <add>, %684, %cst_214 [1] : vector<2x8x32xf32> to vector<2x32xf32>
    %686 = tpu.concatenate %682, %685 in 1 : vector<2x32xf32>, vector<2x32xf32> -> vector<2x64xf32>
    %c0_215 = arith.constant 0 : index
    %c0_216 = arith.constant 0 : index
    %687 = vector.load %arg13[%c0_215, %c0_216] : memref<64x32xf32, #tpu.memory_space<vmem>>, vector<64x32xf32>
    %688 = arith.truncf %686 : vector<2x64xf32> to vector<2x64xbf16>
    %689 = arith.truncf %687 : vector<64x32xf32> to vector<64x32xbf16>
    %cst_217 = arith.constant dense<0.000000e+00> : vector<2x32xf32>
    %690 = tpu.matmul %688, %689, %cst_217 {dimension_numbers = #tpu.dot_dimension_numbers<[1], [0], [0], [1], [0, 0, 1, 1], [], []>} : vector<2x64xbf16>, vector<64x32xbf16>, vector<2x32xf32> -> vector<2x32xf32>
    %691 = arith.addf %285, %690 : vector<2x32xf32>
    %cst_218 = arith.constant 5.000000e-01 : f32
    %692 = vector.broadcast %cst_218 : f32 to vector<2x32xf32>
    %693 = arith.mulf %691, %692 : vector<2x32xf32>
    %694 = vector.shape_cast %693 : vector<2x32xf32> to vector<2x1x32xf32>
    %695 = vector.broadcast %694 : vector<2x1x32xf32> to vector<2x8x32xf32>
    %696 = arith.mulf %695, %291 : vector<2x8x32xf32>
    %697 = vector.shape_cast %696 : vector<2x8x32xf32> to vector<16x32xf32>
    %cst_219 = arith.constant dense<0.000000e+00> : vector<16x8xf32>
    %698 = tpu.matmul %697, %12, %cst_219 {dimension_numbers = #tpu.dot_dimension_numbers<[1], [0], [0], [1], [0, 0, 1, 1], [], []>} : vector<16x32xf32>, vector<32x8xf32>, vector<16x8xf32> -> vector<16x8xf32>
    %699 = vector.shape_cast %698 : vector<16x8xf32> to vector<2x8x8xf32>
    %cst_220 = arith.constant -1.000000e+09 : f32
    %700 = vector.broadcast %cst_220 : f32 to vector<2x8x1xf32>
    %701 = arith.mulf %679, %700 : vector<2x8x1xf32>
    %702 = vector.broadcast %701 : vector<2x8x1xf32> to vector<2x8x8xf32>
    %703 = arith.addf %699, %702 : vector<2x8x8xf32>
    %cst_221 = arith.constant dense<0xFF800000> : vector<2x8xf32>
    %704 = vector.multi_reduction <maximumf>, %703, %cst_221 [1] : vector<2x8x8xf32> to vector<2x8xf32>
    %705 = vector.shape_cast %704 : vector<2x8xf32> to vector<2x1x8xf32>
    %706 = vector.broadcast %705 : vector<2x1x8xf32> to vector<2x8x8xf32>
    %707 = arith.subf %703, %706 : vector<2x8x8xf32>
    %708 = math.exp %707 : vector<2x8x8xf32>
    %cst_222 = arith.constant dense<0.000000e+00> : vector<2x8xf32>
    %709 = vector.multi_reduction <add>, %708, %cst_222 [1] : vector<2x8x8xf32> to vector<2x8xf32>
    %710 = vector.shape_cast %709 : vector<2x8xf32> to vector<2x1x8xf32>
    %711 = tpu.reciprocal %710 {approx = true} : vector<2x1x8xf32> -> vector<2x1x8xf32>
    %712 = vector.broadcast %711 : vector<2x1x8xf32> to vector<2x8x8xf32>
    %713 = arith.mulf %708, %712 : vector<2x8x8xf32>
    %714 = vector.shape_cast %713 : vector<2x8x8xf32> to vector<16x8xf32>
    %cst_223 = arith.constant dense<0.000000e+00> : vector<16x32xf32>
    %715 = tpu.matmul %714, %25, %cst_223 {dimension_numbers = #tpu.dot_dimension_numbers<[1], [0], [0], [1], [0, 0, 1, 1], [], []>} : vector<16x8xf32>, vector<8x32xf32>, vector<16x32xf32> -> vector<16x32xf32>
    %716 = vector.shape_cast %715 : vector<16x32xf32> to vector<2x8x32xf32>
    %717 = arith.mulf %716, %293 : vector<2x8x32xf32>
    %cst_224 = arith.constant dense<0.000000e+00> : vector<2x32xf32>
    %718 = vector.multi_reduction <add>, %717, %cst_224 [1] : vector<2x8x32xf32> to vector<2x32xf32>
    %c0_225 = arith.constant 0 : index
    %c0_226 = arith.constant 0 : index
    %719 = vector.load %arg14[%c0_225, %c0_226] : memref<32x32xf32, #tpu.memory_space<vmem>>, vector<32x32xf32>
    %720 = arith.truncf %718 : vector<2x32xf32> to vector<2x32xbf16>
    %721 = arith.truncf %719 : vector<32x32xf32> to vector<32x32xbf16>
    %cst_227 = arith.constant dense<0.000000e+00> : vector<2x32xf32>
    %722 = tpu.matmul %720, %721, %cst_227 {dimension_numbers = #tpu.dot_dimension_numbers<[1], [0], [0], [1], [0, 0, 1, 1], [], []>} : vector<2x32xbf16>, vector<32x32xbf16>, vector<2x32xf32> -> vector<2x32xf32>
    %723 = vector.shape_cast %722 : vector<2x32xf32> to vector<2x1x32xf32>
    %724 = vector.broadcast %723 : vector<2x1x32xf32> to vector<2x8x32xf32>
    %725 = arith.mulf %724, %295 : vector<2x8x32xf32>
    %cst_228 = arith.constant dense<0.000000e+00> : vector<2x8xf32>
    %726 = vector.multi_reduction <add>, %725, %cst_228 [2] : vector<2x8x32xf32> to vector<2x8xf32>
    %727 = vector.shape_cast %726 : vector<2x8xf32> to vector<2x8x1xf32>
    %cst_229 = arith.constant 0.176776692 : f32
    %728 = vector.broadcast %cst_229 : f32 to vector<2x8x1xf32>
    %729 = arith.mulf %727, %728 : vector<2x8x1xf32>
    %730 = math.tanh %729 : vector<2x8x1xf32>
    %cst_230 = arith.constant 1.000000e+01 : f32
    %731 = vector.broadcast %cst_230 : f32 to vector<2x8x1xf32>
    %732 = arith.mulf %730, %731 : vector<2x8x1xf32>
    %cst_231 = arith.constant -1.000000e+09 : f32
    %733 = vector.broadcast %cst_231 : f32 to vector<2x8x1xf32>
    %734 = arith.mulf %679, %733 : vector<2x8x1xf32>
    %735 = arith.addf %732, %734 : vector<2x8x1xf32>
    %cst_232 = arith.constant 1.000000e+00 : f32
    %736 = vector.broadcast %cst_232 : f32 to vector<2x8x1xf32>
    %737 = arith.mulf %735, %736 : vector<2x8x1xf32>
    %cst_233 = arith.constant dense<0xFF800000> : vector<2x1xf32>
    %738 = vector.multi_reduction <maximumf>, %737, %cst_233 [1] : vector<2x8x1xf32> to vector<2x1xf32>
    %739 = vector.shape_cast %738 : vector<2x1xf32> to vector<2x1x1xf32>
    %740 = vector.broadcast %739 : vector<2x1x1xf32> to vector<2x8x1xf32>
    %741 = arith.subf %737, %740 : vector<2x8x1xf32>
    %742 = math.exp %741 : vector<2x8x1xf32>
    %cst_234 = arith.constant dense<0.000000e+00> : vector<2x1xf32>
    %743 = vector.multi_reduction <add>, %742, %cst_234 [1] : vector<2x8x1xf32> to vector<2x1xf32>
    %744 = vector.shape_cast %743 : vector<2x1xf32> to vector<2x1x1xf32>
    %745 = math.log %744 : vector<2x1x1xf32>
    %746 = arith.addf %745, %739 : vector<2x1x1xf32>
    %747 = vector.broadcast %746 : vector<2x1x1xf32> to vector<2x8x1xf32>
    %748 = arith.subf %737, %747 : vector<2x8x1xf32>
    %cst_235 = arith.constant dense<0xFF800000> : vector<2x1xf32>
    %749 = vector.multi_reduction <maximumf>, %748, %cst_235 [1] : vector<2x8x1xf32> to vector<2x1xf32>
    %750 = vector.shape_cast %749 : vector<2x1xf32> to vector<2x1x1xf32>
    %751 = vector.broadcast %750 : vector<2x1x1xf32> to vector<2x8x1xf32>
    %752 = arith.cmpf oge, %748, %751 : vector<2x8x1xf32>
    %c8_i32_236 = arith.constant 8 : i32
    %753 = vector.broadcast %c8_i32_236 : i32 to vector<2x8x1xi32>
    %754 = arith.select %752, %296, %753 : vector<2x8x1xi1>, vector<2x8x1xi32>
    %cst_237 = arith.constant dense<2147483647> : vector<2x1xi32>
    %755 = vector.multi_reduction <minsi>, %754, %cst_237 [1] : vector<2x8x1xi32> to vector<2x1xi32>
    %756 = vector.shape_cast %755 : vector<2x1xi32> to vector<2x1x1xi32>
    %757 = vector.broadcast %756 : vector<2x1x1xi32> to vector<2x8x1xi32>
    %758 = arith.cmpi eq, %296, %757 : vector<2x8x1xi32>
    %759 = arith.extui %758 : vector<2x8x1xi1> to vector<2x8x1xi32>
    %760 = arith.sitofp %759 : vector<2x8x1xi32> to vector<2x8x1xf32>
    %761 = arith.mulf %760, %748 : vector<2x8x1xf32>
    %cst_238 = arith.constant dense<0.000000e+00> : vector<2x1xf32>
    %762 = vector.multi_reduction <add>, %761, %cst_238 [1] : vector<2x8x1xf32> to vector<2x1xf32>
    %763 = vector.shape_cast %762 : vector<2x1xf32> to vector<2x1x1xf32>
    %c4_i32_239 = arith.constant 4 : i32
    %764 = vector.broadcast %c4_i32_239 : i32 to vector<2x8x1xi32>
    %765 = arith.cmpi eq, %296, %764 : vector<2x8x1xi32>
    %766 = arith.extui %765 : vector<2x8x1xi1> to vector<2x8x1xi32>
    %767 = arith.sitofp %766 : vector<2x8x1xi32> to vector<2x8x1xf32>
    %768 = vector.broadcast %763 : vector<2x1x1xf32> to vector<2x8x1xf32>
    %769 = arith.mulf %768, %767 : vector<2x8x1xf32>
    %770 = arith.addf %674, %769 : vector<2x8x1xf32>
    %771 = arith.extui %765 : vector<2x8x1xi1> to vector<2x8x1xi32>
    %772 = vector.broadcast %756 : vector<2x1x1xi32> to vector<2x8x1xi32>
    %773 = arith.muli %772, %771 : vector<2x8x1xi32>
    %774 = arith.addi %678, %773 : vector<2x8x1xi32>
    %775 = arith.maximumf %679, %760 : vector<2x8x1xf32>
    %776 = vector.broadcast %376 : vector<2x8x1xf32> to vector<2x8x32xf32>
    %777 = arith.mulf %776, %278 : vector<2x8x32xf32>
    %cst_240 = arith.constant dense<0.000000e+00> : vector<2x32xf32>
    %778 = vector.multi_reduction <add>, %777, %cst_240 [1] : vector<2x8x32xf32> to vector<2x32xf32>
    %779 = vector.broadcast %760 : vector<2x8x1xf32> to vector<2x8x32xf32>
    %780 = arith.mulf %779, %278 : vector<2x8x32xf32>
    %cst_241 = arith.constant dense<0.000000e+00> : vector<2x32xf32>
    %781 = vector.multi_reduction <add>, %780, %cst_241 [1] : vector<2x8x32xf32> to vector<2x32xf32>
    %782 = tpu.concatenate %778, %781 in 1 : vector<2x32xf32>, vector<2x32xf32> -> vector<2x64xf32>
    %c0_242 = arith.constant 0 : index
    %c0_243 = arith.constant 0 : index
    %783 = vector.load %arg13[%c0_242, %c0_243] : memref<64x32xf32, #tpu.memory_space<vmem>>, vector<64x32xf32>
    %784 = arith.truncf %782 : vector<2x64xf32> to vector<2x64xbf16>
    %785 = arith.truncf %783 : vector<64x32xf32> to vector<64x32xbf16>
    %cst_244 = arith.constant dense<0.000000e+00> : vector<2x32xf32>
    %786 = tpu.matmul %784, %785, %cst_244 {dimension_numbers = #tpu.dot_dimension_numbers<[1], [0], [0], [1], [0, 0, 1, 1], [], []>} : vector<2x64xbf16>, vector<64x32xbf16>, vector<2x32xf32> -> vector<2x32xf32>
    %787 = arith.addf %285, %786 : vector<2x32xf32>
    %cst_245 = arith.constant 5.000000e-01 : f32
    %788 = vector.broadcast %cst_245 : f32 to vector<2x32xf32>
    %789 = arith.mulf %787, %788 : vector<2x32xf32>
    %790 = vector.shape_cast %789 : vector<2x32xf32> to vector<2x1x32xf32>
    %791 = vector.broadcast %790 : vector<2x1x32xf32> to vector<2x8x32xf32>
    %792 = arith.mulf %791, %291 : vector<2x8x32xf32>
    %793 = vector.shape_cast %792 : vector<2x8x32xf32> to vector<16x32xf32>
    %cst_246 = arith.constant dense<0.000000e+00> : vector<16x8xf32>
    %794 = tpu.matmul %793, %12, %cst_246 {dimension_numbers = #tpu.dot_dimension_numbers<[1], [0], [0], [1], [0, 0, 1, 1], [], []>} : vector<16x32xf32>, vector<32x8xf32>, vector<16x8xf32> -> vector<16x8xf32>
    %795 = vector.shape_cast %794 : vector<16x8xf32> to vector<2x8x8xf32>
    %cst_247 = arith.constant -1.000000e+09 : f32
    %796 = vector.broadcast %cst_247 : f32 to vector<2x8x1xf32>
    %797 = arith.mulf %775, %796 : vector<2x8x1xf32>
    %798 = vector.broadcast %797 : vector<2x8x1xf32> to vector<2x8x8xf32>
    %799 = arith.addf %795, %798 : vector<2x8x8xf32>
    %cst_248 = arith.constant dense<0xFF800000> : vector<2x8xf32>
    %800 = vector.multi_reduction <maximumf>, %799, %cst_248 [1] : vector<2x8x8xf32> to vector<2x8xf32>
    %801 = vector.shape_cast %800 : vector<2x8xf32> to vector<2x1x8xf32>
    %802 = vector.broadcast %801 : vector<2x1x8xf32> to vector<2x8x8xf32>
    %803 = arith.subf %799, %802 : vector<2x8x8xf32>
    %804 = math.exp %803 : vector<2x8x8xf32>
    %cst_249 = arith.constant dense<0.000000e+00> : vector<2x8xf32>
    %805 = vector.multi_reduction <add>, %804, %cst_249 [1] : vector<2x8x8xf32> to vector<2x8xf32>
    %806 = vector.shape_cast %805 : vector<2x8xf32> to vector<2x1x8xf32>
    %807 = tpu.reciprocal %806 {approx = true} : vector<2x1x8xf32> -> vector<2x1x8xf32>
    %808 = vector.broadcast %807 : vector<2x1x8xf32> to vector<2x8x8xf32>
    %809 = arith.mulf %804, %808 : vector<2x8x8xf32>
    %810 = vector.shape_cast %809 : vector<2x8x8xf32> to vector<16x8xf32>
    %cst_250 = arith.constant dense<0.000000e+00> : vector<16x32xf32>
    %811 = tpu.matmul %810, %25, %cst_250 {dimension_numbers = #tpu.dot_dimension_numbers<[1], [0], [0], [1], [0, 0, 1, 1], [], []>} : vector<16x8xf32>, vector<8x32xf32>, vector<16x32xf32> -> vector<16x32xf32>
    %812 = vector.shape_cast %811 : vector<16x32xf32> to vector<2x8x32xf32>
    %813 = arith.mulf %812, %293 : vector<2x8x32xf32>
    %cst_251 = arith.constant dense<0.000000e+00> : vector<2x32xf32>
    %814 = vector.multi_reduction <add>, %813, %cst_251 [1] : vector<2x8x32xf32> to vector<2x32xf32>
    %c0_252 = arith.constant 0 : index
    %c0_253 = arith.constant 0 : index
    %815 = vector.load %arg14[%c0_252, %c0_253] : memref<32x32xf32, #tpu.memory_space<vmem>>, vector<32x32xf32>
    %816 = arith.truncf %814 : vector<2x32xf32> to vector<2x32xbf16>
    %817 = arith.truncf %815 : vector<32x32xf32> to vector<32x32xbf16>
    %cst_254 = arith.constant dense<0.000000e+00> : vector<2x32xf32>
    %818 = tpu.matmul %816, %817, %cst_254 {dimension_numbers = #tpu.dot_dimension_numbers<[1], [0], [0], [1], [0, 0, 1, 1], [], []>} : vector<2x32xbf16>, vector<32x32xbf16>, vector<2x32xf32> -> vector<2x32xf32>
    %819 = vector.shape_cast %818 : vector<2x32xf32> to vector<2x1x32xf32>
    %820 = vector.broadcast %819 : vector<2x1x32xf32> to vector<2x8x32xf32>
    %821 = arith.mulf %820, %295 : vector<2x8x32xf32>
    %cst_255 = arith.constant dense<0.000000e+00> : vector<2x8xf32>
    %822 = vector.multi_reduction <add>, %821, %cst_255 [2] : vector<2x8x32xf32> to vector<2x8xf32>
    %823 = vector.shape_cast %822 : vector<2x8xf32> to vector<2x8x1xf32>
    %cst_256 = arith.constant 0.176776692 : f32
    %824 = vector.broadcast %cst_256 : f32 to vector<2x8x1xf32>
    %825 = arith.mulf %823, %824 : vector<2x8x1xf32>
    %826 = math.tanh %825 : vector<2x8x1xf32>
    %cst_257 = arith.constant 1.000000e+01 : f32
    %827 = vector.broadcast %cst_257 : f32 to vector<2x8x1xf32>
    %828 = arith.mulf %826, %827 : vector<2x8x1xf32>
    %cst_258 = arith.constant -1.000000e+09 : f32
    %829 = vector.broadcast %cst_258 : f32 to vector<2x8x1xf32>
    %830 = arith.mulf %775, %829 : vector<2x8x1xf32>
    %831 = arith.addf %828, %830 : vector<2x8x1xf32>
    %cst_259 = arith.constant 1.000000e+00 : f32
    %832 = vector.broadcast %cst_259 : f32 to vector<2x8x1xf32>
    %833 = arith.mulf %831, %832 : vector<2x8x1xf32>
    %cst_260 = arith.constant dense<0xFF800000> : vector<2x1xf32>
    %834 = vector.multi_reduction <maximumf>, %833, %cst_260 [1] : vector<2x8x1xf32> to vector<2x1xf32>
    %835 = vector.shape_cast %834 : vector<2x1xf32> to vector<2x1x1xf32>
    %836 = vector.broadcast %835 : vector<2x1x1xf32> to vector<2x8x1xf32>
    %837 = arith.subf %833, %836 : vector<2x8x1xf32>
    %838 = math.exp %837 : vector<2x8x1xf32>
    %cst_261 = arith.constant dense<0.000000e+00> : vector<2x1xf32>
    %839 = vector.multi_reduction <add>, %838, %cst_261 [1] : vector<2x8x1xf32> to vector<2x1xf32>
    %840 = vector.shape_cast %839 : vector<2x1xf32> to vector<2x1x1xf32>
    %841 = math.log %840 : vector<2x1x1xf32>
    %842 = arith.addf %841, %835 : vector<2x1x1xf32>
    %843 = vector.broadcast %842 : vector<2x1x1xf32> to vector<2x8x1xf32>
    %844 = arith.subf %833, %843 : vector<2x8x1xf32>
    %cst_262 = arith.constant dense<0xFF800000> : vector<2x1xf32>
    %845 = vector.multi_reduction <maximumf>, %844, %cst_262 [1] : vector<2x8x1xf32> to vector<2x1xf32>
    %846 = vector.shape_cast %845 : vector<2x1xf32> to vector<2x1x1xf32>
    %847 = vector.broadcast %846 : vector<2x1x1xf32> to vector<2x8x1xf32>
    %848 = arith.cmpf oge, %844, %847 : vector<2x8x1xf32>
    %c8_i32_263 = arith.constant 8 : i32
    %849 = vector.broadcast %c8_i32_263 : i32 to vector<2x8x1xi32>
    %850 = arith.select %848, %296, %849 : vector<2x8x1xi1>, vector<2x8x1xi32>
    %cst_264 = arith.constant dense<2147483647> : vector<2x1xi32>
    %851 = vector.multi_reduction <minsi>, %850, %cst_264 [1] : vector<2x8x1xi32> to vector<2x1xi32>
    %852 = vector.shape_cast %851 : vector<2x1xi32> to vector<2x1x1xi32>
    %853 = vector.broadcast %852 : vector<2x1x1xi32> to vector<2x8x1xi32>
    %854 = arith.cmpi eq, %296, %853 : vector<2x8x1xi32>
    %855 = arith.extui %854 : vector<2x8x1xi1> to vector<2x8x1xi32>
    %856 = arith.sitofp %855 : vector<2x8x1xi32> to vector<2x8x1xf32>
    %857 = arith.mulf %856, %844 : vector<2x8x1xf32>
    %cst_265 = arith.constant dense<0.000000e+00> : vector<2x1xf32>
    %858 = vector.multi_reduction <add>, %857, %cst_265 [1] : vector<2x8x1xf32> to vector<2x1xf32>
    %859 = vector.shape_cast %858 : vector<2x1xf32> to vector<2x1x1xf32>
    %c5_i32 = arith.constant 5 : i32
    %860 = vector.broadcast %c5_i32 : i32 to vector<2x8x1xi32>
    %861 = arith.cmpi eq, %296, %860 : vector<2x8x1xi32>
    %862 = arith.extui %861 : vector<2x8x1xi1> to vector<2x8x1xi32>
    %863 = arith.sitofp %862 : vector<2x8x1xi32> to vector<2x8x1xf32>
    %864 = vector.broadcast %859 : vector<2x1x1xf32> to vector<2x8x1xf32>
    %865 = arith.mulf %864, %863 : vector<2x8x1xf32>
    %866 = arith.addf %770, %865 : vector<2x8x1xf32>
    %867 = arith.extui %861 : vector<2x8x1xi1> to vector<2x8x1xi32>
    %868 = vector.broadcast %852 : vector<2x1x1xi32> to vector<2x8x1xi32>
    %869 = arith.muli %868, %867 : vector<2x8x1xi32>
    %870 = arith.addi %774, %869 : vector<2x8x1xi32>
    %871 = arith.maximumf %775, %856 : vector<2x8x1xf32>
    %872 = vector.broadcast %376 : vector<2x8x1xf32> to vector<2x8x32xf32>
    %873 = arith.mulf %872, %278 : vector<2x8x32xf32>
    %cst_266 = arith.constant dense<0.000000e+00> : vector<2x32xf32>
    %874 = vector.multi_reduction <add>, %873, %cst_266 [1] : vector<2x8x32xf32> to vector<2x32xf32>
    %875 = vector.broadcast %856 : vector<2x8x1xf32> to vector<2x8x32xf32>
    %876 = arith.mulf %875, %278 : vector<2x8x32xf32>
    %cst_267 = arith.constant dense<0.000000e+00> : vector<2x32xf32>
    %877 = vector.multi_reduction <add>, %876, %cst_267 [1] : vector<2x8x32xf32> to vector<2x32xf32>
    %878 = tpu.concatenate %874, %877 in 1 : vector<2x32xf32>, vector<2x32xf32> -> vector<2x64xf32>
    %c0_268 = arith.constant 0 : index
    %c0_269 = arith.constant 0 : index
    %879 = vector.load %arg13[%c0_268, %c0_269] : memref<64x32xf32, #tpu.memory_space<vmem>>, vector<64x32xf32>
    %880 = arith.truncf %878 : vector<2x64xf32> to vector<2x64xbf16>
    %881 = arith.truncf %879 : vector<64x32xf32> to vector<64x32xbf16>
    %cst_270 = arith.constant dense<0.000000e+00> : vector<2x32xf32>
    %882 = tpu.matmul %880, %881, %cst_270 {dimension_numbers = #tpu.dot_dimension_numbers<[1], [0], [0], [1], [0, 0, 1, 1], [], []>} : vector<2x64xbf16>, vector<64x32xbf16>, vector<2x32xf32> -> vector<2x32xf32>
    %883 = arith.addf %285, %882 : vector<2x32xf32>
    %cst_271 = arith.constant 5.000000e-01 : f32
    %884 = vector.broadcast %cst_271 : f32 to vector<2x32xf32>
    %885 = arith.mulf %883, %884 : vector<2x32xf32>
    %886 = vector.shape_cast %885 : vector<2x32xf32> to vector<2x1x32xf32>
    %887 = vector.broadcast %886 : vector<2x1x32xf32> to vector<2x8x32xf32>
    %888 = arith.mulf %887, %291 : vector<2x8x32xf32>
    %889 = vector.shape_cast %888 : vector<2x8x32xf32> to vector<16x32xf32>
    %cst_272 = arith.constant dense<0.000000e+00> : vector<16x8xf32>
    %890 = tpu.matmul %889, %12, %cst_272 {dimension_numbers = #tpu.dot_dimension_numbers<[1], [0], [0], [1], [0, 0, 1, 1], [], []>} : vector<16x32xf32>, vector<32x8xf32>, vector<16x8xf32> -> vector<16x8xf32>
    %891 = vector.shape_cast %890 : vector<16x8xf32> to vector<2x8x8xf32>
    %cst_273 = arith.constant -1.000000e+09 : f32
    %892 = vector.broadcast %cst_273 : f32 to vector<2x8x1xf32>
    %893 = arith.mulf %871, %892 : vector<2x8x1xf32>
    %894 = vector.broadcast %893 : vector<2x8x1xf32> to vector<2x8x8xf32>
    %895 = arith.addf %891, %894 : vector<2x8x8xf32>
    %cst_274 = arith.constant dense<0xFF800000> : vector<2x8xf32>
    %896 = vector.multi_reduction <maximumf>, %895, %cst_274 [1] : vector<2x8x8xf32> to vector<2x8xf32>
    %897 = vector.shape_cast %896 : vector<2x8xf32> to vector<2x1x8xf32>
    %898 = vector.broadcast %897 : vector<2x1x8xf32> to vector<2x8x8xf32>
    %899 = arith.subf %895, %898 : vector<2x8x8xf32>
    %900 = math.exp %899 : vector<2x8x8xf32>
    %cst_275 = arith.constant dense<0.000000e+00> : vector<2x8xf32>
    %901 = vector.multi_reduction <add>, %900, %cst_275 [1] : vector<2x8x8xf32> to vector<2x8xf32>
    %902 = vector.shape_cast %901 : vector<2x8xf32> to vector<2x1x8xf32>
    %903 = tpu.reciprocal %902 {approx = true} : vector<2x1x8xf32> -> vector<2x1x8xf32>
    %904 = vector.broadcast %903 : vector<2x1x8xf32> to vector<2x8x8xf32>
    %905 = arith.mulf %900, %904 : vector<2x8x8xf32>
    %906 = vector.shape_cast %905 : vector<2x8x8xf32> to vector<16x8xf32>
    %cst_276 = arith.constant dense<0.000000e+00> : vector<16x32xf32>
    %907 = tpu.matmul %906, %25, %cst_276 {dimension_numbers = #tpu.dot_dimension_numbers<[1], [0], [0], [1], [0, 0, 1, 1], [], []>} : vector<16x8xf32>, vector<8x32xf32>, vector<16x32xf32> -> vector<16x32xf32>
    %908 = vector.shape_cast %907 : vector<16x32xf32> to vector<2x8x32xf32>
    %909 = arith.mulf %908, %293 : vector<2x8x32xf32>
    %cst_277 = arith.constant dense<0.000000e+00> : vector<2x32xf32>
    %910 = vector.multi_reduction <add>, %909, %cst_277 [1] : vector<2x8x32xf32> to vector<2x32xf32>
    %c0_278 = arith.constant 0 : index
    %c0_279 = arith.constant 0 : index
    %911 = vector.load %arg14[%c0_278, %c0_279] : memref<32x32xf32, #tpu.memory_space<vmem>>, vector<32x32xf32>
    %912 = arith.truncf %910 : vector<2x32xf32> to vector<2x32xbf16>
    %913 = arith.truncf %911 : vector<32x32xf32> to vector<32x32xbf16>
    %cst_280 = arith.constant dense<0.000000e+00> : vector<2x32xf32>
    %914 = tpu.matmul %912, %913, %cst_280 {dimension_numbers = #tpu.dot_dimension_numbers<[1], [0], [0], [1], [0, 0, 1, 1], [], []>} : vector<2x32xbf16>, vector<32x32xbf16>, vector<2x32xf32> -> vector<2x32xf32>
    %915 = vector.shape_cast %914 : vector<2x32xf32> to vector<2x1x32xf32>
    %916 = vector.broadcast %915 : vector<2x1x32xf32> to vector<2x8x32xf32>
    %917 = arith.mulf %916, %295 : vector<2x8x32xf32>
    %cst_281 = arith.constant dense<0.000000e+00> : vector<2x8xf32>
    %918 = vector.multi_reduction <add>, %917, %cst_281 [2] : vector<2x8x32xf32> to vector<2x8xf32>
    %919 = vector.shape_cast %918 : vector<2x8xf32> to vector<2x8x1xf32>
    %cst_282 = arith.constant 0.176776692 : f32
    %920 = vector.broadcast %cst_282 : f32 to vector<2x8x1xf32>
    %921 = arith.mulf %919, %920 : vector<2x8x1xf32>
    %922 = math.tanh %921 : vector<2x8x1xf32>
    %cst_283 = arith.constant 1.000000e+01 : f32
    %923 = vector.broadcast %cst_283 : f32 to vector<2x8x1xf32>
    %924 = arith.mulf %922, %923 : vector<2x8x1xf32>
    %cst_284 = arith.constant -1.000000e+09 : f32
    %925 = vector.broadcast %cst_284 : f32 to vector<2x8x1xf32>
    %926 = arith.mulf %871, %925 : vector<2x8x1xf32>
    %927 = arith.addf %924, %926 : vector<2x8x1xf32>
    %cst_285 = arith.constant 1.000000e+00 : f32
    %928 = vector.broadcast %cst_285 : f32 to vector<2x8x1xf32>
    %929 = arith.mulf %927, %928 : vector<2x8x1xf32>
    %cst_286 = arith.constant dense<0xFF800000> : vector<2x1xf32>
    %930 = vector.multi_reduction <maximumf>, %929, %cst_286 [1] : vector<2x8x1xf32> to vector<2x1xf32>
    %931 = vector.shape_cast %930 : vector<2x1xf32> to vector<2x1x1xf32>
    %932 = vector.broadcast %931 : vector<2x1x1xf32> to vector<2x8x1xf32>
    %933 = arith.subf %929, %932 : vector<2x8x1xf32>
    %934 = math.exp %933 : vector<2x8x1xf32>
    %cst_287 = arith.constant dense<0.000000e+00> : vector<2x1xf32>
    %935 = vector.multi_reduction <add>, %934, %cst_287 [1] : vector<2x8x1xf32> to vector<2x1xf32>
    %936 = vector.shape_cast %935 : vector<2x1xf32> to vector<2x1x1xf32>
    %937 = math.log %936 : vector<2x1x1xf32>
    %938 = arith.addf %937, %931 : vector<2x1x1xf32>
    %939 = vector.broadcast %938 : vector<2x1x1xf32> to vector<2x8x1xf32>
    %940 = arith.subf %929, %939 : vector<2x8x1xf32>
    %cst_288 = arith.constant dense<0xFF800000> : vector<2x1xf32>
    %941 = vector.multi_reduction <maximumf>, %940, %cst_288 [1] : vector<2x8x1xf32> to vector<2x1xf32>
    %942 = vector.shape_cast %941 : vector<2x1xf32> to vector<2x1x1xf32>
    %943 = vector.broadcast %942 : vector<2x1x1xf32> to vector<2x8x1xf32>
    %944 = arith.cmpf oge, %940, %943 : vector<2x8x1xf32>
    %c8_i32_289 = arith.constant 8 : i32
    %945 = vector.broadcast %c8_i32_289 : i32 to vector<2x8x1xi32>
    %946 = arith.select %944, %296, %945 : vector<2x8x1xi1>, vector<2x8x1xi32>
    %cst_290 = arith.constant dense<2147483647> : vector<2x1xi32>
    %947 = vector.multi_reduction <minsi>, %946, %cst_290 [1] : vector<2x8x1xi32> to vector<2x1xi32>
    %948 = vector.shape_cast %947 : vector<2x1xi32> to vector<2x1x1xi32>
    %949 = vector.broadcast %948 : vector<2x1x1xi32> to vector<2x8x1xi32>
    %950 = arith.cmpi eq, %296, %949 : vector<2x8x1xi32>
    %951 = arith.extui %950 : vector<2x8x1xi1> to vector<2x8x1xi32>
    %952 = arith.sitofp %951 : vector<2x8x1xi32> to vector<2x8x1xf32>
    %953 = arith.mulf %952, %940 : vector<2x8x1xf32>
    %cst_291 = arith.constant dense<0.000000e+00> : vector<2x1xf32>
    %954 = vector.multi_reduction <add>, %953, %cst_291 [1] : vector<2x8x1xf32> to vector<2x1xf32>
    %955 = vector.shape_cast %954 : vector<2x1xf32> to vector<2x1x1xf32>
    %c6_i32 = arith.constant 6 : i32
    %956 = vector.broadcast %c6_i32 : i32 to vector<2x8x1xi32>
    %957 = arith.cmpi eq, %296, %956 : vector<2x8x1xi32>
    %958 = arith.extui %957 : vector<2x8x1xi1> to vector<2x8x1xi32>
    %959 = arith.sitofp %958 : vector<2x8x1xi32> to vector<2x8x1xf32>
    %960 = vector.broadcast %955 : vector<2x1x1xf32> to vector<2x8x1xf32>
    %961 = arith.mulf %960, %959 : vector<2x8x1xf32>
    %962 = arith.addf %866, %961 : vector<2x8x1xf32>
    %963 = arith.extui %957 : vector<2x8x1xi1> to vector<2x8x1xi32>
    %964 = vector.broadcast %948 : vector<2x1x1xi32> to vector<2x8x1xi32>
    %965 = arith.muli %964, %963 : vector<2x8x1xi32>
    %966 = arith.addi %870, %965 : vector<2x8x1xi32>
    %967 = arith.maximumf %871, %952 : vector<2x8x1xf32>
    %968 = vector.broadcast %376 : vector<2x8x1xf32> to vector<2x8x32xf32>
    %969 = arith.mulf %968, %278 : vector<2x8x32xf32>
    %cst_292 = arith.constant dense<0.000000e+00> : vector<2x32xf32>
    %970 = vector.multi_reduction <add>, %969, %cst_292 [1] : vector<2x8x32xf32> to vector<2x32xf32>
    %971 = vector.broadcast %952 : vector<2x8x1xf32> to vector<2x8x32xf32>
    %972 = arith.mulf %971, %278 : vector<2x8x32xf32>
    %cst_293 = arith.constant dense<0.000000e+00> : vector<2x32xf32>
    %973 = vector.multi_reduction <add>, %972, %cst_293 [1] : vector<2x8x32xf32> to vector<2x32xf32>
    %974 = tpu.concatenate %970, %973 in 1 : vector<2x32xf32>, vector<2x32xf32> -> vector<2x64xf32>
    %c0_294 = arith.constant 0 : index
    %c0_295 = arith.constant 0 : index
    %975 = vector.load %arg13[%c0_294, %c0_295] : memref<64x32xf32, #tpu.memory_space<vmem>>, vector<64x32xf32>
    %976 = arith.truncf %974 : vector<2x64xf32> to vector<2x64xbf16>
    %977 = arith.truncf %975 : vector<64x32xf32> to vector<64x32xbf16>
    %cst_296 = arith.constant dense<0.000000e+00> : vector<2x32xf32>
    %978 = tpu.matmul %976, %977, %cst_296 {dimension_numbers = #tpu.dot_dimension_numbers<[1], [0], [0], [1], [0, 0, 1, 1], [], []>} : vector<2x64xbf16>, vector<64x32xbf16>, vector<2x32xf32> -> vector<2x32xf32>
    %979 = arith.addf %285, %978 : vector<2x32xf32>
    %cst_297 = arith.constant 5.000000e-01 : f32
    %980 = vector.broadcast %cst_297 : f32 to vector<2x32xf32>
    %981 = arith.mulf %979, %980 : vector<2x32xf32>
    %982 = vector.shape_cast %981 : vector<2x32xf32> to vector<2x1x32xf32>
    %983 = vector.broadcast %982 : vector<2x1x32xf32> to vector<2x8x32xf32>
    %984 = arith.mulf %983, %291 : vector<2x8x32xf32>
    %985 = vector.shape_cast %984 : vector<2x8x32xf32> to vector<16x32xf32>
    %cst_298 = arith.constant dense<0.000000e+00> : vector<16x8xf32>
    %986 = tpu.matmul %985, %12, %cst_298 {dimension_numbers = #tpu.dot_dimension_numbers<[1], [0], [0], [1], [0, 0, 1, 1], [], []>} : vector<16x32xf32>, vector<32x8xf32>, vector<16x8xf32> -> vector<16x8xf32>
    %987 = vector.shape_cast %986 : vector<16x8xf32> to vector<2x8x8xf32>
    %cst_299 = arith.constant -1.000000e+09 : f32
    %988 = vector.broadcast %cst_299 : f32 to vector<2x8x1xf32>
    %989 = arith.mulf %967, %988 : vector<2x8x1xf32>
    %990 = vector.broadcast %989 : vector<2x8x1xf32> to vector<2x8x8xf32>
    %991 = arith.addf %987, %990 : vector<2x8x8xf32>
    %cst_300 = arith.constant dense<0xFF800000> : vector<2x8xf32>
    %992 = vector.multi_reduction <maximumf>, %991, %cst_300 [1] : vector<2x8x8xf32> to vector<2x8xf32>
    %993 = vector.shape_cast %992 : vector<2x8xf32> to vector<2x1x8xf32>
    %994 = vector.broadcast %993 : vector<2x1x8xf32> to vector<2x8x8xf32>
    %995 = arith.subf %991, %994 : vector<2x8x8xf32>
    %996 = math.exp %995 : vector<2x8x8xf32>
    %cst_301 = arith.constant dense<0.000000e+00> : vector<2x8xf32>
    %997 = vector.multi_reduction <add>, %996, %cst_301 [1] : vector<2x8x8xf32> to vector<2x8xf32>
    %998 = vector.shape_cast %997 : vector<2x8xf32> to vector<2x1x8xf32>
    %999 = tpu.reciprocal %998 {approx = true} : vector<2x1x8xf32> -> vector<2x1x8xf32>
    %1000 = vector.broadcast %999 : vector<2x1x8xf32> to vector<2x8x8xf32>
    %1001 = arith.mulf %996, %1000 : vector<2x8x8xf32>
    %1002 = vector.shape_cast %1001 : vector<2x8x8xf32> to vector<16x8xf32>
    %cst_302 = arith.constant dense<0.000000e+00> : vector<16x32xf32>
    %1003 = tpu.matmul %1002, %25, %cst_302 {dimension_numbers = #tpu.dot_dimension_numbers<[1], [0], [0], [1], [0, 0, 1, 1], [], []>} : vector<16x8xf32>, vector<8x32xf32>, vector<16x32xf32> -> vector<16x32xf32>
    %1004 = vector.shape_cast %1003 : vector<16x32xf32> to vector<2x8x32xf32>
    %1005 = arith.mulf %1004, %293 : vector<2x8x32xf32>
    %cst_303 = arith.constant dense<0.000000e+00> : vector<2x32xf32>
    %1006 = vector.multi_reduction <add>, %1005, %cst_303 [1] : vector<2x8x32xf32> to vector<2x32xf32>
    %c0_304 = arith.constant 0 : index
    %c0_305 = arith.constant 0 : index
    %1007 = vector.load %arg14[%c0_304, %c0_305] : memref<32x32xf32, #tpu.memory_space<vmem>>, vector<32x32xf32>
    %1008 = arith.truncf %1006 : vector<2x32xf32> to vector<2x32xbf16>
    %1009 = arith.truncf %1007 : vector<32x32xf32> to vector<32x32xbf16>
    %cst_306 = arith.constant dense<0.000000e+00> : vector<2x32xf32>
    %1010 = tpu.matmul %1008, %1009, %cst_306 {dimension_numbers = #tpu.dot_dimension_numbers<[1], [0], [0], [1], [0, 0, 1, 1], [], []>} : vector<2x32xbf16>, vector<32x32xbf16>, vector<2x32xf32> -> vector<2x32xf32>
    %1011 = vector.shape_cast %1010 : vector<2x32xf32> to vector<2x1x32xf32>
    %1012 = vector.broadcast %1011 : vector<2x1x32xf32> to vector<2x8x32xf32>
    %1013 = arith.mulf %1012, %295 : vector<2x8x32xf32>
    %cst_307 = arith.constant dense<0.000000e+00> : vector<2x8xf32>
    %1014 = vector.multi_reduction <add>, %1013, %cst_307 [2] : vector<2x8x32xf32> to vector<2x8xf32>
    %1015 = vector.shape_cast %1014 : vector<2x8xf32> to vector<2x8x1xf32>
    %cst_308 = arith.constant 0.176776692 : f32
    %1016 = vector.broadcast %cst_308 : f32 to vector<2x8x1xf32>
    %1017 = arith.mulf %1015, %1016 : vector<2x8x1xf32>
    %1018 = math.tanh %1017 : vector<2x8x1xf32>
    %cst_309 = arith.constant 1.000000e+01 : f32
    %1019 = vector.broadcast %cst_309 : f32 to vector<2x8x1xf32>
    %1020 = arith.mulf %1018, %1019 : vector<2x8x1xf32>
    %cst_310 = arith.constant -1.000000e+09 : f32
    %1021 = vector.broadcast %cst_310 : f32 to vector<2x8x1xf32>
    %1022 = arith.mulf %967, %1021 : vector<2x8x1xf32>
    %1023 = arith.addf %1020, %1022 : vector<2x8x1xf32>
    %cst_311 = arith.constant 1.000000e+00 : f32
    %1024 = vector.broadcast %cst_311 : f32 to vector<2x8x1xf32>
    %1025 = arith.mulf %1023, %1024 : vector<2x8x1xf32>
    %cst_312 = arith.constant dense<0xFF800000> : vector<2x1xf32>
    %1026 = vector.multi_reduction <maximumf>, %1025, %cst_312 [1] : vector<2x8x1xf32> to vector<2x1xf32>
    %1027 = vector.shape_cast %1026 : vector<2x1xf32> to vector<2x1x1xf32>
    %1028 = vector.broadcast %1027 : vector<2x1x1xf32> to vector<2x8x1xf32>
    %1029 = arith.subf %1025, %1028 : vector<2x8x1xf32>
    %1030 = math.exp %1029 : vector<2x8x1xf32>
    %cst_313 = arith.constant dense<0.000000e+00> : vector<2x1xf32>
    %1031 = vector.multi_reduction <add>, %1030, %cst_313 [1] : vector<2x8x1xf32> to vector<2x1xf32>
    %1032 = vector.shape_cast %1031 : vector<2x1xf32> to vector<2x1x1xf32>
    %1033 = math.log %1032 : vector<2x1x1xf32>
    %1034 = arith.addf %1033, %1027 : vector<2x1x1xf32>
    %1035 = vector.broadcast %1034 : vector<2x1x1xf32> to vector<2x8x1xf32>
    %1036 = arith.subf %1025, %1035 : vector<2x8x1xf32>
    %cst_314 = arith.constant dense<0xFF800000> : vector<2x1xf32>
    %1037 = vector.multi_reduction <maximumf>, %1036, %cst_314 [1] : vector<2x8x1xf32> to vector<2x1xf32>
    %1038 = vector.shape_cast %1037 : vector<2x1xf32> to vector<2x1x1xf32>
    %1039 = vector.broadcast %1038 : vector<2x1x1xf32> to vector<2x8x1xf32>
    %1040 = arith.cmpf oge, %1036, %1039 : vector<2x8x1xf32>
    %c8_i32_315 = arith.constant 8 : i32
    %1041 = vector.broadcast %c8_i32_315 : i32 to vector<2x8x1xi32>
    %1042 = arith.select %1040, %296, %1041 : vector<2x8x1xi1>, vector<2x8x1xi32>
    %cst_316 = arith.constant dense<2147483647> : vector<2x1xi32>
    %1043 = vector.multi_reduction <minsi>, %1042, %cst_316 [1] : vector<2x8x1xi32> to vector<2x1xi32>
    %1044 = vector.shape_cast %1043 : vector<2x1xi32> to vector<2x1x1xi32>
    %1045 = vector.broadcast %1044 : vector<2x1x1xi32> to vector<2x8x1xi32>
    %1046 = arith.cmpi eq, %296, %1045 : vector<2x8x1xi32>
    %1047 = arith.extui %1046 : vector<2x8x1xi1> to vector<2x8x1xi32>
    %1048 = arith.sitofp %1047 : vector<2x8x1xi32> to vector<2x8x1xf32>
    %1049 = arith.mulf %1048, %1036 : vector<2x8x1xf32>
    %cst_317 = arith.constant dense<0.000000e+00> : vector<2x1xf32>
    %1050 = vector.multi_reduction <add>, %1049, %cst_317 [1] : vector<2x8x1xf32> to vector<2x1xf32>
    %1051 = vector.shape_cast %1050 : vector<2x1xf32> to vector<2x1x1xf32>
    %c7_i32 = arith.constant 7 : i32
    %1052 = vector.broadcast %c7_i32 : i32 to vector<2x8x1xi32>
    %1053 = arith.cmpi eq, %296, %1052 : vector<2x8x1xi32>
    %1054 = arith.extui %1053 : vector<2x8x1xi1> to vector<2x8x1xi32>
    %1055 = arith.sitofp %1054 : vector<2x8x1xi32> to vector<2x8x1xf32>
    %1056 = vector.broadcast %1051 : vector<2x1x1xf32> to vector<2x8x1xf32>
    %1057 = arith.mulf %1056, %1055 : vector<2x8x1xf32>
    %1058 = arith.addf %962, %1057 : vector<2x8x1xf32>
    %1059 = arith.extui %1053 : vector<2x8x1xi1> to vector<2x8x1xi32>
    %1060 = vector.broadcast %1044 : vector<2x1x1xi32> to vector<2x8x1xi32>
    %1061 = arith.muli %1060, %1059 : vector<2x8x1xi32>
    %1062 = arith.addi %966, %1061 : vector<2x8x1xi32>
    %c0_318 = arith.constant 0 : index
    %c0_319 = arith.constant 0 : index
    %c0_320 = arith.constant 0 : index
    %1063 = vector.load %arg15[%c0_318, %c0_319, %c0_320] : memref<2x8x1xf32, #tpu.memory_space<vmem>>, vector<2x8x1xf32>
    tpu.vector_store %arg15[%c0_318, %c0_319, %c0_320], %1058 {strides = array<i32>} : memref<2x8x1xf32, #tpu.memory_space<vmem>>, vector<2x8x1xf32>,
    %c0_321 = arith.constant 0 : index
    %c0_322 = arith.constant 0 : index
    %c0_323 = arith.constant 0 : index
    %1064 = vector.load %arg16[%c0_321, %c0_322, %c0_323] : memref<2x8x1xi32, #tpu.memory_space<vmem>>, vector<2x8x1xi32>
    tpu.vector_store %arg16[%c0_321, %c0_322, %c0_323], %1062 {strides = array<i32>} : memref<2x8x1xi32, #tpu.memory_space<vmem>>, vector<2x8x1xi32>,
    return
  }
}

</mosaic_0001>

<bundles_post_ra>
// kernel: forward.1
= control target key start
LH: loop header
LB: loop body
LE: loop exit
PB: predicated region body
PF: predicated region fallthrough
CT: control target
= control target key end

     0   :  { %vm108_vm0 = vcmask 1041408   ;;  %vm101_vm1 = vcmask 15360   ;;  %v9485_v3 = vmov 0.0   ;;  %vm9486_vm2 = vmmov 0   ;;  %s11985_s1 = inlined_call_operand.vmem [shape: f32[2,32], index: 1, kind: input, shape index: {}]   ;;  %s11986_s0 = inlined_call_operand.vmem [shape: f32[16,2], index: 0, kind: input, shape index: {}]   ;;  %s11987_s3 = inlined_call_operand.vmem [shape: f32[2,4,32,32], index: 3, kind: input, shape index: {}]   ;;  %s11988_s2 = inlined_call_operand.vmem [shape: f32[1,32], index: 2, kind: input, shape index: {}]   ;;  %s11989_s6 = inlined_call_operand.vmem [shape: f32[2,32,512], index: 6, kind: input, shape index: {}]   ;;  %s11990_s8 = inlined_call_operand.vmem [shape: f32[2,512,32], index: 8, kind: input, shape index: {}]   ;;  %s11991_s4 = inlined_call_operand.vmem [shape: f32[2,2,32], index: 4, kind: input, shape index: {}]   ;;  %s11992_s5 = inlined_call_operand.vmem [shape: f32[2,2,32], index: 5, kind: input, shape index: {}]   ;;  %s11993_s7 = inlined_call_operand.vmem [shape: f32[2,1,512], index: 7, kind: input, shape index: {}]   ;;  %s11994_s9 = inlined_call_operand.vmem [shape: f32[2,1,32], index: 9, kind: input, shape index: {}]   ;;  %s11995_s11 = inlined_call_operand.vmem [shape: f32[32,96], index: 11, kind: input, shape index: {}]   ;;  %s11996_s12 = inlined_call_operand.vmem [shape: f32[32,32], index: 12, kind: input, shape index: {}]   ;;  %s11997_s13 = inlined_call_operand.vmem [shape: f32[64,32], index: 13, kind: input, shape index: {}]   ;;  %s11998_s10 = inlined_call_operand.vmem [shape: f32[1,64], index: 10, kind: input, shape index: {}]   ;;  %s11999_s14 = inlined_call_operand.vmem [shape: f32[32,32], index: 14, kind: input, shape index: {}]   ;;  %s12000_s16 = inlined_call_operand.vmem [shape: s32[2,8,1], index: 16, kind: output, shape index: {1}]   ;;  %s12001_s15 = inlined_call_operand.vmem [shape: f32[2,8,1], index: 15, kind: output, shape index: {0}]  }
   0x1   :  { %12007 = sst [smem:[#allocation2_spill]] %s11985_s1  ;;  %v91_v1 = vld [vmem:[%s11986_s0] sm:$0xff]  ;;  %v92_v2 = vld [vmem:[%s11986_s0 + $0x8] sm:$0xff]  ;;  %8616 = vmatprep.subr.bf16.mxu0 %v9485_v3  ;;  %v189_v10 = vld [vmem:[%s11987_s3 + $0x10] sm:$0xff]  ;;  %8620 = vmatprep.mubr.msk.bf16.mxu0 %vm9486_vm2, %v9485_v3  ;;  %vm206_vm3 = vcmask 261120   ;;  %v53_v28 = vlaneseq }
   0x2   :  { %s12008_s23 = sld [smem:[#allocation2_spill]]  ;;  %8613 = vmatprep.mubr.msk.f32.mxu1 %vm101_vm1, %v91_v1  ;;  %v187_v4 = vld [vmem:[%s11987_s3] sm:$0xff]  ;;  %v188_v5 = vld [vmem:[%s11987_s3 + $0x8] sm:$0xff]  ;;  %v190_v11 = vld [vmem:[%s11987_s3 + $0x18] sm:$0xff]  ;;  %v12004_v38 = vmov 1.0|1.0  }
   0x3   :  { %v195_v6 = vld [vmem:[%s11987_s3 + $0x40] sm:$0xff]  ;;  %v204_v7 = vpack.c.bf16 %v188_v5, %v187_v4  ;;  %v196_v8 = vld [vmem:[%s11987_s3 + $0x48] sm:$0xff]  ;;  %v205_v12 = vpack.c.bf16 %v190_v11, %v189_v10  ;;  %v197_v13 = vld [vmem:[%s11987_s3 + $0x50] sm:$0xff]  ;;  %v9648_v29 = vshrl.u32 %v53_v28, 7  ;;  %v9650_v30 = vand.u32 127, %v53_v28 }
   0x4   :  { %v296_v9 = vpack.c.bf16 %v196_v8, %v195_v6  ;;  %v198_v14 = vld [vmem:[%s11987_s3 + $0x58] sm:$0xff]  ;;  %v7973_v16 = vld [vmem:[%s11988_s2] ss:$0 sm:$0xff]  ;;  %v192_v19 = vld [vmem:[%s11987_s3 + $0x28] sm:$0xff]  ;;  %v9488_v40 = vmov 1966171168  }
   0x5   :  { %8617 = vmatpush3.bf16.msra.mxu0 %v204_v7  ;;  %v297_v15 = vpack.c.bf16 %v198_v14, %v197_v13  ;;  %v191_v18 = vld [vmem:[%s11987_s3 + $0x20] sm:$0xff]  ;;  %v193_v25 = vld [vmem:[%s11987_s3 + $0x30] sm:$0xff]  ;;  %v194_v26 = vld [vmem:[%s11987_s3 + $0x38] sm:$0xff]  ;;  %v65_v31 = vadd.s32 1, %v9650_v30  ;;  %v55_v32 = vadd.s32 8, %v9648_v29  ;;  %v60_v33 = vmul.u32 4, %v9650_v30 }
   0x6   :  { %8618 = vmatprep.subr.bf16.mxu0 %v9485_v3  ;;  %v253_v23 = vpack.c.bf16 %v192_v19, %v191_v18  ;;  %v254_v27 = vpack.c.bf16 %v194_v26, %v193_v25  ;;  %v56_v35 = vadd.s32 16, %v9648_v29  ;;  %v57_v36 = vadd.s32 24, %v9648_v29 }
   0x7   :  { %v66_v34 = vmul.u32 4, %v65_v31  ;;  %vm61_vm4 = vcmp.ge.s32.totalorder %v9648_v29, %v60_v33  ;;  %vm62_vm5 = vcmp.ge.s32.totalorder %v55_v32, %v60_v33  ;;  %v343_v41 = vunpack.c.l.s4 %v9488_v40 }
   0x8   :  { %v93_v0 = vld [vmem:[%s12008_s23] sm:$0x3]  ;;  %vm63_vm11 = vcmp.ge.s32.totalorder %v56_v35, %v60_v33  ;;  %vm64_vm12 = vcmp.ge.s32.totalorder %v57_v36, %v60_v33  ;;  %v9689_v56 = vsub.s32 0, %v9648_v29 }
   0x9   :  { %8611 = vmatprep.subr.msk.mxu1 %vm108_vm0, %v93_v0  ;;  %8619 = vmatpush3.bf16.msra.mxu0 %v205_v12  ;;  %vm67_vm6 = vcmp.lt.s32.totalorder %v9648_v29, %v66_v34  ;;  %vm68_vm7 = vcmp.lt.s32.totalorder %v55_v32, %v66_v34  ;;  %vm69_vm13 = vcmp.lt.s32.totalorder %v56_v35, %v66_v34  ;;  %v344_v42 = vunpack.c.0.s8 %v343_v41 }
   0xa   :  { %8612 = vmatpush3.msk.msra.mxu1 %vm108_vm0, %v93_v0  ;;  %8624 = vmatprep.subr.bf16.mxu0 %v9485_v3  ;;  %vm71_vm8 = vmand %vm61_vm4, %vm67_vm6  ;;  %vm70_vm14 = vcmp.lt.s32.totalorder %v57_v36, %v66_v34 }
   0xb   :  { %8614 = vmatmul.mubr.msk.f32.vlgmr.msra.gmra.mrb[0].mxu1 %vm101_vm1, %v92_v2  ;;  %8632 = vmatprep.subr.bf16.mxu1 %v9485_v3  ;;  %vm72_vm9 = vmand %vm62_vm5, %vm68_vm7  ;;  %v9681_v43 = vsub.s32 %v344_v42, %v9648_v29  ;;  %vm728_vm7 = vcmask 64512  }
   0xc   :  { %8633 = vmatpush3.bf16.msra.mxu1 %v296_v9  ;;  %8636 = vmatprep.mubr.msk.bf16.mxu1 %vm9486_vm2, %v9485_v3  ;;  %vm9659_vm10 = vmpackc.low %vm72_vm9, %vm71_vm8  ;;  %vm1404_vm8 = vcmask 1041409   ;;  %vm1406_vm9 = vcmask 1042434  }
   0xd   :  { %8634 = vmatprep.subr.bf16.mxu1 %v9485_v3  ;;  %vm73_vm15 = vmand %vm63_vm11, %vm69_vm13  ;;  %vm1408_vm11 = vcmask 1043459   ;;  %vm1412_vm13 = vcmask 1045509  }
   0xe   :  { %vm74_vm0 = vmand %vm64_vm12, %vm70_vm14  ;;  %vm1410_vm12 = vcmask 1044484   ;;  %vm1414_vm14 = vcmask 1046534  }
   0xf   :  { %vm9669_vm1 = vmpackc.low %vm74_vm0, %vm73_vm15  ;;  %vm1416_vm15 = vcmask 1047559   ;;  %vm3735_vm0 = vcmask 523264  }
  0x10   :  { %8635 = vmatpush3.bf16.msra.mxu1 %v297_v15 }
  0xde   :  { %v8615_v17 = vpop.f32.mrb[0].mxu1 }
  0xdf   :  { %v9630_v20 = vadd.f32 %v8615_v17, %v7973_v16  ;;  %v178_v21 = vpop.f32.mrb[1].mxu1 }
  0xe0   :  { %v9632_v22 = vadd.f32 %v7973_v16, %v178_v21 }
  0xe2   :  { %v203_v24 = vpack.c.bf16 %v9630_v20, %v9632_v22 }
  0xe4   :  { %8621 = vmatmul.mubr.msk.bf16.vlgmr.msra.gmra.mrb[0].mxu0 %vm206_vm3, %v203_v24  ;;  %8637 = vmatmul.mubr.msk.bf16.vlgmr.msra.gmra.mrb[4].mxu1 %vm206_vm3, %v203_v24 }
  0xe5   :  { %8625 = vmatpush3.bf16.msra.mxu0 %v253_v23  ;;  %8628 = vmatprep.mubr.msk.bf16.mxu0 %vm9486_vm2, %v9485_v3 }
  0xe6   :  { %8626 = vmatprep.subr.bf16.mxu0 %v9485_v3 }
  0xe9   :  { %8627 = vmatpush3.bf16.msra.mxu0 %v254_v27 }
  0xea   :  { %9101 = vmatprep.subr.msk.bf16.mxu0 %vm9659_vm10, %v12004_v38 }
  0xec   :  { %8629 = vmatmul.mubr.msk.bf16.vlgmr.msra.gmra.mrb[4].mxu0 %vm206_vm3, %v203_v24 }
  0xed   :  { %9103 = vmatpush3.bf16.msk.msra.mxu0 %vm9659_vm10, %v12004_v38 }
  0xee   :  { %9105 = vmatprep.subr.msk.bf16.mxu0 %vm9669_vm1, %v12004_v38 }
  0xf1   :  { %9107 = vmatpush3.bf16.msk.msra.mxu0 %vm9669_vm1, %v12004_v38 }
  0xf2   :  { %8698 = vmatprep.subr.bf16.mxu0 %v9485_v3 }
 0x1b7   :  { %v244_v44 = vpop.f32.mrb[0].mxu0  ;;  %v9683_v45 = vpop.f32.mrb[4].mxu1 }
 0x1b8   :  { %v251_v46 = vmul.f32 0.5, %v244_v44  ;;  %v8622_v47 = vpop.f32.mrb[1].mxu0  ;;  %v8638_v48 = vpop.f32.mrb[5].mxu1 }
 0x1b9   :  { %v247_v49 = vpop.f32.mrb[2].mxu0  ;;  %v9685_v50 = vpop.f32.mrb[6].mxu1 }
 0x1ba   :  { %v341_v51 = vcombine.high %v251_v46, %v251_v46  ;;  %v348_v52 = vrot.slane %v251_v46, %v9681_v43  ;;  %v252_v53 = vmul.f32 0.5, %v247_v49  ;;  %v8623_v54 = vpop.f32.mrb[3].mxu0  ;;  %v8639_v55 = vpop.f32.mrb[7].mxu1 }
 0x1bc   :  { %v355_v57 = vrot.slane %v341_v51, %v9681_v43  ;;  %v356_v58 = vcombine.high %v348_v52, %v348_v52  ;;  %v364_v59 = vrot.slane %v348_v52, %v9681_v43  ;;  %v390_v60 = vcombine.high %v252_v53, %v252_v53 }
 0x1bd   :  { %v397_v61 = vrot.slane %v252_v53, %v9681_v43 }
 0x1be   :  { %v357_v62 = vcombine.high %v355_v57, %v355_v57  ;;  %v371_v63 = vrot.slane %v355_v57, %v9681_v43  ;;  %v378_v0 = vrot.slane %v356_v58, %v9681_v43  ;;  %v386_v1 = vcombine.high %v364_v59, %v364_v59 }
 0x1bf   :  { %v442_v2 = vrot.slane %v364_v59, %v9689_v56  ;;  %v404_v4 = vrot.slane %v390_v60, %v9681_v43  ;;  %v405_v5 = vcombine.high %v397_v61, %v397_v61  ;;  %v413_v6 = vrot.slane %v397_v61, %v9681_v43  ;;  %v289_v7 = vpop.f32.mrb[4].mxu0 }
 0x1c0   :  { %v385_v8 = vrot.slane %v357_v62, %v9681_v43  ;;  %v387_v9 = vcombine.high %v371_v63, %v371_v63  ;;  %v388_v10 = vcombine.high %v378_v0, %v378_v0  ;;  %v446_v11 = vrot.slane %v378_v0, %v9689_v56  ;;  %v8630_v12 = vpop.f32.mrb[5].mxu0 }
 0x1c1   :  { %v450_v13 = vrot.slane %v386_v1, %v9689_v56  ;;  %v458_v14 = vrot.slane %v371_v63, %v9689_v56  ;;  %v406_v15 = vcombine.high %v404_v4, %v404_v4  ;;  %v420_v16 = vrot.slane %v404_v4, %v9681_v43  ;;  %v292_v17 = vpop.f32.mrb[6].mxu0 }
 0x1c2   :  { %v389_v18 = vcombine.high %v385_v8, %v385_v8  ;;  %v427_v19 = vrot.slane %v405_v5, %v9681_v43  ;;  %v435_v21 = vcombine.high %v413_v6, %v413_v6  ;;  %v474_v23 = vrot.slane %v413_v6, %v9689_v56  ;;  %v8631_v24 = vpop.f32.mrb[7].mxu0 }
 0x1c3   :  { %v434_v25 = vrot.slane %v406_v15, %v9681_v43  ;;  %v436_v26 = vcombine.high %v420_v16, %v420_v16  ;;  %v490_v27 = vrot.slane %v420_v16, %v9689_v56  ;;  %v519_v28 = vmul.f32 %v442_v2, %v289_v7 }
 0x1c4   :  { %v437_v31 = vcombine.high %v427_v19, %v427_v19  ;;  %v478_v32 = vrot.slane %v427_v19, %v9689_v56  ;;  %v482_v33 = vrot.slane %v435_v21, %v9689_v56  ;;  %v520_v34 = vmul.f32 %v446_v11, %v289_v7 }
 0x1c5   :  { %v438_v35 = vcombine.high %v434_v25, %v434_v25  ;;  %8648 = vmatprep.mubr.msk.f32.mxu0 %vm206_vm3, %v519_v28  ;;  %v521_v36 = vmul.f32 %v450_v13, %v289_v7  ;;  %v454_v40 = vrot.slane %v388_v10, %v9689_v56  ;;  %v523_v41 = vmul.f32 %v458_v14, %v289_v7 }
 0x1c6   :  { %8649 = vmatmul.mubr.msk.f32.vlgmr.msra.gmra.mrb[8].mxu0 %vm206_vm3, %v520_v34  ;;  %v462_v42 = vrot.slane %v385_v8, %v9689_v56  ;;  %v466_v44 = vrot.slane %v387_v9, %v9689_v56  ;;  %v470_v46 = vrot.slane %v389_v18, %v9689_v56  ;;  %v527_v47 = vmul.f32 %v474_v23, %v292_v17 }
 0x1c7   :  { %8651 = vmatprep.mubr.msk.f32.mxu0 %vm206_vm3, %v521_v36  ;;  %v522_v48 = vmul.f32 %v454_v40, %v289_v7  ;;  %v528_v49 = vmul.f32 %v478_v32, %v292_v17  ;;  %v529_v51 = vmul.f32 %v482_v33, %v292_v17  ;;  %v486_v52 = vrot.slane %v437_v31, %v9689_v56 }
 0x1c8   :  { %v524_v53 = vmul.f32 %v462_v42, %v289_v7  ;;  %v525_v54 = vmul.f32 %v466_v44, %v289_v7  ;;  %v526_v55 = vmul.f32 %v470_v46, %v289_v7  ;;  %v531_v57 = vmul.f32 %v490_v27, %v292_v17 }
 0x1c9   :  { %v530_v58 = vmul.f32 %v486_v52, %v292_v17  ;;  %v494_v59 = vrot.slane %v434_v25, %v9689_v56  ;;  %v498_v60 = vrot.slane %v436_v26, %v9689_v56  ;;  %v502_v61 = vrot.slane %v438_v35, %v9689_v56 }
 0x1ca   :  { %8652 = vmatmul.mubr.msk.f32.gmra.mrb[10].mxu0 %vm206_vm3, %v522_v48  ;;  %v85_v1 = vadd.s32 1, %v9648_v29  ;;  %v83_v2 = vmul.u32 4, %v9648_v29  ;;  %v12002_v6 = vmov 1.0  }
 0x1cb   :  { %8654 = vmatprep.mubr.msk.f32.mxu0 %vm206_vm3, %v523_v41  ;;  %v532_v62 = vmul.f32 %v494_v59, %v292_v17  ;;  %v533_v63 = vmul.f32 %v498_v60, %v292_v17  ;;  %v534_v0 = vmul.f32 %v502_v61, %v292_v17 }
 0x1cc   :  { %v86_v4 = vmul.u32 4, %v85_v1  ;;  %vm84_vm4 = vcmp.ge.s32.totalorder %v9650_v30, %v83_v2 }
 0x1ce   :  { %8655 = vmatmul.mubr.msk.f32.gmra.mrb[12].mxu0 %vm206_vm3, %v524_v53  ;;  %vm87_vm5 = vcmp.lt.s32.totalorder %v9650_v30, %v86_v4 }
 0x1cf   :  { %8657 = vmatprep.mubr.msk.f32.mxu0 %vm206_vm3, %v525_v54  ;;  %vm9740_vm6 = vmand %vm84_vm4, %vm87_vm5 }
 0x1d0   :  { %8672 = vmatprep.subr.msk.mxu1 %vm9740_vm6, %v12002_v6 }
 0x1d1   :  { %8673 = vmatpush3.msk.msra.mxu1 %vm9740_vm6, %v12002_v6 }
 0x1d2   :  { %8658 = vmatmul.mubr.msk.f32.gmra.mrb[14].mxu0 %vm206_vm3, %v526_v55 }
 0x1d3   :  { %8660 = vmatprep.mubr.msk.f32.mxu0 %vm206_vm3, %v527_v47 }
 0x1d6   :  { %8661 = vmatmul.mubr.msk.f32.gmra.mrb[16].mxu0 %vm206_vm3, %v528_v49 }
 0x1d7   :  { %8663 = vmatprep.mubr.msk.f32.mxu0 %vm206_vm3, %v529_v51 }
 0x1da   :  { %8664 = vmatmul.mubr.msk.f32.gmra.mrb[18].mxu0 %vm206_vm3, %v530_v58 }
 0x1db   :  { %8666 = vmatprep.mubr.msk.f32.mxu0 %vm206_vm3, %v531_v57 }
 0x1de   :  { %8667 = vmatmul.mubr.msk.f32.gmra.mrb[20].mxu0 %vm206_vm3, %v532_v62 }
 0x1df   :  { %8669 = vmatprep.mubr.msk.f32.mxu0 %vm206_vm3, %v533_v63 }
 0x1e2   :  { %8670 = vmatmul.mubr.msk.f32.gmra.mrb[22].mxu0 %vm206_vm3, %v534_v0 }
 0x1e3   :  { %8702 = vmatprep.mubr.msk.bf16.mxu0 %vm9486_vm2, %v9485_v3 }
 0x299   :  { %v8650_v7 = vpop.f32.mrb[8].mxu0 }
 0x29a   :  { %v736_v8 = vsel %vm728_vm7, %v8650_v7, -inf  ;;  %v649_v9 = vpop.f32.mrb[9].mxu0 }
 0x29b   :  { %v737_v10 = vrot.slane %v736_v8, 4  ;;  %v729_v30 = vsel %vm728_vm7, %v649_v9, -inf }
 0x29c   :  { %v730_v11 = vrot.slane %v729_v30, 4 }
 0x29d   :  { %v738_v12 = vmax.f32 %v736_v8, %v737_v10  ;;  %v8653_v13 = vpop.f32.mrb[10].mxu0 }
 0x29e   :  { %v731_v14 = vmax.f32 %v729_v30, %v730_v11  ;;  %v750_v15 = vsel %vm728_vm7, %v8653_v13, -inf  ;;  %v659_v16 = vpop.f32.mrb[11].mxu0 }
 0x29f   :  { %v739_v17 = vrot.slane %v738_v12, 2  ;;  %v751_v18 = vrot.slane %v750_v15, 4  ;;  %v743_v19 = vsel %vm728_vm7, %v659_v16, -inf }
 0x2a0   :  { %v732_v21 = vrot.slane %v731_v14, 2  ;;  %v744_v23 = vrot.slane %v743_v19, 4 }
 0x2a1   :  { %v740_v24 = vmax.f32 %v738_v12, %v739_v17  ;;  %v752_v25 = vmax.f32 %v750_v15, %v751_v18  ;;  %v9754_v26 = vpop.f32.mrb[12].mxu0 }
 0x2a2   :  { %v733_v27 = vmax.f32 %v731_v14, %v732_v21  ;;  %v745_v28 = vmax.f32 %v743_v19, %v744_v23  ;;  %v764_v31 = vsel %vm728_vm7, %v9754_v26, -inf  ;;  %v9758_v32 = vpop.f32.mrb[13].mxu0 }
 0x2a3   :  { %v741_v33 = vrot.slane %v740_v24, 1  ;;  %v753_v34 = vrot.slane %v752_v25, 2  ;;  %v765_v35 = vrot.slane %v764_v31, 4  ;;  %v757_v36 = vsel %vm728_vm7, %v9758_v32, -inf }
 0x2a4   :  { %v734_v40 = vrot.slane %v733_v27, 1  ;;  %v746_v41 = vrot.slane %v745_v28, 2  ;;  %v758_v42 = vrot.slane %v757_v36, 4 }
 0x2a5   :  { %v742_v44 = vmax.f32 %v740_v24, %v741_v33  ;;  %v754_v46 = vmax.f32 %v752_v25, %v753_v34  ;;  %v766_v47 = vmax.f32 %v764_v31, %v765_v35  ;;  %v9762_v48 = vpop.f32.mrb[14].mxu0 }
 0x2a6   :  { %v735_v49 = vmax.f32 %v733_v27, %v734_v40  ;;  %v747_v51 = vmax.f32 %v745_v28, %v746_v41  ;;  %v759_v52 = vmax.f32 %v757_v36, %v758_v42  ;;  %v778_v53 = vsel %vm728_vm7, %v9762_v48, -inf  ;;  %v9766_v54 = vpop.f32.mrb[15].mxu0 }
 0x2a7   :  { %v842_v55 = vsub.f32 %v8650_v7, %v742_v44  ;;  %v755_v57 = vrot.slane %v754_v46, 1  ;;  %v767_v58 = vrot.slane %v766_v47, 2  ;;  %v779_v59 = vrot.slane %v778_v53, 4 }
 0x2a8   :  { %v841_v60 = vsub.f32 %v649_v9, %v735_v49  ;;  %v748_v61 = vrot.slane %v747_v51, 1  ;;  %v760_v62 = vrot.slane %v759_v52, 2  ;;  %v771_v63 = vsel %vm728_vm7, %v9766_v54, -inf }
 0x2a9   :  { %v859_v0 = vmul.f32 1.442695, %v842_v55  ;;  %v756_v1 = vmax.f32 %v754_v46, %v755_v57  ;;  %v768_v2 = vmax.f32 %v766_v47, %v767_v58  ;;  %v780_v4 = vmax.f32 %v778_v53, %v779_v59  ;;  %v9770_v8 = vpop.f32.mrb[16].mxu0 }
 0x2aa   :  { %v857_v10 = vmul.f32 1.442695, %v841_v60  ;;  %v749_v30 = vmax.f32 %v747_v51, %v748_v61  ;;  %v761_v11 = vmax.f32 %v759_v52, %v760_v62  ;;  %v772_v12 = vrot.slane %v771_v63, 4  ;;  %v9772_v7 = vpop.f32.mrb[17].mxu0 }
 0x2ab   :  { %9189 = vpow2.f32 %v859_v0  ;;  %v844_v14 = vsub.f32 %v8653_v13, %v756_v1  ;;  %v769_v9 = vrot.slane %v768_v2, 1  ;;  %v781_v15 = vrot.slane %v780_v4, 2 }
 0x2ac   :  { %9191 = vpow2.f32 %v857_v10  ;;  %v843_v17 = vsub.f32 %v659_v16, %v749_v30  ;;  %v762_v18 = vrot.slane %v761_v11, 1  ;;  %v773_v19 = vmax.f32 %v771_v63, %v772_v12 }
 0x2ad   :  { %v863_v21 = vmul.f32 1.442695, %v844_v14  ;;  %v770_v23 = vmax.f32 %v768_v2, %v769_v9  ;;  %v782_v24 = vmax.f32 %v780_v4, %v781_v15  ;;  %v792_v25 = vsel %vm728_vm7, %v9770_v8, -inf  ;;  %v9776_v27 = vpop.f32.mrb[18].mxu0 }
 0x2ae   :  { %v861_v28 = vmul.f32 1.442695, %v843_v17  ;;  %v763_v31 = vmax.f32 %v761_v11, %v762_v18  ;;  %v774_v33 = vrot.slane %v773_v19, 2  ;;  %v793_v34 = vrot.slane %v792_v25, 4  ;;  %v9778_v35 = vpop.f32.mrb[19].mxu0 }
 0x2af   :  { %9193 = vpow2.f32 %v863_v21  ;;  %v846_v13 = vsub.f32 %v9754_v26, %v770_v23  ;;  %v783_v16 = vrot.slane %v782_v24, 1  ;;  %v785_v36 = vsel %vm728_vm7, %v9772_v7, -inf }
 0x2b0   :  { %9195 = vpow2.f32 %v861_v28  ;;  %v845_v40 = vsub.f32 %v9758_v32, %v763_v31  ;;  %v775_v41 = vmax.f32 %v773_v19, %v774_v33  ;;  %v794_v42 = vmax.f32 %v792_v25, %v793_v34 }
 0x2b1   :  { %v867_v44 = vmul.f32 1.442695, %v846_v13  ;;  %v784_v46 = vmax.f32 %v782_v24, %v783_v16  ;;  %v786_v47 = vrot.slane %v785_v36, 4  ;;  %v806_v49 = vsel %vm728_vm7, %v9776_v27, -inf  ;;  %v9786_v51 = vpop.f32.mrb[20].mxu0 }
 0x2b2   :  { %v865_v52 = vmul.f32 1.442695, %v845_v40  ;;  %v776_v53 = vrot.slane %v775_v41, 1  ;;  %v795_v26 = vrot.slane %v794_v42, 2  ;;  %v807_v55 = vrot.slane %v806_v49, 4  ;;  %v9788_v57 = vpop.f32.mrb[21].mxu0 }
 0x2b3   :  { %9197 = vpow2.f32 %v867_v44  ;;  %v848_v58 = vsub.f32 %v9762_v48, %v784_v46  ;;  %v787_v32 = vmax.f32 %v785_v36, %v786_v47  ;;  %v799_v1 = vsel %vm728_vm7, %v9778_v35, -inf }
 0x2b4   :  { %9199 = vpow2.f32 %v865_v52  ;;  %v777_v59 = vmax.f32 %v775_v41, %v776_v53  ;;  %v796_v60 = vmax.f32 %v794_v42, %v795_v26  ;;  %v808_v61 = vmax.f32 %v806_v49, %v807_v55 }
 0x2b5   :  { %v9791_v62 = vpop.eup %9189  ;;  %v871_v63 = vmul.f32 1.442695, %v848_v58  ;;  %v788_v0 = vrot.slane %v787_v32, 2  ;;  %v9795_v2 = vpop.f32.mrb[22].mxu0  ;;  %v800_v28 = vrot.slane %v799_v1, 4  ;;  %v820_v46 = vsel %vm728_vm7, %v9786_v51, -inf }
 0x2b6   :  { %v9797_v4 = vpop.eup %9191  ;;  %v896_v10 = vsel %vm728_vm7, %v9791_v62, 0.0  ;;  %v847_v48 = vsub.f32 %v9766_v54, %v777_v59  ;;  %v797_v30 = vrot.slane %v796_v60, 1  ;;  %v809_v11 = vrot.slane %v808_v61, 2  ;;  %v9802_v12 = vpop.f32.mrb[23].mxu0 }
 0x2b7   :  { %v897_v14 = vrot.slane %v896_v10, 4  ;;  %v889_v9 = vsel %vm728_vm7, %v9797_v4, 0.0  ;;  %9201 = vpow2.f32 %v871_v63  ;;  %v789_v15 = vmax.f32 %v787_v32, %v788_v0 }
 0x2b8   :  { %v890_v17 = vrot.slane %v889_v9, 4  ;;  %v869_v18 = vmul.f32 1.442695, %v847_v48  ;;  %v798_v19 = vmax.f32 %v796_v60, %v797_v30  ;;  %v810_v25 = vmax.f32 %v808_v61, %v809_v11 }
 0x2b9   :  { %v9806_v21 = vpop.eup %9193  ;;  %v898_v23 = vadd.f32 %v897_v14, %v896_v10  ;;  %v790_v24 = vrot.slane %v789_v15, 1  ;;  %v801_v32 = vmax.f32 %v799_v1, %v800_v28 }
 0x2ba   :  { %v9808_v54 = vpop.eup %9195  ;;  %v891_v31 = vadd.f32 %v890_v17, %v889_v9  ;;  %v910_v33 = vsel %vm728_vm7, %v9806_v21, 0.0  ;;  %9203 = vpow2.f32 %v869_v18  ;;  %v850_v34 = vsub.f32 %v9770_v8, %v798_v19 }
 0x2bb   :  { %v899_v13 = vrot.slane %v898_v23, 2  ;;  %v911_v16 = vrot.slane %v910_v33, 4  ;;  %v903_v36 = vsel %vm728_vm7, %v9808_v54, 0.0  ;;  %v791_v40 = vmax.f32 %v789_v15, %v790_v24 }
 0x2bc   :  { %v892_v41 = vrot.slane %v891_v31, 2  ;;  %v904_v42 = vrot.slane %v903_v36, 4  ;;  %v875_v44 = vmul.f32 1.442695, %v850_v34  ;;  %v811_v26 = vrot.slane %v810_v25, 1 }
 0x2bd   :  { %v9817_v47 = vpop.eup %9197  ;;  %v900_v49 = vadd.f32 %v899_v13, %v898_v23  ;;  %v912_v52 = vadd.f32 %v911_v16, %v910_v33  ;;  %v849_v53 = vsub.f32 %v9772_v7, %v791_v40  ;;  %v821_v9 = vrot.slane %v820_v46, 4 }
 0x2be   :  { %v9820_v8 = vpop.eup %9199  ;;  %v905_v55 = vadd.f32 %v904_v42, %v903_v36  ;;  %v924_v58 = vsel %vm728_vm7, %v9817_v47, 0.0  ;;  %9205 = vpow2.f32 %v875_v44  ;;  %v893_v59 = vadd.f32 %v892_v41, %v891_v31 }
 0x2bf   :  { %v913_v60 = vrot.slane %v912_v52, 2  ;;  %v925_v61 = vrot.slane %v924_v58, 4  ;;  %v917_v63 = vsel %vm728_vm7, %v9820_v8, 0.0  ;;  %v873_v48 = vmul.f32 1.442695, %v849_v53 }
 0x2c0   :  { %v906_v0 = vrot.slane %v905_v55, 2  ;;  %v918_v10 = vrot.slane %v917_v63, 4  ;;  %v901_v7 = vrot.slane %v900_v49, 1  ;;  %v812_v14 = vmax.f32 %v810_v25, %v811_v26 }
 0x2c1   :  { %v9826_v30 = vpop.eup %9201  ;;  %v926_v11 = vadd.f32 %v925_v61, %v924_v58  ;;  %v914_v15 = vadd.f32 %v913_v60, %v912_v52  ;;  %v802_v18 = vrot.slane %v801_v32, 2  ;;  %v894_v19 = vrot.slane %v893_v59, 1 }
 0x2c2   :  { %v919_v17 = vadd.f32 %v918_v10, %v917_v63  ;;  %v938_v1 = vsel %vm728_vm7, %v9826_v30, 0.0  ;;  %v907_v23 = vadd.f32 %v906_v0, %v905_v55  ;;  %9207 = vpow2.f32 %v873_v48 }
 0x2c3   :  { %v927_v24 = vrot.slane %v926_v11, 2  ;;  %v939_v28 = vrot.slane %v938_v1, 4  ;;  %v852_v34 = vsub.f32 %v9776_v27, %v812_v14  ;;  %v902_v13 = vadd.f32 %v901_v7, %v900_v49 }
 0x2c4   :  { %v9830_v31 = vpop.eup %9203  ;;  %v920_v33 = vrot.slane %v919_v17, 2  ;;  %v915_v36 = vrot.slane %v914_v15, 1  ;;  %v895_v44 = vadd.f32 %v894_v19, %v893_v59  ;;  %v908_v52 = vrot.slane %v907_v23, 1 }
 0x2c5   :  { %v928_v16 = vadd.f32 %v927_v24, %v926_v11  ;;  %v931_v25 = vsel %vm728_vm7, %v9830_v31, 0.0  ;;  %v940_v40 = vadd.f32 %v939_v28, %v938_v1  ;;  %v879_v42 = vmul.f32 1.442695, %v852_v34 }
 0x2c6   :  { %v932_v41 = vrot.slane %v931_v25, 4  ;;  %v803_v53 = vmax.f32 %v801_v32, %v802_v18  ;;  %v822_v26 = vmax.f32 %v820_v46, %v821_v9  ;;  %v921_v58 = vadd.f32 %v920_v33, %v919_v17 }
 0x2c7   :  { %9209 = vpow2.f32 %v879_v42  ;;  %v813_v27 = vsel %vm728_vm7, %v9788_v57, -inf  ;;  %v929_v49 = vrot.slane %v928_v16, 1  ;;  %v916_v0 = vadd.f32 %v915_v36, %v914_v15 }
 0x2c8   :  { %v9835_v55 = vpop.eup %9205  ;;  %v933_v60 = vadd.f32 %v932_v41, %v931_v25  ;;  %9211 = vrcp.f32 %v902_v13  ;;  %v804_v63 = vrot.slane %v803_v53, 1  ;;  %v941_v10 = vrot.slane %v940_v40, 2 }
 0x2c9   :  { %v952_v61 = vsel %vm728_vm7, %v9835_v55, 0.0  ;;  %v823_v48 = vrot.slane %v822_v26, 2  ;;  %v909_v32 = vadd.f32 %v908_v52, %v907_v23  ;;  %v814_v7 = vrot.slane %v813_v27, 4 }
 0x2ca   :  { %v953_v59 = vrot.slane %v952_v61, 4  ;;  %v805_v46 = vmax.f32 %v803_v53, %v804_v63  ;;  %v834_v11 = vsel %vm728_vm7, %v9795_v2, -inf  ;;  %v922_v14 = vrot.slane %v921_v58, 1 }
 0x2cb   :  { %v934_v9 = vrot.slane %v933_v60, 2  ;;  %v824_v17 = vmax.f32 %v822_v26, %v823_v48  ;;  %v835_v1 = vrot.slane %v834_v11, 4  ;;  %v930_v18 = vadd.f32 %v929_v49, %v928_v16 }
 0x2cc   :  { %v851_v19 = vsub.f32 %v9778_v35, %v805_v46  ;;  %v815_v24 = vmax.f32 %v813_v27, %v814_v7  ;;  %v827_v15 = vsel %vm728_vm7, %v9802_v12, -inf  ;;  %v9846_v28 = vpop.eup %9207  ;;  %v942_v33 = vadd.f32 %v941_v10, %v940_v40 }
 0x2cd   :  { %v954_v23 = vadd.f32 %v953_v59, %v952_v61  ;;  %v825_v34 = vrot.slane %v824_v17, 1  ;;  %v836_v13 = vmax.f32 %v834_v11, %v835_v1  ;;  %v945_v25 = vsel %vm728_vm7, %v9846_v28, 0.0 }
 0x2ce   :  { %v877_v36 = vmul.f32 1.442695, %v851_v19  ;;  %v816_v41 = vrot.slane %v815_v24, 2  ;;  %v828_v42 = vrot.slane %v827_v15, 4  ;;  %v923_v52 = vadd.f32 %v922_v14, %v921_v58 }
 0x2cf   :  { %v935_v16 = vadd.f32 %v934_v9, %v933_v60  ;;  %v946_v53 = vrot.slane %v945_v25, 4  ;;  %v826_v35 = vmax.f32 %v824_v17, %v825_v34  ;;  %v837_v27 = vrot.slane %v836_v13, 2 }
 0x2d0   :  { %9213 = vpow2.f32 %v877_v36  ;;  %v817_v26 = vmax.f32 %v815_v24, %v816_v41  ;;  %v829_v49 = vmax.f32 %v827_v15, %v828_v42  ;;  %v955_v40 = vrot.slane %v954_v23, 2 }
 0x2d1   :  { %v9850_v63 = vpop.eup %9209  ;;  %v947_v61 = vadd.f32 %v946_v53, %v945_v25  ;;  %v854_v10 = vsub.f32 %v9786_v51, %v826_v35  ;;  %9215 = vrcp.f32 %v895_v44  ;;  %v838_v58 = vmax.f32 %v836_v13, %v837_v27 }
 0x2d2   :  { %v9212_v59 = vpop.eup %9211  ;;  %v966_v48 = vsel %vm728_vm7, %v9850_v63, 0.0  ;;  %v818_v46 = vrot.slane %v817_v26, 1  ;;  %v830_v60 = vrot.slane %v829_v49, 2  ;;  %v936_v7 = vrot.slane %v935_v16, 1 }
 0x2d3   :  { %v948_v11 = vrot.slane %v947_v61, 2  ;;  %v967_v14 = vrot.slane %v966_v48, 4  ;;  %v883_v9 = vmul.f32 1.442695, %v854_v10  ;;  %v943_v17 = vrot.slane %v942_v33, 1 }
 0x2d4   :  { %v819_v1 = vmax.f32 %v817_v26, %v818_v46  ;;  %v839_v19 = vrot.slane %v838_v58, 1  ;;  %v831_v24 = vmax.f32 %v829_v49, %v830_v60  ;;  %v956_v15 = vadd.f32 %v955_v40, %v954_v23 }
 0x2d5   :  { %v949_v34 = vadd.f32 %v948_v11, %v947_v61  ;;  %v968_v25 = vadd.f32 %v967_v14, %v966_v48  ;;  %9217 = vpow2.f32 %v883_v9  ;;  %v937_v41 = vadd.f32 %v936_v7, %v935_v16 }
 0x2d6   :  { %v853_v51 = vsub.f32 %v9788_v57, %v819_v1  ;;  %v840_v44 = vmax.f32 %v838_v58, %v839_v19  ;;  %v832_v36 = vrot.slane %v831_v24, 1  ;;  %9219 = vrcp.f32 %v909_v32 }
 0x2d7   :  { %v950_v13 = vrot.slane %v949_v34, 1  ;;  %v969_v42 = vrot.slane %v968_v25, 2  ;;  %9221 = vrcp.f32 %v916_v0  ;;  %v944_v26 = vadd.f32 %v943_v17, %v942_v33 }
 0x2d8   :  { %v881_v53 = vmul.f32 1.442695, %v853_v51  ;;  %v856_v35 = vsub.f32 %v9795_v2, %v840_v44  ;;  %v833_v27 = vmax.f32 %v831_v24, %v832_v36  ;;  %9223 = vrcp.f32 %v923_v52 }
 0x2d9   :  { %v957_v49 = vrot.slane %v956_v15, 1  ;;  %9225 = vrcp.f32 %v930_v18  ;;  %v951_v32 = vadd.f32 %v950_v13, %v949_v34  ;;  %v970_v16 = vadd.f32 %v969_v42, %v968_v25 }
 0x2da   :  { %v9857_v23 = vpop.eup %9213  ;;  %9227 = vpow2.f32 %v881_v53  ;;  %v887_v40 = vmul.f32 1.442695, %v856_v35  ;;  %v855_v57 = vsub.f32 %v9802_v12, %v833_v27  ;;  %v1018_v18 = vmul.f32 %v9212_v59, %v9791_v62 }
 0x2db   :  { %v9216_v61 = vpop.eup %9215  ;;  %v959_v0 = vsel %vm728_vm7, %v9857_v23, 0.0  ;;  %9229 = vrcp.f32 %v937_v41  ;;  %v958_v52 = vadd.f32 %v957_v49, %v956_v15  ;;  %v971_v46 = vrot.slane %v970_v16, 1 }
 0x2dc   :  { %v960_v10 = vrot.slane %v959_v0, 4  ;;  %9231 = vpow2.f32 %v887_v40  ;;  %v885_v2 = vmul.f32 1.442695, %v855_v57  ;;  %v1017_v33 = vmul.f32 %v9216_v61, %v9797_v4 }
 0x2dd   :  { %9233 = vrcp.f32 %v944_v26  ;;  %v972_v1 = vadd.f32 %v971_v46, %v970_v16 }
 0x2de   :  { %v961_v48 = vadd.f32 %v960_v10, %v959_v0  ;;  %9235 = vpow2.f32 %v885_v2  ;;  %8674 = vmatprep.mubr.msk.f32.mxu1 %vm728_vm7, %v1017_v33 }
 0x2df   :  { %v9865_v12 = vpop.eup %9217  ;;  %8675 = vmatmul.mubr.msk.f32.vlgmr.msra.gmra.mrb[2].mxu1 %vm728_vm7, %v1018_v18  ;;  %9237 = vrcp.f32 %v951_v32 }
 0x2e0   :  { %v9220_v58 = vpop.eup %9219  ;;  %v962_v60 = vrot.slane %v961_v48, 2  ;;  %v980_v7 = vsel %vm728_vm7, %v9865_v12, 0.0  ;;  %9239 = vrcp.f32 %v958_v52 }
 0x2e1   :  { %v9222_v4 = vpop.eup %9221  ;;  %v981_v11 = vrot.slane %v980_v7, 4  ;;  %v1019_v62 = vmul.f32 %v9220_v58, %v9808_v54  ;;  %9241 = vrcp.f32 %v972_v1 }
 0x2e2   :  { %v9224_v59 = vpop.eup %9223  ;;  %v963_v14 = vadd.f32 %v962_v60, %v961_v48  ;;  %v1020_v9 = vmul.f32 %v9222_v4, %v9806_v21 }
 0x2e3   :  { %v9226_v17 = vpop.eup %9225  ;;  %v982_v19 = vadd.f32 %v981_v11, %v980_v7  ;;  %8677 = vmatprep.mubr.msk.f32.mxu1 %vm728_vm7, %v1019_v62  ;;  %v1021_v24 = vmul.f32 %v9224_v59, %v9820_v8 }
 0x2e4   :  { %v9228_v15 = vpop.eup %9227  ;;  %v964_v34 = vrot.slane %v963_v14, 1  ;;  %8678 = vmatmul.mubr.msk.f32.gmra.mrb[8].mxu1 %vm728_vm7, %v1020_v9  ;;  %v1022_v41 = vmul.f32 %v9226_v17, %v9817_v47 }
 0x2e5   :  { %v9230_v25 = vpop.eup %9229  ;;  %v983_v51 = vrot.slane %v982_v19, 2  ;;  %v973_v54 = vsel %vm728_vm7, %v9228_v15, 0.0  ;;  %8680 = vmatprep.mubr.msk.f32.mxu1 %vm728_vm7, %v1021_v24 }
 0x2e6   :  { %v9232_v44 = vpop.eup %9231  ;;  %v965_v36 = vadd.f32 %v964_v34, %v963_v14  ;;  %v974_v21 = vrot.slane %v973_v54, 4  ;;  %v1023_v13 = vmul.f32 %v9230_v25, %v9830_v31 }
 0x2e7   :  { %v9234_v42 = vpop.eup %9233  ;;  %v984_v53 = vadd.f32 %v983_v51, %v982_v19  ;;  %v994_v8 = vsel %vm728_vm7, %v9232_v44, 0.0  ;;  %v201_v51 = vld [vmem:[%s11987_s3 + $0x70] sm:$0xff] }
 0x2e8   :  { %v9236_v35 = vpop.eup %9235  ;;  %v975_v27 = vadd.f32 %v974_v21, %v973_v54  ;;  %v995_v26 = vrot.slane %v994_v8, 4  ;;  %8681 = vmatmul.mubr.msk.f32.gmra.mrb[10].mxu1 %vm728_vm7, %v1022_v41  ;;  %9243 = vrcp.f32 %v965_v36  ;;  %v1024_v47 = vmul.f32 %v9234_v42, %v9826_v30  ;;  %v202_v54 = vld [vmem:[%s11987_s3 + $0x78] sm:$0xff] }
 0x2e9   :  { %v9238_v49 = vpop.eup %9237  ;;  %v985_v40 = vrot.slane %v984_v53, 1  ;;  %v987_v57 = vsel %vm728_vm7, %v9236_v35, 0.0  ;;  %8683 = vmatprep.mubr.msk.f32.mxu1 %vm728_vm7, %v1023_v13 }
 0x2ea   :  { %v976_v31 = vrot.slane %v975_v27, 2  ;;  %v996_v61 = vadd.f32 %v995_v26, %v994_v8  ;;  %v988_v32 = vrot.slane %v987_v57, 4  ;;  %v1025_v16 = vmul.f32 %v9238_v49, %v9846_v28  ;;  %v9240_v0 = vpop.eup %9239 }
 0x2eb   :  { %v986_v52 = vadd.f32 %v985_v40, %v984_v53  ;;  %v1026_v58 = vmul.f32 %v9240_v0, %v9835_v55  ;;  %v9242_v28 = vpop.eup %9241 }
 0x2ec   :  { %v977_v10 = vadd.f32 %v976_v31, %v975_v27  ;;  %v997_v2 = vrot.slane %v996_v61, 2  ;;  %v989_v33 = vadd.f32 %v988_v32, %v987_v57  ;;  %8684 = vmatmul.mubr.msk.f32.gmra.mrb[12].mxu1 %vm728_vm7, %v1024_v47  ;;  %v1028_v9 = vmul.f32 %v9242_v28, %v9850_v63  ;;  %v199_v63 = vld [vmem:[%s11987_s3 + $0x60] sm:$0xff] }
 0x2ed   :  { %8686 = vmatprep.mubr.msk.f32.mxu1 %vm728_vm7, %v1025_v16  ;;  %9245 = vrcp.f32 %v986_v52 }
 0x2ee   :  { %v978_v18 = vrot.slane %v977_v10, 1  ;;  %v998_v48 = vadd.f32 %v997_v2, %v996_v61  ;;  %v990_v46 = vrot.slane %v989_v33, 2 }
 0x2f0   :  { %v979_v30 = vadd.f32 %v978_v18, %v977_v10  ;;  %v999_v60 = vrot.slane %v998_v48, 1  ;;  %v991_v7 = vadd.f32 %v990_v46, %v989_v33  ;;  %8687 = vmatmul.mubr.msk.f32.gmra.mrb[14].mxu1 %vm728_vm7, %v1026_v58 }
 0x2f2   :  { %v9244_v4 = vpop.eup %9243  ;;  %v1000_v11 = vadd.f32 %v999_v60, %v998_v48  ;;  %v992_v62 = vrot.slane %v991_v7, 1  ;;  %9247 = vrcp.f32 %v979_v30 }
 0x2f3   :  { %v1027_v59 = vmul.f32 %v9244_v4, %v9857_v23 }
 0x2f4   :  { %v993_v14 = vadd.f32 %v992_v62, %v991_v7  ;;  %9249 = vrcp.f32 %v1000_v11 }
 0x2f5   :  { %8689 = vmatprep.mubr.msk.f32.mxu1 %vm728_vm7, %v1027_v59 }
 0x2f6   :  { %8690 = vmatmul.mubr.msk.f32.gmra.mrb[16].mxu1 %vm728_vm7, %v1028_v9  ;;  %9251 = vrcp.f32 %v993_v14 }
 0x2f7   :  { %v9246_v55 = vpop.eup %9245 }
 0x2f8   :  { %v1030_v19 = vmul.f32 %v9246_v55, %v9865_v12  ;;  %v200_v12 = vld [vmem:[%s11987_s3 + $0x68] sm:$0xff] }
 0x2fc   :  { %v9248_v17 = vpop.eup %9247 }
 0x2fd   :  { %v1029_v1 = vmul.f32 %v9248_v17, %v9228_v15  ;;  %v1370_v15 = vpack.c.bf16 %v200_v12, %v199_v63 }
 0x2fe   :  { %v9250_v24 = vpop.eup %9249 }
 0x2ff   :  { %8692 = vmatprep.mubr.msk.f32.mxu1 %vm728_vm7, %v1029_v1  ;;  %v1032_v25 = vmul.f32 %v9250_v24, %v9232_v44  ;;  %8699 = vmatpush3.bf16.msra.mxu0 %v1370_v15  ;;  %v1371_v44 = vpack.c.bf16 %v202_v54, %v201_v51 }
 0x300   :  { %v9252_v34 = vpop.eup %9251  ;;  %8693 = vmatmul.mubr.msk.f32.gmra.mrb[18].mxu1 %vm728_vm7, %v1030_v19  ;;  %8700 = vmatprep.subr.bf16.mxu0 %v9485_v3 }
 0x301   :  { %v1031_v23 = vmul.f32 %v9252_v34, %v9236_v35 }
 0x303   :  { %8695 = vmatprep.mubr.msk.f32.mxu1 %vm728_vm7, %v1031_v23  ;;  %8701 = vmatpush3.bf16.msra.mxu0 %v1371_v44 }
 0x304   :  { %8696 = vmatmul.mubr.msk.f32.gmra.mrb[20].mxu1 %vm728_vm7, %v1032_v25 }
 0x3b2   :  { %v8676_v36 = vpop.f32.mrb[2].mxu1 }
 0x3b3   :  { %v1227_v21 = vmul.f32 %v8676_v36, %v9683_v45  ;;  %v1147_v41 = vpop.f32.mrb[3].mxu1 }
 0x3b4   :  { %v1226_v13 = vmul.f32 %v1147_v41, %v9683_v45 }
 0x3b5   :  { %v1249_v42 = vsel %vm206_vm3, %v1227_v21, 0.0 }
 0x3b6   :  { %v1250_v53 = vrot.slane %v1249_v42, 4  ;;  %v1242_v8 = vsel %vm206_vm3, %v1226_v13, 0.0 }
 0x3b7   :  { %v1243_v35 = vrot.slane %v1242_v8, 4  ;;  %v8679_v27 = vpop.f32.mrb[8].mxu1 }
 0x3b8   :  { %v1251_v26 = vadd.f32 %v1250_v53, %v1249_v42  ;;  %v1229_v49 = vmul.f32 %v8679_v27, %v9683_v45  ;;  %v1157_v40 = vpop.f32.mrb[9].mxu1 }
 0x3b9   :  { %v1244_v57 = vadd.f32 %v1243_v35, %v1242_v8  ;;  %v1228_v47 = vmul.f32 %v1157_v40, %v9683_v45 }
 0x3ba   :  { %v1252_v31 = vrot.slane %v1251_v26, 2  ;;  %v1263_v61 = vsel %vm206_vm3, %v1229_v49, 0.0 }
 0x3bb   :  { %v1245_v32 = vrot.slane %v1244_v57, 2  ;;  %v1264_v16 = vrot.slane %v1263_v61, 4  ;;  %v1256_v0 = vsel %vm206_vm3, %v1228_v47, 0.0  ;;  %v8682_v10 = vpop.f32.mrb[10].mxu1 }
 0x3bc   :  { %v1253_v2 = vadd.f32 %v1252_v31, %v1251_v26  ;;  %v1257_v33 = vrot.slane %v1256_v0, 4  ;;  %v1231_v52 = vmul.f32 %v8682_v10, %v9683_v45  ;;  %v1167_v18 = vpop.f32.mrb[11].mxu1 }
 0x3bd   :  { %v1246_v48 = vadd.f32 %v1245_v32, %v1244_v57  ;;  %v1265_v46 = vadd.f32 %v1264_v16, %v1263_v61  ;;  %v1230_v58 = vmul.f32 %v1167_v18, %v9683_v45 }
 0x3be   :  { %v1254_v30 = vrot.slane %v1253_v2, 1  ;;  %v1258_v60 = vadd.f32 %v1257_v33, %v1256_v0  ;;  %v1277_v7 = vsel %vm206_vm3, %v1231_v52, 0.0 }
 0x3bf   :  { %v1247_v28 = vrot.slane %v1246_v48, 1  ;;  %v1266_v4 = vrot.slane %v1265_v46, 2  ;;  %v1278_v11 = vrot.slane %v1277_v7, 4  ;;  %v1270_v62 = vsel %vm206_vm3, %v1230_v58, 0.0  ;;  %v8685_v59 = vpop.f32.mrb[12].mxu1 }
 0x3c0   :  { %v1255_v14 = vadd.f32 %v1254_v30, %v1253_v2  ;;  %v1259_v9 = vrot.slane %v1258_v60, 2  ;;  %v1271_v55 = vrot.slane %v1270_v62, 4  ;;  %v1233_v17 = vmul.f32 %v8685_v59, %v9683_v45  ;;  %v1177_v1 = vpop.f32.mrb[13].mxu1 }
 0x3c1   :  { %v1248_v19 = vadd.f32 %v1247_v28, %v1246_v48  ;;  %v1267_v24 = vadd.f32 %v1266_v4, %v1265_v46  ;;  %v1279_v34 = vadd.f32 %v1278_v11, %v1277_v7  ;;  %v1232_v23 = vmul.f32 %v1177_v1, %v9683_v45 }
 0x3c2   :  { %v1355_v25 = vpack.c.bf16 %v1255_v14, %v1255_v14  ;;  %v1260_v63 = vadd.f32 %v1259_v9, %v1258_v60  ;;  %v1272_v12 = vadd.f32 %v1271_v55, %v1270_v62  ;;  %v1291_v15 = vsel %vm206_vm3, %v1233_v17, 0.0 }
 0x3c3   :  { %v1354_v51 = vpack.c.bf16 %v1248_v19, %v1248_v19  ;;  %v1268_v54 = vrot.slane %v1267_v24, 1  ;;  %v1280_v44 = vrot.slane %v1279_v34, 2  ;;  %v1292_v36 = vrot.slane %v1291_v15, 4  ;;  %v8688_v21 = vpop.f32.mrb[14].mxu1 }
 0x3c4   :  { %v1389_v41 = vunpack.c.l.b16 %v1355_v25  ;;  %v1261_v13 = vrot.slane %v1260_v63, 1  ;;  %v1273_v42 = vrot.slane %v1272_v12, 2  ;;  %v1284_v53 = vsel %vm206_vm3, %v1232_v23, 0.0  ;;  %v1187_v8 = vpop.f32.mrb[15].mxu1 }
 0x3c5   :  { %v1388_v35 = vunpack.c.l.b16 %v1354_v51  ;;  %v1269_v27 = vadd.f32 %v1268_v54, %v1267_v24  ;;  %v1281_v45 = vadd.f32 %v1280_v44, %v1279_v34  ;;  %v1293_v26 = vadd.f32 %v1292_v36, %v1291_v15 }
 0x3c6   :  { %v1262_v49 = vadd.f32 %v1261_v13, %v1260_v63  ;;  %v1274_v40 = vadd.f32 %v1273_v42, %v1272_v12  ;;  %v1285_v57 = vrot.slane %v1284_v53, 4  ;;  %v1235_v47 = vmul.f32 %v8688_v21, %v9685_v50 }
 0x3c7   :  { %v1405_v31 = vsel %vm1404_vm8, %v1389_v41, %v1388_v35  ;;  %v1357_v61 = vpack.c.bf16 %v1269_v27, %v1269_v27  ;;  %v1282_v32 = vrot.slane %v1281_v45, 1  ;;  %v1294_v16 = vrot.slane %v1293_v26, 2 }
 0x3c8   :  { %v1356_v0 = vpack.c.bf16 %v1262_v49, %v1262_v49  ;;  %v1275_v10 = vrot.slane %v1274_v40, 1  ;;  %v1286_v2 = vadd.f32 %v1285_v57, %v1284_v53  ;;  %v1305_v33 = vsel %vm206_vm3, %v1235_v47, 0.0 }
 0x3c9   :  { %v1391_v52 = vunpack.c.l.b16 %v1357_v61  ;;  %v1283_v18 = vadd.f32 %v1282_v32, %v1281_v45  ;;  %v1295_v48 = vadd.f32 %v1294_v16, %v1293_v26  ;;  %v1306_v46 = vrot.slane %v1305_v33, 4  ;;  %v8691_v58 = vpop.f32.mrb[16].mxu1 }
 0x3ca   :  { %v1390_v30 = vunpack.c.l.b16 %v1356_v0  ;;  %v1276_v60 = vadd.f32 %v1275_v10, %v1274_v40  ;;  %v1287_v7 = vrot.slane %v1286_v2, 2  ;;  %v1234_v28 = vmul.f32 %v1187_v8, %v9685_v50  ;;  %v1197_v4 = vpop.f32.mrb[17].mxu1 }
 0x3cb   :  { %v1359_v11 = vpack.c.bf16 %v1283_v18, %v1283_v18  ;;  %v1296_v62 = vrot.slane %v1295_v48, 1  ;;  %v1307_v59 = vadd.f32 %v1306_v46, %v1305_v33  ;;  %v1237_v14 = vmul.f32 %v8691_v58, %v9685_v50 }
 0x3cc   :  { %v1407_v9 = vsel %vm1406_vm9, %v1390_v30, %v1405_v31  ;;  %v1358_v55 = vpack.c.bf16 %v1276_v60, %v1276_v60  ;;  %v1288_v17 = vadd.f32 %v1287_v7, %v1286_v2  ;;  %v1298_v1 = vsel %vm206_vm3, %v1234_v28, 0.0 }
 0x3cd   :  { %v1409_v19 = vsel %vm1408_vm11, %v1391_v52, %v1407_v9  ;;  %v1297_v24 = vadd.f32 %v1296_v62, %v1295_v48  ;;  %v1308_v34 = vrot.slane %v1307_v59, 2  ;;  %v1299_v63 = vrot.slane %v1298_v1, 4 }
 0x3ce   :  { %v1392_v23 = vunpack.c.l.b16 %v1358_v55  ;;  %v1289_v25 = vrot.slane %v1288_v17, 1  ;;  %v1319_v12 = vsel %vm206_vm3, %v1237_v14, 0.0  ;;  %v1393_v15 = vunpack.c.l.b16 %v1359_v11 }
 0x3cf   :  { %v1309_v51 = vadd.f32 %v1308_v34, %v1307_v59  ;;  %v1320_v54 = vrot.slane %v1319_v12, 4  ;;  %v1236_v44 = vmul.f32 %v1197_v4, %v9685_v50  ;;  %v1361_v21 = vpack.c.bf16 %v1297_v24, %v1297_v24 }
 0x3d0   :  { %v1411_v36 = vsel %vm1410_vm12, %v1392_v23, %v1409_v19  ;;  %v1290_v41 = vadd.f32 %v1289_v25, %v1288_v17  ;;  %v1300_v13 = vadd.f32 %v1299_v63, %v1298_v1 }
 0x3d1   :  { %v1413_v42 = vsel %vm1412_vm13, %v1393_v15, %v1411_v36  ;;  %v1310_v53 = vrot.slane %v1309_v51, 1  ;;  %v1321_v8 = vadd.f32 %v1320_v54, %v1319_v12  ;;  %v1312_v45 = vsel %vm206_vm3, %v1236_v44, 0.0 }
 0x3d2   :  { %v1360_v35 = vpack.c.bf16 %v1290_v41, %v1290_v41  ;;  %v1301_v27 = vrot.slane %v1300_v13, 2  ;;  %v1313_v40 = vrot.slane %v1312_v45, 4  ;;  %v1395_v47 = vunpack.c.l.b16 %v1361_v21 }
 0x3d3   :  { %v1311_v26 = vadd.f32 %v1310_v53, %v1309_v51  ;;  %v1322_v49 = vrot.slane %v1321_v8, 2  ;;  %v8694_v57 = vpop.f32.mrb[18].mxu1 }
 0x3d4   :  { %v1394_v31 = vunpack.c.l.b16 %v1360_v35  ;;  %v1302_v61 = vadd.f32 %v1301_v27, %v1300_v13  ;;  %v1239_v32 = vmul.f32 %v8694_v57, %v9685_v50  ;;  %v1207_v16 = vpop.f32.mrb[19].mxu1  ;;  %v1314_v2 = vadd.f32 %v1313_v40, %v1312_v45 }
 0x3d5   :  { %v1363_v0 = vpack.c.bf16 %v1311_v26, %v1311_v26  ;;  %v1323_v10 = vadd.f32 %v1322_v49, %v1321_v8  ;;  %v1238_v33 = vmul.f32 %v1207_v16, %v9685_v50 }
 0x3d6   :  { %v1415_v52 = vsel %vm1414_vm14, %v1394_v31, %v1413_v42  ;;  %v1303_v18 = vrot.slane %v1302_v61, 1  ;;  %v1333_v48 = vsel %vm206_vm3, %v1239_v32, 0.0  ;;  %v1315_v30 = vrot.slane %v1314_v2, 2 }
 0x3d7   :  { %v9945_v46 = vsel %vm1416_vm15, %v1395_v47, %v1415_v52  ;;  %v1324_v58 = vrot.slane %v1323_v10, 1  ;;  %v8697_v60 = vpop.f32.mrb[20].mxu1  ;;  %v1334_v28 = vrot.slane %v1333_v48, 4  ;;  %v1326_v4 = vsel %vm206_vm3, %v1238_v33, 0.0 }
 0x3d8   :  { %v1304_v7 = vadd.f32 %v1303_v18, %v1302_v61  ;;  %v1241_v11 = vmul.f32 %v8697_v60, %v9685_v50  ;;  %v1217_v62 = vpop.f32.mrb[21].mxu1  ;;  %v1397_v59 = vunpack.c.l.b16 %v1363_v0  ;;  %v1316_v14 = vadd.f32 %v1315_v30, %v1314_v2 }
 0x3d9   :  { %v1327_v9 = vrot.slane %v1326_v4, 4  ;;  %v1240_v55 = vmul.f32 %v1217_v62, %v9685_v50  ;;  %v1325_v1 = vadd.f32 %v1324_v58, %v1323_v10  ;;  %v1335_v19 = vadd.f32 %v1334_v28, %v1333_v48 }
 0x3da   :  { %v1362_v17 = vpack.c.bf16 %v1304_v7, %v1304_v7  ;;  %v1347_v24 = vsel %vm206_vm3, %v1241_v11, 0.0  ;;  %v1317_v34 = vrot.slane %v1316_v14, 1 }
 0x3db   :  { %v1328_v23 = vadd.f32 %v1327_v9, %v1326_v4  ;;  %v1348_v25 = vrot.slane %v1347_v24, 4  ;;  %v1336_v12 = vrot.slane %v1335_v19, 2  ;;  %v1340_v15 = vsel %vm206_vm3, %v1240_v55, 0.0  ;;  %v1520_v9 = vld [vmem:[%s11989_s6 + $0x28] sm:$0xff]  ;;  %v1518_v55 = vld [vmem:[%s11989_s6 + $0x18] sm:$0xff] }
 0x3dc   :  { %v1396_v63 = vunpack.c.l.b16 %v1362_v17  ;;  %v1318_v51 = vadd.f32 %v1317_v34, %v1316_v14  ;;  %v1365_v21 = vpack.c.bf16 %v1325_v1, %v1325_v1  ;;  %v1341_v50 = vrot.slane %v1340_v15, 4  ;;  %v1516_v14 = vld [vmem:[%s11989_s6 + $0x8] sm:$0xff]  ;;  %v1515_v1 = vld [vmem:[%s11989_s6] sm:$0xff] }
 0x3dd   :  { %v1329_v54 = vrot.slane %v1328_v23, 2  ;;  %v1349_v44 = vadd.f32 %v1348_v25, %v1347_v24  ;;  %v1337_v41 = vadd.f32 %v1336_v12, %v1335_v19  ;;  %v1533_v17 = vpack.c.bf16 %v1520_v9, %v1516_v14  ;;  %v1522_v19 = vld [vmem:[%s11989_s6 + $0x38] sm:$0xff]  ;;  %v1521_v25 = vld [vmem:[%s11989_s6 + $0x30] sm:$0xff]  ;;  %v1524_v12 = vld [vmem:[%s11989_s6 + $0x48] sm:$0xff] }
 0x3de   :  { %v1418_v36 = vsel %vm1404_vm8, %v1397_v59, %v1396_v63  ;;  %v1364_v13 = vpack.c.bf16 %v1318_v51, %v1318_v51  ;;  %v1342_v35 = vadd.f32 %v1341_v50, %v1340_v15  ;;  %v1399_v49 = vunpack.c.l.b16 %v1365_v21  ;;  %v1528_v15 = vld [vmem:[%s11989_s6 + $0x68] sm:$0xff]  ;;  %v1526_v51 = vld [vmem:[%s11989_s6 + $0x58] sm:$0xff] }
 0x3df   :  { %v1330_v42 = vadd.f32 %v1329_v54, %v1328_v23  ;;  %v1350_v53 = vrot.slane %v1349_v44, 2  ;;  %v1338_v8 = vrot.slane %v1337_v41, 1  ;;  %v1535_v34 = vpack.c.bf16 %v1522_v19, %v1518_v55  ;;  %v1517_v23 = vld [vmem:[%s11989_s6 + $0x10] sm:$0xff]  ;;  %1565 = vmatprep.subr.bf16.mxu1 %v1533_v17  ;;  %v1530_v21 = vld [vmem:[%s11989_s6 + $0x78] sm:$0xff] }
 0x3e0   :  { %v1398_v27 = vunpack.c.l.b16 %v1364_v13  ;;  %v1343_v57 = vrot.slane %v1342_v35, 2  ;;  %v1534_v63 = vpack.c.bf16 %v1521_v25, %v1517_v23  ;;  %v1537_v54 = vpack.c.bf16 %v1528_v15, %v1524_v12  ;;  %v1525_v13 = vld [vmem:[%s11989_s6 + $0x50] sm:$0xff] }
 0x3e1   :  { %v1331_v45 = vrot.slane %v1330_v42, 1  ;;  %v1351_v26 = vadd.f32 %v1350_v53, %v1349_v44  ;;  %v1339_v40 = vadd.f32 %v1338_v8, %v1337_v41  ;;  %1608 = vmatprep.subr.bf16.mxu0 %v1535_v34  ;;  %v1523_v44 = vld [vmem:[%s11989_s6 + $0x40] sm:$0xff]  ;;  %v1539_v50 = vpack.c.bf16 %v1530_v21, %v1526_v51 }
 0x3e2   :  { %v1419_v47 = vsel %vm1406_vm9, %v1398_v27, %v1418_v36  ;;  %v1344_v0 = vadd.f32 %v1343_v57, %v1342_v35  ;;  %v1527_v36 = vld [vmem:[%s11989_s6 + $0x60] sm:$0xff]  ;;  %v9490_v8 = vmov 0   ;;  %v1676_v27 = vld [vmem:[%s11990_s8 + $0x88] sm:$0xff] }
 0x3e3   :  { %v1332_v31 = vadd.f32 %v1331_v45, %v1330_v42  ;;  %v1352_v61 = vrot.slane %v1351_v26, 1  ;;  %v1367_v32 = vpack.c.bf16 %v1339_v40, %v1339_v40  ;;  %v1420_v16 = vsel %vm1408_vm11, %v1399_v49, %v1419_v47  ;;  %v1529_v42 = vld [vmem:[%s11989_s6 + $0x70] sm:$0xff]  ;;  %1597 = vmatprep.mubr.bf16.mxu1 %v9490_v8  ;;  %v1675_v35 = vld [vmem:[%s11990_s8 + $0x80] sm:$0xff]  ;;  %v1708_v49 = vld [vmem:[%s11990_s8 + $0x188] sm:$0xff] }
 0x3e4   :  { %v1345_v33 = vrot.slane %v1344_v0, 1  ;;  %v1536_v41 = vpack.c.bf16 %v1527_v36, %v1523_v44  ;;  %v1538_v53 = vpack.c.bf16 %v1529_v42, %v1525_v13  ;;  %v1707_v45 = vld [vmem:[%s11990_s8 + $0x180] sm:$0xff]  ;;  %v1678_v13 = vld [vmem:[%s11990_s8 + $0x98] sm:$0xff]  ;;  %v1709_v42 = vld [vmem:[%s11990_s8 + $0x190] sm:$0xff] }
 0x3e5   :  { %v1366_v10 = vpack.c.bf16 %v1332_v31, %v1332_v31  ;;  %v1353_v2 = vadd.f32 %v1352_v61, %v1351_v26  ;;  %v1401_v18 = vunpack.c.l.b16 %v1367_v32  ;;  %v1735_v26 = vpack.c.bf16 %v1676_v27, %v1675_v35  ;;  %v10037_v34 = vld [vmem:[%s11992_s5] sm:$0x3] }
 0x3e6   :  { %v1346_v48 = vadd.f32 %v1345_v33, %v1344_v0  ;;  %v1751_v40 = vpack.c.bf16 %v1708_v49, %v1707_v45  ;;  %v1512_v15 = vrot.slane %v10037_v34, %v9689_v56  ;;  %v1659_v51 = vld [vmem:[%s11990_s8] sm:$0xff]  ;;  %v1661_v49 = vld [vmem:[%s11990_s8 + $0x10] sm:$0xff] }
 0x3e7   :  { %v1400_v52 = vunpack.c.l.b16 %v1366_v10  ;;  %v1369_v30 = vpack.c.bf16 %v1353_v2, %v1353_v2  ;;  %v1691_v21 = vld [vmem:[%s11990_s8 + $0x100] sm:$0xff] }
 0x3e8   :  { %v1368_v60 = vpack.c.bf16 %v1346_v48, %v1346_v48 }
 0x3e9   :  { %v1421_v58 = vsel %vm1410_vm12, %v1400_v52, %v1420_v16  ;;  %v1403_v4 = vunpack.c.l.b16 %v1369_v30 }
 0x3ea   :  { %v1422_v7 = vsel %vm1412_vm13, %v1401_v18, %v1421_v58  ;;  %v1402_v28 = vunpack.c.l.b16 %v1368_v60 }
 0x3ec   :  { %v1423_v11 = vsel %vm1414_vm14, %v1402_v28, %v1422_v7 }
 0x3ed   :  { %v1424_v62 = vsel %vm1416_vm15, %v1403_v4, %v1423_v11 }
 0x3ee   :  { %v1425_v59 = vpack.c.b16 %v1424_v62, %v9945_v46  ;;  %v1519_v46 = vld [vmem:[%s11989_s6 + $0x20] sm:$0xff] }
 0x3ef   :  { %v1532_v24 = vpack.c.bf16 %v1519_v46, %v1515_v1 }
 0x3f0   :  { %8703 = vmatmul.mubr.msk.bf16.vlgmr.msra.gmra.mrb[24].mxu0 %vm206_vm3, %v1425_v59 }
 0x3f1   :  { %1566 = vmatpush1.bf16.msra.mxu1 %v1532_v24  ;;  %1609 = vmatpush1.bf16.msra.mxu0 %v1534_v63  ;;  %v10032_v24 = vld [vmem:[%s11991_s4] sm:$0x3] }
 0x3f2   :  { %1567 = vmatprep.subr.bf16.mxu1 %v1537_v54  ;;  %1610 = vmatprep.subr.bf16.mxu0 %v1539_v50  ;;  %v1506_v23 = vrot.slane %v10032_v24, %v9689_v56  ;;  %v1660_v54 = vld [vmem:[%s11990_s8 + $0x8] sm:$0xff]  ;;  %v1677_v50 = vld [vmem:[%s11990_s8 + $0x90] sm:$0xff] }
 0x3f3   :  { %1640 = vmatprep.mubr.bf16.mxu0 %v9490_v8  ;;  %v1727_v45 = vpack.c.bf16 %v1660_v54, %v1659_v51  ;;  %v1668_v51 = vld [vmem:[%s11990_s8 + $0x48] sm:$0xff] }
 0x3f5   :  { %1568 = vmatpush1.bf16.msra.mxu1 %v1536_v41  ;;  %1611 = vmatpush1.bf16.msra.mxu0 %v1538_v53  ;;  %v1692_v41 = vld [vmem:[%s11990_s8 + $0x108] sm:$0xff]  ;;  %v1710_v53 = vld [vmem:[%s11990_s8 + $0x198] sm:$0xff] }
 0x3f6   :  { %8332 = vmatprep.subr.bf16.mxu1 %v1735_v26  ;;  %8354 = vmatprep.subr.bf16.mxu0 %v1751_v40  ;;  %v1743_v26 = vpack.c.bf16 %v1692_v41, %v1691_v21  ;;  %v1662_v40 = vld [vmem:[%s11990_s8 + $0x18] sm:$0xff]  ;;  %v1700_v21 = vld [vmem:[%s11990_s8 + $0x148] sm:$0xff]  ;;  %v1685_v41 = vld [vmem:[%s11990_s8 + $0xd0] sm:$0xff] }
 0x4c3   :  { %v1463_v57 = vpop.f32.mrb[24].mxu0 }
 0x4c4   :  { %v1470_v47 = vadd.f32 %v1463_v57, %v9632_v22  ;;  %v8704_v31 = vpop.f32.mrb[25].mxu0 }
 0x4c5   :  { %v1466_v61 = vpop.f32.mrb[26].mxu0  ;;  %v1752_v31 = vpack.c.bf16 %v1710_v53, %v1709_v42  ;;  %v1718_v42 = vld [vmem:[%s11990_s8 + $0x1d8] sm:$0xff] }
 0x4c6   :  { %v1471_v32 = vadd.f32 %v1466_v61, %v9630_v20  ;;  %v8705_v16 = vpop.f32.mrb[27].mxu0  ;;  %v1474_v0 = vsel %vm206_vm3, %v1470_v47, 0.0  ;;  %v1693_v61 = vld [vmem:[%s11990_s8 + $0x110] sm:$0xff] }
 0x4c7   :  { %v1679_v16 = vld [vmem:[%s11990_s8 + $0xa0] sm:$0xff] }
 0x4c8   :  { %v1475_v10 = vsel %vm206_vm3, %v1471_v32, 0.0 }
 0x4c9   :  { %v1476_v2 = vadd.f32 %v1475_v10, %v1474_v0  ;;  %v1680_v0 = vld [vmem:[%s11990_s8 + $0xa8] sm:$0xff]  ;;  %v1711_v10 = vld [vmem:[%s11990_s8 + $0x1a0] sm:$0xff] }
 0x4cb   :  { %v1477_v33 = vrot.slane %v1476_v2, 4 }
 0x4cd   :  { %v1478_v52 = vadd.f32 %v1477_v33, %v1476_v2  ;;  %v1712_v2 = vld [vmem:[%s11990_s8 + $0x1a8] sm:$0xff]  ;;  %v1728_v33 = vpack.c.bf16 %v1662_v40, %v1661_v49  ;;  %v1669_v40 = vld [vmem:[%s11990_s8 + $0x50] sm:$0xff] }
 0x4cf   :  { %v1479_v18 = vrot.slane %v1478_v52, 2 }
 0x4d1   :  { %v1480_v48 = vadd.f32 %v1479_v18, %v1478_v52  ;;  %v1663_v18 = vld [vmem:[%s11990_s8 + $0x20] sm:$0xff] }
 0x4d3   :  { %v1481_v58 = vrot.slane %v1480_v48, 1 }
 0x4d5   :  { %v1482_v30 = vadd.f32 %v1481_v58, %v1480_v48  ;;  %v1664_v48 = vld [vmem:[%s11990_s8 + $0x28] sm:$0xff]  ;;  %v1737_v58 = vpack.c.bf16 %v1680_v0, %v1679_v16  ;;  %v1687_v16 = vld [vmem:[%s11990_s8 + $0xe0] sm:$0xff] }
 0x4d6   :  { %v1688_v0 = vld [vmem:[%s11990_s8 + $0xe8] sm:$0xff] }
 0x4d7   :  { %v1484_v60 = vmul.f32 0.0625, %v1482_v30  ;;  %v1753_v30 = vpack.c.bf16 %v1712_v2, %v1711_v10  ;;  %v1719_v10 = vld [vmem:[%s11990_s8 + $0x1e0] sm:$0xff]  ;;  %v1741_v2 = vpack.c.bf16 %v1688_v0, %v1687_v16 }
 0x4d9   :  { %v1485_v7 = vsub.f32 %v1470_v47, %v1484_v60  ;;  %v1486_v28 = vsub.f32 %v1471_v32, %v1484_v60  ;;  %v1736_v47 = vpack.c.bf16 %v1678_v13, %v1677_v50  ;;  %v1694_v32 = vld [vmem:[%s11990_s8 + $0x118] sm:$0xff]  ;;  %v1695_v60 = vld [vmem:[%s11990_s8 + $0x120] sm:$0xff]  ;;  %v1717_v13 = vld [vmem:[%s11990_s8 + $0x1d0] sm:$0xff] }
 0x4da   :  { %v1744_v52 = vpack.c.bf16 %v1694_v32, %v1693_v61  ;;  %v1686_v50 = vld [vmem:[%s11990_s8 + $0xd8] sm:$0xff]  ;;  %v1756_v49 = vpack.c.bf16 %v1718_v42, %v1717_v13 }
 0x4db   :  { %v1487_v22 = vmul.f32 %v1485_v7, %v1485_v7  ;;  %v1488_v4 = vmul.f32 %v1486_v28, %v1486_v28  ;;  %v1702_v61 = vld [vmem:[%s11990_s8 + $0x158] sm:$0xff] }
 0x4dd   :  { %v1489_v11 = vsel %vm206_vm3, %v1487_v22, 0.0  ;;  %v1490_v20 = vsel %vm206_vm3, %v1488_v4, 0.0  ;;  %v1682_v22 = vld [vmem:[%s11990_s8 + $0xb8] sm:$0xff]  ;;  %v1713_v4 = vld [vmem:[%s11990_s8 + $0x1b0] sm:$0xff] }
 0x4de   :  { %v1491_v62 = vadd.f32 %v1490_v20, %v1489_v11  ;;  %v1714_v11 = vld [vmem:[%s11990_s8 + $0x1b8] sm:$0xff]  ;;  %v1729_v20 = vpack.c.bf16 %v1664_v48, %v1663_v18  ;;  %v1672_v18 = vld [vmem:[%s11990_s8 + $0x68] sm:$0xff] }
 0x4e0   :  { %v1492_v59 = vrot.slane %v1491_v62, 4 }
 0x4e2   :  { %v1493_v14 = vadd.f32 %v1492_v59, %v1491_v62  ;;  %v1665_v59 = vld [vmem:[%s11990_s8 + $0x30] sm:$0xff] }
 0x4e4   :  { %v1494_v9 = vrot.slane %v1493_v14, 2 }
 0x4e6   :  { %v1495_v55 = vadd.f32 %v1494_v9, %v1493_v14  ;;  %v1666_v14 = vld [vmem:[%s11990_s8 + $0x38] sm:$0xff] }
 0x4e8   :  { %v1496_v17 = vrot.slane %v1495_v55, 1 }
 0x4ea   :  { %v1497_v1 = vadd.f32 %v1496_v17, %v1495_v55  ;;  %v1754_v55 = vpack.c.bf16 %v1714_v11, %v1713_v4  ;;  %v1697_v17 = vld [vmem:[%s11990_s8 + $0x130] sm:$0xff] }
 0x4eb   :  { %v1721_v4 = vld [vmem:[%s11990_s8 + $0x1f0] sm:$0xff] }
 0x4ec   :  { %v1498_v46 = vmul.f32 0.0625, %v1497_v1  ;;  %v1698_v1 = vld [vmem:[%s11990_s8 + $0x138] sm:$0xff] }
 0x4ee   :  { %v1499_v19 = vadd.f32 1e-05, %v1498_v46  ;;  %v1683_v46 = vld [vmem:[%s11990_s8 + $0xc0] sm:$0xff] }
 0x4f0   :  { %9253 = vrsqrt.f32 %v1499_v19  ;;  %v1684_v19 = vld [vmem:[%s11990_s8 + $0xc8] sm:$0xff] }
 0x4f1   :  { %v1739_v54 = vpack.c.bf16 %v1684_v19, %v1683_v46  ;;  %v1552_v46 = vsub.s32 2, %v9648_v29  ;;  %v10235_v19 = vsub.s32 1, %v9648_v29 }
 0x4fa   :  { %v9254_v25 = vpop.eup %9253 }
 0x4fb   :  { %v1501_v63 = vmul.f32 %v9254_v25, %v1485_v7  ;;  %v1502_v12 = vmul.f32 %v9254_v25, %v1486_v28  ;;  %v1696_v7 = vld [vmem:[%s11990_s8 + $0x128] sm:$0xff]  ;;  %v1681_v28 = vld [vmem:[%s11990_s8 + $0xb0] sm:$0xff] }
 0x4fc   :  { %v1745_v62 = vpack.c.bf16 %v1696_v7, %v1695_v60  ;;  %v1738_v9 = vpack.c.bf16 %v1682_v22, %v1681_v28  ;;  %v1716_v25 = vld [vmem:[%s11990_s8 + $0x1c8] sm:$0xff]  ;;  %v1689_v28 = vld [vmem:[%s11990_s8 + $0xf0] sm:$0xff]  ;;  %v1690_v22 = vld [vmem:[%s11990_s8 + $0xf8] sm:$0xff] }
 0x4fd   :  { %v1507_v44 = vmul.f32 %v1506_v23, %v1501_v63  ;;  %v1508_v36 = vmul.f32 %v1506_v23, %v1502_v12  ;;  %v1715_v23 = vld [vmem:[%s11990_s8 + $0x1c0] sm:$0xff]  ;;  %v1730_v63 = vpack.c.bf16 %v1666_v14, %v1665_v59  ;;  %v1746_v12 = vpack.c.bf16 %v1698_v1, %v1697_v17  ;;  %v1704_v60 = vld [vmem:[%s11990_s8 + $0x168] sm:$0xff]  ;;  %v1674_v59 = vld [vmem:[%s11990_s8 + $0x78] sm:$0xff] }
 0x4fe   :  { %v1742_v11 = vpack.c.bf16 %v1690_v22, %v1689_v28  ;;  %v1706_v17 = vld [vmem:[%s11990_s8 + $0x178] sm:$0xff]  ;;  %v8025_v28 = vld [vmem:[%s11987_s3 + $0xa0] sm:$0xff] }
 0x4ff   :  { %v10067_v35 = vadd.f32 %v1512_v15, %v1507_v44  ;;  %v10069_v27 = vadd.f32 %v1512_v15, %v1508_v36  ;;  %v1667_v15 = vld [vmem:[%s11990_s8 + $0x40] sm:$0xff]  ;;  %v1755_v44 = vpack.c.bf16 %v1716_v25, %v1715_v23  ;;  %v12006_v25 = vsub.s32 3, %v9648_v29 }
 0x500   :  { %v1699_v36 = vld [vmem:[%s11990_s8 + $0x140] sm:$0xff]  ;;  %v1731_v53 = vpack.c.bf16 %v1668_v51, %v1667_v15 }
 0x501   :  { %v1531_v57 = vpack.c.bf16 %v10069_v27, %v10067_v35  ;;  %v1540_v23 = vld [vmem:[%s11993_s7] sm:$0xf] }
 0x502   :  { %v1549_v15 = vrot.slane %v1540_v23, %v10235_v19  ;;  %v1557_v51 = vrot.slane %v1540_v23, %v12006_v25 }
 0x503   :  { %8018 = vmatmul.mubr.msk.bf16.vlgmr.msra.gmra.mrb[24].mxu1 %vm206_vm3, %v1531_v57  ;;  %8019 = vmatmul.mubr.msk.bf16.vlgmr.msra.gmra.mrb[28].mxu0 %vm206_vm3, %v1531_v57  ;;  %v1670_v57 = vld [vmem:[%s11990_s8 + $0x58] sm:$0xff] }
 0x504   :  { %8333 = vmatpush3.bf16.msra.mxu1 %v1727_v45  ;;  %8355 = vmatpush3.bf16.msra.mxu0 %v1743_v26  ;;  %v1747_v45 = vpack.c.bf16 %v1700_v21, %v1699_v36  ;;  %v1740_v26 = vpack.c.bf16 %v1686_v50, %v1685_v41 }
 0x505   :  { %8334 = vmatprep.subr.bf16.mxu1 %v1736_v47  ;;  %8356 = vmatprep.subr.bf16.mxu0 %v1752_v31  ;;  %v1701_v47 = vld [vmem:[%s11990_s8 + $0x150] sm:$0xff]  ;;  %v1732_v31 = vpack.c.bf16 %v1670_v57, %v1669_v40 }
 0x506   :  { %v1748_v32 = vpack.c.bf16 %v1702_v61, %v1701_v47 }
 0x508   :  { %8335 = vmatpush3.bf16.msra.mxu1 %v1728_v33  ;;  %8357 = vmatpush3.bf16.msra.mxu0 %v1744_v52  ;;  %v1720_v33 = vld [vmem:[%s11990_s8 + $0x1e8] sm:$0xff]  ;;  %v1671_v52 = vld [vmem:[%s11990_s8 + $0x60] sm:$0xff] }
 0x509   :  { %8336 = vmatprep.subr.bf16.mxu1 %v1737_v58  ;;  %8358 = vmatprep.subr.bf16.mxu0 %v1753_v30  ;;  %v1757_v48 = vpack.c.bf16 %v1720_v33, %v1719_v10  ;;  %v1733_v58 = vpack.c.bf16 %v1672_v18, %v1671_v52  ;;  %v1703_v30 = vld [vmem:[%s11990_s8 + $0x160] sm:$0xff] }
 0x50a   :  { %v1749_v7 = vpack.c.bf16 %v1704_v60, %v1703_v30  ;;  %v8021_v60 = vld [vmem:[%s11987_s3 + $0x80] sm:$0xff] }
 0x50c   :  { %8337 = vmatpush3.bf16.msra.mxu1 %v1729_v20  ;;  %8359 = vmatpush3.bf16.msra.mxu0 %v1745_v62  ;;  %v1722_v20 = vld [vmem:[%s11990_s8 + $0x1f8] sm:$0xff]  ;;  %v1673_v62 = vld [vmem:[%s11990_s8 + $0x70] sm:$0xff] }
 0x50d   :  { %8338 = vmatprep.subr.bf16.mxu1 %v1738_v9  ;;  %8360 = vmatprep.subr.bf16.mxu0 %v1754_v55  ;;  %v1758_v14 = vpack.c.bf16 %v1722_v20, %v1721_v4  ;;  %v1734_v9 = vpack.c.bf16 %v1674_v59, %v1673_v62  ;;  %v1705_v55 = vld [vmem:[%s11990_s8 + $0x170] sm:$0xff]  ;;  %v8026_v4 = vld [vmem:[%s11987_s3 + $0xa8] sm:$0xff]  ;;  %v8024_v62 = vld [vmem:[%s11987_s3 + $0x98] sm:$0xff] }
 0x50e   :  { %v1750_v1 = vpack.c.bf16 %v1706_v17, %v1705_v55  ;;  %v8023_v20 = vld [vmem:[%s11987_s3 + $0x90] sm:$0xff] }
 0x50f   :  { %v8027_v59 = vld [vmem:[%s11987_s3 + $0xb0] sm:$0xff] }
 0x510   :  { %8339 = vmatpush3.bf16.msra.mxu1 %v1730_v63  ;;  %8361 = vmatpush3.bf16.msra.mxu0 %v1746_v12  ;;  %v1545_v63 = vrot.slane %v1540_v23, %v9689_v56  ;;  %v1553_v12 = vrot.slane %v1540_v23, %v1552_v46  ;;  %v8020_v23 = vld [vmem:[%s11994_s9] ss:$0 sm:$0xff] }
 0x511   :  { %8340 = vmatprep.subr.bf16.mxu1 %v1739_v54  ;;  %8362 = vmatprep.subr.bf16.mxu0 %v1755_v44 }
 0x514   :  { %8341 = vmatpush3.bf16.msra.mxu1 %v1731_v53  ;;  %8363 = vmatpush3.bf16.msra.mxu0 %v1747_v45 }
 0x515   :  { %8342 = vmatprep.subr.bf16.mxu1 %v1740_v26  ;;  %8364 = vmatprep.subr.bf16.mxu0 %v1756_v49 }
 0x518   :  { %8343 = vmatpush3.bf16.msra.mxu1 %v1732_v31  ;;  %8365 = vmatpush3.bf16.msra.mxu0 %v1748_v32 }
 0x519   :  { %8344 = vmatprep.subr.bf16.mxu1 %v1741_v2  ;;  %8366 = vmatprep.subr.bf16.mxu0 %v1757_v48 }
 0x51c   :  { %8345 = vmatpush3.bf16.msra.mxu1 %v1733_v58  ;;  %8367 = vmatpush3.bf16.msra.mxu0 %v1749_v7  ;;  %v8022_v7 = vld [vmem:[%s11987_s3 + $0x88] sm:$0xff] }
 0x51d   :  { %8346 = vmatprep.subr.bf16.mxu1 %v1742_v11  ;;  %8368 = vmatprep.subr.bf16.mxu0 %v1758_v14  ;;  %v1908_v22 = vpack.c.bf16 %v8022_v7, %v8021_v60  ;;  %v1956_v11 = vpack.c.bf16 %v8026_v4, %v8025_v28  ;;  %v1909_v14 = vpack.c.bf16 %v8024_v62, %v8023_v20 }
 0x51e   :  { %v1881_v62 = vrot.slane %v10032_v24, %v10235_v19 }
 0x520   :  { %8347 = vmatpush3.bf16.msra.mxu1 %v1734_v9  ;;  %8369 = vmatpush3.bf16.msra.mxu0 %v1750_v1  ;;  %v8028_v9 = vld [vmem:[%s11987_s3 + $0xb8] sm:$0xff] }
 0x521   :  { %8706 = vmatprep.subr.bf16.mxu1 %v9485_v3  ;;  %8714 = vmatprep.subr.bf16.mxu0 %v9485_v3  ;;  %v1957_v55 = vpack.c.bf16 %v8028_v9, %v8027_v59 }
 0x5d6   :  { %v1599_v54 = vpop.f32.mrb[24].mxu1  ;;  %v1642_v44 = vpop.f32.mrb[28].mxu0 }
 0x5d7   :  { %v1600_v36 = vadd.f32 %v1599_v54, %v1545_v63  ;;  %v1643_v21 = vadd.f32 %v1642_v44, %v1553_v12  ;;  %v1601_v41 = vpop.f32.mrb[25].mxu1  ;;  %v1644_v50 = vpop.f32.mrb[29].mxu0 }
 0x5d8   :  { %v1602_v13 = vadd.f32 %v1601_v41, %v1549_v15  ;;  %v1645_v42 = vadd.f32 %v1644_v50, %v1557_v51  ;;  %v1603_v53 = vpop.f32.mrb[26].mxu1  ;;  %v1646_v45 = vpop.f32.mrb[30].mxu0 }
 0x5d9   :  { %v1604_v26 = vadd.f32 %v1603_v53, %v1545_v63  ;;  %v1647_v49 = vadd.f32 %v1646_v45, %v1553_v12  ;;  %v1605_v40 = vpop.f32.mrb[27].mxu1  ;;  %v1648_v57 = vpop.f32.mrb[31].mxu0  ;;  %v1651_v61 = vmax.f32 %v1600_v36, 0.0  ;;  %v1653_v32 = vmax.f32 %v1643_v21, 0.0 }
 0x5da   :  { %v1606_v47 = vadd.f32 %v1605_v40, %v1549_v15  ;;  %v1649_v31 = vadd.f32 %v1648_v57, %v1557_v51  ;;  %v1652_v10 = vmax.f32 %v1602_v13, 0.0  ;;  %v1654_v2 = vmax.f32 %v1645_v42, 0.0 }
 0x5db   :  { %v1655_v16 = vmax.f32 %v1604_v26, 0.0  ;;  %v1657_v0 = vmax.f32 %v1647_v49, 0.0 }
 0x5dc   :  { %v1656_v33 = vmax.f32 %v1606_v47, 0.0  ;;  %v1658_v52 = vmax.f32 %v1649_v31, 0.0 }
 0x5dd   :  { %v1723_v18 = vpack.c.bf16 %v1655_v16, %v1651_v61  ;;  %v1725_v48 = vpack.c.bf16 %v1657_v0, %v1653_v32 }
 0x5de   :  { %v1724_v58 = vpack.c.bf16 %v1656_v33, %v1652_v10  ;;  %v1726_v30 = vpack.c.bf16 %v1658_v52, %v1654_v2 }
 0x5e0   :  { %1798 = vmatprep.mubr.bf16.mxu1 %v1724_v58  ;;  %1839 = vmatprep.mubr.bf16.mxu0 %v1726_v30 }
 0x5e1   :  { %1799 = vmatmul.mubr.bf16.vlgmr.msra.gmra.mrb[28].mxu1 %v1723_v18  ;;  %1840 = vmatmul.mubr.bf16.vlgmr.msra.gmra.mrb[32].mxu0 %v1725_v48 }
 0x5e2   :  { %8710 = vmatprep.mubr.msk.bf16.mxu1 %vm9486_vm2, %v9485_v3  ;;  %8718 = vmatprep.mubr.msk.bf16.mxu0 %vm9486_vm2, %v9485_v3 }
 0x5e3   :  { %8707 = vmatpush3.bf16.msra.mxu1 %v1908_v22  ;;  %8715 = vmatpush3.bf16.msra.mxu0 %v1956_v11 }
 0x5e4   :  { %8708 = vmatprep.subr.bf16.mxu1 %v9485_v3  ;;  %8716 = vmatprep.subr.bf16.mxu0 %v9485_v3 }
 0x5e7   :  { %8709 = vmatpush3.bf16.msra.mxu1 %v1909_v14  ;;  %8717 = vmatpush3.bf16.msra.mxu0 %v1957_v55  ;;  %v1887_v14 = vrot.slane %v10037_v34, %v10235_v19 }
 0x5e8   :  { %8722 = vmatprep.subr.bf16.mxu1 %v9485_v3  ;;  %9109 = vmatprep.subr.msk.bf16.mxu0 %vm9659_vm10, %v12004_v38 }
 0x6b4   :  { %v8348_v17 = vpop.f32.mrb[28].mxu1  ;;  %v8370_v1 = vpop.f32.mrb[32].mxu0 }
 0x6b5   :  { %v8349_v63 = vpop.f32.mrb[29].mxu1  ;;  %v8371_v12 = vpop.f32.mrb[33].mxu0 }
 0x6b6   :  { %v8350_v15 = vadd.f32 %v8349_v63, %v8348_v17  ;;  %v8372_v51 = vadd.f32 %v8371_v12, %v8370_v1  ;;  %v8351_v54 = vpop.f32.mrb[30].mxu1  ;;  %v8373_v44 = vpop.f32.mrb[34].mxu0  ;;  %v8030_v63 = vld [vmem:[%s11987_s3 + $0xc8] sm:$0xff] }
 0x6b7   :  { %v8352_v36 = vpop.f32.mrb[31].mxu1  ;;  %v8374_v21 = vpop.f32.mrb[35].mxu0 }
 0x6b8   :  { %v1801_v41 = vadd.f32 %v8350_v15, %v8020_v23  ;;  %v8353_v50 = vadd.f32 %v8352_v36, %v8351_v54  ;;  %v8375_v13 = vadd.f32 %v8374_v21, %v8373_v44  ;;  %v8032_v54 = vld [vmem:[%s11987_s3 + $0xd8] sm:$0xff] }
 0x6ba   :  { %v1842_v42 = vadd.f32 %v8372_v51, %v1801_v41  ;;  %v1804_v53 = vadd.f32 %v8353_v50, %v8020_v23  ;;  %v8029_v23 = vld [vmem:[%s11987_s3 + $0xc0] sm:$0xff]  ;;  %v8031_v51 = vld [vmem:[%s11987_s3 + $0xd0] sm:$0xff] }
 0x6bb   :  { %v1999_v24 = vpack.c.bf16 %v8030_v63, %v8029_v23  ;;  %v2000_v44 = vpack.c.bf16 %v8032_v54, %v8031_v51 }
 0x6bc   :  { %v1848_v45 = vadd.f32 %v1842_v42, %v10067_v35  ;;  %v1845_v26 = vadd.f32 %v8375_v13, %v1804_v53 }
 0x6be   :  { %v1849_v49 = vadd.f32 %v1845_v26, %v10069_v27  ;;  %v1850_v40 = vsel %vm206_vm3, %v1848_v45, 0.0 }
 0x6c0   :  { %v1851_v57 = vsel %vm206_vm3, %v1849_v49, 0.0 }
 0x6c1   :  { %v1852_v47 = vadd.f32 %v1851_v57, %v1850_v40 }
 0x6c3   :  { %v1853_v31 = vrot.slane %v1852_v47, 4 }
 0x6c5   :  { %v1854_v61 = vadd.f32 %v1853_v31, %v1852_v47 }
 0x6c7   :  { %v1855_v32 = vrot.slane %v1854_v61, 2 }
 0x6c9   :  { %v1856_v16 = vadd.f32 %v1855_v32, %v1854_v61 }
 0x6cb   :  { %v1857_v0 = vrot.slane %v1856_v16, 1 }
 0x6cd   :  { %v1858_v10 = vadd.f32 %v1857_v0, %v1856_v16 }
 0x6cf   :  { %v1859_v2 = vmul.f32 0.0625, %v1858_v10 }
 0x6d1   :  { %v1860_v33 = vsub.f32 %v1848_v45, %v1859_v2  ;;  %v1861_v52 = vsub.f32 %v1849_v49, %v1859_v2 }
 0x6d3   :  { %v1862_v18 = vmul.f32 %v1860_v33, %v1860_v33  ;;  %v1863_v48 = vmul.f32 %v1861_v52, %v1861_v52 }
 0x6d5   :  { %v1864_v35 = vsel %vm206_vm3, %v1862_v18, 0.0  ;;  %v1865_v27 = vsel %vm206_vm3, %v1863_v48, 0.0 }
 0x6d6   :  { %v1866_v58 = vadd.f32 %v1865_v27, %v1864_v35 }
 0x6d8   :  { %v1867_v30 = vrot.slane %v1866_v58, 4 }
 0x6da   :  { %v1868_v60 = vadd.f32 %v1867_v30, %v1866_v58 }
 0x6dc   :  { %v1869_v7 = vrot.slane %v1868_v60, 2 }
 0x6de   :  { %v1870_v28 = vadd.f32 %v1869_v7, %v1868_v60 }
 0x6e0   :  { %v1871_v22 = vrot.slane %v1870_v28, 1 }
 0x6e2   :  { %v1872_v4 = vadd.f32 %v1871_v22, %v1870_v28 }
 0x6e4   :  { %v1873_v11 = vmul.f32 0.0625, %v1872_v4 }
 0x6e6   :  { %v1874_v20 = vadd.f32 1e-05, %v1873_v11 }
 0x6e8   :  { %9255 = vrsqrt.f32 %v1874_v20 }
 0x6f2   :  { %v9256_v59 = vpop.eup %9255 }
 0x6f3   :  { %v1876_v9 = vmul.f32 %v9256_v59, %v1860_v33  ;;  %v1877_v55 = vmul.f32 %v9256_v59, %v1861_v52 }
 0x6f5   :  { %v1882_v17 = vmul.f32 %v1881_v62, %v1876_v9  ;;  %v1883_v1 = vmul.f32 %v1881_v62, %v1877_v55 }
 0x6f7   :  { %v10300_v12 = vadd.f32 %v1887_v14, %v1883_v1  ;;  %v10302_v15 = vadd.f32 %v1887_v14, %v1882_v17 }
 0x6f9   :  { %v1907_v34 = vpack.c.bf16 %v10300_v12, %v10302_v15 }
 0x6fb   :  { %8711 = vmatmul.mubr.msk.bf16.vlgmr.msra.gmra.mrb[32].mxu1 %vm206_vm3, %v1907_v34  ;;  %8719 = vmatmul.mubr.msk.bf16.vlgmr.msra.gmra.mrb[36].mxu0 %vm206_vm3, %v1907_v34 }
 0x6fc   :  { %8723 = vmatpush3.bf16.msra.mxu1 %v1999_v24  ;;  %8726 = vmatprep.mubr.msk.bf16.mxu1 %vm9486_vm2, %v9485_v3 }
 0x6fd   :  { %8724 = vmatprep.subr.bf16.mxu1 %v9485_v3  ;;  %9111 = vmatpush3.bf16.msk.msra.mxu0 %vm9659_vm10, %v12004_v38 }
 0x6fe   :  { %9113 = vmatprep.subr.msk.bf16.mxu0 %vm9669_vm1, %v12004_v38 }
 0x700   :  { %8725 = vmatpush3.bf16.msra.mxu1 %v2000_v44 }
 0x701   :  { %9115 = vmatpush3.bf16.msk.msra.mxu0 %vm9669_vm1, %v12004_v38  ;;  %8762 = vmatprep.subr.msk.mxu1 %vm9740_vm6, %v12002_v6 }
 0x702   :  { %8788 = vmatprep.subr.bf16.mxu0 %v9485_v3 }
 0x703   :  { %8727 = vmatmul.mubr.msk.bf16.vlgmr.msra.gmra.mrb[36].mxu1 %vm206_vm3, %v1907_v34 }
 0x704   :  { %8763 = vmatpush3.msk.msra.mxu1 %vm9740_vm6, %v12002_v6 }
 0x7ce   :  { %v1947_v36 = vpop.f32.mrb[32].mxu1  ;;  %v10334_v21 = vpop.f32.mrb[36].mxu0 }
 0x7cf   :  { %v1954_v41 = vmul.f32 0.5, %v1947_v36  ;;  %v8712_v50 = vpop.f32.mrb[33].mxu1  ;;  %v8720_v13 = vpop.f32.mrb[37].mxu0 }
 0x7d0   :  { %v1950_v42 = vpop.f32.mrb[34].mxu1  ;;  %v10336_v53 = vpop.f32.mrb[38].mxu0 }
 0x7d1   :  { %v2044_v45 = vcombine.high %v1954_v41, %v1954_v41  ;;  %v2051_v26 = vrot.slane %v1954_v41, %v9681_v43  ;;  %v1955_v49 = vmul.f32 0.5, %v1950_v42  ;;  %v8713_v40 = vpop.f32.mrb[35].mxu1  ;;  %v8721_v57 = vpop.f32.mrb[39].mxu0 }
 0x7d3   :  { %v2058_v47 = vrot.slane %v2044_v45, %v9681_v43  ;;  %v2059_v31 = vcombine.high %v2051_v26, %v2051_v26  ;;  %v2067_v61 = vrot.slane %v2051_v26, %v9681_v43  ;;  %v2093_v32 = vcombine.high %v1955_v49, %v1955_v49 }
 0x7d4   :  { %v2100_v16 = vrot.slane %v1955_v49, %v9681_v43 }
 0x7d5   :  { %v2060_v0 = vcombine.high %v2058_v47, %v2058_v47  ;;  %v2074_v10 = vrot.slane %v2058_v47, %v9681_v43  ;;  %v2081_v2 = vrot.slane %v2059_v31, %v9681_v43  ;;  %v2089_v33 = vcombine.high %v2067_v61, %v2067_v61 }
 0x7d6   :  { %v2145_v52 = vrot.slane %v2067_v61, %v9689_v56  ;;  %v2107_v18 = vrot.slane %v2093_v32, %v9681_v43  ;;  %v2108_v48 = vcombine.high %v2100_v16, %v2100_v16  ;;  %v2116_v35 = vrot.slane %v2100_v16, %v9681_v43  ;;  %v10347_v27 = vpop.f32.mrb[36].mxu1 }
 0x7d7   :  { %v2088_v58 = vrot.slane %v2060_v0, %v9681_v43  ;;  %v2090_v30 = vcombine.high %v2074_v10, %v2074_v10  ;;  %v2091_v60 = vcombine.high %v2081_v2, %v2081_v2  ;;  %v2149_v7 = vrot.slane %v2081_v2, %v9689_v56  ;;  %v8728_v28 = vpop.f32.mrb[37].mxu1 }
 0x7d8   :  { %v2153_v22 = vrot.slane %v2089_v33, %v9689_v56  ;;  %v2161_v4 = vrot.slane %v2074_v10, %v9689_v56  ;;  %v2109_v11 = vcombine.high %v2107_v18, %v2107_v18  ;;  %v2123_v20 = vrot.slane %v2107_v18, %v9681_v43  ;;  %v10354_v62 = vpop.f32.mrb[38].mxu1 }
 0x7d9   :  { %v2092_v59 = vcombine.high %v2088_v58, %v2088_v58  ;;  %v2130_v14 = vrot.slane %v2108_v48, %v9681_v43  ;;  %v2138_v9 = vcombine.high %v2116_v35, %v2116_v35  ;;  %v2177_v55 = vrot.slane %v2116_v35, %v9689_v56  ;;  %v8729_v17 = vpop.f32.mrb[39].mxu1 }
 0x7da   :  { %v2137_v1 = vrot.slane %v2109_v11, %v9681_v43  ;;  %v2139_v23 = vcombine.high %v2123_v20, %v2123_v20  ;;  %v2193_v63 = vrot.slane %v2123_v20, %v9689_v56  ;;  %v2222_v24 = vmul.f32 %v2145_v52, %v10334_v21 }
 0x7db   :  { %v2140_v34 = vcombine.high %v2130_v14, %v2130_v14  ;;  %v2181_v51 = vrot.slane %v2130_v14, %v9689_v56  ;;  %v2185_v54 = vrot.slane %v2138_v9, %v9689_v56  ;;  %v2223_v44 = vmul.f32 %v2149_v7, %v10334_v21 }
 0x7dc   :  { %v2141_v36 = vcombine.high %v2137_v1, %v2137_v1  ;;  %8738 = vmatprep.mubr.msk.f32.mxu0 %vm206_vm3, %v2222_v24  ;;  %v2224_v41 = vmul.f32 %v2153_v22, %v10334_v21  ;;  %v2157_v50 = vrot.slane %v2091_v60, %v9689_v56  ;;  %v2226_v13 = vmul.f32 %v2161_v4, %v10334_v21 }
 0x7dd   :  { %8739 = vmatmul.mubr.msk.f32.vlgmr.msra.gmra.mrb[40].mxu0 %vm206_vm3, %v2223_v44  ;;  %v2165_v42 = vrot.slane %v2088_v58, %v9689_v56  ;;  %v2169_v45 = vrot.slane %v2090_v30, %v9689_v56  ;;  %v2173_v26 = vrot.slane %v2092_v59, %v9689_v56  ;;  %v2230_v49 = vmul.f32 %v2177_v55, %v10336_v53 }
 0x7de   :  { %8741 = vmatprep.mubr.msk.f32.mxu0 %vm206_vm3, %v2224_v41  ;;  %v2225_v40 = vmul.f32 %v2157_v50, %v10334_v21  ;;  %v2231_v57 = vmul.f32 %v2181_v51, %v10336_v53  ;;  %v2232_v47 = vmul.f32 %v2185_v54, %v10336_v53  ;;  %v2189_v31 = vrot.slane %v2140_v34, %v9689_v56 }
 0x7df   :  { %v2227_v61 = vmul.f32 %v2165_v42, %v10334_v21  ;;  %v2228_v32 = vmul.f32 %v2169_v45, %v10334_v21  ;;  %v2229_v16 = vmul.f32 %v2173_v26, %v10334_v21  ;;  %v2234_v0 = vmul.f32 %v2193_v63, %v10336_v53 }
 0x7e0   :  { %v2233_v10 = vmul.f32 %v2189_v31, %v10336_v53  ;;  %v2197_v2 = vrot.slane %v2137_v1, %v9689_v56  ;;  %v2201_v33 = vrot.slane %v2139_v23, %v9689_v56  ;;  %v2205_v52 = vrot.slane %v2141_v36, %v9689_v56 }
 0x7e1   :  { %8742 = vmatmul.mubr.msk.f32.gmra.mrb[42].mxu0 %vm206_vm3, %v2225_v40 }
 0x7e2   :  { %8744 = vmatprep.mubr.msk.f32.mxu0 %vm206_vm3, %v2226_v13  ;;  %v2235_v18 = vmul.f32 %v2197_v2, %v10336_v53  ;;  %v2236_v48 = vmul.f32 %v2201_v33, %v10336_v53  ;;  %v2237_v21 = vmul.f32 %v2205_v52, %v10336_v53 }
 0x7e5   :  { %8745 = vmatmul.mubr.msk.f32.gmra.mrb[44].mxu0 %vm206_vm3, %v2227_v61 }
 0x7e6   :  { %8747 = vmatprep.mubr.msk.f32.mxu0 %vm206_vm3, %v2228_v32 }
 0x7e9   :  { %8748 = vmatmul.mubr.msk.f32.gmra.mrb[46].mxu0 %vm206_vm3, %v2229_v16 }
 0x7ea   :  { %8750 = vmatprep.mubr.msk.f32.mxu0 %vm206_vm3, %v2230_v49 }
 0x7ed   :  { %8751 = vmatmul.mubr.msk.f32.gmra.mrb[48].mxu0 %vm206_vm3, %v2231_v57 }
 0x7ee   :  { %8753 = vmatprep.mubr.msk.f32.mxu0 %vm206_vm3, %v2232_v47 }
 0x7f1   :  { %8754 = vmatmul.mubr.msk.f32.gmra.mrb[50].mxu0 %vm206_vm3, %v2233_v10 }
 0x7f2   :  { %8756 = vmatprep.mubr.msk.f32.mxu0 %vm206_vm3, %v2234_v0 }
 0x7f5   :  { %8757 = vmatmul.mubr.msk.f32.gmra.mrb[52].mxu0 %vm206_vm3, %v2235_v18 }
 0x7f6   :  { %8759 = vmatprep.mubr.msk.f32.mxu0 %vm206_vm3, %v2236_v48 }
 0x7f9   :  { %8760 = vmatmul.mubr.msk.f32.gmra.mrb[54].mxu0 %vm206_vm3, %v2237_v21 }
 0x7fa   :  { %8792 = vmatprep.mubr.msk.bf16.mxu0 %vm9486_vm2, %v9485_v3 }
 0x8b0   :  { %v8740_v53 = vpop.f32.mrb[40].mxu0 }
 0x8b1   :  { %v2438_v35 = vsel %vm728_vm7, %v8740_v53, -inf  ;;  %v2352_v58 = vpop.f32.mrb[41].mxu0 }
 0x8b2   :  { %v2439_v30 = vrot.slane %v2438_v35, 4  ;;  %v2431_v60 = vsel %vm728_vm7, %v2352_v58, -inf }
 0x8b3   :  { %v2432_v7 = vrot.slane %v2431_v60, 4 }
 0x8b4   :  { %v2440_v28 = vmax.f32 %v2438_v35, %v2439_v30  ;;  %v8743_v22 = vpop.f32.mrb[42].mxu0 }
 0x8b5   :  { %v2433_v4 = vmax.f32 %v2431_v60, %v2432_v7  ;;  %v2452_v11 = vsel %vm728_vm7, %v8743_v22, -inf  ;;  %v2362_v20 = vpop.f32.mrb[43].mxu0 }
 0x8b6   :  { %v2441_v59 = vrot.slane %v2440_v28, 2  ;;  %v2453_v14 = vrot.slane %v2452_v11, 4  ;;  %v2445_v9 = vsel %vm728_vm7, %v2362_v20, -inf }
 0x8b7   :  { %v2434_v55 = vrot.slane %v2433_v4, 2  ;;  %v2446_v17 = vrot.slane %v2445_v9, 4 }
 0x8b8   :  { %v2442_v1 = vmax.f32 %v2440_v28, %v2441_v59  ;;  %v2454_v23 = vmax.f32 %v2452_v11, %v2453_v14  ;;  %v10408_v63 = vpop.f32.mrb[44].mxu0 }
 0x8b9   :  { %v2435_v24 = vmax.f32 %v2433_v4, %v2434_v55  ;;  %v2447_v34 = vmax.f32 %v2445_v9, %v2446_v17  ;;  %v2466_v51 = vsel %vm728_vm7, %v10408_v63, -inf  ;;  %v10412_v54 = vpop.f32.mrb[45].mxu0 }
 0x8ba   :  { %v2443_v44 = vrot.slane %v2442_v1, 1  ;;  %v2455_v36 = vrot.slane %v2454_v23, 2  ;;  %v2467_v41 = vrot.slane %v2466_v51, 4  ;;  %v2459_v50 = vsel %vm728_vm7, %v10412_v54, -inf }
 0x8bb   :  { %v2436_v13 = vrot.slane %v2435_v24, 1  ;;  %v2448_v42 = vrot.slane %v2447_v34, 2  ;;  %v2460_v45 = vrot.slane %v2459_v50, 4 }
 0x8bc   :  { %v2444_v26 = vmax.f32 %v2442_v1, %v2443_v44  ;;  %v2456_v49 = vmax.f32 %v2454_v23, %v2455_v36  ;;  %v2468_v40 = vmax.f32 %v2466_v51, %v2467_v41  ;;  %v10416_v57 = vpop.f32.mrb[46].mxu0 }
 0x8bd   :  { %v2437_v47 = vmax.f32 %v2435_v24, %v2436_v13  ;;  %v2449_v31 = vmax.f32 %v2447_v34, %v2448_v42  ;;  %v2461_v61 = vmax.f32 %v2459_v50, %v2460_v45  ;;  %v2480_v32 = vsel %vm728_vm7, %v10416_v57, -inf  ;;  %v10420_v16 = vpop.f32.mrb[47].mxu0 }
 0x8be   :  { %v2544_v0 = vsub.f32 %v8740_v53, %v2444_v26  ;;  %v2457_v10 = vrot.slane %v2456_v49, 1  ;;  %v2469_v2 = vrot.slane %v2468_v40, 2  ;;  %v2481_v33 = vrot.slane %v2480_v32, 4 }
 0x8bf   :  { %v2543_v52 = vsub.f32 %v2352_v58, %v2437_v47  ;;  %v2450_v18 = vrot.slane %v2449_v31, 1  ;;  %v2462_v48 = vrot.slane %v2461_v61, 2  ;;  %v2473_v21 = vsel %vm728_vm7, %v10420_v16, -inf }
 0x8c0   :  { %v2561_v35 = vmul.f32 1.442695, %v2544_v0  ;;  %v2458_v30 = vmax.f32 %v2456_v49, %v2457_v10  ;;  %v2470_v60 = vmax.f32 %v2468_v40, %v2469_v2  ;;  %v2482_v7 = vmax.f32 %v2480_v32, %v2481_v33  ;;  %v10424_v28 = vpop.f32.mrb[48].mxu0 }
 0x8c1   :  { %v2559_v4 = vmul.f32 1.442695, %v2543_v52  ;;  %v2451_v11 = vmax.f32 %v2449_v31, %v2450_v18  ;;  %v2463_v59 = vmax.f32 %v2461_v61, %v2462_v48  ;;  %v2474_v14 = vrot.slane %v2473_v21, 4  ;;  %v10426_v53 = vpop.f32.mrb[49].mxu0 }
 0x8c2   :  { %9257 = vpow2.f32 %v2561_v35  ;;  %v2546_v9 = vsub.f32 %v8743_v22, %v2458_v30  ;;  %v2471_v58 = vrot.slane %v2470_v60, 1  ;;  %v2483_v55 = vrot.slane %v2482_v7, 2 }
 0x8c3   :  { %9259 = vpow2.f32 %v2559_v4  ;;  %v2545_v17 = vsub.f32 %v2362_v20, %v2451_v11  ;;  %v2464_v1 = vrot.slane %v2463_v59, 1  ;;  %v2475_v23 = vmax.f32 %v2473_v21, %v2474_v14 }
 0x8c4   :  { %v2565_v24 = vmul.f32 1.442695, %v2546_v9  ;;  %v2472_v34 = vmax.f32 %v2470_v60, %v2471_v58  ;;  %v2484_v51 = vmax.f32 %v2482_v7, %v2483_v55  ;;  %v2494_v44 = vsel %vm728_vm7, %v10424_v28, -inf  ;;  %v10430_v36 = vpop.f32.mrb[50].mxu0 }
 0x8c5   :  { %v2563_v41 = vmul.f32 1.442695, %v2545_v17  ;;  %v2465_v50 = vmax.f32 %v2463_v59, %v2464_v1  ;;  %v2476_v13 = vrot.slane %v2475_v23, 2  ;;  %v2495_v42 = vrot.slane %v2494_v44, 4  ;;  %v10432_v45 = vpop.f32.mrb[51].mxu0 }
 0x8c6   :  { %9261 = vpow2.f32 %v2565_v24  ;;  %v2548_v22 = vsub.f32 %v10408_v63, %v2472_v34  ;;  %v2485_v20 = vrot.slane %v2484_v51, 1  ;;  %v2487_v26 = vsel %vm728_vm7, %v10426_v53, -inf }
 0x8c7   :  { %9263 = vpow2.f32 %v2563_v41  ;;  %v2547_v49 = vsub.f32 %v10412_v54, %v2465_v50  ;;  %v2477_v40 = vmax.f32 %v2475_v23, %v2476_v13  ;;  %v2496_v47 = vmax.f32 %v2494_v44, %v2495_v42 }
 0x8c8   :  { %v2569_v31 = vmul.f32 1.442695, %v2548_v22  ;;  %v2486_v61 = vmax.f32 %v2484_v51, %v2485_v20  ;;  %v2488_v32 = vrot.slane %v2487_v26, 4  ;;  %v2508_v0 = vsel %vm728_vm7, %v10430_v36, -inf  ;;  %v10440_v10 = vpop.f32.mrb[52].mxu0 }
 0x8c9   :  { %v2567_v2 = vmul.f32 1.442695, %v2547_v49  ;;  %v2478_v33 = vrot.slane %v2477_v40, 1  ;;  %v2497_v63 = vrot.slane %v2496_v47, 2  ;;  %v2509_v52 = vrot.slane %v2508_v0, 4  ;;  %v10442_v18 = vpop.f32.mrb[53].mxu0 }
 0x8ca   :  { %9265 = vpow2.f32 %v2569_v31  ;;  %v2550_v48 = vsub.f32 %v10416_v57, %v2486_v61  ;;  %v2489_v54 = vmax.f32 %v2487_v26, %v2488_v32  ;;  %v2501_v11 = vsel %vm728_vm7, %v10432_v45, -inf }
 0x8cb   :  { %9267 = vpow2.f32 %v2567_v2  ;;  %v2479_v21 = vmax.f32 %v2477_v40, %v2478_v33  ;;  %v2498_v35 = vmax.f32 %v2496_v47, %v2497_v63  ;;  %v2510_v30 = vmax.f32 %v2508_v0, %v2509_v52 }
 0x8cc   :  { %v10445_v60 = vpop.eup %9257  ;;  %v2573_v7 = vmul.f32 1.442695, %v2550_v48  ;;  %v2490_v4 = vrot.slane %v2489_v54, 2  ;;  %v10449_v59 = vpop.f32.mrb[54].mxu0  ;;  %v2502_v22 = vrot.slane %v2501_v11, 4  ;;  %v2522_v33 = vsel %vm728_vm7, %v10440_v10, -inf }
 0x8cd   :  { %v10451_v14 = vpop.eup %9259  ;;  %v2598_v9 = vsel %vm728_vm7, %v10445_v60, 0.0  ;;  %v2549_v57 = vsub.f32 %v10420_v16, %v2479_v21  ;;  %v2499_v58 = vrot.slane %v2498_v35, 1  ;;  %v2511_v55 = vrot.slane %v2510_v30, 2  ;;  %v10456_v17 = vpop.f32.mrb[55].mxu0 }
 0x8ce   :  { %v2599_v1 = vrot.slane %v2598_v9, 4  ;;  %v2591_v23 = vsel %vm728_vm7, %v10451_v14, 0.0  ;;  %9269 = vpow2.f32 %v2573_v7  ;;  %v2491_v24 = vmax.f32 %v2489_v54, %v2490_v4 }
 0x8cf   :  { %v2592_v34 = vrot.slane %v2591_v23, 4  ;;  %v2571_v51 = vmul.f32 1.442695, %v2549_v57  ;;  %v2500_v44 = vmax.f32 %v2498_v35, %v2499_v58  ;;  %v2512_v42 = vmax.f32 %v2510_v30, %v2511_v55 }
 0x8d0   :  { %v10460_v41 = vpop.eup %9261  ;;  %v2600_v50 = vadd.f32 %v2599_v1, %v2598_v9  ;;  %v2492_v13 = vrot.slane %v2491_v24, 1  ;;  %v2503_v7 = vmax.f32 %v2501_v11, %v2502_v22 }
 0x8d1   :  { %v10462_v16 = vpop.eup %9263  ;;  %v2593_v20 = vadd.f32 %v2592_v34, %v2591_v23  ;;  %v2612_v26 = vsel %vm728_vm7, %v10460_v41, 0.0  ;;  %9271 = vpow2.f32 %v2571_v51  ;;  %v2552_v49 = vsub.f32 %v10424_v28, %v2500_v44 }
 0x8d2   :  { %v2601_v40 = vrot.slane %v2600_v50, 2  ;;  %v2613_v47 = vrot.slane %v2612_v26, 4  ;;  %v2605_v31 = vsel %vm728_vm7, %v10462_v16, 0.0  ;;  %v2493_v61 = vmax.f32 %v2491_v24, %v2492_v13 }
 0x8d3   :  { %v2594_v32 = vrot.slane %v2593_v20, 2  ;;  %v2606_v0 = vrot.slane %v2605_v31, 4  ;;  %v2577_v2 = vmul.f32 1.442695, %v2552_v49  ;;  %v2513_v21 = vrot.slane %v2512_v42, 1 }
 0x8d4   :  { %v10471_v63 = vpop.eup %9265  ;;  %v2602_v52 = vadd.f32 %v2601_v40, %v2600_v50  ;;  %v2614_v48 = vadd.f32 %v2613_v47, %v2612_v26  ;;  %v2551_v54 = vsub.f32 %v10426_v53, %v2493_v61  ;;  %v2523_v44 = vrot.slane %v2522_v33, 4 }
 0x8d5   :  { %v10474_v28 = vpop.eup %9267  ;;  %v2607_v35 = vadd.f32 %v2606_v0, %v2605_v31  ;;  %v2626_v30 = vsel %vm728_vm7, %v10471_v63, 0.0  ;;  %9273 = vpow2.f32 %v2577_v2  ;;  %v2595_v4 = vadd.f32 %v2594_v32, %v2593_v20 }
 0x8d6   :  { %v2615_v9 = vrot.slane %v2614_v48, 2  ;;  %v2627_v57 = vrot.slane %v2626_v30, 4  ;;  %v2619_v58 = vsel %vm728_vm7, %v10474_v28, 0.0  ;;  %v2575_v23 = vmul.f32 1.442695, %v2551_v54 }
 0x8d7   :  { %v2608_v55 = vrot.slane %v2607_v35, 2  ;;  %v2620_v1 = vrot.slane %v2619_v58, 4  ;;  %v2603_v53 = vrot.slane %v2602_v52, 1  ;;  %v2514_v51 = vmax.f32 %v2512_v42, %v2513_v21 }
 0x8d8   :  { %v10480_v24 = vpop.eup %9269  ;;  %v2628_v34 = vadd.f32 %v2627_v57, %v2626_v30  ;;  %v2616_v50 = vadd.f32 %v2615_v9, %v2614_v48  ;;  %v2504_v22 = vrot.slane %v2503_v7, 2  ;;  %v2596_v20 = vrot.slane %v2595_v4, 1 }
 0x8d9   :  { %v2621_v13 = vadd.f32 %v2620_v1, %v2619_v58  ;;  %v2640_v11 = vsel %vm728_vm7, %v10480_v24, 0.0  ;;  %v2609_v26 = vadd.f32 %v2608_v55, %v2607_v35  ;;  %9275 = vpow2.f32 %v2575_v23 }
 0x8da   :  { %v2629_v49 = vrot.slane %v2628_v34, 2  ;;  %v2641_v40 = vrot.slane %v2640_v11, 4  ;;  %v2554_v61 = vsub.f32 %v10430_v36, %v2514_v51  ;;  %v2604_v32 = vadd.f32 %v2603_v53, %v2602_v52 }
 0x8db   :  { %v10484_v47 = vpop.eup %9271  ;;  %v2622_v31 = vrot.slane %v2621_v13, 2  ;;  %v2617_v2 = vrot.slane %v2616_v50, 1  ;;  %v2597_v30 = vadd.f32 %v2596_v20, %v2595_v4  ;;  %v2610_v9 = vrot.slane %v2609_v26, 1 }
 0x8dc   :  { %v2630_v0 = vadd.f32 %v2629_v49, %v2628_v34  ;;  %v2633_v42 = vsel %vm728_vm7, %v10484_v47, 0.0  ;;  %v2642_v48 = vadd.f32 %v2641_v40, %v2640_v11  ;;  %v2581_v21 = vmul.f32 1.442695, %v2554_v61 }
 0x8dd   :  { %v2634_v54 = vrot.slane %v2633_v42, 4  ;;  %v2505_v35 = vmax.f32 %v2503_v7, %v2504_v22  ;;  %v2524_v57 = vmax.f32 %v2522_v33, %v2523_v44  ;;  %v2623_v55 = vadd.f32 %v2622_v31, %v2621_v13 }
 0x8de   :  { %9277 = vpow2.f32 %v2581_v21  ;;  %v2515_v36 = vsel %vm728_vm7, %v10442_v18, -inf  ;;  %v2631_v52 = vrot.slane %v2630_v0, 1  ;;  %v2618_v34 = vadd.f32 %v2617_v2, %v2616_v50 }
 0x8df   :  { %v10489_v58 = vpop.eup %9273  ;;  %v2635_v1 = vadd.f32 %v2634_v54, %v2633_v42  ;;  %9279 = vrcp.f32 %v2604_v32  ;;  %v2506_v53 = vrot.slane %v2505_v35, 1  ;;  %v2643_v51 = vrot.slane %v2642_v48, 2 }
 0x8e0   :  { %v2654_v23 = vsel %vm728_vm7, %v10489_v58, 0.0  ;;  %v2525_v11 = vrot.slane %v2524_v57, 2  ;;  %v2611_v7 = vadd.f32 %v2610_v9, %v2609_v26  ;;  %v2516_v44 = vrot.slane %v2515_v36, 4 }
 0x8e1   :  { %v2655_v4 = vrot.slane %v2654_v23, 4  ;;  %v2507_v33 = vmax.f32 %v2505_v35, %v2506_v53  ;;  %v2536_v13 = vsel %vm728_vm7, %v10449_v59, -inf  ;;  %v2624_v22 = vrot.slane %v2623_v55, 1 }
 0x8e2   :  { %v2636_v20 = vrot.slane %v2635_v1, 2  ;;  %v2526_v49 = vmax.f32 %v2524_v57, %v2525_v11  ;;  %v2537_v40 = vrot.slane %v2536_v13, 4  ;;  %v2632_v31 = vadd.f32 %v2631_v52, %v2630_v0 }
 0x8e3   :  { %v2553_v61 = vsub.f32 %v10432_v45, %v2507_v33  ;;  %v2517_v32 = vmax.f32 %v2515_v36, %v2516_v44  ;;  %v2529_v50 = vsel %vm728_vm7, %v10456_v17, -inf  ;;  %v10500_v42 = vpop.eup %9275  ;;  %v2644_v2 = vadd.f32 %v2643_v51, %v2642_v48 }
 0x8e4   :  { %v2656_v26 = vadd.f32 %v2655_v4, %v2654_v23  ;;  %v2527_v54 = vrot.slane %v2526_v49, 1  ;;  %v2538_v21 = vmax.f32 %v2536_v13, %v2537_v40  ;;  %v2647_v9 = vsel %vm728_vm7, %v10500_v42, 0.0 }
 0x8e5   :  { %v2579_v35 = vmul.f32 1.442695, %v2553_v61  ;;  %v2518_v53 = vrot.slane %v2517_v32, 2  ;;  %v2530_v57 = vrot.slane %v2529_v50, 4  ;;  %v2625_v11 = vadd.f32 %v2624_v22, %v2623_v55 }
 0x8e6   :  { %v2637_v0 = vadd.f32 %v2636_v20, %v2635_v1  ;;  %v2648_v52 = vrot.slane %v2647_v9, 4  ;;  %v2528_v45 = vmax.f32 %v2526_v49, %v2527_v54  ;;  %v2539_v33 = vrot.slane %v2538_v21, 2 }
 0x8e7   :  { %9281 = vpow2.f32 %v2579_v35  ;;  %v2519_v36 = vmax.f32 %v2517_v32, %v2518_v53  ;;  %v2531_v44 = vmax.f32 %v2529_v50, %v2530_v57  ;;  %v2657_v48 = vrot.slane %v2656_v26, 2 }
 0x8e8   :  { %v10504_v6 = vpop.eup %9277  ;;  %v2649_v23 = vadd.f32 %v2648_v52, %v2647_v9  ;;  %v2556_v51 = vsub.f32 %v10440_v10, %v2528_v45  ;;  %9283 = vrcp.f32 %v2597_v30  ;;  %v2540_v55 = vmax.f32 %v2538_v21, %v2539_v33 }
 0x8e9   :  { %v9280_v4 = vpop.eup %9279  ;;  %v2668_v13 = vsel %vm728_vm7, %v10504_v6, 0.0  ;;  %v2520_v40 = vrot.slane %v2519_v36, 1  ;;  %v2532_v1 = vrot.slane %v2531_v44, 2  ;;  %v2638_v22 = vrot.slane %v2637_v0, 1 }
 0x8ea   :  { %v2650_v20 = vrot.slane %v2649_v23, 2  ;;  %v2669_v49 = vrot.slane %v2668_v13, 4  ;;  %v2585_v61 = vmul.f32 1.442695, %v2556_v51  ;;  %v2645_v32 = vrot.slane %v2644_v2, 1 }
 0x8eb   :  { %v2521_v50 = vmax.f32 %v2519_v36, %v2520_v40  ;;  %v2541_v54 = vrot.slane %v2540_v55, 1  ;;  %v2533_v35 = vmax.f32 %v2531_v44, %v2532_v1  ;;  %v2658_v53 = vadd.f32 %v2657_v48, %v2656_v26 }
 0x8ec   :  { %v2651_v9 = vadd.f32 %v2650_v20, %v2649_v23  ;;  %v2670_v57 = vadd.f32 %v2669_v49, %v2668_v13  ;;  %9285 = vpow2.f32 %v2585_v61  ;;  %v2639_v45 = vadd.f32 %v2638_v22, %v2637_v0 }
 0x8ed   :  { %v2555_v10 = vsub.f32 %v10442_v18, %v2521_v50  ;;  %v2542_v30 = vmax.f32 %v2540_v55, %v2541_v54  ;;  %v2534_v52 = vrot.slane %v2533_v35, 1  ;;  %9287 = vrcp.f32 %v2611_v7 }
 0x8ee   :  { %v2652_v21 = vrot.slane %v2651_v9, 1  ;;  %v2671_v33 = vrot.slane %v2670_v57, 2  ;;  %9289 = vrcp.f32 %v2618_v34  ;;  %v2646_v36 = vadd.f32 %v2645_v32, %v2644_v2 }
 0x8ef   :  { %v2583_v38 = vmul.f32 1.442695, %v2555_v10  ;;  %v2558_v51 = vsub.f32 %v10449_v59, %v2542_v30  ;;  %v2535_v25 = vmax.f32 %v2533_v35, %v2534_v52  ;;  %9291 = vrcp.f32 %v2625_v11 }
 0x8f0   :  { %v2659_v44 = vrot.slane %v2658_v53, 1  ;;  %9293 = vrcp.f32 %v2632_v31  ;;  %v2653_v7 = vadd.f32 %v2652_v21, %v2651_v9  ;;  %v2672_v0 = vadd.f32 %v2671_v33, %v2670_v57 }
 0x8f1   :  { %v10511_v26 = vpop.eup %9281  ;;  %9295 = vpow2.f32 %v2583_v38  ;;  %v2589_v48 = vmul.f32 1.442695, %v2558_v51  ;;  %v2557_v18 = vsub.f32 %v10456_v17, %v2535_v25  ;;  %v2720_v31 = vmul.f32 %v9280_v4, %v10445_v60 }
 0x8f2   :  { %v9284_v23 = vpop.eup %9283  ;;  %v2661_v34 = vsel %vm728_vm7, %v10511_v26, 0.0  ;;  %9297 = vrcp.f32 %v2639_v45  ;;  %v2660_v11 = vadd.f32 %v2659_v44, %v2658_v53  ;;  %v2673_v17 = vrot.slane %v2672_v0, 1 }
 0x8f3   :  { %v2662_v13 = vrot.slane %v2661_v34, 4  ;;  %9299 = vpow2.f32 %v2589_v48  ;;  %v2587_v59 = vmul.f32 1.442695, %v2557_v18  ;;  %v2719_v2 = vmul.f32 %v9284_v23, %v10451_v14 }
 0x8f4   :  { %9301 = vrcp.f32 %v2646_v36  ;;  %v2674_v32 = vadd.f32 %v2673_v17, %v2672_v0 }
 0x8f5   :  { %v2663_v38 = vadd.f32 %v2662_v13, %v2661_v34  ;;  %9303 = vpow2.f32 %v2587_v59  ;;  %8764 = vmatprep.mubr.msk.f32.mxu1 %vm728_vm7, %v2719_v2 }
 0x8f6   :  { %v10519_v25 = vpop.eup %9285  ;;  %8765 = vmatmul.mubr.msk.f32.vlgmr.msra.gmra.mrb[22].mxu1 %vm728_vm7, %v2720_v31  ;;  %9305 = vrcp.f32 %v2653_v7 }
 0x8f7   :  { %v9288_v40 = vpop.eup %9287  ;;  %v2664_v55 = vrot.slane %v2663_v38, 2  ;;  %v2682_v1 = vsel %vm728_vm7, %v10519_v25, 0.0  ;;  %9307 = vrcp.f32 %v2660_v11 }
 0x8f8   :  { %v9290_v14 = vpop.eup %9289  ;;  %v2683_v22 = vrot.slane %v2682_v1, 4  ;;  %v2721_v60 = vmul.f32 %v9288_v40, %v10462_v16  ;;  %9309 = vrcp.f32 %v2674_v32 }
 0x8f9   :  { %v9292_v4 = vpop.eup %9291  ;;  %v2665_v20 = vadd.f32 %v2664_v55, %v2663_v38  ;;  %v2722_v49 = vmul.f32 %v9290_v14, %v10460_v41 }
 0x8fa   :  { %v9294_v61 = vpop.eup %9293  ;;  %v2684_v50 = vadd.f32 %v2683_v22, %v2682_v1  ;;  %8767 = vmatprep.mubr.msk.f32.mxu1 %vm728_vm7, %v2721_v60  ;;  %v2723_v54 = vmul.f32 %v9292_v4, %v10474_v28 }
 0x8fb   :  { %v9296_v35 = vpop.eup %9295  ;;  %v2666_v53 = vrot.slane %v2665_v20, 1  ;;  %8768 = vmatmul.mubr.msk.f32.gmra.mrb[40].mxu1 %vm728_vm7, %v2722_v49  ;;  %v2724_v52 = vmul.f32 %v9294_v61, %v10471_v63 }
 0x8fc   :  { %v9298_v9 = vpop.eup %9297  ;;  %v2685_v57 = vrot.slane %v2684_v50, 2  ;;  %v2675_v16 = vsel %vm728_vm7, %v9296_v35, 0.0  ;;  %8770 = vmatprep.mubr.msk.f32.mxu1 %vm728_vm7, %v2723_v54 }
 0x8fd   :  { %v9300_v10 = vpop.eup %9299  ;;  %v2667_v30 = vadd.f32 %v2666_v53, %v2665_v20  ;;  %v2676_v41 = vrot.slane %v2675_v16, 4  ;;  %v2725_v45 = vmul.f32 %v9298_v9, %v10484_v47 }
 0x8fe   :  { %v9302_v21 = vpop.eup %9301  ;;  %v2686_v33 = vadd.f32 %v2685_v57, %v2684_v50  ;;  %v2696_v28 = vsel %vm728_vm7, %v9300_v10, 0.0 }
 0x8ff   :  { %v9304_v51 = vpop.eup %9303  ;;  %v2677_v36 = vadd.f32 %v2676_v41, %v2675_v16  ;;  %v2697_v44 = vrot.slane %v2696_v28, 4  ;;  %8771 = vmatmul.mubr.msk.f32.gmra.mrb[42].mxu1 %vm728_vm7, %v2724_v52  ;;  %9311 = vrcp.f32 %v2667_v30  ;;  %v2726_v63 = vmul.f32 %v9302_v21, %v10480_v24  ;;  %v8035_v16 = vld [vmem:[%s11987_s3 + $0xf0] sm:$0xff] }
 0x900   :  { %v9306_v48 = vpop.eup %9305  ;;  %v2687_v18 = vrot.slane %v2686_v33, 1  ;;  %v2689_v23 = vsel %vm728_vm7, %v9304_v51, 0.0  ;;  %8773 = vmatprep.mubr.msk.f32.mxu1 %vm728_vm7, %v2725_v45 }
 0x901   :  { %v2678_v47 = vrot.slane %v2677_v36, 2  ;;  %v2698_v7 = vadd.f32 %v2697_v44, %v2696_v28  ;;  %v2690_v0 = vrot.slane %v2689_v23, 4  ;;  %v2727_v34 = vmul.f32 %v9306_v48, %v10500_v42  ;;  %v9308_v13 = vpop.eup %9307 }
 0x902   :  { %v2688_v31 = vadd.f32 %v2687_v18, %v2686_v33  ;;  %v2728_v55 = vmul.f32 %v9308_v13, %v10489_v58  ;;  %v9310_v42 = vpop.eup %9309 }
 0x903   :  { %v2679_v59 = vadd.f32 %v2678_v47, %v2677_v36  ;;  %v2699_v2 = vrot.slane %v2698_v7, 2  ;;  %v2691_v11 = vadd.f32 %v2690_v0, %v2689_v23  ;;  %8774 = vmatmul.mubr.msk.f32.gmra.mrb[44].mxu1 %vm728_vm7, %v2726_v63  ;;  %v2730_v61 = vmul.f32 %v9310_v42, %v10504_v6  ;;  %v8033_v6 = vld [vmem:[%s11987_s3 + $0xe0] sm:$0xff] }
 0x904   :  { %8776 = vmatprep.mubr.msk.f32.mxu1 %vm728_vm7, %v2727_v34  ;;  %9313 = vrcp.f32 %v2688_v31 }
 0x905   :  { %v2680_v38 = vrot.slane %v2679_v59, 1  ;;  %v2700_v17 = vadd.f32 %v2699_v2, %v2698_v7  ;;  %v2692_v40 = vrot.slane %v2691_v11, 2 }
 0x907   :  { %v2681_v24 = vadd.f32 %v2680_v38, %v2679_v59  ;;  %v2701_v1 = vrot.slane %v2700_v17, 1  ;;  %v2693_v14 = vadd.f32 %v2692_v40, %v2691_v11  ;;  %8777 = vmatmul.mubr.msk.f32.gmra.mrb[46].mxu1 %vm728_vm7, %v2728_v55 }
 0x909   :  { %v9312_v22 = vpop.eup %9311  ;;  %v2702_v60 = vadd.f32 %v2701_v1, %v2700_v17  ;;  %v2694_v4 = vrot.slane %v2693_v14, 1  ;;  %9315 = vrcp.f32 %v2681_v24 }
 0x90a   :  { %v2729_v20 = vmul.f32 %v9312_v22, %v10511_v26 }
 0x90b   :  { %v2695_v49 = vadd.f32 %v2694_v4, %v2693_v14  ;;  %9317 = vrcp.f32 %v2702_v60 }
 0x90c   :  { %8779 = vmatprep.mubr.msk.f32.mxu1 %vm728_vm7, %v2729_v20 }
 0x90d   :  { %8780 = vmatmul.mubr.msk.f32.gmra.mrb[48].mxu1 %vm728_vm7, %v2730_v61  ;;  %9319 = vrcp.f32 %v2695_v49 }
 0x90e   :  { %v9314_v58 = vpop.eup %9313 }
 0x90f   :  { %v2732_v54 = vmul.f32 %v9314_v58, %v10519_v25  ;;  %v8034_v25 = vld [vmem:[%s11987_s3 + $0xe8] sm:$0xff] }
 0x913   :  { %v9316_v32 = vpop.eup %9315 }
 0x914   :  { %v2731_v50 = vmul.f32 %v9316_v32, %v9296_v35  ;;  %v3072_v35 = vpack.c.bf16 %v8034_v25, %v8033_v6 }
 0x915   :  { %v9318_v53 = vpop.eup %9317 }
 0x916   :  { %8782 = vmatprep.mubr.msk.f32.mxu1 %vm728_vm7, %v2731_v50  ;;  %v2734_v57 = vmul.f32 %v9318_v53, %v9300_v10  ;;  %8789 = vmatpush3.bf16.msra.mxu0 %v3072_v35  ;;  %v8036_v10 = vld [vmem:[%s11987_s3 + $0xf8] sm:$0xff] }
 0x917   :  { %v9320_v9 = vpop.eup %9319  ;;  %8783 = vmatmul.mubr.msk.f32.gmra.mrb[50].mxu1 %vm728_vm7, %v2732_v54  ;;  %8790 = vmatprep.subr.bf16.mxu0 %v9485_v3  ;;  %v3073_v30 = vpack.c.bf16 %v8036_v10, %v8035_v16 }
 0x918   :  { %v2733_v26 = vmul.f32 %v9320_v9, %v9304_v51 }
 0x91a   :  { %8785 = vmatprep.mubr.msk.f32.mxu1 %vm728_vm7, %v2733_v26  ;;  %8791 = vmatpush3.bf16.msra.mxu0 %v3073_v30 }
 0x91b   :  { %8786 = vmatmul.mubr.msk.f32.gmra.mrb[52].mxu1 %vm728_vm7, %v2734_v57 }
 0x91c   :  { %3295 = vmatprep.mubr.bf16.mxu1 %v9490_v8 }
 0x9c9   :  { %v8766_v41 = vpop.f32.mrb[22].mxu1 }
 0x9ca   :  { %v2929_v52 = vmul.f32 %v8766_v41, %v10347_v27  ;;  %v2849_v45 = vpop.f32.mrb[23].mxu1 }
 0x9cb   :  { %v2928_v21 = vmul.f32 %v2849_v45, %v10347_v27 }
 0x9cc   :  { %v2951_v33 = vsel %vm206_vm3, %v2929_v52, 0.0 }
 0x9cd   :  { %v2952_v28 = vrot.slane %v2951_v33, 4  ;;  %v2944_v51 = vsel %vm206_vm3, %v2928_v21, 0.0 }
 0x9ce   :  { %v2945_v36 = vrot.slane %v2944_v51, 4  ;;  %v8769_v44 = vpop.f32.mrb[40].mxu1 }
 0x9cf   :  { %v2953_v48 = vadd.f32 %v2952_v28, %v2951_v33  ;;  %v2931_v18 = vmul.f32 %v8769_v44, %v10347_v27  ;;  %v2859_v23 = vpop.f32.mrb[41].mxu1 }
 0x9d0   :  { %v2946_v63 = vadd.f32 %v2945_v36, %v2944_v51  ;;  %v2930_v47 = vmul.f32 %v2859_v23, %v10347_v27 }
 0x9d1   :  { %v2954_v7 = vrot.slane %v2953_v48, 2  ;;  %v2965_v0 = vsel %vm206_vm3, %v2931_v18, 0.0 }
 0x9d2   :  { %v2947_v34 = vrot.slane %v2946_v63, 2  ;;  %v2966_v13 = vrot.slane %v2965_v0, 4  ;;  %v2958_v59 = vsel %vm206_vm3, %v2930_v47, 0.0  ;;  %v8772_v2 = vpop.f32.mrb[42].mxu1 }
 0x9d3   :  { %v2955_v11 = vadd.f32 %v2954_v7, %v2953_v48  ;;  %v2959_v31 = vrot.slane %v2958_v59, 4  ;;  %v2933_v38 = vmul.f32 %v8772_v2, %v10347_v27  ;;  %v2869_v17 = vpop.f32.mrb[43].mxu1 }
 0x9d4   :  { %v2948_v40 = vadd.f32 %v2947_v34, %v2946_v63  ;;  %v2967_v55 = vadd.f32 %v2966_v13, %v2965_v0  ;;  %v2932_v24 = vmul.f32 %v2869_v17, %v10347_v27 }
 0x9d5   :  { %v2956_v1 = vrot.slane %v2955_v11, 1  ;;  %v2960_v14 = vadd.f32 %v2959_v31, %v2958_v59  ;;  %v2979_v42 = vsel %vm206_vm3, %v2933_v38, 0.0 }
 0x9d6   :  { %v2949_v22 = vrot.slane %v2948_v40, 1  ;;  %v2968_v60 = vrot.slane %v2967_v55, 2  ;;  %v2980_v4 = vrot.slane %v2979_v42, 4  ;;  %v2972_v20 = vsel %vm206_vm3, %v2932_v24, 0.0  ;;  %v8775_v49 = vpop.f32.mrb[44].mxu1 }
 0x9d7   :  { %v2957_v61 = vadd.f32 %v2956_v1, %v2955_v11  ;;  %v2961_v58 = vrot.slane %v2960_v14, 2  ;;  %v2973_v32 = vrot.slane %v2972_v20, 4  ;;  %v2935_v50 = vmul.f32 %v8775_v49, %v10347_v27  ;;  %v2879_v54 = vpop.f32.mrb[45].mxu1 }
 0x9d8   :  { %v2950_v53 = vadd.f32 %v2949_v22, %v2948_v40  ;;  %v2969_v9 = vadd.f32 %v2968_v60, %v2967_v55  ;;  %v2981_v26 = vadd.f32 %v2980_v4, %v2979_v42  ;;  %v2934_v57 = vmul.f32 %v2879_v54, %v10347_v27 }
 0x9d9   :  { %v3057_v6 = vpack.c.bf16 %v2957_v61, %v2957_v61  ;;  %v2962_v25 = vadd.f32 %v2961_v58, %v2960_v14  ;;  %v2974_v35 = vadd.f32 %v2973_v32, %v2972_v20  ;;  %v2993_v16 = vsel %vm206_vm3, %v2935_v50, 0.0 }
 0x9da   :  { %v3056_v10 = vpack.c.bf16 %v2950_v53, %v2950_v53  ;;  %v2970_v30 = vrot.slane %v2969_v9, 1  ;;  %v2982_v41 = vrot.slane %v2981_v26, 2  ;;  %v2994_v52 = vrot.slane %v2993_v16, 4  ;;  %v8778_v45 = vpop.f32.mrb[46].mxu1 }
 0x9db   :  { %v3091_v21 = vunpack.c.l.b16 %v3057_v6  ;;  %v2963_v33 = vrot.slane %v2962_v25, 1  ;;  %v2975_v28 = vrot.slane %v2974_v35, 2  ;;  %v2986_v51 = vsel %vm206_vm3, %v2934_v57, 0.0  ;;  %v2889_v36 = vpop.f32.mrb[47].mxu1 }
 0x9dc   :  { %v3090_v44 = vunpack.c.l.b16 %v3056_v10  ;;  %v2971_v48 = vadd.f32 %v2970_v30, %v2969_v9  ;;  %v2983_v18 = vadd.f32 %v2982_v41, %v2981_v26  ;;  %v2995_v27 = vadd.f32 %v2994_v52, %v2993_v16 }
 0x9dd   :  { %v2964_v23 = vadd.f32 %v2963_v33, %v2962_v25  ;;  %v2976_v63 = vadd.f32 %v2975_v28, %v2974_v35  ;;  %v2987_v47 = vrot.slane %v2986_v51, 4  ;;  %v2937_v7 = vmul.f32 %v8778_v45, %v10354_v62 }
 0x9de   :  { %v3106_v0 = vsel %vm1404_vm8, %v3091_v21, %v3090_v44  ;;  %v3059_v34 = vpack.c.bf16 %v2971_v48, %v2971_v48  ;;  %v2984_v13 = vrot.slane %v2983_v18, 1  ;;  %v2996_v59 = vrot.slane %v2995_v27, 2 }
 0x9df   :  { %v3058_v2 = vpack.c.bf16 %v2964_v23, %v2964_v23  ;;  %v2977_v11 = vrot.slane %v2976_v63, 1  ;;  %v2988_v31 = vadd.f32 %v2987_v47, %v2986_v51  ;;  %v3007_v38 = vsel %vm206_vm3, %v2937_v7, 0.0 }
 0x9e0   :  { %v3093_v17 = vunpack.c.l.b16 %v3059_v34  ;;  %v2985_v40 = vadd.f32 %v2984_v13, %v2983_v18  ;;  %v2997_v55 = vadd.f32 %v2996_v59, %v2995_v27  ;;  %v3008_v24 = vrot.slane %v3007_v38, 4  ;;  %v8781_v1 = vpop.f32.mrb[48].mxu1 }
 0x9e1   :  { %v3092_v14 = vunpack.c.l.b16 %v3058_v2  ;;  %v2978_v42 = vadd.f32 %v2977_v11, %v2976_v63  ;;  %v2989_v22 = vrot.slane %v2988_v31, 2  ;;  %v2936_v60 = vmul.f32 %v2889_v36, %v10354_v62  ;;  %v2899_v4 = vpop.f32.mrb[49].mxu1 }
 0x9e2   :  { %v3061_v20 = vpack.c.bf16 %v2985_v40, %v2985_v40  ;;  %v2998_v49 = vrot.slane %v2997_v55, 1  ;;  %v3009_v61 = vadd.f32 %v3008_v24, %v3007_v38  ;;  %v2939_v58 = vmul.f32 %v8781_v1, %v10354_v62 }
 0x9e3   :  { %v3107_v32 = vsel %vm1406_vm9, %v3092_v14, %v3106_v0  ;;  %v3060_v50 = vpack.c.bf16 %v2978_v42, %v2978_v42  ;;  %v2990_v54 = vadd.f32 %v2989_v22, %v2988_v31  ;;  %v3000_v53 = vsel %vm206_vm3, %v2936_v60, 0.0 }
 0x9e4   :  { %v3108_v9 = vsel %vm1408_vm11, %v3093_v17, %v3107_v32  ;;  %v2999_v26 = vadd.f32 %v2998_v49, %v2997_v55  ;;  %v3010_v57 = vrot.slane %v3009_v61, 2  ;;  %v3001_v35 = vrot.slane %v3000_v53, 4 }
 0x9e5   :  { %v3094_v6 = vunpack.c.l.b16 %v3060_v50  ;;  %v2991_v25 = vrot.slane %v2990_v54, 1  ;;  %v3021_v16 = vsel %vm206_vm3, %v2939_v58, 0.0  ;;  %v3095_v10 = vunpack.c.l.b16 %v3061_v20 }
 0x9e6   :  { %v3011_v30 = vadd.f32 %v3010_v57, %v3009_v61  ;;  %v3022_v41 = vrot.slane %v3021_v16, 4  ;;  %v2938_v52 = vmul.f32 %v2899_v4, %v10354_v62  ;;  %v3063_v21 = vpack.c.bf16 %v2999_v26, %v2999_v26 }
 0x9e7   :  { %v3109_v45 = vsel %vm1410_vm12, %v3094_v6, %v3108_v9  ;;  %v2992_v33 = vadd.f32 %v2991_v25, %v2990_v54  ;;  %v3002_v28 = vadd.f32 %v3001_v35, %v3000_v53 }
 0x9e8   :  { %v3110_v51 = vsel %vm1412_vm13, %v3095_v10, %v3109_v45  ;;  %v3012_v36 = vrot.slane %v3011_v30, 1  ;;  %v3023_v44 = vadd.f32 %v3022_v41, %v3021_v16  ;;  %v3014_v27 = vsel %vm206_vm3, %v2938_v52, 0.0 }
 0x9e9   :  { %v3062_v48 = vpack.c.bf16 %v2992_v33, %v2992_v33  ;;  %v3003_v18 = vrot.slane %v3002_v28, 2  ;;  %v3015_v47 = vrot.slane %v3014_v27, 4  ;;  %v3097_v0 = vunpack.c.l.b16 %v3063_v21 }
 0x9ea   :  { %v3013_v23 = vadd.f32 %v3012_v36, %v3011_v30  ;;  %v3024_v63 = vrot.slane %v3023_v44, 2  ;;  %v8784_v7 = vpop.f32.mrb[50].mxu1 }
 0x9eb   :  { %v3096_v34 = vunpack.c.l.b16 %v3062_v48  ;;  %v3004_v13 = vadd.f32 %v3003_v18, %v3002_v28  ;;  %v2941_v59 = vmul.f32 %v8784_v7, %v10354_v62  ;;  %v2909_v2 = vpop.f32.mrb[51].mxu1  ;;  %v3016_v38 = vadd.f32 %v3015_v47, %v3014_v27 }
 0x9ec   :  { %v3065_v11 = vpack.c.bf16 %v3013_v23, %v3013_v23  ;;  %v3025_v31 = vadd.f32 %v3024_v63, %v3023_v44  ;;  %v2940_v17 = vmul.f32 %v2909_v2, %v10354_v62 }
 0x9ed   :  { %v3111_v40 = vsel %vm1414_vm14, %v3096_v34, %v3110_v51  ;;  %v3005_v55 = vrot.slane %v3004_v13, 1  ;;  %v3035_v24 = vsel %vm206_vm3, %v2941_v59, 0.0  ;;  %v3017_v42 = vrot.slane %v3016_v38, 2 }
 0x9ee   :  { %v10600_v1 = vsel %vm1416_vm15, %v3097_v0, %v3111_v40  ;;  %v3026_v14 = vrot.slane %v3025_v31, 1  ;;  %v8787_v22 = vpop.f32.mrb[52].mxu1  ;;  %v3036_v4 = vrot.slane %v3035_v24, 4  ;;  %v3028_v20 = vsel %vm206_vm3, %v2940_v17, 0.0 }
 0x9ef   :  { %v3006_v60 = vadd.f32 %v3005_v55, %v3004_v13  ;;  %v2943_v49 = vmul.f32 %v8787_v22, %v10354_v62  ;;  %v2919_v61 = vpop.f32.mrb[53].mxu1  ;;  %v3099_v58 = vunpack.c.l.b16 %v3065_v11  ;;  %v3018_v32 = vadd.f32 %v3017_v42, %v3016_v38 }
 0x9f0   :  { %v3029_v50 = vrot.slane %v3028_v20, 4  ;;  %v2942_v54 = vmul.f32 %v2919_v61, %v10354_v62  ;;  %v3027_v9 = vadd.f32 %v3026_v14, %v3025_v31  ;;  %v3037_v26 = vadd.f32 %v3036_v4, %v3035_v24 }
 0x9f1   :  { %v3064_v53 = vpack.c.bf16 %v3006_v60, %v3006_v60  ;;  %v3049_v57 = vsel %vm206_vm3, %v2943_v49, 0.0  ;;  %v3019_v6 = vrot.slane %v3018_v32, 1 }
 0x9f2   :  { %v3030_v25 = vadd.f32 %v3029_v50, %v3028_v20  ;;  %v3050_v35 = vrot.slane %v3049_v57, 4  ;;  %v3038_v10 = vrot.slane %v3037_v26, 2  ;;  %v3042_v30 = vsel %vm206_vm3, %v2942_v54, 0.0  ;;  %v8081_v50 = vld [vmem:[%s11989_s6 + $0x88] sm:$0xff] }
 0x9f3   :  { %v3098_v16 = vunpack.c.l.b16 %v3064_v53  ;;  %v3020_v41 = vadd.f32 %v3019_v6, %v3018_v32  ;;  %v3067_v33 = vpack.c.bf16 %v3027_v9, %v3027_v9  ;;  %v3043_v62 = vrot.slane %v3042_v30, 4  ;;  %v8085_v54 = vld [vmem:[%s11989_s6 + $0xa8] sm:$0xff]  ;;  %v8083_v53 = vld [vmem:[%s11989_s6 + $0x98] sm:$0xff] }
 0x9f4   :  { %v3031_v52 = vrot.slane %v3030_v25, 2  ;;  %v3051_v45 = vadd.f32 %v3050_v35, %v3049_v57  ;;  %v3039_v28 = vadd.f32 %v3038_v10, %v3037_v26  ;;  %v3230_v9 = vpack.c.bf16 %v8085_v54, %v8081_v50  ;;  %v8084_v26 = vld [vmem:[%s11989_s6 + $0xa0] sm:$0xff]  ;;  %v8087_v57 = vld [vmem:[%s11989_s6 + $0xb8] sm:$0xff]  ;;  %v8082_v35 = vld [vmem:[%s11989_s6 + $0x90] sm:$0xff] }
 0x9f5   :  { %v3113_v21 = vsel %vm1404_vm8, %v3099_v58, %v3098_v16  ;;  %v3066_v51 = vpack.c.bf16 %v3020_v41, %v3020_v41  ;;  %v3044_v18 = vadd.f32 %v3043_v62, %v3042_v30  ;;  %v3101_v47 = vunpack.c.l.b16 %v3067_v33  ;;  %v8086_v16 = vld [vmem:[%s11989_s6 + $0xb0] sm:$0xff]  ;;  %v8089_v30 = vld [vmem:[%s11989_s6 + $0xc8] sm:$0xff]  ;;  %v8092_v33 = vld [vmem:[%s11989_s6 + $0xe0] sm:$0xff] }
 0x9f6   :  { %v3032_v36 = vadd.f32 %v3031_v52, %v3030_v25  ;;  %v3052_v44 = vrot.slane %v3051_v45, 2  ;;  %v3040_v48 = vrot.slane %v3039_v28, 1  ;;  %v3232_v25 = vpack.c.bf16 %v8087_v57, %v8083_v53  ;;  %3263 = vmatprep.subr.bf16.mxu1 %v3230_v9  ;;  %v8093_v41 = vld [vmem:[%s11989_s6 + $0xe8] sm:$0xff]  ;;  %v8091_v52 = vld [vmem:[%s11989_s6 + $0xd8] sm:$0xff] }
 0x9f7   :  { %v3100_v27 = vunpack.c.l.b16 %v3066_v51  ;;  %v3045_v0 = vrot.slane %v3044_v18, 2  ;;  %v3231_v10 = vpack.c.bf16 %v8086_v16, %v8082_v35 }
 0x9f8   :  { %v3033_v23 = vrot.slane %v3032_v36, 1  ;;  %v3053_v63 = vadd.f32 %v3052_v44, %v3051_v45  ;;  %v3041_v7 = vadd.f32 %v3040_v48, %v3039_v28  ;;  %3306 = vmatprep.subr.bf16.mxu0 %v3232_v25  ;;  %v3234_v45 = vpack.c.bf16 %v8093_v41, %v8089_v30  ;;  %v8095_v28 = vld [vmem:[%s11989_s6 + $0xf8] sm:$0xff]  ;;  %v8094_v44 = vld [vmem:[%s11989_s6 + $0xf0] sm:$0xff]  ;;  %v10691_v25 = vld [vmem:[%s11992_s5 + $0x2] sm:$0x3] }
 0x9f9   :  { %v3114_v34 = vsel %vm1406_vm9, %v3100_v27, %v3113_v21  ;;  %v3046_v31 = vadd.f32 %v3045_v0, %v3044_v18  ;;  %v8088_v21 = vld [vmem:[%s11989_s6 + $0xc0] sm:$0xff]  ;;  %v3236_v51 = vpack.c.bf16 %v8095_v28, %v8091_v52  ;;  %v8116_v27 = vld [vmem:[%s11990_s8 + $0x288] sm:$0xff]  ;;  %v3208_v41 = vrot.slane %v10691_v25, %v9689_v56 }
 0x9fa   :  { %v3034_v13 = vadd.f32 %v3033_v23, %v3032_v36  ;;  %v3054_v59 = vrot.slane %v3053_v63, 1  ;;  %v3069_v2 = vpack.c.bf16 %v3041_v7, %v3041_v7  ;;  %v3115_v11 = vsel %vm1408_vm11, %v3101_v47, %v3114_v34  ;;  %v8090_v36 = vld [vmem:[%s11989_s6 + $0xd0] sm:$0xff]  ;;  %v8115_v18 = vld [vmem:[%s11990_s8 + $0x280] sm:$0xff]  ;;  %v8148_v47 = vld [vmem:[%s11990_s8 + $0x388] sm:$0xff] }
 0x9fb   :  { %v3047_v40 = vrot.slane %v3046_v31, 1  ;;  %v3233_v62 = vpack.c.bf16 %v8092_v33, %v8088_v21  ;;  %v3235_v48 = vpack.c.bf16 %v8094_v44, %v8090_v36  ;;  %v8147_v23 = vld [vmem:[%s11990_s8 + $0x380] sm:$0xff]  ;;  %v8118_v36 = vld [vmem:[%s11990_s8 + $0x298] sm:$0xff]  ;;  %v8149_v44 = vld [vmem:[%s11990_s8 + $0x390] sm:$0xff] }
 0x9fc   :  { %v3068_v38 = vpack.c.bf16 %v3034_v13, %v3034_v13  ;;  %v3055_v17 = vadd.f32 %v3054_v59, %v3053_v63  ;;  %v3103_v24 = vunpack.c.l.b16 %v3069_v2  ;;  %v3434_v63 = vpack.c.bf16 %v8116_v27, %v8115_v18  ;;  %v8099_v52 = vld [vmem:[%s11990_s8 + $0x200] sm:$0xff] }
 0x9fd   :  { %v3048_v14 = vadd.f32 %v3047_v40, %v3046_v31  ;;  %v3450_v7 = vpack.c.bf16 %v8148_v47, %v8147_v23  ;;  %v8131_v28 = vld [vmem:[%s11990_s8 + $0x300] sm:$0xff]  ;;  %v8101_v47 = vld [vmem:[%s11990_s8 + $0x210] sm:$0xff] }
 0x9fe   :  { %v3102_v55 = vunpack.c.l.b16 %v3068_v38  ;;  %v3071_v22 = vpack.c.bf16 %v3055_v17, %v3055_v17 }
 0x9ff   :  { %v3070_v60 = vpack.c.bf16 %v3048_v14, %v3048_v14 }
 0xa00   :  { %v3116_v42 = vsel %vm1410_vm12, %v3102_v55, %v3115_v11  ;;  %v3105_v49 = vunpack.c.l.b16 %v3071_v22 }
 0xa01   :  { %v3117_v4 = vsel %vm1412_vm13, %v3103_v24, %v3116_v42  ;;  %v3104_v20 = vunpack.c.l.b16 %v3070_v60 }
 0xa03   :  { %v3118_v61 = vsel %vm1414_vm14, %v3104_v20, %v3117_v4 }
 0xa04   :  { %v3119_v58 = vsel %vm1416_vm15, %v3105_v49, %v3118_v61 }
 0xa05   :  { %v3120_v32 = vpack.c.b16 %v3119_v58, %v10600_v1  ;;  %v8080_v1 = vld [vmem:[%s11989_s6 + $0x80] sm:$0xff] }
 0xa06   :  { %v3229_v6 = vpack.c.bf16 %v8084_v26, %v8080_v1 }
 0xa07   :  { %8793 = vmatmul.mubr.msk.bf16.vlgmr.msra.gmra.mrb[56].mxu0 %vm206_vm3, %v3120_v32 }
 0xa08   :  { %3338 = vmatprep.mubr.bf16.mxu0 %v9490_v8  ;;  %3264 = vmatpush1.bf16.msra.mxu1 %v3229_v6  ;;  %v10686_v6 = vld [vmem:[%s11991_s4 + $0x2] sm:$0x3] }
 0xa09   :  { %3307 = vmatpush1.bf16.msra.mxu0 %v3231_v10  ;;  %3265 = vmatprep.subr.bf16.mxu1 %v3234_v45  ;;  %v3202_v35 = vrot.slane %v10686_v6, %v9689_v56  ;;  %v8100_v45 = vld [vmem:[%s11990_s8 + $0x208] sm:$0xff] }
 0xa0a   :  { %3308 = vmatprep.subr.bf16.mxu0 %v3236_v51  ;;  %v8117_v51 = vld [vmem:[%s11990_s8 + $0x290] sm:$0xff]  ;;  %v3426_v23 = vpack.c.bf16 %v8100_v45, %v8099_v52  ;;  %v8108_v52 = vld [vmem:[%s11990_s8 + $0x248] sm:$0xff] }
 0xa0c   :  { %3266 = vmatpush1.bf16.msra.mxu1 %v3233_v62  ;;  %v8132_v62 = vld [vmem:[%s11990_s8 + $0x308] sm:$0xff] }
 0xa0d   :  { %3309 = vmatpush1.bf16.msra.mxu0 %v3235_v48  ;;  %8425 = vmatprep.subr.bf16.mxu1 %v3434_v63  ;;  %v8150_v48 = vld [vmem:[%s11990_s8 + $0x398] sm:$0xff]  ;;  %v3442_v63 = vpack.c.bf16 %v8132_v62, %v8131_v28  ;;  %v8140_v28 = vld [vmem:[%s11990_s8 + $0x348] sm:$0xff]  ;;  %v8125_v62 = vld [vmem:[%s11990_s8 + $0x2d0] sm:$0xff] }
 0xa0e   :  { %8447 = vmatprep.subr.bf16.mxu0 %v3450_v7  ;;  %v8102_v7 = vld [vmem:[%s11990_s8 + $0x218] sm:$0xff] }
 0xada   :  { %v3158_v0 = vpop.f32.mrb[56].mxu0 }
 0xadb   :  { %v3165_v34 = vadd.f32 %v3158_v0, %v10302_v15  ;;  %v8794_v13 = vpop.f32.mrb[57].mxu0 }
 0xadc   :  { %v3161_v59 = vpop.f32.mrb[58].mxu0  ;;  %v3451_v13 = vpack.c.bf16 %v8150_v48, %v8149_v44  ;;  %v8158_v44 = vld [vmem:[%s11990_s8 + $0x3d8] sm:$0xff] }
 0xadd   :  { %v3166_v2 = vadd.f32 %v3161_v59, %v10300_v12  ;;  %v8795_v11 = vpop.f32.mrb[59].mxu0  ;;  %v3171_v31 = vsel %vm206_vm3, %v3165_v34, 0.0  ;;  %v8133_v59 = vld [vmem:[%s11990_s8 + $0x310] sm:$0xff] }
 0xade   :  { %v8119_v11 = vld [vmem:[%s11990_s8 + $0x2a0] sm:$0xff] }
 0xadf   :  { %v3172_v38 = vsel %vm206_vm3, %v3166_v2, 0.0 }
 0xae0   :  { %v3173_v17 = vadd.f32 %v3172_v38, %v3171_v31  ;;  %v8120_v31 = vld [vmem:[%s11990_s8 + $0x2a8] sm:$0xff]  ;;  %v8151_v38 = vld [vmem:[%s11990_s8 + $0x3a0] sm:$0xff] }
 0xae2   :  { %v3174_v40 = vrot.slane %v3173_v17, 4 }
 0xae4   :  { %v3175_v55 = vadd.f32 %v3174_v40, %v3173_v17  ;;  %v8152_v17 = vld [vmem:[%s11990_s8 + $0x3a8] sm:$0xff]  ;;  %v3427_v40 = vpack.c.bf16 %v8102_v7, %v8101_v47  ;;  %v8109_v7 = vld [vmem:[%s11990_s8 + $0x250] sm:$0xff] }
 0xae6   :  { %v3176_v24 = vrot.slane %v3175_v55, 2 }
 0xae8   :  { %v3177_v14 = vadd.f32 %v3176_v24, %v3175_v55  ;;  %v8103_v24 = vld [vmem:[%s11990_s8 + $0x220] sm:$0xff] }
 0xaea   :  { %v3178_v42 = vrot.slane %v3177_v14, 1 }
 0xaec   :  { %v3179_v22 = vadd.f32 %v3178_v42, %v3177_v14  ;;  %v8104_v14 = vld [vmem:[%s11990_s8 + $0x228] sm:$0xff]  ;;  %v3436_v42 = vpack.c.bf16 %v8120_v31, %v8119_v11  ;;  %v8127_v11 = vld [vmem:[%s11990_s8 + $0x2e0] sm:$0xff] }
 0xaed   :  { %v8128_v31 = vld [vmem:[%s11990_s8 + $0x2e8] sm:$0xff] }
 0xaee   :  { %v3180_v60 = vmul.f32 0.0625, %v3179_v22  ;;  %v3452_v22 = vpack.c.bf16 %v8152_v17, %v8151_v38  ;;  %v8159_v38 = vld [vmem:[%s11990_s8 + $0x3e0] sm:$0xff]  ;;  %v3440_v17 = vpack.c.bf16 %v8128_v31, %v8127_v11 }
 0xaf0   :  { %v3181_v4 = vsub.f32 %v3165_v34, %v3180_v60  ;;  %v3182_v20 = vsub.f32 %v3166_v2, %v3180_v60  ;;  %v3435_v34 = vpack.c.bf16 %v8118_v36, %v8117_v51  ;;  %v8134_v2 = vld [vmem:[%s11990_s8 + $0x318] sm:$0xff]  ;;  %v8135_v60 = vld [vmem:[%s11990_s8 + $0x320] sm:$0xff]  ;;  %v8157_v36 = vld [vmem:[%s11990_s8 + $0x3d0] sm:$0xff] }
 0xaf1   :  { %v3443_v55 = vpack.c.bf16 %v8134_v2, %v8133_v59  ;;  %v8126_v51 = vld [vmem:[%s11990_s8 + $0x2d8] sm:$0xff]  ;;  %v3455_v47 = vpack.c.bf16 %v8158_v44, %v8157_v36 }
 0xaf2   :  { %v3183_v15 = vmul.f32 %v3181_v4, %v3181_v4  ;;  %v3184_v49 = vmul.f32 %v3182_v20, %v3182_v20  ;;  %v8142_v59 = vld [vmem:[%s11990_s8 + $0x358] sm:$0xff] }
 0xaf4   :  { %v3185_v61 = vsel %vm206_vm3, %v3183_v15, 0.0  ;;  %v3186_v12 = vsel %vm206_vm3, %v3184_v49, 0.0  ;;  %v8122_v15 = vld [vmem:[%s11990_s8 + $0x2b8] sm:$0xff]  ;;  %v8153_v49 = vld [vmem:[%s11990_s8 + $0x3b0] sm:$0xff] }
 0xaf5   :  { %v3187_v58 = vadd.f32 %v3186_v12, %v3185_v61  ;;  %v8154_v61 = vld [vmem:[%s11990_s8 + $0x3b8] sm:$0xff]  ;;  %v3428_v12 = vpack.c.bf16 %v8104_v14, %v8103_v24  ;;  %v8112_v24 = vld [vmem:[%s11990_s8 + $0x268] sm:$0xff] }
 0xaf7   :  { %v3188_v32 = vrot.slane %v3187_v58, 4 }
 0xaf9   :  { %v3189_v50 = vadd.f32 %v3188_v32, %v3187_v58  ;;  %v8105_v32 = vld [vmem:[%s11990_s8 + $0x230] sm:$0xff] }
 0xafb   :  { %v3190_v54 = vrot.slane %v3189_v50, 2 }
 0xafd   :  { %v3191_v53 = vadd.f32 %v3190_v54, %v3189_v50  ;;  %v8106_v50 = vld [vmem:[%s11990_s8 + $0x238] sm:$0xff] }
 0xaff   :  { %v3192_v9 = vrot.slane %v3191_v53, 1 }
 0xb01   :  { %v3193_v1 = vadd.f32 %v3192_v9, %v3191_v53  ;;  %v3453_v53 = vpack.c.bf16 %v8154_v61, %v8153_v49  ;;  %v8137_v9 = vld [vmem:[%s11990_s8 + $0x330] sm:$0xff] }
 0xb02   :  { %v8161_v49 = vld [vmem:[%s11990_s8 + $0x3f0] sm:$0xff] }
 0xb03   :  { %v3194_v26 = vmul.f32 0.0625, %v3193_v1  ;;  %v8138_v1 = vld [vmem:[%s11990_s8 + $0x338] sm:$0xff] }
 0xb05   :  { %v3195_v57 = vadd.f32 1e-05, %v3194_v26  ;;  %v8123_v26 = vld [vmem:[%s11990_s8 + $0x2c0] sm:$0xff] }
 0xb07   :  { %9321 = vrsqrt.f32 %v3195_v57  ;;  %v8124_v57 = vld [vmem:[%s11990_s8 + $0x2c8] sm:$0xff] }
 0xb08   :  { %v3438_v45 = vpack.c.bf16 %v8124_v57, %v8123_v26  ;;  %v8096_v26 = vld [vmem:[%s11993_s7 + $0x4] sm:$0xf] }
 0xb09   :  { %v3243_v57 = vrot.slane %v8096_v26, %v9689_v56 }
 0xb11   :  { %v9322_v16 = vpop.eup %9321 }
 0xb12   :  { %v3197_v10 = vmul.f32 %v9322_v16, %v3181_v4  ;;  %v3198_v30 = vmul.f32 %v9322_v16, %v3182_v20  ;;  %v8136_v4 = vld [vmem:[%s11990_s8 + $0x328] sm:$0xff]  ;;  %v8121_v20 = vld [vmem:[%s11990_s8 + $0x2b0] sm:$0xff] }
 0xb13   :  { %v3444_v58 = vpack.c.bf16 %v8136_v4, %v8135_v60  ;;  %v3437_v54 = vpack.c.bf16 %v8122_v15, %v8121_v20  ;;  %v8156_v16 = vld [vmem:[%s11990_s8 + $0x3c8] sm:$0xff]  ;;  %v8129_v20 = vld [vmem:[%s11990_s8 + $0x2f0] sm:$0xff]  ;;  %v8130_v15 = vld [vmem:[%s11990_s8 + $0x2f8] sm:$0xff] }
 0xb14   :  { %v3203_v21 = vmul.f32 %v3202_v35, %v3197_v10  ;;  %v3204_v33 = vmul.f32 %v3202_v35, %v3198_v30  ;;  %v8155_v35 = vld [vmem:[%s11990_s8 + $0x3c0] sm:$0xff]  ;;  %v3429_v10 = vpack.c.bf16 %v8106_v50, %v8105_v32  ;;  %v3445_v30 = vpack.c.bf16 %v8138_v1, %v8137_v9  ;;  %v8144_v60 = vld [vmem:[%s11990_s8 + $0x368] sm:$0xff]  ;;  %v8114_v32 = vld [vmem:[%s11990_s8 + $0x278] sm:$0xff] }
 0xb15   :  { %v3441_v61 = vpack.c.bf16 %v8130_v15, %v8129_v20  ;;  %v8146_v9 = vld [vmem:[%s11990_s8 + $0x378] sm:$0xff]  ;;  %v12016_v15 = vmov 1.0|1.0  }
 0xb16   :  { %v10721_v18 = vadd.f32 %v3208_v41, %v3203_v21  ;;  %v10723_v27 = vadd.f32 %v3208_v41, %v3204_v33  ;;  %v8107_v41 = vld [vmem:[%s11990_s8 + $0x240] sm:$0xff]  ;;  %v3454_v21 = vpack.c.bf16 %v8156_v16, %v8155_v35  ;;  %v3251_v35 = vrot.slane %v8096_v26, %v1552_v46 }
 0xb17   :  { %v8139_v33 = vld [vmem:[%s11990_s8 + $0x340] sm:$0xff]  ;;  %v3430_v48 = vpack.c.bf16 %v8108_v52, %v8107_v41  ;;  %v3247_v16 = vrot.slane %v8096_v26, %v10235_v19 }
 0xb18   :  { %v3228_v0 = vpack.c.bf16 %v10723_v27, %v10721_v18 }
 0xb1a   :  { %8097 = vmatmul.mubr.msk.bf16.vlgmr.msra.gmra.mrb[56].mxu1 %vm206_vm3, %v3228_v0  ;;  %8098 = vmatmul.mubr.msk.bf16.vlgmr.msra.gmra.mrb[60].mxu0 %vm206_vm3, %v3228_v0  ;;  %v8110_v0 = vld [vmem:[%s11990_s8 + $0x258] sm:$0xff] }
 0xb1b   :  { %8426 = vmatpush3.bf16.msra.mxu1 %v3426_v23  ;;  %8448 = vmatpush3.bf16.msra.mxu0 %v3442_v63  ;;  %v3446_v23 = vpack.c.bf16 %v8140_v28, %v8139_v33  ;;  %v3439_v63 = vpack.c.bf16 %v8126_v51, %v8125_v62 }
 0xb1c   :  { %8427 = vmatprep.subr.bf16.mxu1 %v3435_v34  ;;  %8449 = vmatprep.subr.bf16.mxu0 %v3451_v13  ;;  %v8141_v34 = vld [vmem:[%s11990_s8 + $0x350] sm:$0xff]  ;;  %v3431_v13 = vpack.c.bf16 %v8110_v0, %v8109_v7 }
 0xb1d   :  { %v3447_v2 = vpack.c.bf16 %v8142_v59, %v8141_v34 }
 0xb1f   :  { %8428 = vmatpush3.bf16.msra.mxu1 %v3427_v40  ;;  %8450 = vmatpush3.bf16.msra.mxu0 %v3443_v55  ;;  %v8160_v40 = vld [vmem:[%s11990_s8 + $0x3e8] sm:$0xff]  ;;  %v8111_v55 = vld [vmem:[%s11990_s8 + $0x260] sm:$0xff] }
 0xb20   :  { %8429 = vmatprep.subr.bf16.mxu1 %v3436_v42  ;;  %8451 = vmatprep.subr.bf16.mxu0 %v3452_v22  ;;  %v3456_v14 = vpack.c.bf16 %v8160_v40, %v8159_v38  ;;  %v3432_v42 = vpack.c.bf16 %v8112_v24, %v8111_v55  ;;  %v8143_v22 = vld [vmem:[%s11990_s8 + $0x360] sm:$0xff] }
 0xb21   :  { %v3448_v4 = vpack.c.bf16 %v8144_v60, %v8143_v22  ;;  %v3666_v60 = vld [vmem:[%s11995_s11 + $0x10] sm:$0xff] }
 0xb23   :  { %8430 = vmatpush3.bf16.msra.mxu1 %v3428_v12  ;;  %8452 = vmatpush3.bf16.msra.mxu0 %v3444_v58  ;;  %v8162_v12 = vld [vmem:[%s11990_s8 + $0x3f8] sm:$0xff]  ;;  %v8113_v58 = vld [vmem:[%s11990_s8 + $0x270] sm:$0xff] }
 0xb24   :  { %8431 = vmatprep.subr.bf16.mxu1 %v3437_v54  ;;  %8453 = vmatprep.subr.bf16.mxu0 %v3453_v53  ;;  %v3457_v50 = vpack.c.bf16 %v8162_v12, %v8161_v49  ;;  %v3433_v54 = vpack.c.bf16 %v8114_v32, %v8113_v58  ;;  %v8145_v53 = vld [vmem:[%s11990_s8 + $0x370] sm:$0xff]  ;;  %v3607_v49 = vld [vmem:[%s11996_s12] sm:$0xff]  ;;  %v3610_v32 = vld [vmem:[%s11996_s12 + $0x18] sm:$0xff] }
 0xb25   :  { %v3449_v1 = vpack.c.bf16 %v8146_v9, %v8145_v53  ;;  %v3609_v12 = vld [vmem:[%s11996_s12 + $0x10] sm:$0xff]  ;;  %v8164_v9 = vld [vmem:[%s11994_s9 + $0x1] ss:$0 sm:$0xff] }
 0xb27   :  { %8432 = vmatpush3.bf16.msra.mxu1 %v3429_v10  ;;  %8454 = vmatpush3.bf16.msra.mxu0 %v3445_v30  ;;  %v12015_v10 = vsub.s32 3, %v9648_v29 }
 0xb28   :  { %8433 = vmatprep.subr.bf16.mxu1 %v3438_v45  ;;  %8455 = vmatprep.subr.bf16.mxu0 %v3454_v21 }
 0xb29   :  { %v3255_v30 = vrot.slane %v8096_v26, %v12015_v10 }
 0xb2b   :  { %8434 = vmatpush3.bf16.msra.mxu1 %v3430_v48  ;;  %8456 = vmatpush3.bf16.msra.mxu0 %v3446_v23 }
 0xb2c   :  { %8435 = vmatprep.subr.bf16.mxu1 %v3439_v63  ;;  %8457 = vmatprep.subr.bf16.mxu0 %v3455_v47 }
 0xb2f   :  { %8436 = vmatpush3.bf16.msra.mxu1 %v3431_v13  ;;  %8458 = vmatpush3.bf16.msra.mxu0 %v3447_v2 }
 0xb30   :  { %8437 = vmatprep.subr.bf16.mxu1 %v3440_v17  ;;  %8459 = vmatprep.subr.bf16.mxu0 %v3456_v14  ;;  %v3664_v14 = vld [vmem:[%s11995_s11] sm:$0xff] }
 0xb33   :  { %8438 = vmatpush3.bf16.msra.mxu1 %v3432_v42  ;;  %8460 = vmatpush3.bf16.msra.mxu0 %v3448_v4  ;;  %v3665_v42 = vld [vmem:[%s11995_s11 + $0x8] sm:$0xff]  ;;  %v3667_v4 = vld [vmem:[%s11995_s11 + $0x18] sm:$0xff] }
 0xb34   :  { %8439 = vmatprep.subr.bf16.mxu1 %v3441_v61  ;;  %8461 = vmatprep.subr.bf16.mxu0 %v3457_v50  ;;  %v3669_v22 = vpack.c.bf16 %v3665_v42, %v3664_v14  ;;  %v3670_v20 = vpack.c.bf16 %v3667_v4, %v3666_v60  ;;  %v3608_v61 = vld [vmem:[%s11996_s12 + $0x8] sm:$0xff]  ;;  %v3614_v50 = vpack.c.bf16 %v3610_v32, %v3609_v12 }
 0xb35   :  { %v3613_v58 = vpack.c.bf16 %v3608_v61, %v3607_v49  ;;  %v3581_v4 = vrot.slane %v10686_v6, %v10235_v19  ;;  %v3587_v49 = vrot.slane %v10691_v25, %v10235_v19 }
 0xb37   :  { %8440 = vmatpush3.bf16.msra.mxu1 %v3433_v54  ;;  %8462 = vmatpush3.bf16.msra.mxu0 %v3449_v1 }
 0xb38   :  { %8796 = vmatprep.subr.bf16.mxu1 %v9485_v3  ;;  %8804 = vmatprep.subr.bf16.mxu0 %v9485_v3 }
 0xbed   :  { %v3297_v41 = vpop.f32.mrb[56].mxu1  ;;  %v3340_v52 = vpop.f32.mrb[60].mxu0 }
 0xbee   :  { %v3298_v45 = vadd.f32 %v3297_v41, %v3243_v57  ;;  %v3341_v21 = vadd.f32 %v3340_v52, %v3251_v35  ;;  %v3299_v33 = vpop.f32.mrb[57].mxu1  ;;  %v3342_v28 = vpop.f32.mrb[61].mxu0 }
 0xbef   :  { %v3300_v62 = vadd.f32 %v3299_v33, %v3247_v16  ;;  %v3343_v51 = vadd.f32 %v3342_v28, %v3255_v30  ;;  %v3301_v36 = vpop.f32.mrb[58].mxu1  ;;  %v3344_v44 = vpop.f32.mrb[62].mxu0 }
 0xbf0   :  { %v3302_v48 = vadd.f32 %v3301_v36, %v3243_v57  ;;  %v3345_v23 = vadd.f32 %v3344_v44, %v3251_v35  ;;  %v3303_v63 = vpop.f32.mrb[59].mxu1  ;;  %v3346_v47 = vpop.f32.mrb[63].mxu0  ;;  %v3349_v0 = vmax.f32 %v3298_v45, 0.0  ;;  %v3351_v34 = vmax.f32 %v3341_v21, 0.0 }
 0xbf1   :  { %v3304_v46 = vadd.f32 %v3303_v63, %v3247_v16  ;;  %v3347_v7 = vadd.f32 %v3346_v47, %v3255_v30  ;;  %v3350_v2 = vmax.f32 %v3300_v62, 0.0  ;;  %v3352_v11 = vmax.f32 %v3343_v51, 0.0 }
 0xbf2   :  { %v3353_v13 = vmax.f32 %v3302_v48, 0.0  ;;  %v3355_v59 = vmax.f32 %v3345_v23, 0.0 }
 0xbf3   :  { %v3354_v31 = vmax.f32 %v3304_v46, 0.0  ;;  %v3356_v38 = vmax.f32 %v3347_v7, 0.0 }
 0xbf4   :  { %v3422_v17 = vpack.c.bf16 %v3353_v13, %v3349_v0  ;;  %v3424_v40 = vpack.c.bf16 %v3355_v59, %v3351_v34 }
 0xbf5   :  { %v3423_v55 = vpack.c.bf16 %v3354_v31, %v3350_v2  ;;  %v3425_v24 = vpack.c.bf16 %v3356_v38, %v3352_v11 }
 0xbf7   :  { %3498 = vmatprep.mubr.bf16.mxu1 %v3423_v55  ;;  %3539 = vmatprep.mubr.bf16.mxu0 %v3425_v24 }
 0xbf8   :  { %3499 = vmatmul.mubr.bf16.vlgmr.msra.gmra.mrb[60].mxu1 %v3422_v17  ;;  %3540 = vmatmul.mubr.bf16.vlgmr.msra.gmra.mrb[64].mxu0 %v3424_v40 }
 0xbf9   :  { %8808 = vmatprep.mubr.msk.bf16.mxu0 %vm9486_vm2, %v9485_v3  ;;  %8800 = vmatprep.mubr.msk.bf16.mxu1 %vm9486_vm2, %v9485_v3 }
 0xbfa   :  { %8805 = vmatpush3.bf16.msra.mxu0 %v3669_v22  ;;  %8797 = vmatpush3.bf16.msra.mxu1 %v3613_v58 }
 0xbfb   :  { %8806 = vmatprep.subr.bf16.mxu0 %v9485_v3  ;;  %8798 = vmatprep.subr.bf16.mxu1 %v9485_v3 }
 0xbfe   :  { %8807 = vmatpush3.bf16.msra.mxu0 %v3670_v20  ;;  %8799 = vmatpush3.bf16.msra.mxu1 %v3614_v50 }
 0xbff   :  { %9117 = vmatprep.subr.msk.bf16.mxu0 %vm9659_vm10, %v12016_v15  ;;  %8812 = vmatprep.subr.bf16.mxu1 %v9485_v3 }
 0xccb   :  { %v8441_v54 = vpop.f32.mrb[60].mxu1  ;;  %v8463_v53 = vpop.f32.mrb[64].mxu0 }
 0xccc   :  { %v8442_v1 = vpop.f32.mrb[61].mxu1  ;;  %v8464_v26 = vpop.f32.mrb[65].mxu0 }
 0xccd   :  { %v8443_v57 = vadd.f32 %v8442_v1, %v8441_v54  ;;  %v8465_v35 = vadd.f32 %v8464_v26, %v8463_v53  ;;  %v8444_v16 = vpop.f32.mrb[62].mxu1  ;;  %v8466_v10 = vpop.f32.mrb[66].mxu0 }
 0xcce   :  { %v8445_v30 = vpop.f32.mrb[63].mxu1  ;;  %v8467_v41 = vpop.f32.mrb[67].mxu0 }
 0xccf   :  { %v3501_v52 = vadd.f32 %v8443_v57, %v8164_v9  ;;  %v8446_v45 = vadd.f32 %v8445_v30, %v8444_v16  ;;  %v8468_v21 = vadd.f32 %v8467_v41, %v8466_v10  ;;  %v12017_v30 = vmov 1.0  }
 0xcd1   :  { %v3542_v33 = vadd.f32 %v8465_v35, %v3501_v52  ;;  %v3504_v28 = vadd.f32 %v8446_v45, %v8164_v9 }
 0xcd3   :  { %v3548_v62 = vadd.f32 %v3542_v33, %v10721_v18  ;;  %v3545_v51 = vadd.f32 %v8468_v21, %v3504_v28 }
 0xcd5   :  { %v3549_v36 = vadd.f32 %v3545_v51, %v10723_v27  ;;  %v3550_v44 = vsel %vm206_vm3, %v3548_v62, 0.0 }
 0xcd7   :  { %v3551_v48 = vsel %vm206_vm3, %v3549_v36, 0.0 }
 0xcd8   :  { %v3552_v23 = vadd.f32 %v3551_v48, %v3550_v44  ;;  %v3723_v44 = vld [vmem:[%s11997_s13 + $0x8] sm:$0xff] }
 0xcda   :  { %v3553_v63 = vrot.slane %v3552_v23, 4 }
 0xcdc   :  { %v3554_v47 = vadd.f32 %v3553_v63, %v3552_v23 }
 0xcde   :  { %v3555_v46 = vrot.slane %v3554_v47, 2 }
 0xce0   :  { %v3556_v7 = vadd.f32 %v3555_v46, %v3554_v47 }
 0xce2   :  { %v3557_v0 = vrot.slane %v3556_v7, 1 }
 0xce4   :  { %v3558_v34 = vadd.f32 %v3557_v0, %v3556_v7  ;;  %v3724_v7 = vld [vmem:[%s11997_s13 + $0x10] sm:$0xff]  ;;  %v3725_v0 = vld [vmem:[%s11997_s13 + $0x18] sm:$0xff] }
 0xce6   :  { %v3559_v13 = vmul.f32 0.0625, %v3558_v34  ;;  %v10983_v34 = vpack.c.bf16 %v3725_v0, %v3724_v7 }
 0xce8   :  { %v3560_v59 = vsub.f32 %v3548_v62, %v3559_v13  ;;  %v3561_v2 = vsub.f32 %v3549_v36, %v3559_v13  ;;  %v3722_v36 = vld [vmem:[%s11997_s13] sm:$0xff] }
 0xce9   :  { %v10973_v47 = vpack.c.bf16 %v3723_v44, %v3722_v36  ;;  %v3726_v13 = vld [vmem:[%s11997_s13 + $0x20] sm:$0xff] }
 0xcea   :  { %v3562_v11 = vmul.f32 %v3560_v59, %v3560_v59  ;;  %v3563_v31 = vmul.f32 %v3561_v2, %v3561_v2 }
 0xcec   :  { %v3564_v18 = vsel %vm206_vm3, %v3562_v11, 0.0  ;;  %v3565_v27 = vsel %vm206_vm3, %v3563_v31, 0.0  ;;  %v3728_v11 = vld [vmem:[%s11997_s13 + $0x30] sm:$0xff]  ;;  %v3729_v31 = vld [vmem:[%s11997_s13 + $0x38] sm:$0xff] }
 0xced   :  { %v3566_v38 = vadd.f32 %v3565_v27, %v3564_v18  ;;  %v11005_v18 = vpack.c.bf16 %v3729_v31, %v3728_v11  ;;  %v8167_v27 = vld [vmem:[%s11998_s10] ss:$0 sm:$0xff]  ;;  %s9491_s10 = smov 64  }
 0xcef   :  { %v3567_v17 = vrot.slane %v3566_v38, 4 }
 0xcf1   :  { %v3568_v40 = vadd.f32 %v3567_v17, %v3566_v38  ;;  %v3730_v38 = vpack.c.bf16 %v8167_v27, %v8167_v27 }
 0xcf3   :  { %v3569_v55 = vrot.slane %v3568_v40, 2 }
 0xcf5   :  { %v3570_v24 = vadd.f32 %v3569_v55, %v3568_v40 }
 0xcf7   :  { %v3571_v14 = vrot.slane %v3570_v24, 1 }
 0xcf9   :  { %v3572_v42 = vadd.f32 %v3571_v14, %v3570_v24 }
 0xcfb   :  { %v3573_v22 = vmul.f32 0.0625, %v3572_v42 }
 0xcfd   :  { %v3574_v60 = vadd.f32 1e-05, %v3573_v22 }
 0xcff   :  { %9323 = vrsqrt.f32 %v3574_v60 }
 0xd09   :  { %v9324_v20 = vpop.eup %9323 }
 0xd0a   :  { %v3576_v61 = vmul.f32 %v9324_v20, %v3560_v59  ;;  %v3577_v12 = vmul.f32 %v9324_v20, %v3561_v2  ;;  %v3727_v59 = vld [vmem:[%s11997_s13 + $0x28] sm:$0xff]  ;;  %s9492_s13 = smov 96  }
 0xd0b   :  { %v10995_v2 = vpack.c.bf16 %v3727_v59, %v3726_v13 }
 0xd0c   :  { %v3582_v58 = vmul.f32 %v3581_v4, %v3576_v61  ;;  %v3583_v32 = vmul.f32 %v3581_v4, %v3577_v12 }
 0xd0e   :  { %v10943_v50 = vadd.f32 %v3587_v49, %v3582_v58  ;;  %v10945_v54 = vadd.f32 %v3587_v49, %v3583_v32 }
 0xd10   :  { %v3668_v53 = vpack.c.bf16 %v10945_v54, %v10943_v50  ;;  %v3590_v9 = vsel %vm206_vm3, %v10943_v50, 0.0  ;;  %v3597_v6 = vsel %vm206_vm3, %v10945_v54, 0.0 }
 0xd11   :  { %v3591_v1 = vrot.slane %v3590_v9, 4  ;;  %v3598_v26 = vrot.slane %v3597_v6, 4 }
 0xd12   :  { %8809 = vmatmul.mubr.msk.bf16.vlgmr.msra.gmra.mrb[68].mxu0 %vm206_vm3, %v3668_v53 }
 0xd13   :  { %v3592_v19 = vadd.f32 %v3591_v1, %v3590_v9  ;;  %v3599_v25 = vadd.f32 %v3598_v26, %v3597_v6  ;;  %9119 = vmatpush3.bf16.msk.msra.mxu0 %vm9659_vm10, %v12016_v15 }
 0xd14   :  { %9121 = vmatprep.subr.msk.bf16.mxu0 %vm9669_vm1, %v12016_v15 }
 0xd15   :  { %v3593_v57 = vrot.slane %v3592_v19, 2  ;;  %v3600_v35 = vrot.slane %v3599_v25, 2 }
 0xd17   :  { %v3594_v16 = vadd.f32 %v3593_v57, %v3592_v19  ;;  %v3601_v10 = vadd.f32 %v3600_v35, %v3599_v25  ;;  %9123 = vmatpush3.bf16.msk.msra.mxu0 %vm9669_vm1, %v12016_v15 }
 0xd18   :  { %8835 = vmatprep.subr.msk.mxu0 %vm9740_vm6, %v12017_v30 }
 0xd19   :  { %v3595_v41 = vrot.slane %v3594_v16, 1  ;;  %v3602_v52 = vrot.slane %v3601_v10, 1 }
 0xd1b   :  { %v3596_v45 = vadd.f32 %v3595_v41, %v3594_v16  ;;  %v3603_v21 = vadd.f32 %v3602_v52, %v3601_v10 }
 0xd1d   :  { %v3605_v33 = vmul.f32 0.125, %v3596_v45  ;;  %v3606_v28 = vmul.f32 0.125, %v3603_v21 }
 0xd1f   :  { %v3611_v62 = vpack.c.bf16 %v3605_v33, %v3605_v33  ;;  %v3612_v51 = vpack.c.bf16 %v3606_v28, %v3606_v28 }
 0xd21   :  { %v3617_v48 = vunpack.c.l.b16 %v3611_v62  ;;  %v3618_v23 = vunpack.c.l.b16 %v3612_v51 }
 0xd23   :  { %v3619_v63 = vsel %vm1404_vm8, %v3618_v23, %v3617_v48 }
 0xd24   :  { %v3620_v46 = vpack.c.b16 %v3619_v63, %v3619_v63 }
 0xd26   :  { %8801 = vmatmul.mubr.msk.bf16.vlgmr.msra.gmra.mrb[64].mxu1 %vm206_vm3, %v3620_v46 }
 0xd27   :  { %8813 = vmatpush3.bf16.msra.mxu1 %v10973_v47  ;;  %8820 = vmatprep.mubr.msk.bf16.mxu1 %vm9486_vm2, %v9485_v3 }
 0xd28   :  { %8814 = vmatprep.subr.bf16.mxu1 %v9485_v3 }
 0xd2b   :  { %8815 = vmatpush3.bf16.msra.mxu1 %v10983_v34 }
 0xd2c   :  { %8816 = vmatprep.subr.bf16.mxu1 %v9485_v3 }
 0xd2f   :  { %8817 = vmatpush3.bf16.msra.mxu1 %v10995_v2 }
 0xd30   :  { %8818 = vmatprep.subr.bf16.mxu1 %v9485_v3 }
 0xd33   :  { %8819 = vmatpush3.bf16.msra.mxu1 %v11005_v18 }
 0xd34   :  { %8848 = vmatprep.subr.bf16.mxu1 %v9485_v3 }
 0xd36   :  { %8821 = vmatmul.mubr.msk.bf16.vlgmr.msra.gmra.mrb[68].mxu1 %vm3735_vm0, %v3730_v38 }
 0xd37   :  { %8849 = vmatpush3.bf16.msra.mxu1 %v10973_v47  ;;  %8856 = vmatprep.mubr.msk.bf16.mxu1 %vm9486_vm2, %v9485_v3 }
 0xd38   :  { %8850 = vmatprep.subr.bf16.mxu1 %v9485_v3 }
 0xd3b   :  { %8851 = vmatpush3.bf16.msra.mxu1 %v10983_v34 }
 0xd3c   :  { %8852 = vmatprep.subr.bf16.mxu1 %v9485_v3 }
 0xd3f   :  { %8853 = vmatpush3.bf16.msra.mxu1 %v10995_v2 }
 0xd40   :  { %8854 = vmatprep.subr.bf16.mxu1 %v9485_v3 }
 0xd43   :  { %8855 = vmatpush3.bf16.msra.mxu1 %v11005_v18 }
 0xd44   :  { %8876 = vmatprep.subr.bf16.mxu1 %v9485_v3 }
 0xde5   :  { %v11024_v17 = vpop.f32.mrb[68].mxu0 }
 0xde6   :  { %4130 = vrot.lane.b32.xlu1 %v11024_v17, %s9491_s10  ;;  %4018 = vrot.lane.b32.xlu0 %v11024_v17, %s9492_s13  ;;  %v8810_v40 = vpop.f32.mrb[69].mxu0 }
 0xde7   :  { %v11028_v55 = vpop.f32.mrb[70].mxu0 }
 0xde8   :  { %v8811_v24 = vpop.f32.mrb[71].mxu0 }
 0xdea   :  { %4132 = vrot.lane.b32.xlu1 %v11028_v55, %s9491_s10  ;;  %4020 = vrot.lane.b32.xlu0 %v11028_v55, %s9492_s13 }
 0xdf9   :  { %v11032_v14 = vpop.f32.mrb[64].mxu1 }
 0xdfa   :  { %v8802_v42 = vpop.f32.mrb[65].mxu1 }
 0xdfb   :  { %v3661_v22 = vpop.f32.mrb[66].mxu1 }
 0xdfc   :  { %v8803_v60 = vpop.f32.mrb[67].mxu1 }
 0xe09   :  { %v3773_v4 = vpop.f32.mrb[68].mxu1 }
 0xe0a   :  { %v3779_v20 = vadd.f32 %v3773_v4, %v11032_v14  ;;  %v8822_v49 = vpop.f32.mrb[69].mxu1 }
 0xe0b   :  { %v3776_v61 = vpop.f32.mrb[70].mxu1 }
 0xe0c   :  { %v3780_v12 = vmul.f32 0.5, %v3779_v20  ;;  %v8823_v58 = vpop.f32.mrb[71].mxu1 }
 0xe0e   :  { %v3788_v32 = vrot.slane %v3780_v12, %v9681_v43 }
 0xe10   :  { %v3789_v53 = vcombine.high %v3788_v32, %v3788_v32  ;;  %v3796_v9 = vrot.slane %v3788_v32, %v9681_v43 }
 0xe12   :  { %v3803_v6 = vrot.slane %v3789_v53, %v9681_v43  ;;  %v3807_v1 = vrot.slane %v3796_v9, %v9689_v56 }
 0xe14   :  { %v3811_v26 = vrot.slane %v3803_v6, %v9689_v56  ;;  %v3814_v19 = vmul.f32 %v3807_v1, %v11024_v17  ;;  %v4040_v6 = vld [vmem:[%s11999_s14] sm:$0xff]  ;;  %v4041_v1 = vld [vmem:[%s11999_s14 + $0x8] sm:$0xff] }
 0xe16   :  { %v3815_v25 = vmul.f32 %v3811_v26, %v11028_v55  ;;  %8832 = vmatprep.mubr.msk.f32.mxu0 %vm206_vm3, %v3814_v19  ;;  %v11062_v26 = vpack.c.bf16 %v4041_v1, %v4040_v6  ;;  %v4042_v19 = vld [vmem:[%s11999_s14 + $0x10] sm:$0xff] }
 0xe18   :  { %8833 = vmatmul.mubr.msk.f32.vlgmr.msra.gmra.mrb[72].mxu0 %vm206_vm3, %v3815_v25  ;;  %v4043_v25 = vld [vmem:[%s11999_s14 + $0x18] sm:$0xff]  ;;  %s9493_s14 = smov 32  }
 0xe19   :  { %8836 = vmatpush3.msk.msra.mxu0 %vm9740_vm6, %v12017_v30 }
 0xe1a   :  { %8840 = vmatprep.subr.bf16.mxu0 %v9485_v3 }
 0xeeb   :  { %v8834_v57 = vpop.f32.mrb[72].mxu0 }
 0xeec   :  { %v3904_v35 = vsel %vm728_vm7, %v8834_v57, -inf  ;;  %v3888_v16 = vpop.f32.mrb[73].mxu0 }
 0xeed   :  { %v3905_v10 = vrot.slane %v3904_v35, 4  ;;  %v3897_v41 = vsel %vm728_vm7, %v3888_v16, -inf }
 0xeee   :  { %v3898_v52 = vrot.slane %v3897_v41, 4 }
 0xeef   :  { %v3906_v45 = vmax.f32 %v3904_v35, %v3905_v10  ;;  %v11078_v35 = vpop.permute.xlu0 %4018 }
 0xef0   :  { %v3899_v21 = vmax.f32 %v3897_v41, %v3898_v52 }
 0xef1   :  { %v3907_v33 = vrot.slane %v3906_v45, 2 }
 0xef2   :  { %v3900_v28 = vrot.slane %v3899_v21, 2 }
 0xef3   :  { %v3908_v62 = vmax.f32 %v3906_v45, %v3907_v33 }
 0xef4   :  { %v3901_v51 = vmax.f32 %v3899_v21, %v3900_v28 }
 0xef5   :  { %v3909_v36 = vrot.slane %v3908_v62, 1 }
 0xef6   :  { %v3902_v44 = vrot.slane %v3901_v51, 1 }
 0xef7   :  { %v3910_v48 = vmax.f32 %v3908_v62, %v3909_v36 }
 0xef8   :  { %v3903_v23 = vmax.f32 %v3901_v51, %v3902_v44 }
 0xef9   :  { %v3912_v63 = vsub.f32 %v8834_v57, %v3910_v48  ;;  %v11072_v57 = vpack.c.bf16 %v4043_v25, %v4042_v19 }
 0xefa   :  { %v3911_v46 = vsub.f32 %v3888_v16, %v3903_v23  ;;  %v11080_v16 = vpop.permute.xlu0 %4020 }
 0xefb   :  { %v3915_v7 = vmul.f32 1.442695, %v3912_v63 }
 0xefc   :  { %v3913_v0 = vmul.f32 1.442695, %v3911_v46 }
 0xefd   :  { %9325 = vpow2.f32 %v3915_v7 }
 0xefe   :  { %9327 = vpow2.f32 %v3913_v0 }
 0xf07   :  { %v9326_v13 = vpop.eup %9325 }
 0xf08   :  { %v9328_v59 = vpop.eup %9327  ;;  %v3924_v11 = vsel %vm728_vm7, %v9326_v13, 0.0 }
 0xf09   :  { %v3925_v31 = vrot.slane %v3924_v11, 4  ;;  %v3917_v27 = vsel %vm728_vm7, %v9328_v59, 0.0 }
 0xf0a   :  { %v3918_v38 = vrot.slane %v3917_v27, 4 }
 0xf0b   :  { %v3926_v40 = vadd.f32 %v3925_v31, %v3924_v11 }
 0xf0c   :  { %v3919_v24 = vadd.f32 %v3918_v38, %v3917_v27 }
 0xf0d   :  { %v3927_v42 = vrot.slane %v3926_v40, 2 }
 0xf0e   :  { %v3920_v22 = vrot.slane %v3919_v24, 2 }
 0xf0f   :  { %v3928_v60 = vadd.f32 %v3927_v42, %v3926_v40 }
 0xf10   :  { %v3921_v4 = vadd.f32 %v3920_v22, %v3919_v24 }
 0xf11   :  { %v3929_v20 = vrot.slane %v3928_v60, 1 }
 0xf12   :  { %v3922_v49 = vrot.slane %v3921_v4, 1 }
 0xf13   :  { %v3930_v61 = vadd.f32 %v3929_v20, %v3928_v60  ;;  %v11101_v60 = vpop.permute.xlu1 %4130 }
 0xf14   :  { %v3923_v12 = vadd.f32 %v3922_v49, %v3921_v4 }
 0xf15   :  { %9329 = vrcp.f32 %v3930_v61 }
 0xf16   :  { %9331 = vrcp.f32 %v3923_v12 }
 0xf1f   :  { %v9330_v58 = vpop.eup %9329 }
 0xf20   :  { %v9332_v32 = vpop.eup %9331  ;;  %v3934_v9 = vmul.f32 %v9330_v58, %v9326_v13 }
 0xf21   :  { %v3933_v53 = vmul.f32 %v9332_v32, %v9328_v59 }
 0xf23   :  { %8837 = vmatprep.mubr.msk.f32.mxu0 %vm728_vm7, %v3933_v53 }
 0xf24   :  { %8838 = vmatmul.mubr.msk.f32.vlgmr.msra.gmra.mrb[74].mxu0 %vm728_vm7, %v3934_v9  ;;  %v11108_v9 = vpop.permute.xlu1 %4132 }
 0xf25   :  { %8844 = vmatprep.mubr.msk.bf16.mxu0 %vm9486_vm2, %v9485_v3  ;;  %8841 = vmatpush3.bf16.msra.mxu0 %v11062_v26 }
 0xf26   :  { %8842 = vmatprep.subr.bf16.mxu0 %v9485_v3 }
 0xf29   :  { %8843 = vmatpush3.bf16.msra.mxu0 %v11072_v57 }
 0xf2a   :  { %9125 = vmatprep.subr.msk.bf16.mxu0 %vm9659_vm10, %v12016_v15 }
 0xff7   :  { %v8839_v10 = vpop.f32.mrb[74].mxu0 }
 0xff8   :  { %v4025_v41 = vmul.f32 %v8839_v10, %v11080_v16  ;;  %v4007_v52 = vpop.f32.mrb[75].mxu0 }
 0xff9   :  { %v4024_v45 = vmul.f32 %v11078_v35, %v4007_v52 }
 0xffa   :  { %v4033_v21 = vsel %vm206_vm3, %v4025_v41, 0.0 }
 0xffb   :  { %v4034_v33 = vrot.slane %v4033_v21, 4  ;;  %v4026_v28 = vsel %vm206_vm3, %v4024_v45, 0.0 }
 0xffc   :  { %v4027_v62 = vrot.slane %v4026_v28, 4 }
 0xffd   :  { %v4035_v51 = vadd.f32 %v4034_v33, %v4033_v21 }
 0xffe   :  { %v4028_v36 = vadd.f32 %v4027_v62, %v4026_v28 }
 0xfff   :  { %v4036_v44 = vrot.slane %v4035_v51, 2 }
0x1000   :  { %v4029_v48 = vrot.slane %v4028_v36, 2 }
0x1001   :  { %v4037_v23 = vadd.f32 %v4036_v44, %v4035_v51 }
0x1002   :  { %v4030_v63 = vadd.f32 %v4029_v48, %v4028_v36 }
0x1003   :  { %v4038_v46 = vrot.slane %v4037_v23, 1 }
0x1004   :  { %v4031_v7 = vrot.slane %v4030_v63, 1 }
0x1005   :  { %v4039_v0 = vadd.f32 %v4038_v46, %v4037_v23 }
0x1006   :  { %v4032_v13 = vadd.f32 %v4031_v7, %v4030_v63 }
0x1007   :  { %v4045_v59 = vpack.c.bf16 %v4039_v0, %v4039_v0 }
0x1008   :  { %v4044_v11 = vpack.c.bf16 %v4032_v13, %v4032_v13 }
0x1009   :  { %v4051_v31 = vunpack.c.l.b16 %v4045_v59 }
0x100a   :  { %v4050_v27 = vunpack.c.l.b16 %v4044_v11 }
0x100c   :  { %v4052_v38 = vsel %vm1404_vm8, %v4051_v31, %v4050_v27 }
0x100d   :  { %v4053_v40 = vpack.c.b16 %v4052_v38, %v4052_v38 }
0x100f   :  { %8845 = vmatmul.mubr.msk.bf16.vlgmr.msra.gmra.mrb[76].mxu0 %vm206_vm3, %v4053_v40 }
0x1010   :  { %9127 = vmatpush3.bf16.msk.msra.mxu0 %vm9659_vm10, %v12016_v15 }
0x1011   :  { %9129 = vmatprep.subr.msk.bf16.mxu0 %vm9669_vm1, %v12016_v15 }
0x1014   :  { %9131 = vmatpush3.bf16.msk.msra.mxu0 %vm9669_vm1, %v12016_v15 }
0x1015   :  { %8871 = vmatprep.subr.msk.mxu0 %vm9740_vm6, %v12017_v30 }
0x10e2   :  { %v4091_v24 = vpop.f32.mrb[76].mxu0 }
0x10e3   :  { %v4104_v42 = vrot.slane %v4091_v24, %v9681_v43  ;;  %v8846_v22 = vpop.f32.mrb[77].mxu0 }
0x10e4   :  { %v4094_v4 = vpop.f32.mrb[78].mxu0 }
0x10e5   :  { %v4105_v20 = vcombine.high %v4104_v42, %v4104_v42  ;;  %v4112_v49 = vrot.slane %v4104_v42, %v9681_v43  ;;  %v8847_v61 = vpop.f32.mrb[79].mxu0 }
0x10e7   :  { %v4119_v12 = vrot.slane %v4105_v20, %v9681_v43  ;;  %v4123_v58 = vrot.slane %v4112_v49, %v9689_v56 }
0x10e9   :  { %v4136_v32 = vmul.f32 %v11101_v60, %v4123_v58  ;;  %v4127_v53 = vrot.slane %v4119_v12, %v9689_v56 }
0x10eb   :  { %v4138_v6 = vsel %vm206_vm3, %v4136_v32, 0.0  ;;  %v4137_v1 = vmul.f32 %v11108_v9, %v4127_v53 }
0x10ec   :  { %4139 = vadd.xlane.f32.xlu0 %v4138_v6 }
0x10ed   :  { %v4141_v19 = vsel %vm206_vm3, %v4137_v1, 0.0 }
0x10ee   :  { %4142 = vadd.xlane.f32.xlu1 %v4141_v19 }
0x1179   :  { %v4140_v25 = vpop.xlane.xlu0 %4139 }
0x117a   :  { %v4144_v10 = vmul.f32 0.17677669, %v4140_v25 }
0x117b   :  { %v4143_v41 = vpop.xlane.xlu1 %4142 }
0x117c   :  { %9333 = vtanh.f32 %v4144_v10  ;;  %v4145_v52 = vmul.f32 0.17677669, %v4143_v41 }
0x117e   :  { %9335 = vtanh.f32 %v4145_v52 }
0x1186   :  { %v9334_v45 = vpop.eup %9333 }
0x1187   :  { %v4148_v21 = vmul.f32 10.0, %v9334_v45 }
0x1188   :  { %v9336_v33 = vpop.eup %9335 }
0x1189   :  { %v4150_v28 = vrot.slane %v4148_v21, 4  ;;  %v4149_v62 = vmul.f32 10.0, %v9336_v33 }
0x118b   :  { %v4151_v51 = vmax.f32 %v4148_v21, %v4150_v28  ;;  %v4156_v36 = vrot.slane %v4149_v62, 4 }
0x118d   :  { %v4152_v44 = vrot.slane %v4151_v51, 2  ;;  %v4157_v48 = vmax.f32 %v4149_v62, %v4156_v36 }
0x118f   :  { %v4153_v23 = vmax.f32 %v4151_v51, %v4152_v44  ;;  %v4158_v63 = vrot.slane %v4157_v48, 2 }
0x1191   :  { %v4154_v46 = vrot.slane %v4153_v23, 1  ;;  %v4159_v7 = vmax.f32 %v4157_v48, %v4158_v63 }
0x1193   :  { %v4155_v0 = vmax.f32 %v4153_v23, %v4154_v46  ;;  %v4160_v13 = vrot.slane %v4159_v7, 1 }
0x1195   :  { %v4162_v59 = vsub.f32 %v4148_v21, %v4155_v0  ;;  %v4161_v11 = vmax.f32 %v4159_v7, %v4160_v13 }
0x1197   :  { %v4164_v31 = vmul.f32 1.442695, %v4162_v59  ;;  %v4163_v27 = vsub.f32 %v4149_v62, %v4161_v11 }
0x1199   :  { %9337 = vpow2.f32 %v4164_v31  ;;  %v4166_v38 = vmul.f32 1.442695, %v4163_v27 }
0x119b   :  { %9339 = vpow2.f32 %v4166_v38 }
0x11a3   :  { %v9338_v40 = vpop.eup %9337 }
0x11a4   :  { %v4168_v24 = vrot.slane %v9338_v40, 4 }
0x11a5   :  { %v9340_v42 = vpop.eup %9339 }
0x11a6   :  { %v4169_v22 = vadd.f32 %v9338_v40, %v4168_v24  ;;  %v4174_v4 = vrot.slane %v9340_v42, 4 }
0x11a8   :  { %v4170_v20 = vrot.slane %v4169_v22, 2  ;;  %v4175_v49 = vadd.f32 %v9340_v42, %v4174_v4 }
0x11aa   :  { %v4171_v61 = vadd.f32 %v4170_v20, %v4169_v22  ;;  %v4176_v12 = vrot.slane %v4175_v49, 2 }
0x11ac   :  { %v4172_v58 = vrot.slane %v4171_v61, 1  ;;  %v4177_v32 = vadd.f32 %v4176_v12, %v4175_v49 }
0x11ae   :  { %v4173_v53 = vadd.f32 %v4172_v58, %v4171_v61  ;;  %v4178_v6 = vrot.slane %v4177_v32, 1 }
0x11b0   :  { %9341 = vlog2.f32 %v4173_v53  ;;  %v4179_v1 = vadd.f32 %v4178_v6, %v4177_v32 }
0x11b2   :  { %9343 = vlog2.f32 %v4179_v1 }
0x11ba   :  { %v9342_v19 = vpop.eup %9341 }
0x11bb   :  { %v4181_v25 = vmul.f32 0.6931472, %v9342_v19 }
0x11bc   :  { %v9344_v10 = vpop.eup %9343 }
0x11bd   :  { %v4184_v41 = vadd.f32 %v4181_v25, %v4155_v0  ;;  %v4183_v52 = vmul.f32 0.6931472, %v9344_v10 }
0x11bf   :  { %v4186_v45 = vsub.f32 %v4148_v21, %v4184_v41  ;;  %v4185_v33 = vadd.f32 %v4183_v52, %v4161_v11 }
0x11c1   :  { %v4188_v28 = vrot.slane %v4186_v45, 4  ;;  %v4187_v51 = vsub.f32 %v4149_v62, %v4185_v33 }
0x11c3   :  { %v4189_v36 = vmax.f32 %v4186_v45, %v4188_v28  ;;  %v4194_v44 = vrot.slane %v4187_v51, 4 }
0x11c5   :  { %v4190_v48 = vrot.slane %v4189_v36, 2  ;;  %v4195_v23 = vmax.f32 %v4187_v51, %v4194_v44 }
0x11c7   :  { %v4191_v63 = vmax.f32 %v4189_v36, %v4190_v48  ;;  %v4196_v46 = vrot.slane %v4195_v23, 2 }
0x11c9   :  { %v4192_v7 = vrot.slane %v4191_v63, 1  ;;  %v4197_v13 = vmax.f32 %v4195_v23, %v4196_v46 }
0x11cb   :  { %v4193_v59 = vmax.f32 %v4191_v63, %v4192_v7  ;;  %v4198_v31 = vrot.slane %v4197_v13, 1 }
0x11cd   :  { %vm4200_vm4 = vcmp.ge.f32.partialorder %v4186_v45, %v4193_v59  ;;  %v4199_v27 = vmax.f32 %v4197_v13, %v4198_v31 }
0x11ce   :  { %v4202_v38 = vsel %vm4200_vm4, %v9648_v29, 8 }
0x11cf   :  { %v4204_v0 = vrot.slane %v4202_v38, 4  ;;  %vm4201_vm5 = vcmp.ge.f32.partialorder %v4187_v51, %v4199_v27 }
0x11d0   :  { %v4203_v21 = vsel %vm4201_vm5, %v9648_v29, 8 }
0x11d1   :  { %vm4205_vm9 = vcmp.lt.s32.totalorder %v4202_v38, %v4204_v0  ;;  %v4213_v62 = vrot.slane %v4203_v21, 4 }
0x11d2   :  { %v4206_v11 = vsel %vm4205_vm9, %v4202_v38, %v4204_v0 }
0x11d3   :  { %v4207_v40 = vrot.slane %v4206_v11, 2  ;;  %vm4214_vm11 = vcmp.lt.s32.totalorder %v4203_v21, %v4213_v62 }
0x11d4   :  { %v4215_v24 = vsel %vm4214_vm11, %v4203_v21, %v4213_v62 }
0x11d5   :  { %vm4208_vm12 = vcmp.lt.s32.totalorder %v4206_v11, %v4207_v40  ;;  %v4216_v42 = vrot.slane %v4215_v24, 2 }
0x11d6   :  { %v4209_v22 = vsel %vm4208_vm12, %v4206_v11, %v4207_v40 }
0x11d7   :  { %v4210_v4 = vrot.slane %v4209_v22, 1  ;;  %vm4217_vm13 = vcmp.lt.s32.totalorder %v4215_v24, %v4216_v42 }
0x11d8   :  { %v4218_v20 = vsel %vm4217_vm13, %v4215_v24, %v4216_v42  ;;  %vm4242_vm13 = vcmp.eq.s32.totalorder %v9648_v29, 0 }
0x11d9   :  { %vm4211_vm14 = vcmp.lt.s32.totalorder %v4209_v22, %v4210_v4  ;;  %v4219_v49 = vrot.slane %v4218_v20, 1 }
0x11da   :  { %v11115_v61 = vsel %vm4211_vm14, %v4209_v22, %v4210_v4 }
0x11db   :  { %vm4222_vm15 = vcmp.eq.s32.totalorder %v9648_v29, %v11115_v61  ;;  %vm4220_vm4 = vcmp.lt.s32.totalorder %v4218_v20, %v4219_v49 }
0x11dc   :  { %v11120_v12 = vsel %vm4222_vm15, 1.0, %v9485_v3  ;;  %v11122_v58 = vsel %vm4220_vm4, %v4218_v20, %v4219_v49  ;;  %vm4770_vm4 = vcmp.eq.s32.totalorder %v9648_v29, 1 }
0x11dd   :  { %v11125_v32 = vmul.f32 %v11120_v12, %v4186_v45  ;;  %v4253_v53 = vmul.f32 %v11120_v12, %v10943_v50  ;;  %vm4223_vm5 = vcmp.eq.s32.totalorder %v9648_v29, %v11122_v58 }
0x11de   :  { %v11132_v6 = vsel %vm4223_vm5, 1.0, %v9485_v3 }
0x11df   :  { %v11135_v1 = vmul.f32 %v11132_v6, %v4187_v51  ;;  %v4254_v19 = vmul.f32 %v11132_v6, %v10945_v54  ;;  %v4255_v25 = vsel %vm206_vm3, %v4253_v53, 0.0 }
0x11e0   :  { %v4256_v10 = vrot.slane %v4255_v25, 4 }
0x11e1   :  { %v4262_v41 = vsel %vm206_vm3, %v4254_v19, 0.0  ;;  %v4252_v19 = vmax.f32 %v11132_v6, 0.0 }
0x11e2   :  { %v4257_v52 = vadd.f32 %v4256_v10, %v4255_v25  ;;  %v4263_v45 = vrot.slane %v4262_v41, 4  ;;  %v4251_v25 = vmax.f32 %v11120_v12, 0.0 }
0x11e3   :  { %v11175_v10 = vmul.f32 -1e+09, %v4252_v19 }
0x11e4   :  { %v4258_v33 = vrot.slane %v4257_v52, 2  ;;  %v4264_v28 = vadd.f32 %v4263_v45, %v4262_v41 }
0x11e6   :  { %v4259_v36 = vadd.f32 %v4258_v33, %v4257_v52  ;;  %v4265_v44 = vrot.slane %v4264_v28, 2  ;;  %v11179_v52 = vmul.f32 -1e+09, %v4251_v25 }
0x11e8   :  { %v4260_v48 = vrot.slane %v4259_v36, 1  ;;  %v4266_v23 = vadd.f32 %v4265_v44, %v4264_v28 }
0x11ea   :  { %v4267_v63 = vrot.slane %v4266_v23, 1  ;;  %v4261_v46 = vadd.f32 %v4260_v48, %v4259_v36 }
0x11ec   :  { %v4268_v51 = vadd.f32 %v4267_v63, %v4266_v23 }
0x11ee   :  { %v11142_v7 = vsel %vm1404_vm8, %v4268_v51, %v4261_v46 }
0x11ef   :  { %4273 = vrot.lane.b32.xlu0 %v11142_v7, %s9493_s14 }
0x1261   :  { %v4274_v13 = vpop.permute.xlu0 %4273 }
0x1262   :  { %v4276_v59 = vsel %vm206_vm3, %v11142_v7, %v4274_v13 }
0x1263   :  { %v4277_v31 = vpack.c.bf16 %v4276_v59, %v4276_v59 }
0x1265   :  { %8857 = vmatmul.mubr.msk.bf16.vlgmr.msra.gmra.mrb[72].mxu1 %vm3735_vm0, %v4277_v31 }
0x1266   :  { %8877 = vmatpush3.bf16.msra.mxu1 %v11062_v26  ;;  %8880 = vmatprep.mubr.msk.bf16.mxu1 %vm9486_vm2, %v9485_v3 }
0x1267   :  { %8878 = vmatprep.subr.bf16.mxu1 %v9485_v3 }
0x126a   :  { %8879 = vmatpush3.bf16.msra.mxu1 %v11072_v57 }
0x126b   :  { %9133 = vmatprep.subr.msk.bf16.mxu1 %vm9659_vm10, %v12016_v15 }
0x1338   :  { %v4315_v27 = vpop.f32.mrb[72].mxu1 }
0x1339   :  { %v4321_v38 = vadd.f32 %v4315_v27, %v11032_v14  ;;  %v8858_v0 = vpop.f32.mrb[73].mxu1 }
0x133a   :  { %v4318_v21 = vpop.f32.mrb[74].mxu1 }
0x133b   :  { %v4322_v62 = vmul.f32 0.5, %v4321_v38  ;;  %v8859_v11 = vpop.f32.mrb[75].mxu1 }
0x133d   :  { %v4330_v40 = vrot.slane %v4322_v62, %v9681_v43 }
0x133f   :  { %v4331_v24 = vcombine.high %v4330_v40, %v4330_v40  ;;  %v4338_v42 = vrot.slane %v4330_v40, %v9681_v43 }
0x1341   :  { %v4345_v22 = vrot.slane %v4331_v24, %v9681_v43  ;;  %v4349_v4 = vrot.slane %v4338_v42, %v9689_v56 }
0x1343   :  { %v4353_v20 = vrot.slane %v4345_v22, %v9689_v56  ;;  %v4356_v49 = vmul.f32 %v4349_v4, %v11024_v17 }
0x1345   :  { %v4357_v53 = vmul.f32 %v4353_v20, %v11028_v55  ;;  %8868 = vmatprep.mubr.msk.f32.mxu0 %vm206_vm3, %v4356_v49 }
0x1347   :  { %8869 = vmatmul.mubr.msk.f32.vlgmr.msra.gmra.mrb[80].mxu0 %vm206_vm3, %v4357_v53 }
0x1348   :  { %8872 = vmatpush3.msk.msra.mxu0 %vm9740_vm6, %v12017_v30 }
0x1349   :  { %8884 = vmatprep.subr.bf16.mxu0 %v9485_v3 }
0x141a   :  { %v8870_v41 = vpop.f32.mrb[80].mxu0 }
0x141b   :  { %v4442_v45 = vadd.f32 %v8870_v41, %v11175_v10  ;;  %v4430_v33 = vpop.f32.mrb[81].mxu0 }
0x141c   :  { %v4441_v28 = vadd.f32 %v11179_v52, %v4430_v33 }
0x141d   :  { %v4450_v36 = vsel %vm728_vm7, %v4442_v45, -inf }
0x141e   :  { %v4451_v44 = vrot.slane %v4450_v36, 4  ;;  %v4443_v48 = vsel %vm728_vm7, %v4441_v28, -inf }
0x141f   :  { %v4444_v23 = vrot.slane %v4443_v48, 4 }
0x1420   :  { %v4452_v63 = vmax.f32 %v4450_v36, %v4451_v44 }
0x1421   :  { %v4445_v46 = vmax.f32 %v4443_v48, %v4444_v23 }
0x1422   :  { %v4453_v51 = vrot.slane %v4452_v63, 2 }
0x1423   :  { %v4446_v13 = vrot.slane %v4445_v46, 2 }
0x1424   :  { %v4454_v59 = vmax.f32 %v4452_v63, %v4453_v51 }
0x1425   :  { %v4447_v31 = vmax.f32 %v4445_v46, %v4446_v13 }
0x1426   :  { %v4455_v27 = vrot.slane %v4454_v59, 1 }
0x1427   :  { %v4448_v38 = vrot.slane %v4447_v31, 1 }
0x1428   :  { %v4456_v0 = vmax.f32 %v4454_v59, %v4455_v27 }
0x1429   :  { %v4449_v21 = vmax.f32 %v4447_v31, %v4448_v38 }
0x142a   :  { %v4458_v62 = vsub.f32 %v4442_v45, %v4456_v0 }
0x142b   :  { %v4457_v11 = vsub.f32 %v4441_v28, %v4449_v21 }
0x142c   :  { %v4461_v40 = vmul.f32 1.442695, %v4458_v62 }
0x142d   :  { %v4459_v24 = vmul.f32 1.442695, %v4457_v11 }
0x142e   :  { %9345 = vpow2.f32 %v4461_v40 }
0x142f   :  { %9347 = vpow2.f32 %v4459_v24 }
0x1438   :  { %v9346_v42 = vpop.eup %9345 }
0x1439   :  { %v9348_v22 = vpop.eup %9347  ;;  %v4470_v4 = vsel %vm728_vm7, %v9346_v42, 0.0 }
0x143a   :  { %v4471_v20 = vrot.slane %v4470_v4, 4  ;;  %v4463_v49 = vsel %vm728_vm7, %v9348_v22, 0.0 }
0x143b   :  { %v4464_v53 = vrot.slane %v4463_v49, 4 }
0x143c   :  { %v4472_v41 = vadd.f32 %v4471_v20, %v4470_v4 }
0x143d   :  { %v4465_v33 = vadd.f32 %v4464_v53, %v4463_v49 }
0x143e   :  { %v4473_v36 = vrot.slane %v4472_v41, 2 }
0x143f   :  { %v4466_v44 = vrot.slane %v4465_v33, 2 }
0x1440   :  { %v4474_v48 = vadd.f32 %v4473_v36, %v4472_v41 }
0x1441   :  { %v4467_v23 = vadd.f32 %v4466_v44, %v4465_v33 }
0x1442   :  { %v4475_v45 = vrot.slane %v4474_v48, 1 }
0x1443   :  { %v4468_v28 = vrot.slane %v4467_v23, 1 }
0x1444   :  { %v4476_v63 = vadd.f32 %v4475_v45, %v4474_v48 }
0x1445   :  { %v4469_v46 = vadd.f32 %v4468_v28, %v4467_v23 }
0x1446   :  { %9349 = vrcp.f32 %v4476_v63 }
0x1447   :  { %9351 = vrcp.f32 %v4469_v46 }
0x1450   :  { %v9350_v51 = vpop.eup %9349 }
0x1451   :  { %v9352_v13 = vpop.eup %9351  ;;  %v4480_v31 = vmul.f32 %v9350_v51, %v9346_v42 }
0x1452   :  { %v4479_v59 = vmul.f32 %v9352_v13, %v9348_v22 }
0x1454   :  { %8873 = vmatprep.mubr.msk.f32.mxu0 %vm728_vm7, %v4479_v59 }
0x1455   :  { %8874 = vmatmul.mubr.msk.f32.vlgmr.msra.gmra.mrb[82].mxu0 %vm728_vm7, %v4480_v31 }
0x1456   :  { %8885 = vmatpush3.bf16.msra.mxu0 %v10973_v47  ;;  %8892 = vmatprep.mubr.msk.bf16.mxu0 %vm9486_vm2, %v9485_v3 }
0x1457   :  { %8886 = vmatprep.subr.bf16.mxu0 %v9485_v3 }
0x145a   :  { %8887 = vmatpush3.bf16.msra.mxu0 %v10983_v34 }
0x145b   :  { %8888 = vmatprep.subr.bf16.mxu0 %v9485_v3 }
0x145e   :  { %8889 = vmatpush3.bf16.msra.mxu0 %v10995_v2 }
0x145f   :  { %8890 = vmatprep.subr.bf16.mxu0 %v9485_v3 }
0x1462   :  { %8891 = vmatpush3.bf16.msra.mxu0 %v11005_v18 }
0x1463   :  { %8912 = vmatprep.subr.bf16.mxu0 %v9485_v3 }
0x1528   :  { %v8875_v27 = vpop.f32.mrb[82].mxu0 }
0x1529   :  { %v4563_v38 = vmul.f32 %v8875_v27, %v11080_v16  ;;  %v4553_v0 = vpop.f32.mrb[83].mxu0 }
0x152a   :  { %v4562_v21 = vmul.f32 %v4553_v0, %v11078_v35 }
0x152b   :  { %v4571_v62 = vsel %vm206_vm3, %v4563_v38, 0.0 }
0x152c   :  { %v4572_v11 = vrot.slane %v4571_v62, 4  ;;  %v4564_v40 = vsel %vm206_vm3, %v4562_v21, 0.0 }
0x152d   :  { %v4565_v24 = vrot.slane %v4564_v40, 4 }
0x152e   :  { %v4573_v42 = vadd.f32 %v4572_v11, %v4571_v62 }
0x152f   :  { %v4566_v22 = vadd.f32 %v4565_v24, %v4564_v40 }
0x1530   :  { %v4574_v4 = vrot.slane %v4573_v42, 2 }
0x1531   :  { %v4567_v20 = vrot.slane %v4566_v22, 2 }
0x1532   :  { %v4575_v49 = vadd.f32 %v4574_v4, %v4573_v42 }
0x1533   :  { %v4568_v53 = vadd.f32 %v4567_v20, %v4566_v22 }
0x1534   :  { %v4576_v41 = vrot.slane %v4575_v49, 1 }
0x1535   :  { %v4569_v33 = vrot.slane %v4568_v53, 1 }
0x1536   :  { %v4577_v36 = vadd.f32 %v4576_v41, %v4575_v49 }
0x1537   :  { %v4570_v44 = vadd.f32 %v4569_v33, %v4568_v53 }
0x1538   :  { %v4579_v48 = vpack.c.bf16 %v4577_v36, %v4577_v36 }
0x1539   :  { %v4578_v23 = vpack.c.bf16 %v4570_v44, %v4570_v44 }
0x153a   :  { %v4583_v45 = vunpack.c.l.b16 %v4579_v48 }
0x153b   :  { %v4582_v28 = vunpack.c.l.b16 %v4578_v23 }
0x153d   :  { %v4584_v63 = vsel %vm1404_vm8, %v4583_v45, %v4582_v28 }
0x153e   :  { %v4585_v46 = vpack.c.b16 %v4584_v63, %v4584_v63 }
0x1540   :  { %8881 = vmatmul.mubr.msk.bf16.vlgmr.msra.gmra.mrb[76].mxu1 %vm206_vm3, %v4585_v46 }
0x1541   :  { %9135 = vmatpush3.bf16.msk.msra.mxu1 %vm9659_vm10, %v12016_v15 }
0x1542   :  { %9137 = vmatprep.subr.msk.bf16.mxu1 %vm9669_vm1, %v12016_v15 }
0x1545   :  { %9139 = vmatpush3.bf16.msk.msra.mxu1 %vm9669_vm1, %v12016_v15 }
0x1546   :  { %8907 = vmatprep.subr.msk.mxu1 %vm9740_vm6, %v12017_v30 }
0x1613   :  { %v4623_v51 = vpop.f32.mrb[76].mxu1 }
0x1614   :  { %v4636_v13 = vrot.slane %v4623_v51, %v9681_v43  ;;  %v8882_v59 = vpop.f32.mrb[77].mxu1 }
0x1615   :  { %v4626_v31 = vpop.f32.mrb[78].mxu1 }
0x1616   :  { %v4637_v27 = vcombine.high %v4636_v13, %v4636_v13  ;;  %v4644_v38 = vrot.slane %v4636_v13, %v9681_v43  ;;  %v8883_v0 = vpop.f32.mrb[79].mxu1 }
0x1618   :  { %v4651_v21 = vrot.slane %v4637_v27, %v9681_v43  ;;  %v4655_v62 = vrot.slane %v4644_v38, %v9689_v56 }
0x161a   :  { %v4662_v11 = vmul.f32 %v4655_v62, %v11101_v60  ;;  %v4659_v40 = vrot.slane %v4651_v21, %v9689_v56 }
0x161c   :  { %v4664_v24 = vsel %vm206_vm3, %v4662_v11, 0.0  ;;  %v4663_v42 = vmul.f32 %v4659_v40, %v11108_v9 }
0x161d   :  { %4665 = vadd.xlane.f32.xlu1 %v4664_v24 }
0x161e   :  { %v4667_v22 = vsel %vm206_vm3, %v4663_v42, 0.0 }
0x1621   :  { %4668 = vadd.xlane.f32.xlu1 %v4667_v22 }
0x16aa   :  { %v4666_v4 = vpop.xlane.xlu1 %4665 }
0x16ab   :  { %v4670_v20 = vmul.f32 0.17677669, %v4666_v4 }
0x16ad   :  { %9353 = vtanh.f32 %v4670_v20 }
0x16ae   :  { %v4669_v49 = vpop.xlane.xlu1 %4668 }
0x16af   :  { %v4671_v53 = vmul.f32 0.17677669, %v4669_v49 }
0x16b1   :  { %9355 = vtanh.f32 %v4671_v53 }
0x16b7   :  { %v9354_v41 = vpop.eup %9353 }
0x16b8   :  { %v4674_v33 = vmul.f32 10.0, %v9354_v41 }
0x16ba   :  { %v4676_v36 = vadd.f32 %v4674_v33, %v11179_v52 }
0x16bb   :  { %v9356_v44 = vpop.eup %9355 }
0x16bc   :  { %v4678_v48 = vrot.slane %v4676_v36, 4  ;;  %v4675_v23 = vmul.f32 10.0, %v9356_v44 }
0x16be   :  { %v4679_v45 = vmax.f32 %v4676_v36, %v4678_v48  ;;  %v4677_v28 = vadd.f32 %v4675_v23, %v11175_v10 }
0x16c0   :  { %v4680_v63 = vrot.slane %v4679_v45, 2  ;;  %v4684_v46 = vrot.slane %v4677_v28, 4 }
0x16c2   :  { %v4681_v51 = vmax.f32 %v4679_v45, %v4680_v63  ;;  %v4685_v13 = vmax.f32 %v4677_v28, %v4684_v46 }
0x16c4   :  { %v4682_v59 = vrot.slane %v4681_v51, 1  ;;  %v4686_v31 = vrot.slane %v4685_v13, 2 }
0x16c6   :  { %v4683_v27 = vmax.f32 %v4681_v51, %v4682_v59  ;;  %v4687_v38 = vmax.f32 %v4685_v13, %v4686_v31 }
0x16c8   :  { %v4690_v0 = vsub.f32 %v4676_v36, %v4683_v27  ;;  %v4688_v21 = vrot.slane %v4687_v38, 1 }
0x16ca   :  { %v4692_v62 = vmul.f32 1.442695, %v4690_v0  ;;  %v4689_v11 = vmax.f32 %v4687_v38, %v4688_v21 }
0x16cc   :  { %9357 = vpow2.f32 %v4692_v62  ;;  %v4691_v52 = vsub.f32 %v4677_v28, %v4689_v11 }
0x16ce   :  { %v4694_v40 = vmul.f32 1.442695, %v4691_v52 }
0x16d0   :  { %9359 = vpow2.f32 %v4694_v40 }
0x16d6   :  { %v9358_v24 = vpop.eup %9357 }
0x16d7   :  { %v4696_v42 = vrot.slane %v9358_v24, 4 }
0x16d9   :  { %v4697_v22 = vadd.f32 %v9358_v24, %v4696_v42 }
0x16da   :  { %v9360_v10 = vpop.eup %9359 }
0x16db   :  { %v4698_v4 = vrot.slane %v4697_v22, 2  ;;  %v4702_v20 = vrot.slane %v9360_v10, 4 }
0x16dd   :  { %v4699_v49 = vadd.f32 %v4698_v4, %v4697_v22  ;;  %v4703_v53 = vadd.f32 %v9360_v10, %v4702_v20 }
0x16df   :  { %v4700_v41 = vrot.slane %v4699_v49, 1  ;;  %v4704_v33 = vrot.slane %v4703_v53, 2 }
0x16e1   :  { %v4701_v44 = vadd.f32 %v4700_v41, %v4699_v49  ;;  %v4705_v48 = vadd.f32 %v4704_v33, %v4703_v53 }
0x16e3   :  { %9361 = vlog2.f32 %v4701_v44  ;;  %v4706_v23 = vrot.slane %v4705_v48, 1 }
0x16e5   :  { %v4707_v45 = vadd.f32 %v4706_v23, %v4705_v48  ;;  %v4236_v23 = vrot.slane %v11135_v1, 4 }
0x16e7   :  { %9363 = vlog2.f32 %v4707_v45 }
0x16ed   :  { %v9362_v63 = vpop.eup %9361 }
0x16ee   :  { %v4709_v46 = vmul.f32 0.6931472, %v9362_v63 }
0x16f0   :  { %v4712_v51 = vadd.f32 %v4709_v46, %v4683_v27 }
0x16f1   :  { %v9364_v13 = vpop.eup %9363 }
0x16f2   :  { %v4714_v59 = vsub.f32 %v4676_v36, %v4712_v51  ;;  %v4711_v31 = vmul.f32 0.6931472, %v9364_v13  ;;  %v4230_v36 = vrot.slane %v11125_v32, 4  ;;  %v4243_v13 = vsel %vm4242_vm13, 1, %v9490_v8 }
0x16f4   :  { %v4716_v38 = vrot.slane %v4714_v59, 4  ;;  %v4713_v0 = vadd.f32 %v4711_v31, %v4689_v11  ;;  %v4231_v48 = vadd.f32 %v4230_v36, %v11125_v32  ;;  %v4771_v31 = vsel %vm4770_vm4, 1, %v9490_v8 }
0x16f6   :  { %v4717_v21 = vmax.f32 %v4714_v59, %v4716_v38  ;;  %v4715_v62 = vsub.f32 %v4677_v28, %v4713_v0  ;;  %v4232_v38 = vrot.slane %v4231_v48, 2  ;;  %v4237_v0 = vadd.f32 %v4236_v23, %v11135_v1 }
0x16f8   :  { %v4718_v52 = vrot.slane %v4717_v21, 2  ;;  %v4722_v40 = vrot.slane %v4715_v62, 4  ;;  %v4233_v1 = vadd.f32 %v4232_v38, %v4231_v48 }
0x16fa   :  { %v4719_v24 = vmax.f32 %v4717_v21, %v4718_v52  ;;  %v4723_v42 = vmax.f32 %v4715_v62, %v4722_v40  ;;  %v4249_v52 = vmul.u32 %v4243_v13, %v11115_v61 }
0x16fc   :  { %v4720_v22 = vrot.slane %v4719_v24, 1  ;;  %v4724_v10 = vrot.slane %v4723_v42, 2 }
0x16fe   :  { %v4721_v4 = vmax.f32 %v4719_v24, %v4720_v22  ;;  %v4725_v20 = vmax.f32 %v4723_v42, %v4724_v10 }
0x1700   :  { %vm4728_vm9 = vcmp.ge.f32.partialorder %v4714_v59, %v4721_v4  ;;  %v4726_v49 = vrot.slane %v4725_v20, 1 }
0x1701   :  { %v4730_v53 = vsel %vm4728_vm9, %v9648_v29, 8 }
0x1702   :  { %v4732_v27 = vrot.slane %v4730_v53, 4  ;;  %v4727_v41 = vmax.f32 %v4725_v20, %v4726_v49  ;;  %v4238_v20 = vrot.slane %v4237_v0, 2  ;;  %v4250_v49 = vmul.u32 %v4243_v13, %v11122_v58 }
0x1703   :  { %v4234_v58 = vrot.slane %v4233_v1, 1 }
0x1704   :  { %vm4729_vm11 = vcmp.ge.f32.partialorder %v4715_v62, %v4727_v41  ;;  %vm4733_vm12 = vcmp.lt.s32.totalorder %v4730_v53, %v4732_v27  ;;  %v4239_v23 = vadd.f32 %v4238_v20, %v4237_v0  ;;  %v8195_v0 = vsel %vm4770_vm4, 1.0, %v9485_v3 }
0x1705   :  { %v4731_v28 = vsel %vm4729_vm11, %v9648_v29, 8  ;;  %v4734_v11 = vsel %vm4733_vm12, %v4730_v53, %v4732_v27 }
0x1706   :  { %v4741_v33 = vrot.slane %v4731_v28, 4  ;;  %v4735_v44 = vrot.slane %v4734_v11, 2 }
0x1708   :  { %vm4736_vm14 = vcmp.lt.s32.totalorder %v4734_v11, %v4735_v44  ;;  %vm4742_vm15 = vcmp.lt.s32.totalorder %v4731_v28, %v4741_v33 }
0x1709   :  { %v4737_v45 = vsel %vm4736_vm14, %v4734_v11, %v4735_v44  ;;  %v4743_v63 = vsel %vm4742_vm15, %v4731_v28, %v4741_v33 }
0x170a   :  { %v4738_v46 = vrot.slane %v4737_v45, 1  ;;  %v4744_v51 = vrot.slane %v4743_v63, 2 }
0x170c   :  { %vm4739_vm5 = vcmp.lt.s32.totalorder %v4737_v45, %v4738_v46  ;;  %vm4745_vm9 = vcmp.lt.s32.totalorder %v4743_v63, %v4744_v51 }
0x170d   :  { %v4740_v32 = vsel %vm4739_vm5, %v4737_v45, %v4738_v46  ;;  %v4746_v21 = vsel %vm4745_vm9, %v4743_v63, %v4744_v51 }
0x170e   :  { %v4747_v40 = vrot.slane %v4746_v21, 1  ;;  %vm4750_vm11 = vcmp.eq.s32.totalorder %v9648_v29, %v4740_v32  ;;  %v4777_v24 = vmul.u32 %v4771_v31, %v4740_v32 }
0x170f   :  { %v11245_v42 = vsel %vm4750_vm11, 1.0, %v9485_v3  ;;  %vm5299_vm11 = vcmp.eq.s32.totalorder %v9648_v29, 2 }
0x1710   :  { %vm4748_vm12 = vcmp.lt.s32.totalorder %v4746_v21, %v4747_v40  ;;  %v4756_v22 = vmul.f32 %v11245_v42, %v4714_v59  ;;  %v11248_v10 = vadd.s32 %v4777_v24, %v4249_v52  ;;  %v4783_v4 = vmul.f32 %v11245_v42, %v10943_v50 }
0x1711   :  { %v4749_v61 = vsel %vm4748_vm12, %v4746_v21, %v4747_v40  ;;  %v4235_v52 = vadd.f32 %v4234_v58, %v4233_v1  ;;  %v4240_v40 = vrot.slane %v4239_v23, 1 }
0x1712   :  { %vm4751_vm14 = vcmp.eq.s32.totalorder %v9648_v29, %v4749_v61  ;;  %v4758_v53 = vrot.slane %v4756_v22, 4  ;;  %v4778_v27 = vmul.u32 %v4771_v31, %v4749_v61  ;;  %v4785_v41 = vsel %vm206_vm3, %v4783_v4, 0.0 }
0x1713   :  { %v11256_v36 = vsel %vm4751_vm14, 1.0, %v9485_v3  ;;  %v4786_v59 = vrot.slane %v4785_v41, 4 }
0x1714   :  { %v4759_v28 = vadd.f32 %v4758_v53, %v4756_v22  ;;  %v11258_v11 = vadd.s32 %v4778_v27, %v4250_v49  ;;  %v4784_v33 = vmul.f32 %v11256_v36, %v10945_v54  ;;  %v4757_v44 = vmul.f32 %v11256_v36, %v4715_v62 }
0x1715   :  { %v4787_v48 = vadd.f32 %v4786_v59, %v4785_v41  ;;  %v8181_v62 = vsel %vm4242_vm13, 1.0, %v9485_v3  ;;  %v4241_v27 = vadd.f32 %v4240_v40, %v4239_v23 }
0x1716   :  { %v4760_v45 = vrot.slane %v4759_v28, 2  ;;  %v4792_v63 = vsel %vm206_vm3, %v4784_v33, 0.0  ;;  %v4764_v46 = vrot.slane %v4757_v44, 4  ;;  %v4245_v41 = vmul.f32 %v8181_v62, %v4235_v52 }
0x1717   :  { %v4788_v51 = vrot.slane %v4787_v48, 2  ;;  %v4793_v13 = vrot.slane %v4792_v63, 4 }
0x1718   :  { %v4761_v31 = vadd.f32 %v4760_v45, %v4759_v28  ;;  %v4765_v38 = vadd.f32 %v4764_v46, %v4757_v44  ;;  %v4246_v45 = vmul.f32 %v8181_v62, %v4241_v27  ;;  %v11304_v27 = vmax.f32 %v4252_v19, %v11256_v36 }
0x1719   :  { %v4789_v32 = vadd.f32 %v4788_v51, %v4787_v48  ;;  %v4794_v21 = vadd.f32 %v4793_v13, %v4792_v63 }
0x171a   :  { %v4762_v24 = vrot.slane %v4761_v31, 1  ;;  %v4766_v22 = vrot.slane %v4765_v38, 2 }
0x171b   :  { %v4795_v4 = vrot.slane %v4794_v21, 2  ;;  %v4790_v61 = vrot.slane %v4789_v32, 1 }
0x171c   :  { %v4763_v20 = vadd.f32 %v4762_v24, %v4761_v31  ;;  %v4767_v49 = vadd.f32 %v4766_v22, %v4765_v38 }
0x171d   :  { %v4796_v53 = vadd.f32 %v4795_v4, %v4794_v21  ;;  %v4791_v58 = vadd.f32 %v4790_v61, %v4789_v32 }
0x171e   :  { %v4773_v59 = vmul.f32 %v8195_v0, %v4763_v20  ;;  %v4768_v1 = vrot.slane %v4767_v49, 1 }
0x171f   :  { %v4797_v28 = vrot.slane %v4796_v53, 1 }
0x1720   :  { %v11270_v33 = vadd.f32 %v4773_v59, %v4245_v41  ;;  %v4769_v44 = vadd.f32 %v4768_v1, %v4767_v49  ;;  %v11309_v41 = vmax.f32 %v4251_v25, %v11245_v42  ;;  %v11312_v59 = vmul.f32 -1e+09, %v11304_v27 }
0x1721   :  { %v4798_v48 = vadd.f32 %v4797_v28, %v4796_v53 }
0x1722   :  { %v4774_v63 = vmul.f32 %v8195_v0, %v4769_v44  ;;  %v11315_v28 = vmul.f32 -1e+09, %v11309_v41 }
0x1723   :  { %v4801_v46 = vsel %vm1404_vm8, %v4798_v48, %v4791_v58 }
0x1724   :  { %4802 = vrot.lane.b32.xlu1 %v4801_v46, %s9493_s14  ;;  %v11274_v51 = vadd.f32 %v4774_v63, %v4246_v45 }
0x1796   :  { %v4803_v13 = vpop.permute.xlu1 %4802 }
0x1797   :  { %v4805_v23 = vsel %vm206_vm3, %v11142_v7, %v4803_v13 }
0x1798   :  { %v4806_v31 = vpack.c.bf16 %v4805_v23, %v4805_v23 }
0x179a   :  { %8893 = vmatmul.mubr.msk.bf16.vlgmr.msra.gmra.mrb[84].mxu0 %vm3735_vm0, %v4806_v31 }
0x179b   :  { %8913 = vmatpush3.bf16.msra.mxu0 %v11062_v26  ;;  %8916 = vmatprep.mubr.msk.bf16.mxu0 %vm9486_vm2, %v9485_v3 }
0x179c   :  { %8914 = vmatprep.subr.bf16.mxu0 %v9485_v3 }
0x179f   :  { %8915 = vmatpush3.bf16.msra.mxu0 %v11072_v57 }
0x17a0   :  { %9141 = vmatprep.subr.msk.bf16.mxu0 %vm9659_vm10, %v12016_v15 }
0x186d   :  { %v4844_v38 = vpop.f32.mrb[84].mxu0 }
0x186e   :  { %v4850_v32 = vadd.f32 %v4844_v38, %v11032_v14  ;;  %v8894_v21 = vpop.f32.mrb[85].mxu0 }
0x186f   :  { %v4847_v52 = vpop.f32.mrb[86].mxu0 }
0x1870   :  { %v4851_v40 = vmul.f32 0.5, %v4850_v32  ;;  %v8895_v24 = vpop.f32.mrb[87].mxu0 }
0x1872   :  { %v4859_v22 = vrot.slane %v4851_v40, %v9681_v43 }
0x1874   :  { %v4860_v62 = vcombine.high %v4859_v22, %v4859_v22  ;;  %v4867_v0 = vrot.slane %v4859_v22, %v9681_v43 }
0x1876   :  { %v4874_v4 = vrot.slane %v4860_v62, %v9681_v43  ;;  %v4878_v20 = vrot.slane %v4867_v0, %v9689_v56 }
0x1878   :  { %v4882_v49 = vrot.slane %v4874_v4, %v9689_v56  ;;  %v4885_v61 = vmul.f32 %v4878_v20, %v11024_v17 }
0x187a   :  { %v4886_v53 = vmul.f32 %v4882_v49, %v11028_v55  ;;  %8904 = vmatprep.mubr.msk.f32.mxu1 %vm206_vm3, %v4885_v61 }
0x187c   :  { %8905 = vmatmul.mubr.msk.f32.vlgmr.msra.gmra.mrb[54].mxu1 %vm206_vm3, %v4886_v53 }
0x187d   :  { %8908 = vmatpush3.msk.msra.mxu1 %vm9740_vm6, %v12017_v30 }
0x187e   :  { %8920 = vmatprep.subr.bf16.mxu1 %v9485_v3 }
0x194f   :  { %v8906_v1 = vpop.f32.mrb[54].mxu1 }
0x1950   :  { %v4971_v44 = vadd.f32 %v8906_v1, %v11312_v59  ;;  %v4959_v58 = vpop.f32.mrb[55].mxu1 }
0x1951   :  { %v4970_v48 = vadd.f32 %v11315_v28, %v4959_v58 }
0x1952   :  { %v4979_v6 = vsel %vm728_vm7, %v4971_v44, -inf }
0x1953   :  { %v4980_v19 = vrot.slane %v4979_v6, 4  ;;  %v4972_v36 = vsel %vm728_vm7, %v4970_v48, -inf }
0x1954   :  { %v4973_v12 = vrot.slane %v4972_v36, 4 }
0x1955   :  { %v4981_v25 = vmax.f32 %v4979_v6, %v4980_v19 }
0x1956   :  { %v4974_v42 = vmax.f32 %v4972_v36, %v4973_v12 }
0x1957   :  { %v4982_v45 = vrot.slane %v4981_v25, 2 }
0x1958   :  { %v4975_v63 = vrot.slane %v4974_v42, 2 }
0x1959   :  { %v4983_v46 = vmax.f32 %v4981_v25, %v4982_v45 }
0x195a   :  { %v4976_v13 = vmax.f32 %v4974_v42, %v4975_v63 }
0x195b   :  { %v4984_v23 = vrot.slane %v4983_v46, 1 }
0x195c   :  { %v4977_v31 = vrot.slane %v4976_v13, 1 }
0x195d   :  { %v4985_v38 = vmax.f32 %v4983_v46, %v4984_v23 }
0x195e   :  { %v4978_v32 = vmax.f32 %v4976_v13, %v4977_v31 }
0x195f   :  { %v4987_v21 = vsub.f32 %v4971_v44, %v4985_v38 }
0x1960   :  { %v4986_v52 = vsub.f32 %v4970_v48, %v4978_v32 }
0x1961   :  { %v4990_v40 = vmul.f32 1.442695, %v4987_v21 }
0x1962   :  { %v4988_v24 = vmul.f32 1.442695, %v4986_v52 }
0x1963   :  { %9365 = vpow2.f32 %v4990_v40 }
0x1964   :  { %9367 = vpow2.f32 %v4988_v24 }
0x196d   :  { %v9366_v22 = vpop.eup %9365 }
0x196e   :  { %v9368_v62 = vpop.eup %9367  ;;  %v4999_v0 = vsel %vm728_vm7, %v9366_v22, 0.0 }
0x196f   :  { %v5000_v4 = vrot.slane %v4999_v0, 4  ;;  %v4992_v20 = vsel %vm728_vm7, %v9368_v62, 0.0 }
0x1970   :  { %v4993_v49 = vrot.slane %v4992_v20, 4 }
0x1971   :  { %v5001_v61 = vadd.f32 %v5000_v4, %v4999_v0 }
0x1972   :  { %v4994_v53 = vadd.f32 %v4993_v49, %v4992_v20 }
0x1973   :  { %v5002_v1 = vrot.slane %v5001_v61, 2 }
0x1974   :  { %v4995_v58 = vrot.slane %v4994_v53, 2 }
0x1975   :  { %v5003_v6 = vadd.f32 %v5002_v1, %v5001_v61 }
0x1976   :  { %v4996_v19 = vadd.f32 %v4995_v58, %v4994_v53 }
0x1977   :  { %v5004_v44 = vrot.slane %v5003_v6, 1 }
0x1978   :  { %v4997_v48 = vrot.slane %v4996_v19, 1 }
0x1979   :  { %v5005_v36 = vadd.f32 %v5004_v44, %v5003_v6 }
0x197a   :  { %v4998_v12 = vadd.f32 %v4997_v48, %v4996_v19 }
0x197b   :  { %9369 = vrcp.f32 %v5005_v36 }
0x197c   :  { %9371 = vrcp.f32 %v4998_v12 }
0x1985   :  { %v9370_v25 = vpop.eup %9369 }
0x1986   :  { %v9372_v42 = vpop.eup %9371  ;;  %v5009_v63 = vmul.f32 %v9370_v25, %v9366_v22 }
0x1987   :  { %v5008_v45 = vmul.f32 %v9372_v42, %v9368_v62 }
0x1989   :  { %8909 = vmatprep.mubr.msk.f32.mxu1 %vm728_vm7, %v5008_v45 }
0x198a   :  { %8910 = vmatmul.mubr.msk.f32.vlgmr.msra.gmra.mrb[80].mxu1 %vm728_vm7, %v5009_v63 }
0x198b   :  { %8921 = vmatpush3.bf16.msra.mxu1 %v10973_v47  ;;  %8928 = vmatprep.mubr.msk.bf16.mxu1 %vm9486_vm2, %v9485_v3 }
0x198c   :  { %8922 = vmatprep.subr.bf16.mxu1 %v9485_v3 }
0x198f   :  { %8923 = vmatpush3.bf16.msra.mxu1 %v10983_v34 }
0x1990   :  { %8924 = vmatprep.subr.bf16.mxu1 %v9485_v3 }
0x1993   :  { %8925 = vmatpush3.bf16.msra.mxu1 %v10995_v2 }
0x1994   :  { %8926 = vmatprep.subr.bf16.mxu1 %v9485_v3 }
0x1997   :  { %8927 = vmatpush3.bf16.msra.mxu1 %v11005_v18 }
0x1998   :  { %8948 = vmatprep.subr.bf16.mxu1 %v9485_v3 }
0x1a5d   :  { %v8911_v46 = vpop.f32.mrb[80].mxu1 }
0x1a5e   :  { %v5092_v13 = vmul.f32 %v8911_v46, %v11080_v16  ;;  %v5082_v23 = vpop.f32.mrb[81].mxu1 }
0x1a5f   :  { %v5091_v31 = vmul.f32 %v5082_v23, %v11078_v35 }
0x1a60   :  { %v5100_v38 = vsel %vm206_vm3, %v5092_v13, 0.0 }
0x1a61   :  { %v5101_v32 = vrot.slane %v5100_v38, 4  ;;  %v5093_v21 = vsel %vm206_vm3, %v5091_v31, 0.0 }
0x1a62   :  { %v5094_v52 = vrot.slane %v5093_v21, 4 }
0x1a63   :  { %v5102_v40 = vadd.f32 %v5101_v32, %v5100_v38 }
0x1a64   :  { %v5095_v24 = vadd.f32 %v5094_v52, %v5093_v21 }
0x1a65   :  { %v5103_v22 = vrot.slane %v5102_v40, 2 }
0x1a66   :  { %v5096_v62 = vrot.slane %v5095_v24, 2 }
0x1a67   :  { %v5104_v0 = vadd.f32 %v5103_v22, %v5102_v40 }
0x1a68   :  { %v5097_v4 = vadd.f32 %v5096_v62, %v5095_v24 }
0x1a69   :  { %v5105_v20 = vrot.slane %v5104_v0, 1 }
0x1a6a   :  { %v5098_v49 = vrot.slane %v5097_v4, 1 }
0x1a6b   :  { %v5106_v61 = vadd.f32 %v5105_v20, %v5104_v0 }
0x1a6c   :  { %v5099_v53 = vadd.f32 %v5098_v49, %v5097_v4 }
0x1a6d   :  { %v5108_v1 = vpack.c.bf16 %v5106_v61, %v5106_v61 }
0x1a6e   :  { %v5107_v58 = vpack.c.bf16 %v5099_v53, %v5099_v53 }
0x1a6f   :  { %v5112_v6 = vunpack.c.l.b16 %v5108_v1 }
0x1a70   :  { %v5111_v19 = vunpack.c.l.b16 %v5107_v58 }
0x1a72   :  { %v5113_v44 = vsel %vm1404_vm8, %v5112_v6, %v5111_v19 }
0x1a73   :  { %v5114_v48 = vpack.c.b16 %v5113_v44, %v5113_v44 }
0x1a75   :  { %8917 = vmatmul.mubr.msk.bf16.vlgmr.msra.gmra.mrb[88].mxu0 %vm206_vm3, %v5114_v48 }
0x1a76   :  { %9143 = vmatpush3.bf16.msk.msra.mxu0 %vm9659_vm10, %v12016_v15 }
0x1a77   :  { %9145 = vmatprep.subr.msk.bf16.mxu0 %vm9669_vm1, %v12016_v15 }
0x1a7a   :  { %9147 = vmatpush3.bf16.msk.msra.mxu0 %vm9669_vm1, %v12016_v15 }
0x1a7b   :  { %8943 = vmatprep.subr.msk.mxu0 %vm9740_vm6, %v12017_v30 }
0x1b48   :  { %v5152_v36 = vpop.f32.mrb[88].mxu0 }
0x1b49   :  { %v5165_v12 = vrot.slane %v5152_v36, %v9681_v43  ;;  %v8918_v25 = vpop.f32.mrb[89].mxu0 }
0x1b4a   :  { %v5155_v42 = vpop.f32.mrb[90].mxu0 }
0x1b4b   :  { %v5166_v45 = vcombine.high %v5165_v12, %v5165_v12  ;;  %v5173_v63 = vrot.slane %v5165_v12, %v9681_v43  ;;  %v8919_v46 = vpop.f32.mrb[91].mxu0 }
0x1b4d   :  { %v5180_v13 = vrot.slane %v5166_v45, %v9681_v43  ;;  %v5184_v23 = vrot.slane %v5173_v63, %v9689_v56 }
0x1b4f   :  { %v5191_v31 = vmul.f32 %v5184_v23, %v11101_v60  ;;  %v5188_v38 = vrot.slane %v5180_v13, %v9689_v56 }
0x1b51   :  { %v5193_v32 = vsel %vm206_vm3, %v5191_v31, 0.0  ;;  %v5192_v21 = vmul.f32 %v5188_v38, %v11108_v9 }
0x1b52   :  { %5194 = vadd.xlane.f32.xlu0 %v5193_v32 }
0x1b53   :  { %v5196_v52 = vsel %vm206_vm3, %v5192_v21, 0.0 }
0x1b54   :  { %5197 = vadd.xlane.f32.xlu1 %v5196_v52 }
0x1bdf   :  { %v5195_v40 = vpop.xlane.xlu0 %5194 }
0x1be0   :  { %v5199_v24 = vmul.f32 0.17677669, %v5195_v40 }
0x1be1   :  { %v5198_v22 = vpop.xlane.xlu1 %5197 }
0x1be2   :  { %9373 = vtanh.f32 %v5199_v24  ;;  %v5200_v62 = vmul.f32 0.17677669, %v5198_v22 }
0x1be4   :  { %9375 = vtanh.f32 %v5200_v62 }
0x1bec   :  { %v9374_v0 = vpop.eup %9373 }
0x1bed   :  { %v5203_v4 = vmul.f32 10.0, %v9374_v0 }
0x1bee   :  { %v9376_v20 = vpop.eup %9375 }
0x1bef   :  { %v5205_v49 = vadd.f32 %v5203_v4, %v11315_v28  ;;  %v5204_v61 = vmul.f32 10.0, %v9376_v20 }
0x1bf1   :  { %v5207_v53 = vrot.slane %v5205_v49, 4  ;;  %v5206_v1 = vadd.f32 %v5204_v61, %v11312_v59 }
0x1bf3   :  { %v5208_v58 = vmax.f32 %v5205_v49, %v5207_v53  ;;  %v5213_v6 = vrot.slane %v5206_v1, 4 }
0x1bf5   :  { %v5209_v19 = vrot.slane %v5208_v58, 2  ;;  %v5214_v44 = vmax.f32 %v5206_v1, %v5213_v6 }
0x1bf7   :  { %v5210_v48 = vmax.f32 %v5208_v58, %v5209_v19  ;;  %v5215_v36 = vrot.slane %v5214_v44, 2 }
0x1bf9   :  { %v5211_v12 = vrot.slane %v5210_v48, 1  ;;  %v5216_v25 = vmax.f32 %v5214_v44, %v5215_v36 }
0x1bfb   :  { %v5212_v42 = vmax.f32 %v5210_v48, %v5211_v12  ;;  %v5217_v45 = vrot.slane %v5216_v25, 1 }
0x1bfd   :  { %v5219_v63 = vsub.f32 %v5205_v49, %v5212_v42  ;;  %v5218_v46 = vmax.f32 %v5216_v25, %v5217_v45 }
0x1bff   :  { %v5221_v13 = vmul.f32 1.442695, %v5219_v63  ;;  %v5220_v23 = vsub.f32 %v5206_v1, %v5218_v46 }
0x1c01   :  { %9377 = vpow2.f32 %v5221_v13  ;;  %v5223_v28 = vmul.f32 1.442695, %v5220_v23 }
0x1c03   :  { %9379 = vpow2.f32 %v5223_v28 }
0x1c0b   :  { %v9378_v31 = vpop.eup %9377 }
0x1c0c   :  { %v5225_v38 = vrot.slane %v9378_v31, 4 }
0x1c0d   :  { %v9380_v59 = vpop.eup %9379 }
0x1c0e   :  { %v5226_v32 = vadd.f32 %v9378_v31, %v5225_v38  ;;  %v5231_v21 = vrot.slane %v9380_v59, 4 }
0x1c10   :  { %v5227_v52 = vrot.slane %v5226_v32, 2  ;;  %v5232_v40 = vadd.f32 %v9380_v59, %v5231_v21 }
0x1c12   :  { %v5228_v24 = vadd.f32 %v5227_v52, %v5226_v32  ;;  %v5233_v22 = vrot.slane %v5232_v40, 2 }
0x1c14   :  { %v5229_v62 = vrot.slane %v5228_v24, 1  ;;  %v5234_v0 = vadd.f32 %v5233_v22, %v5232_v40 }
0x1c16   :  { %v5230_v4 = vadd.f32 %v5229_v62, %v5228_v24  ;;  %v5235_v20 = vrot.slane %v5234_v0, 1 }
0x1c18   :  { %9381 = vlog2.f32 %v5230_v4  ;;  %v5236_v61 = vadd.f32 %v5235_v20, %v5234_v0 }
0x1c1a   :  { %9383 = vlog2.f32 %v5236_v61  ;;  %v5300_v61 = vsel %vm5299_vm11, 1, %v9490_v8 }
0x1c22   :  { %v9382_v53 = vpop.eup %9381 }
0x1c23   :  { %v5238_v58 = vmul.f32 0.6931472, %v9382_v53 }
0x1c24   :  { %v9384_v6 = vpop.eup %9383 }
0x1c25   :  { %v5241_v19 = vadd.f32 %v5238_v58, %v5212_v42  ;;  %v5240_v44 = vmul.f32 0.6931472, %v9384_v6 }
0x1c27   :  { %v5243_v48 = vsub.f32 %v5205_v49, %v5241_v19  ;;  %v5242_v36 = vadd.f32 %v5240_v44, %v5218_v46 }
0x1c29   :  { %v5245_v12 = vrot.slane %v5243_v48, 4  ;;  %v5244_v25 = vsub.f32 %v5206_v1, %v5242_v36 }
0x1c2b   :  { %v5246_v45 = vmax.f32 %v5243_v48, %v5245_v12  ;;  %v5251_v63 = vrot.slane %v5244_v25, 4 }
0x1c2d   :  { %v5247_v13 = vrot.slane %v5246_v45, 2  ;;  %v5252_v23 = vmax.f32 %v5244_v25, %v5251_v63 }
0x1c2f   :  { %v5248_v28 = vmax.f32 %v5246_v45, %v5247_v13  ;;  %v5253_v31 = vrot.slane %v5252_v23, 2 }
0x1c31   :  { %v5249_v38 = vrot.slane %v5248_v28, 1  ;;  %v5254_v59 = vmax.f32 %v5252_v23, %v5253_v31 }
0x1c33   :  { %v5250_v32 = vmax.f32 %v5248_v28, %v5249_v38  ;;  %v5255_v21 = vrot.slane %v5254_v59, 1 }
0x1c35   :  { %vm5257_vm13 = vcmp.ge.f32.partialorder %v5243_v48, %v5250_v32  ;;  %v5256_v52 = vmax.f32 %v5254_v59, %v5255_v21 }
0x1c36   :  { %v5259_v40 = vsel %vm5257_vm13, %v9648_v29, 8 }
0x1c37   :  { %v5261_v42 = vrot.slane %v5259_v40, 4  ;;  %vm5258_vm15 = vcmp.ge.f32.partialorder %v5244_v25, %v5256_v52 }
0x1c38   :  { %v5260_v49 = vsel %vm5258_vm15, %v9648_v29, 8 }
0x1c39   :  { %v5270_v46 = vrot.slane %v5260_v49, 4  ;;  %vm5262_vm4 = vcmp.lt.s32.totalorder %v5259_v40, %v5261_v42 }
0x1c3a   :  { %v5263_v1 = vsel %vm5262_vm4, %v5259_v40, %v5261_v42 }
0x1c3b   :  { %v5264_v24 = vrot.slane %v5263_v1, 2  ;;  %vm5271_vm5 = vcmp.lt.s32.totalorder %v5260_v49, %v5270_v46 }
0x1c3c   :  { %v5272_v22 = vsel %vm5271_vm5, %v5260_v49, %v5270_v46 }
0x1c3d   :  { %vm5265_vm9 = vcmp.lt.s32.totalorder %v5263_v1, %v5264_v24  ;;  %v5273_v62 = vrot.slane %v5272_v22, 2 }
0x1c3e   :  { %v5266_v0 = vsel %vm5265_vm9, %v5263_v1, %v5264_v24 }
0x1c3f   :  { %v5267_v4 = vrot.slane %v5266_v0, 1  ;;  %vm5274_vm12 = vcmp.lt.s32.totalorder %v5272_v22, %v5273_v62 }
0x1c40   :  { %v5275_v20 = vsel %vm5274_vm12, %v5272_v22, %v5273_v62 }
0x1c41   :  { %vm5268_vm14 = vcmp.lt.s32.totalorder %v5266_v0, %v5267_v4  ;;  %v5276_v53 = vrot.slane %v5275_v20, 1 }
0x1c42   :  { %v5269_v58 = vsel %vm5268_vm14, %v5266_v0, %v5267_v4 }
0x1c43   :  { %vm5277_vm13 = vcmp.lt.s32.totalorder %v5275_v20, %v5276_v53  ;;  %vm5279_vm15 = vcmp.eq.s32.totalorder %v9648_v29, %v5269_v58  ;;  %v5306_v6 = vmul.u32 %v5300_v61, %v5269_v58 }
0x1c44   :  { %v5278_v19 = vsel %vm5277_vm13, %v5275_v20, %v5276_v53  ;;  %v11372_v44 = vsel %vm5279_vm15, 1.0, %v9485_v3  ;;  %vm5828_vm13 = vcmp.eq.s32.totalorder %v9648_v29, 3 }
0x1c45   :  { %vm5280_vm4 = vcmp.eq.s32.totalorder %v9648_v29, %v5278_v19  ;;  %v5285_v36 = vmul.f32 %v11372_v44, %v5243_v48  ;;  %v5307_v12 = vmul.u32 %v5300_v61, %v5278_v19  ;;  %v11377_v45 = vadd.s32 %v5306_v6, %v11248_v10 }
0x1c46   :  { %v11380_v63 = vsel %vm5280_vm4, 1.0, %v9485_v3  ;;  %v5312_v13 = vmul.f32 %v11372_v44, %v10943_v50 }
0x1c47   :  { %v5287_v23 = vrot.slane %v5285_v36, 4  ;;  %v11385_v28 = vadd.s32 %v5307_v12, %v11258_v11  ;;  %v5313_v31 = vmul.f32 %v11380_v63, %v10945_v54  ;;  %v5286_v38 = vmul.f32 %v11380_v63, %v5244_v25 }
0x1c48   :  { %v5314_v48 = vsel %vm206_vm3, %v5312_v13, 0.0  ;;  %v8209_v25 = vsel %vm5299_vm11, 1.0, %v9485_v3 }
0x1c49   :  { %v5288_v59 = vadd.f32 %v5287_v23, %v5285_v36  ;;  %v5315_v10 = vrot.slane %v5314_v48, 4  ;;  %v5321_v32 = vsel %vm206_vm3, %v5313_v31, 0.0  ;;  %v5293_v21 = vrot.slane %v5286_v38, 4 }
0x1c4a   :  { %v5322_v52 = vrot.slane %v5321_v32, 4 }
0x1c4b   :  { %v5289_v40 = vrot.slane %v5288_v59, 2  ;;  %v5316_v42 = vadd.f32 %v5315_v10, %v5314_v48  ;;  %v5294_v49 = vadd.f32 %v5293_v21, %v5286_v38 }
0x1c4c   :  { %v5323_v46 = vadd.f32 %v5322_v52, %v5321_v32 }
0x1c4d   :  { %v5290_v1 = vadd.f32 %v5289_v40, %v5288_v59  ;;  %v5317_v11 = vrot.slane %v5316_v42, 2  ;;  %v5295_v24 = vrot.slane %v5294_v49, 2 }
0x1c4e   :  { %v5324_v22 = vrot.slane %v5323_v46, 2 }
0x1c4f   :  { %v5291_v62 = vrot.slane %v5290_v1, 1  ;;  %v5318_v0 = vadd.f32 %v5317_v11, %v5316_v42  ;;  %v5296_v4 = vadd.f32 %v5295_v24, %v5294_v49 }
0x1c50   :  { %v5325_v20 = vadd.f32 %v5324_v22, %v5323_v46 }
0x1c51   :  { %v5292_v61 = vadd.f32 %v5291_v62, %v5290_v1  ;;  %v5319_v53 = vrot.slane %v5318_v0, 1  ;;  %v5297_v58 = vrot.slane %v5296_v4, 1 }
0x1c52   :  { %v5326_v6 = vrot.slane %v5325_v20, 1 }
0x1c53   :  { %v5302_v19 = vmul.f32 %v8209_v25, %v5292_v61  ;;  %v5298_v36 = vadd.f32 %v5297_v58, %v5296_v4  ;;  %v5320_v12 = vadd.f32 %v5319_v53, %v5318_v0  ;;  %v11430_v4 = vmax.f32 %v11304_v27, %v11380_v63 }
0x1c54   :  { %v5327_v13 = vadd.f32 %v5326_v6, %v5325_v20 }
0x1c55   :  { %v11396_v23 = vadd.f32 %v5302_v19, %v11270_v33  ;;  %v5303_v31 = vmul.f32 %v8209_v25, %v5298_v36  ;;  %v11434_v25 = vmax.f32 %v11309_v41, %v11372_v44  ;;  %v11437_v20 = vmul.f32 -1e+09, %v11430_v4 }
0x1c56   :  { %v5330_v38 = vsel %vm1404_vm8, %v5327_v13, %v5320_v12 }
0x1c57   :  { %5331 = vrot.lane.b32.xlu0 %v5330_v38, %s9493_s14  ;;  %v11401_v48 = vadd.f32 %v5303_v31, %v11274_v51  ;;  %v11440_v53 = vmul.f32 -1e+09, %v11434_v25 }
0x1cc9   :  { %v5332_v59 = vpop.permute.xlu0 %5331 }
0x1cca   :  { %v5334_v10 = vsel %vm206_vm3, %v11142_v7, %v5332_v59 }
0x1ccb   :  { %v5335_v32 = vpack.c.bf16 %v5334_v10, %v5334_v10 }
0x1ccd   :  { %8929 = vmatmul.mubr.msk.bf16.vlgmr.msra.gmra.mrb[84].mxu1 %vm3735_vm0, %v5335_v32 }
0x1cce   :  { %8949 = vmatpush3.bf16.msra.mxu1 %v11062_v26  ;;  %8952 = vmatprep.mubr.msk.bf16.mxu1 %vm9486_vm2, %v9485_v3 }
0x1ccf   :  { %8950 = vmatprep.subr.bf16.mxu1 %v9485_v3 }
0x1cd2   :  { %8951 = vmatpush3.bf16.msra.mxu1 %v11072_v57 }
0x1cd3   :  { %9149 = vmatprep.subr.msk.bf16.mxu1 %vm9659_vm10, %v12016_v15 }
0x1da0   :  { %v5373_v33 = vpop.f32.mrb[84].mxu1 }
0x1da1   :  { %v5379_v51 = vadd.f32 %v5373_v33, %v11032_v14  ;;  %v8930_v21 = vpop.f32.mrb[85].mxu1 }
0x1da2   :  { %v5376_v52 = vpop.f32.mrb[86].mxu1 }
0x1da3   :  { %v5380_v40 = vmul.f32 0.5, %v5379_v51  ;;  %v8931_v42 = vpop.f32.mrb[87].mxu1 }
0x1da5   :  { %v5388_v49 = vrot.slane %v5380_v40, %v9681_v43 }
0x1da7   :  { %v5389_v46 = vcombine.high %v5388_v49, %v5388_v49  ;;  %v5396_v1 = vrot.slane %v5388_v49, %v9681_v43 }
0x1da9   :  { %v5403_v11 = vrot.slane %v5389_v46, %v9681_v43  ;;  %v5407_v24 = vrot.slane %v5396_v1, %v9689_v56 }
0x1dab   :  { %v5411_v22 = vrot.slane %v5403_v11, %v9689_v56  ;;  %v5414_v62 = vmul.f32 %v5407_v24, %v11024_v17 }
0x1dad   :  { %v5415_v0 = vmul.f32 %v5411_v22, %v11028_v55  ;;  %8940 = vmatprep.mubr.msk.f32.mxu0 %vm206_vm3, %v5414_v62 }
0x1daf   :  { %8941 = vmatmul.mubr.msk.f32.vlgmr.msra.gmra.mrb[92].mxu0 %vm206_vm3, %v5415_v0 }
0x1db0   :  { %8944 = vmatpush3.msk.msra.mxu0 %vm9740_vm6, %v12017_v30 }
0x1db1   :  { %8956 = vmatprep.subr.bf16.mxu0 %v9485_v3 }
0x1e82   :  { %v8942_v61 = vpop.f32.mrb[92].mxu0 }
0x1e83   :  { %v5500_v58 = vadd.f32 %v8942_v61, %v11437_v20  ;;  %v5488_v6 = vpop.f32.mrb[93].mxu0 }
0x1e84   :  { %v5499_v19 = vadd.f32 %v11440_v53, %v5488_v6 }
0x1e85   :  { %v5508_v36 = vsel %vm728_vm7, %v5500_v58, -inf }
0x1e86   :  { %v5509_v27 = vrot.slane %v5508_v36, 4  ;;  %v5501_v63 = vsel %vm728_vm7, %v5499_v19, -inf }
0x1e87   :  { %v5502_v12 = vrot.slane %v5501_v63, 4 }
0x1e88   :  { %v5510_v41 = vmax.f32 %v5508_v36, %v5509_v27 }
0x1e89   :  { %v5503_v44 = vmax.f32 %v5501_v63, %v5502_v12 }
0x1e8a   :  { %v5511_v13 = vrot.slane %v5510_v41, 2 }
0x1e8b   :  { %v5504_v31 = vrot.slane %v5503_v44, 2 }
0x1e8c   :  { %v5512_v38 = vmax.f32 %v5510_v41, %v5511_v13 }
0x1e8d   :  { %v5505_v59 = vmax.f32 %v5503_v44, %v5504_v31 }
0x1e8e   :  { %v5513_v10 = vrot.slane %v5512_v38, 1 }
0x1e8f   :  { %v5506_v32 = vrot.slane %v5505_v59, 1 }
0x1e90   :  { %v5514_v33 = vmax.f32 %v5512_v38, %v5513_v10 }
0x1e91   :  { %v5507_v51 = vmax.f32 %v5505_v59, %v5506_v32 }
0x1e92   :  { %v5516_v21 = vsub.f32 %v5500_v58, %v5514_v33 }
0x1e93   :  { %v5515_v52 = vsub.f32 %v5499_v19, %v5507_v51 }
0x1e94   :  { %v5519_v40 = vmul.f32 1.442695, %v5516_v21 }
0x1e95   :  { %v5517_v42 = vmul.f32 1.442695, %v5515_v52 }
0x1e96   :  { %9385 = vpow2.f32 %v5519_v40 }
0x1e97   :  { %9387 = vpow2.f32 %v5517_v42 }
0x1ea0   :  { %v9386_v49 = vpop.eup %9385 }
0x1ea1   :  { %v9388_v46 = vpop.eup %9387  ;;  %v5528_v1 = vsel %vm728_vm7, %v9386_v49, 0.0 }
0x1ea2   :  { %v5529_v11 = vrot.slane %v5528_v1, 4  ;;  %v5521_v24 = vsel %vm728_vm7, %v9388_v46, 0.0 }
0x1ea3   :  { %v5522_v22 = vrot.slane %v5521_v24, 4 }
0x1ea4   :  { %v5530_v62 = vadd.f32 %v5529_v11, %v5528_v1 }
0x1ea5   :  { %v5523_v0 = vadd.f32 %v5522_v22, %v5521_v24 }
0x1ea6   :  { %v5531_v61 = vrot.slane %v5530_v62, 2 }
0x1ea7   :  { %v5524_v6 = vrot.slane %v5523_v0, 2 }
0x1ea8   :  { %v5532_v36 = vadd.f32 %v5531_v61, %v5530_v62 }
0x1ea9   :  { %v5525_v27 = vadd.f32 %v5524_v6, %v5523_v0 }
0x1eaa   :  { %v5533_v58 = vrot.slane %v5532_v36, 1 }
0x1eab   :  { %v5526_v19 = vrot.slane %v5525_v27, 1 }
0x1eac   :  { %v5534_v63 = vadd.f32 %v5533_v58, %v5532_v36 }
0x1ead   :  { %v5527_v12 = vadd.f32 %v5526_v19, %v5525_v27 }
0x1eae   :  { %9389 = vrcp.f32 %v5534_v63 }
0x1eaf   :  { %9391 = vrcp.f32 %v5527_v12 }
0x1eb8   :  { %v9390_v41 = vpop.eup %9389 }
0x1eb9   :  { %v9392_v44 = vpop.eup %9391  ;;  %v5538_v31 = vmul.f32 %v9390_v41, %v9386_v49 }
0x1eba   :  { %v5537_v13 = vmul.f32 %v9392_v44, %v9388_v46 }
0x1ebc   :  { %8945 = vmatprep.mubr.msk.f32.mxu0 %vm728_vm7, %v5537_v13 }
0x1ebd   :  { %8946 = vmatmul.mubr.msk.f32.vlgmr.msra.gmra.mrb[94].mxu0 %vm728_vm7, %v5538_v31 }
0x1ebe   :  { %8957 = vmatpush3.bf16.msra.mxu0 %v10973_v47  ;;  %8964 = vmatprep.mubr.msk.bf16.mxu0 %vm9486_vm2, %v9485_v3 }
0x1ebf   :  { %8958 = vmatprep.subr.bf16.mxu0 %v9485_v3 }
0x1ec2   :  { %8959 = vmatpush3.bf16.msra.mxu0 %v10983_v34 }
0x1ec3   :  { %8960 = vmatprep.subr.bf16.mxu0 %v9485_v3 }
0x1ec6   :  { %8961 = vmatpush3.bf16.msra.mxu0 %v10995_v2 }
0x1ec7   :  { %8962 = vmatprep.subr.bf16.mxu0 %v9485_v3 }
0x1eca   :  { %8963 = vmatpush3.bf16.msra.mxu0 %v11005_v18 }
0x1ecb   :  { %8984 = vmatprep.subr.bf16.mxu0 %v9485_v3 }
0x1f90   :  { %v8947_v38 = vpop.f32.mrb[94].mxu0 }
0x1f91   :  { %v5621_v59 = vmul.f32 %v8947_v38, %v11080_v16  ;;  %v5611_v10 = vpop.f32.mrb[95].mxu0 }
0x1f92   :  { %v5620_v32 = vmul.f32 %v5611_v10, %v11078_v35 }
0x1f93   :  { %v5629_v33 = vsel %vm206_vm3, %v5621_v59, 0.0 }
0x1f94   :  { %v5630_v51 = vrot.slane %v5629_v33, 4  ;;  %v5622_v21 = vsel %vm206_vm3, %v5620_v32, 0.0 }
0x1f95   :  { %v5623_v52 = vrot.slane %v5622_v21, 4 }
0x1f96   :  { %v5631_v40 = vadd.f32 %v5630_v51, %v5629_v33 }
0x1f97   :  { %v5624_v42 = vadd.f32 %v5623_v52, %v5622_v21 }
0x1f98   :  { %v5632_v49 = vrot.slane %v5631_v40, 2 }
0x1f99   :  { %v5625_v46 = vrot.slane %v5624_v42, 2 }
0x1f9a   :  { %v5633_v1 = vadd.f32 %v5632_v49, %v5631_v40 }
0x1f9b   :  { %v5626_v11 = vadd.f32 %v5625_v46, %v5624_v42 }
0x1f9c   :  { %v5634_v24 = vrot.slane %v5633_v1, 1 }
0x1f9d   :  { %v5627_v22 = vrot.slane %v5626_v11, 1 }
0x1f9e   :  { %v5635_v62 = vadd.f32 %v5634_v24, %v5633_v1 }
0x1f9f   :  { %v5628_v0 = vadd.f32 %v5627_v22, %v5626_v11 }
0x1fa0   :  { %v5637_v61 = vpack.c.bf16 %v5635_v62, %v5635_v62 }
0x1fa1   :  { %v5636_v6 = vpack.c.bf16 %v5628_v0, %v5628_v0 }
0x1fa2   :  { %v5641_v36 = vunpack.c.l.b16 %v5637_v61 }
0x1fa3   :  { %v5640_v27 = vunpack.c.l.b16 %v5636_v6 }
0x1fa5   :  { %v5642_v58 = vsel %vm1404_vm8, %v5641_v36, %v5640_v27 }
0x1fa6   :  { %v5643_v19 = vpack.c.b16 %v5642_v58, %v5642_v58 }
0x1fa8   :  { %8953 = vmatmul.mubr.msk.bf16.vlgmr.msra.gmra.mrb[88].mxu1 %vm206_vm3, %v5643_v19 }
0x1fa9   :  { %9151 = vmatpush3.bf16.msk.msra.mxu1 %vm9659_vm10, %v12016_v15 }
0x1faa   :  { %9153 = vmatprep.subr.msk.bf16.mxu1 %vm9669_vm1, %v12016_v15 }
0x1fad   :  { %9155 = vmatpush3.bf16.msk.msra.mxu1 %vm9669_vm1, %v12016_v15 }
0x1fae   :  { %8979 = vmatprep.subr.msk.mxu1 %vm9740_vm6, %v12017_v30 }
0x207b   :  { %v5681_v63 = vpop.f32.mrb[88].mxu1 }
0x207c   :  { %v5694_v12 = vrot.slane %v5681_v63, %v9681_v43  ;;  %v8954_v41 = vpop.f32.mrb[89].mxu1 }
0x207d   :  { %v5684_v44 = vpop.f32.mrb[90].mxu1 }
0x207e   :  { %v5695_v13 = vcombine.high %v5694_v12, %v5694_v12  ;;  %v5702_v31 = vrot.slane %v5694_v12, %v9681_v43  ;;  %v8955_v38 = vpop.f32.mrb[91].mxu1 }
0x2080   :  { %v5709_v59 = vrot.slane %v5695_v13, %v9681_v43  ;;  %v5713_v10 = vrot.slane %v5702_v31, %v9689_v56 }
0x2082   :  { %v5720_v32 = vmul.f32 %v5713_v10, %v11101_v60  ;;  %v5717_v33 = vrot.slane %v5709_v59, %v9689_v56 }
0x2084   :  { %v5722_v51 = vsel %vm206_vm3, %v5720_v32, 0.0  ;;  %v5721_v21 = vmul.f32 %v5717_v33, %v11108_v9 }
0x2085   :  { %5723 = vadd.xlane.f32.xlu1 %v5722_v51 }
0x2086   :  { %v5725_v52 = vsel %vm206_vm3, %v5721_v21, 0.0 }
0x2089   :  { %5726 = vadd.xlane.f32.xlu1 %v5725_v52 }
0x2112   :  { %v5724_v40 = vpop.xlane.xlu1 %5723 }
0x2113   :  { %v5728_v42 = vmul.f32 0.17677669, %v5724_v40 }
0x2115   :  { %9393 = vtanh.f32 %v5728_v42 }
0x2116   :  { %v5727_v49 = vpop.xlane.xlu1 %5726 }
0x2117   :  { %v5729_v46 = vmul.f32 0.17677669, %v5727_v49 }
0x2119   :  { %9395 = vtanh.f32 %v5729_v46 }
0x211f   :  { %v9394_v1 = vpop.eup %9393 }
0x2120   :  { %v5732_v11 = vmul.f32 10.0, %v9394_v1 }
0x2122   :  { %v5734_v24 = vadd.f32 %v5732_v11, %v11440_v53 }
0x2123   :  { %v9396_v22 = vpop.eup %9395 }
0x2124   :  { %v5736_v62 = vrot.slane %v5734_v24, 4  ;;  %v5733_v0 = vmul.f32 10.0, %v9396_v22 }
0x2126   :  { %v5737_v61 = vmax.f32 %v5734_v24, %v5736_v62  ;;  %v5735_v6 = vadd.f32 %v5733_v0, %v11437_v20 }
0x2128   :  { %v5738_v36 = vrot.slane %v5737_v61, 2  ;;  %v5742_v27 = vrot.slane %v5735_v6, 4 }
0x212a   :  { %v5739_v58 = vmax.f32 %v5737_v61, %v5738_v36  ;;  %v5743_v19 = vmax.f32 %v5735_v6, %v5742_v27 }
0x212c   :  { %v5740_v63 = vrot.slane %v5739_v58, 1  ;;  %v5744_v12 = vrot.slane %v5743_v19, 2 }
0x212e   :  { %v5741_v41 = vmax.f32 %v5739_v58, %v5740_v63  ;;  %v5745_v44 = vmax.f32 %v5743_v19, %v5744_v12 }
0x2130   :  { %v5748_v13 = vsub.f32 %v5734_v24, %v5741_v41  ;;  %v5746_v31 = vrot.slane %v5745_v44, 1 }
0x2132   :  { %v5750_v38 = vmul.f32 1.442695, %v5748_v13  ;;  %v5747_v59 = vmax.f32 %v5745_v44, %v5746_v31 }
0x2134   :  { %9397 = vpow2.f32 %v5750_v38  ;;  %v5749_v53 = vsub.f32 %v5735_v6, %v5747_v59 }
0x2136   :  { %v5752_v10 = vmul.f32 1.442695, %v5749_v53 }
0x2138   :  { %9399 = vpow2.f32 %v5752_v10 }
0x213e   :  { %v9398_v32 = vpop.eup %9397 }
0x213f   :  { %v5754_v33 = vrot.slane %v9398_v32, 4 }
0x2141   :  { %v5755_v51 = vadd.f32 %v9398_v32, %v5754_v33 }
0x2142   :  { %v9400_v20 = vpop.eup %9399 }
0x2143   :  { %v5756_v21 = vrot.slane %v5755_v51, 2  ;;  %v5760_v52 = vrot.slane %v9400_v20, 4 }
0x2145   :  { %v5757_v40 = vadd.f32 %v5756_v21, %v5755_v51  ;;  %v5761_v42 = vadd.f32 %v9400_v20, %v5760_v52 }
0x2147   :  { %v5758_v49 = vrot.slane %v5757_v40, 1  ;;  %v5762_v46 = vrot.slane %v5761_v42, 2 }
0x2149   :  { %v5759_v1 = vadd.f32 %v5758_v49, %v5757_v40  ;;  %v5763_v11 = vadd.f32 %v5762_v46, %v5761_v42 }
0x214b   :  { %9401 = vlog2.f32 %v5759_v1  ;;  %v5764_v22 = vrot.slane %v5763_v11, 1 }
0x214d   :  { %v5765_v62 = vadd.f32 %v5764_v22, %v5763_v11  ;;  %v5829_v22 = vsel %vm5828_vm13, 1, %v9490_v8 }
0x214f   :  { %9403 = vlog2.f32 %v5765_v62 }
0x2155   :  { %v9402_v0 = vpop.eup %9401 }
0x2156   :  { %v5767_v61 = vmul.f32 0.6931472, %v9402_v0 }
0x2158   :  { %v5770_v36 = vadd.f32 %v5767_v61, %v5741_v41 }
0x2159   :  { %v9404_v27 = vpop.eup %9403 }
0x215a   :  { %v5772_v58 = vsub.f32 %v5734_v24, %v5770_v36  ;;  %v5769_v19 = vmul.f32 0.6931472, %v9404_v27 }
0x215c   :  { %v5774_v63 = vrot.slane %v5772_v58, 4  ;;  %v5771_v12 = vadd.f32 %v5769_v19, %v5747_v59 }
0x215e   :  { %v5775_v44 = vmax.f32 %v5772_v58, %v5774_v63  ;;  %v5773_v13 = vsub.f32 %v5735_v6, %v5771_v12 }
0x2160   :  { %v5776_v31 = vrot.slane %v5775_v44, 2  ;;  %v5780_v38 = vrot.slane %v5773_v13, 4 }
0x2162   :  { %v5777_v53 = vmax.f32 %v5775_v44, %v5776_v31  ;;  %v5781_v10 = vmax.f32 %v5773_v13, %v5780_v38 }
0x2164   :  { %v5778_v32 = vrot.slane %v5777_v53, 1  ;;  %v5782_v33 = vrot.slane %v5781_v10, 2 }
0x2166   :  { %v5779_v51 = vmax.f32 %v5777_v53, %v5778_v32  ;;  %v5783_v20 = vmax.f32 %v5781_v10, %v5782_v33 }
0x2168   :  { %vm5786_vm5 = vcmp.ge.f32.partialorder %v5772_v58, %v5779_v51  ;;  %v5784_v21 = vrot.slane %v5783_v20, 1 }
0x2169   :  { %v5788_v52 = vsel %vm5786_vm5, %v9648_v29, 8 }
0x216a   :  { %v5790_v41 = vrot.slane %v5788_v52, 4  ;;  %v5785_v40 = vmax.f32 %v5783_v20, %v5784_v21 }
0x216c   :  { %vm5787_vm9 = vcmp.ge.f32.partialorder %v5773_v13, %v5785_v40  ;;  %vm5791_vm11 = vcmp.lt.s32.totalorder %v5788_v52, %v5790_v41 }
0x216d   :  { %v5789_v24 = vsel %vm5787_vm9, %v9648_v29, 8  ;;  %v5792_v59 = vsel %vm5791_vm11, %v5788_v52, %v5790_v41 }
0x216e   :  { %v5799_v6 = vrot.slane %v5789_v24, 4  ;;  %v5793_v42 = vrot.slane %v5792_v59, 2 }
0x2170   :  { %vm5794_vm12 = vcmp.lt.s32.totalorder %v5792_v59, %v5793_v42  ;;  %vm5800_vm14 = vcmp.lt.s32.totalorder %v5789_v24, %v5799_v6 }
0x2171   :  { %v5795_v49 = vsel %vm5794_vm12, %v5792_v59, %v5793_v42  ;;  %v5801_v46 = vsel %vm5800_vm14, %v5789_v24, %v5799_v6 }
0x2172   :  { %v5796_v1 = vrot.slane %v5795_v49, 1  ;;  %v5802_v11 = vrot.slane %v5801_v46, 2 }
0x2174   :  { %vm5797_vm15 = vcmp.lt.s32.totalorder %v5795_v49, %v5796_v1  ;;  %vm5803_vm4 = vcmp.lt.s32.totalorder %v5801_v46, %v5802_v11 }
0x2175   :  { %v5798_v62 = vsel %vm5797_vm15, %v5795_v49, %v5796_v1  ;;  %v5804_v0 = vsel %vm5803_vm4, %v5801_v46, %v5802_v11 }
0x2176   :  { %v5805_v61 = vrot.slane %v5804_v0, 1  ;;  %vm5808_vm5 = vcmp.eq.s32.totalorder %v9648_v29, %v5798_v62  ;;  %v5835_v36 = vmul.u32 %v5829_v22, %v5798_v62 }
0x2177   :  { %v11497_v27 = vsel %vm5808_vm5, 1.0, %v9485_v3  ;;  %vm6357_vm5 = vcmp.eq.s32.totalorder %v9648_v29, 4 }
0x2178   :  { %vm5806_vm9 = vcmp.lt.s32.totalorder %v5804_v0, %v5805_v61  ;;  %v5814_v19 = vmul.f32 %v11497_v27, %v5772_v58  ;;  %v11501_v63 = vadd.s32 %v5835_v36, %v11377_v45  ;;  %v5841_v12 = vmul.f32 %v11497_v27, %v10943_v50 }
0x2179   :  { %v5807_v44 = vsel %vm5806_vm9, %v5804_v0, %v5805_v61 }
0x217a   :  { %vm5809_vm11 = vcmp.eq.s32.totalorder %v9648_v29, %v5807_v44  ;;  %v5816_v31 = vrot.slane %v5814_v19, 4  ;;  %v5836_v38 = vmul.u32 %v5829_v22, %v5807_v44  ;;  %v5843_v53 = vsel %vm206_vm3, %v5841_v12, 0.0 }
0x217b   :  { %v8222_v10 = vsel %vm5809_vm11, 1.0, %v9485_v3  ;;  %v5844_v32 = vrot.slane %v5843_v53, 4 }
0x217c   :  { %v5817_v33 = vadd.f32 %v5816_v31, %v5814_v19  ;;  %v11509_v51 = vadd.s32 %v5836_v38, %v11385_v28  ;;  %v5842_v45 = vmul.f32 %v8222_v10, %v10945_v54  ;;  %v5815_v58 = vmul.f32 %v8222_v10, %v5773_v13 }
0x217d   :  { %v5845_v20 = vadd.f32 %v5844_v32, %v5843_v53  ;;  %v8223_v28 = vsel %vm5828_vm13, 1.0, %v9485_v3 }
0x217e   :  { %v5818_v21 = vrot.slane %v5817_v33, 2  ;;  %v5850_v52 = vsel %vm206_vm3, %v5842_v45, 0.0  ;;  %v5822_v41 = vrot.slane %v5815_v58, 4 }
0x217f   :  { %v5846_v40 = vrot.slane %v5845_v20, 2  ;;  %v5851_v24 = vrot.slane %v5850_v52, 4 }
0x2180   :  { %v5819_v59 = vadd.f32 %v5818_v21, %v5817_v33  ;;  %v5823_v6 = vadd.f32 %v5822_v41, %v5815_v58 }
0x2181   :  { %v5847_v42 = vadd.f32 %v5846_v40, %v5845_v20  ;;  %v5852_v49 = vadd.f32 %v5851_v24, %v5850_v52 }
0x2182   :  { %v5820_v46 = vrot.slane %v5819_v59, 1  ;;  %v5824_v1 = vrot.slane %v5823_v6, 2 }
0x2183   :  { %v5853_v11 = vrot.slane %v5852_v49, 2  ;;  %v5848_v62 = vrot.slane %v5847_v42, 1 }
0x2184   :  { %v5821_v22 = vadd.f32 %v5820_v46, %v5819_v59  ;;  %v5825_v13 = vadd.f32 %v5824_v1, %v5823_v6 }
0x2185   :  { %v5854_v0 = vadd.f32 %v5853_v11, %v5852_v49  ;;  %v5849_v31 = vadd.f32 %v5848_v62, %v5847_v42  ;;  %v11550_v11 = vmax.f32 %v11430_v4, %v8222_v10 }
0x2186   :  { %v5831_v61 = vmul.f32 %v8223_v28, %v5821_v22  ;;  %v5826_v36 = vrot.slane %v5825_v13, 1  ;;  %v11554_v22 = vmax.f32 %v11434_v25, %v11497_v27 }
0x2187   :  { %v5855_v19 = vrot.slane %v5854_v0, 1 }
0x2188   :  { %v11517_v12 = vadd.f32 %v5831_v61, %v11396_v23  ;;  %v5827_v44 = vadd.f32 %v5826_v36, %v5825_v13  ;;  %v11557_v13 = vmul.f32 -1e+09, %v11550_v11 }
0x2189   :  { %v5856_v38 = vadd.f32 %v5855_v19, %v5854_v0  ;;  %v11560_v0 = vmul.f32 -1e+09, %v11554_v22 }
0x218a   :  { %v5832_v53 = vmul.f32 %v8223_v28, %v5827_v44 }
0x218b   :  { %v5859_v32 = vsel %vm1404_vm8, %v5856_v38, %v5849_v31 }
0x218c   :  { %5860 = vrot.lane.b32.xlu1 %v5859_v32, %s9493_s14  ;;  %v11522_v33 = vadd.f32 %v5832_v53, %v11401_v48 }
0x21fe   :  { %v5861_v45 = vpop.permute.xlu1 %5860 }
0x21ff   :  { %v5863_v58 = vsel %vm206_vm3, %v11142_v7, %v5861_v45 }
0x2200   :  { %v5864_v20 = vpack.c.bf16 %v5863_v58, %v5863_v58 }
0x2202   :  { %8965 = vmatmul.mubr.msk.bf16.vlgmr.msra.gmra.mrb[96].mxu0 %vm3735_vm0, %v5864_v20 }
0x2203   :  { %8985 = vmatpush3.bf16.msra.mxu0 %v11062_v26  ;;  %8988 = vmatprep.mubr.msk.bf16.mxu0 %vm9486_vm2, %v9485_v3 }
0x2204   :  { %8986 = vmatprep.subr.bf16.mxu0 %v9485_v3 }
0x2207   :  { %8987 = vmatpush3.bf16.msra.mxu0 %v11072_v57 }
0x2208   :  { %9157 = vmatprep.subr.msk.bf16.mxu0 %vm9659_vm10, %v12016_v15 }
0x22d5   :  { %v5902_v23 = vpop.f32.mrb[96].mxu0 }
0x22d6   :  { %v5908_v48 = vadd.f32 %v5902_v23, %v11032_v14  ;;  %v8966_v21 = vpop.f32.mrb[97].mxu0 }
0x22d7   :  { %v5905_v52 = vpop.f32.mrb[98].mxu0 }
0x22d8   :  { %v5909_v41 = vmul.f32 0.5, %v5908_v48  ;;  %v8967_v40 = vpop.f32.mrb[99].mxu0 }
0x22da   :  { %v5917_v24 = vrot.slane %v5909_v41, %v9681_v43 }
0x22dc   :  { %v5918_v59 = vcombine.high %v5917_v24, %v5917_v24  ;;  %v5925_v6 = vrot.slane %v5917_v24, %v9681_v43 }
0x22de   :  { %v5932_v42 = vrot.slane %v5918_v59, %v9681_v43  ;;  %v5936_v49 = vrot.slane %v5925_v6, %v9689_v56 }
0x22e0   :  { %v5940_v46 = vrot.slane %v5932_v42, %v9689_v56  ;;  %v5943_v1 = vmul.f32 %v5936_v49, %v11024_v17 }
0x22e2   :  { %v5944_v28 = vmul.f32 %v5940_v46, %v11028_v55  ;;  %8976 = vmatprep.mubr.msk.f32.mxu1 %vm206_vm3, %v5943_v1 }
0x22e4   :  { %8977 = vmatmul.mubr.msk.f32.vlgmr.msra.gmra.mrb[82].mxu1 %vm206_vm3, %v5944_v28 }
0x22e5   :  { %8980 = vmatpush3.msk.msra.mxu1 %vm9740_vm6, %v12017_v30 }
0x22e6   :  { %8992 = vmatprep.subr.bf16.mxu1 %v9485_v3 }
0x23b7   :  { %v8978_v62 = vpop.f32.mrb[82].mxu1 }
0x23b8   :  { %v6029_v61 = vadd.f32 %v8978_v62, %v11557_v13  ;;  %v6017_v36 = vpop.f32.mrb[83].mxu1 }
0x23b9   :  { %v6028_v19 = vadd.f32 %v11560_v0, %v6017_v36 }
0x23ba   :  { %v6037_v44 = vsel %vm728_vm7, %v6029_v61, -inf }
0x23bb   :  { %v6038_v4 = vrot.slane %v6037_v44, 4  ;;  %v6030_v10 = vsel %vm728_vm7, %v6028_v19, -inf }
0x23bc   :  { %v6031_v31 = vrot.slane %v6030_v10, 4 }
0x23bd   :  { %v6039_v25 = vmax.f32 %v6037_v44, %v6038_v4 }
0x23be   :  { %v6032_v27 = vmax.f32 %v6030_v10, %v6031_v31 }
0x23bf   :  { %v6040_v38 = vrot.slane %v6039_v25, 2 }
0x23c0   :  { %v6033_v53 = vrot.slane %v6032_v27, 2 }
0x23c1   :  { %v6041_v32 = vmax.f32 %v6039_v25, %v6040_v38 }
0x23c2   :  { %v6034_v45 = vmax.f32 %v6032_v27, %v6033_v53 }
0x23c3   :  { %v6042_v58 = vrot.slane %v6041_v32, 1 }
0x23c4   :  { %v6035_v20 = vrot.slane %v6034_v45, 1 }
0x23c5   :  { %v6043_v23 = vmax.f32 %v6041_v32, %v6042_v58 }
0x23c6   :  { %v6036_v48 = vmax.f32 %v6034_v45, %v6035_v20 }
0x23c7   :  { %v6045_v21 = vsub.f32 %v6029_v61, %v6043_v23 }
0x23c8   :  { %v6044_v52 = vsub.f32 %v6028_v19, %v6036_v48 }
0x23c9   :  { %v6048_v41 = vmul.f32 1.442695, %v6045_v21 }
0x23ca   :  { %v6046_v40 = vmul.f32 1.442695, %v6044_v52 }
0x23cb   :  { %9405 = vpow2.f32 %v6048_v41 }
0x23cc   :  { %9407 = vpow2.f32 %v6046_v40 }
0x23d5   :  { %v9406_v24 = vpop.eup %9405 }
0x23d6   :  { %v9408_v59 = vpop.eup %9407  ;;  %v6057_v6 = vsel %vm728_vm7, %v9406_v24, 0.0 }
0x23d7   :  { %v6058_v42 = vrot.slane %v6057_v6, 4  ;;  %v6050_v49 = vsel %vm728_vm7, %v9408_v59, 0.0 }
0x23d8   :  { %v6051_v46 = vrot.slane %v6050_v49, 4 }
0x23d9   :  { %v6059_v1 = vadd.f32 %v6058_v42, %v6057_v6 }
0x23da   :  { %v6052_v28 = vadd.f32 %v6051_v46, %v6050_v49 }
0x23db   :  { %v6060_v62 = vrot.slane %v6059_v1, 2 }
0x23dc   :  { %v6053_v36 = vrot.slane %v6052_v28, 2 }
0x23dd   :  { %v6061_v44 = vadd.f32 %v6060_v62, %v6059_v1 }
0x23de   :  { %v6054_v4 = vadd.f32 %v6053_v36, %v6052_v28 }
0x23df   :  { %v6062_v61 = vrot.slane %v6061_v44, 1 }
0x23e0   :  { %v6055_v19 = vrot.slane %v6054_v4, 1 }
0x23e1   :  { %v6063_v10 = vadd.f32 %v6062_v61, %v6061_v44 }
0x23e2   :  { %v6056_v31 = vadd.f32 %v6055_v19, %v6054_v4 }
0x23e3   :  { %9409 = vrcp.f32 %v6063_v10 }
0x23e4   :  { %9411 = vrcp.f32 %v6056_v31 }
0x23ed   :  { %v9410_v25 = vpop.eup %9409 }
0x23ee   :  { %v9412_v27 = vpop.eup %9411  ;;  %v6067_v53 = vmul.f32 %v9410_v25, %v9406_v24 }
0x23ef   :  { %v6066_v38 = vmul.f32 %v9412_v27, %v9408_v59 }
0x23f1   :  { %8981 = vmatprep.mubr.msk.f32.mxu1 %vm728_vm7, %v6066_v38 }
0x23f2   :  { %8982 = vmatmul.mubr.msk.f32.vlgmr.msra.gmra.mrb[92].mxu1 %vm728_vm7, %v6067_v53 }
0x23f3   :  { %8993 = vmatpush3.bf16.msra.mxu1 %v10973_v47  ;;  %9000 = vmatprep.mubr.msk.bf16.mxu1 %vm9486_vm2, %v9485_v3 }
0x23f4   :  { %8994 = vmatprep.subr.bf16.mxu1 %v9485_v3 }
0x23f7   :  { %8995 = vmatpush3.bf16.msra.mxu1 %v10983_v34 }
0x23f8   :  { %8996 = vmatprep.subr.bf16.mxu1 %v9485_v3 }
0x23fb   :  { %8997 = vmatpush3.bf16.msra.mxu1 %v10995_v2 }
0x23fc   :  { %8998 = vmatprep.subr.bf16.mxu1 %v9485_v3 }
0x23ff   :  { %8999 = vmatpush3.bf16.msra.mxu1 %v11005_v18 }
0x2400   :  { %9020 = vmatprep.subr.bf16.mxu1 %v9485_v3 }
0x24c5   :  { %v8983_v32 = vpop.f32.mrb[92].mxu1 }
0x24c6   :  { %v6150_v45 = vmul.f32 %v8983_v32, %v11080_v16  ;;  %v6140_v58 = vpop.f32.mrb[93].mxu1 }
0x24c7   :  { %v6149_v20 = vmul.f32 %v6140_v58, %v11078_v35 }
0x24c8   :  { %v6158_v23 = vsel %vm206_vm3, %v6150_v45, 0.0 }
0x24c9   :  { %v6159_v48 = vrot.slane %v6158_v23, 4  ;;  %v6151_v21 = vsel %vm206_vm3, %v6149_v20, 0.0 }
0x24ca   :  { %v6152_v52 = vrot.slane %v6151_v21, 4 }
0x24cb   :  { %v6160_v41 = vadd.f32 %v6159_v48, %v6158_v23 }
0x24cc   :  { %v6153_v40 = vadd.f32 %v6152_v52, %v6151_v21 }
0x24cd   :  { %v6161_v24 = vrot.slane %v6160_v41, 2 }
0x24ce   :  { %v6154_v59 = vrot.slane %v6153_v40, 2 }
0x24cf   :  { %v6162_v6 = vadd.f32 %v6161_v24, %v6160_v41 }
0x24d0   :  { %v6155_v42 = vadd.f32 %v6154_v59, %v6153_v40 }
0x24d1   :  { %v6163_v49 = vrot.slane %v6162_v6, 1 }
0x24d2   :  { %v6156_v46 = vrot.slane %v6155_v42, 1 }
0x24d3   :  { %v6164_v1 = vadd.f32 %v6163_v49, %v6162_v6 }
0x24d4   :  { %v6157_v28 = vadd.f32 %v6156_v46, %v6155_v42 }
0x24d5   :  { %v6166_v62 = vpack.c.bf16 %v6164_v1, %v6164_v1 }
0x24d6   :  { %v6165_v36 = vpack.c.bf16 %v6157_v28, %v6157_v28 }
0x24d7   :  { %v6170_v44 = vunpack.c.l.b16 %v6166_v62 }
0x24d8   :  { %v6169_v4 = vunpack.c.l.b16 %v6165_v36 }
0x24da   :  { %v6171_v61 = vsel %vm1404_vm8, %v6170_v44, %v6169_v4 }
0x24db   :  { %v6172_v19 = vpack.c.b16 %v6171_v61, %v6171_v61 }
0x24dd   :  { %8989 = vmatmul.mubr.msk.bf16.vlgmr.msra.gmra.mrb[100].mxu0 %vm206_vm3, %v6172_v19 }
0x24de   :  { %9159 = vmatpush3.bf16.msk.msra.mxu0 %vm9659_vm10, %v12016_v15 }
0x24df   :  { %9161 = vmatprep.subr.msk.bf16.mxu0 %vm9669_vm1, %v12016_v15 }
0x24e2   :  { %9163 = vmatpush3.bf16.msk.msra.mxu0 %vm9669_vm1, %v12016_v15 }
0x24e3   :  { %9015 = vmatprep.subr.msk.mxu0 %vm9740_vm6, %v12017_v30 }
0x25b0   :  { %v6210_v10 = vpop.f32.mrb[100].mxu0 }
0x25b1   :  { %v6223_v31 = vrot.slane %v6210_v10, %v9681_v43  ;;  %v8990_v25 = vpop.f32.mrb[101].mxu0 }
0x25b2   :  { %v6213_v27 = vpop.f32.mrb[102].mxu0 }
0x25b3   :  { %v6224_v38 = vcombine.high %v6223_v31, %v6223_v31  ;;  %v6231_v53 = vrot.slane %v6223_v31, %v9681_v43  ;;  %v8991_v32 = vpop.f32.mrb[103].mxu0 }
0x25b5   :  { %v6238_v45 = vrot.slane %v6224_v38, %v9681_v43  ;;  %v6242_v58 = vrot.slane %v6231_v53, %v9689_v56 }
0x25b7   :  { %v6249_v20 = vmul.f32 %v6242_v58, %v11101_v60  ;;  %v6246_v23 = vrot.slane %v6238_v45, %v9689_v56 }
0x25b9   :  { %v6251_v48 = vsel %vm206_vm3, %v6249_v20, 0.0  ;;  %v6250_v21 = vmul.f32 %v6246_v23, %v11108_v9 }
0x25ba   :  { %6252 = vadd.xlane.f32.xlu0 %v6251_v48 }
0x25bb   :  { %v6254_v52 = vsel %vm206_vm3, %v6250_v21, 0.0 }
0x25bc   :  { %6255 = vadd.xlane.f32.xlu1 %v6254_v52 }
0x2647   :  { %v6253_v41 = vpop.xlane.xlu0 %6252 }
0x2648   :  { %v6257_v40 = vmul.f32 0.17677669, %v6253_v41 }
0x2649   :  { %v6256_v24 = vpop.xlane.xlu1 %6255 }
0x264a   :  { %9413 = vtanh.f32 %v6257_v40  ;;  %v6258_v59 = vmul.f32 0.17677669, %v6256_v24 }
0x264c   :  { %9415 = vtanh.f32 %v6258_v59 }
0x2654   :  { %v9414_v6 = vpop.eup %9413 }
0x2655   :  { %v6261_v42 = vmul.f32 10.0, %v9414_v6 }
0x2656   :  { %v9416_v49 = vpop.eup %9415 }
0x2657   :  { %v6263_v46 = vadd.f32 %v6261_v42, %v11560_v0  ;;  %v6262_v1 = vmul.f32 10.0, %v9416_v49 }
0x2659   :  { %v6265_v28 = vrot.slane %v6263_v46, 4  ;;  %v6264_v62 = vadd.f32 %v6262_v1, %v11557_v13 }
0x265b   :  { %v6266_v36 = vmax.f32 %v6263_v46, %v6265_v28  ;;  %v6271_v44 = vrot.slane %v6264_v62, 4 }
0x265d   :  { %v6267_v4 = vrot.slane %v6266_v36, 2  ;;  %v6272_v61 = vmax.f32 %v6264_v62, %v6271_v44 }
0x265f   :  { %v6268_v19 = vmax.f32 %v6266_v36, %v6267_v4  ;;  %v6273_v10 = vrot.slane %v6272_v61, 2 }
0x2661   :  { %v6269_v31 = vrot.slane %v6268_v19, 1  ;;  %v6274_v25 = vmax.f32 %v6272_v61, %v6273_v10 }
0x2663   :  { %v6270_v27 = vmax.f32 %v6268_v19, %v6269_v31  ;;  %v6275_v38 = vrot.slane %v6274_v25, 1 }
0x2665   :  { %v6277_v53 = vsub.f32 %v6263_v46, %v6270_v27  ;;  %v6276_v32 = vmax.f32 %v6274_v25, %v6275_v38 }
0x2667   :  { %v6279_v45 = vmul.f32 1.442695, %v6277_v53  ;;  %v6278_v58 = vsub.f32 %v6264_v62, %v6276_v32 }
0x2669   :  { %9417 = vpow2.f32 %v6279_v45  ;;  %v6281_v0 = vmul.f32 1.442695, %v6278_v58 }
0x266b   :  { %9419 = vpow2.f32 %v6281_v0 }
0x2673   :  { %v9418_v20 = vpop.eup %9417 }
0x2674   :  { %v6283_v23 = vrot.slane %v9418_v20, 4 }
0x2675   :  { %v9420_v13 = vpop.eup %9419 }
0x2676   :  { %v6284_v48 = vadd.f32 %v9418_v20, %v6283_v23  ;;  %v6289_v21 = vrot.slane %v9420_v13, 4 }
0x2678   :  { %v6285_v52 = vrot.slane %v6284_v48, 2  ;;  %v6290_v41 = vadd.f32 %v9420_v13, %v6289_v21 }
0x267a   :  { %v6286_v40 = vadd.f32 %v6285_v52, %v6284_v48  ;;  %v6291_v24 = vrot.slane %v6290_v41, 2 }
0x267c   :  { %v6287_v59 = vrot.slane %v6286_v40, 1  ;;  %v6292_v6 = vadd.f32 %v6291_v24, %v6290_v41 }
0x267e   :  { %v6288_v42 = vadd.f32 %v6287_v59, %v6286_v40  ;;  %v6293_v49 = vrot.slane %v6292_v6, 1 }
0x2680   :  { %9421 = vlog2.f32 %v6288_v42  ;;  %v6294_v1 = vadd.f32 %v6293_v49, %v6292_v6 }
0x2682   :  { %9423 = vlog2.f32 %v6294_v1  ;;  %v6358_v1 = vsel %vm6357_vm5, 1, %v9490_v8 }
0x268a   :  { %v9422_v28 = vpop.eup %9421 }
0x268b   :  { %v6296_v36 = vmul.f32 0.6931472, %v9422_v28 }
0x268c   :  { %v9424_v44 = vpop.eup %9423 }
0x268d   :  { %v6299_v4 = vadd.f32 %v6296_v36, %v6270_v27  ;;  %v6298_v61 = vmul.f32 0.6931472, %v9424_v44 }
0x268f   :  { %v6301_v19 = vsub.f32 %v6263_v46, %v6299_v4  ;;  %v6300_v10 = vadd.f32 %v6298_v61, %v6276_v32 }
0x2691   :  { %v6303_v31 = vrot.slane %v6301_v19, 4  ;;  %v6302_v25 = vsub.f32 %v6264_v62, %v6300_v10 }
0x2693   :  { %v6304_v38 = vmax.f32 %v6301_v19, %v6303_v31  ;;  %v6309_v53 = vrot.slane %v6302_v25, 4 }
0x2695   :  { %v6305_v45 = vrot.slane %v6304_v38, 2  ;;  %v6310_v58 = vmax.f32 %v6302_v25, %v6309_v53 }
0x2697   :  { %v6306_v0 = vmax.f32 %v6304_v38, %v6305_v45  ;;  %v6311_v20 = vrot.slane %v6310_v58, 2 }
0x2699   :  { %v6307_v23 = vrot.slane %v6306_v0, 1  ;;  %v6312_v13 = vmax.f32 %v6310_v58, %v6311_v20 }
0x269b   :  { %v6308_v48 = vmax.f32 %v6306_v0, %v6307_v23  ;;  %v6313_v21 = vrot.slane %v6312_v13, 1 }
0x269d   :  { %vm6315_vm12 = vcmp.ge.f32.partialorder %v6301_v19, %v6308_v48  ;;  %v6314_v52 = vmax.f32 %v6312_v13, %v6313_v21 }
0x269e   :  { %v6317_v41 = vsel %vm6315_vm12, %v9648_v29, 8 }
0x269f   :  { %v6319_v27 = vrot.slane %v6317_v41, 4  ;;  %vm6316_vm14 = vcmp.ge.f32.partialorder %v6302_v25, %v6314_v52 }
0x26a0   :  { %v6318_v46 = vsel %vm6316_vm14, %v9648_v29, 8 }
0x26a1   :  { %v6328_v32 = vrot.slane %v6318_v46, 4  ;;  %vm6320_vm13 = vcmp.lt.s32.totalorder %v6317_v41, %v6319_v27 }
0x26a2   :  { %v6321_v62 = vsel %vm6320_vm13, %v6317_v41, %v6319_v27 }
0x26a3   :  { %v6322_v40 = vrot.slane %v6321_v62, 2  ;;  %vm6329_vm15 = vcmp.lt.s32.totalorder %v6318_v46, %v6328_v32 }
0x26a4   :  { %v6330_v24 = vsel %vm6329_vm15, %v6318_v46, %v6328_v32 }
0x26a5   :  { %vm6323_vm4 = vcmp.lt.s32.totalorder %v6321_v62, %v6322_v40  ;;  %v6331_v59 = vrot.slane %v6330_v24, 2 }
0x26a6   :  { %v6324_v6 = vsel %vm6323_vm4, %v6321_v62, %v6322_v40 }
0x26a7   :  { %v6325_v42 = vrot.slane %v6324_v6, 1  ;;  %vm6332_vm9 = vcmp.lt.s32.totalorder %v6330_v24, %v6331_v59 }
0x26a8   :  { %v6333_v49 = vsel %vm6332_vm9, %v6330_v24, %v6331_v59 }
0x26a9   :  { %vm6326_vm11 = vcmp.lt.s32.totalorder %v6324_v6, %v6325_v42  ;;  %v6334_v28 = vrot.slane %v6333_v49, 1 }
0x26aa   :  { %v6327_v36 = vsel %vm6326_vm11, %v6324_v6, %v6325_v42 }
0x26ab   :  { %vm6335_vm12 = vcmp.lt.s32.totalorder %v6333_v49, %v6334_v28  ;;  %vm6337_vm14 = vcmp.eq.s32.totalorder %v9648_v29, %v6327_v36  ;;  %v6364_v44 = vmul.u32 %v6358_v1, %v6327_v36 }
0x26ac   :  { %v6336_v4 = vsel %vm6335_vm12, %v6333_v49, %v6334_v28  ;;  %v11617_v61 = vsel %vm6337_vm14, 1.0, %v9485_v3  ;;  %vm6886_vm12 = vcmp.eq.s32.totalorder %v9648_v29, 5 }
0x26ad   :  { %vm6338_vm13 = vcmp.eq.s32.totalorder %v9648_v29, %v6336_v4  ;;  %v6343_v10 = vmul.f32 %v11617_v61, %v6301_v19  ;;  %v6365_v31 = vmul.u32 %v6358_v1, %v6336_v4  ;;  %v11622_v38 = vadd.s32 %v6364_v44, %v11501_v63 }
0x26ae   :  { %v11625_v53 = vsel %vm6338_vm13, 1.0, %v9485_v3  ;;  %v6370_v45 = vmul.f32 %v11617_v61, %v10943_v50 }
0x26af   :  { %v6345_v58 = vrot.slane %v6343_v10, 4  ;;  %v11630_v0 = vadd.s32 %v6365_v31, %v11509_v51  ;;  %v6371_v20 = vmul.f32 %v11625_v53, %v10945_v54  ;;  %v6344_v23 = vmul.f32 %v11625_v53, %v6302_v25 }
0x26b0   :  { %v6372_v19 = vsel %vm206_vm3, %v6370_v45, 0.0  ;;  %v8237_v25 = vsel %vm6357_vm5, 1.0, %v9485_v3 }
0x26b1   :  { %v6346_v13 = vadd.f32 %v6345_v58, %v6343_v10  ;;  %v6373_v63 = vrot.slane %v6372_v19, 4  ;;  %v6379_v48 = vsel %vm206_vm3, %v6371_v20, 0.0  ;;  %v6351_v21 = vrot.slane %v6344_v23, 4 }
0x26b2   :  { %v6380_v52 = vrot.slane %v6379_v48, 4 }
0x26b3   :  { %v6347_v41 = vrot.slane %v6346_v13, 2  ;;  %v6374_v27 = vadd.f32 %v6373_v63, %v6372_v19  ;;  %v6352_v46 = vadd.f32 %v6351_v21, %v6344_v23 }
0x26b4   :  { %v6381_v32 = vadd.f32 %v6380_v52, %v6379_v48 }
0x26b5   :  { %v6348_v62 = vadd.f32 %v6347_v41, %v6346_v13  ;;  %v6375_v51 = vrot.slane %v6374_v27, 2  ;;  %v6353_v40 = vrot.slane %v6352_v46, 2 }
0x26b6   :  { %v6382_v24 = vrot.slane %v6381_v32, 2 }
0x26b7   :  { %v6349_v59 = vrot.slane %v6348_v62, 1  ;;  %v6376_v6 = vadd.f32 %v6375_v51, %v6374_v27  ;;  %v6354_v42 = vadd.f32 %v6353_v40, %v6352_v46 }
0x26b8   :  { %v6383_v49 = vadd.f32 %v6382_v24, %v6381_v32 }
0x26b9   :  { %v6350_v1 = vadd.f32 %v6349_v59, %v6348_v62  ;;  %v6377_v28 = vrot.slane %v6376_v6, 1  ;;  %v6355_v36 = vrot.slane %v6354_v42, 1 }
0x26ba   :  { %v6384_v44 = vrot.slane %v6383_v49, 1 }
0x26bb   :  { %v6360_v4 = vmul.f32 %v8237_v25, %v6350_v1  ;;  %v6356_v10 = vadd.f32 %v6355_v36, %v6354_v42  ;;  %v6378_v31 = vadd.f32 %v6377_v28, %v6376_v6  ;;  %v11675_v42 = vmax.f32 %v11550_v11, %v11625_v53 }
0x26bc   :  { %v6385_v45 = vadd.f32 %v6384_v44, %v6383_v49 }
0x26bd   :  { %v11641_v58 = vadd.f32 %v6360_v4, %v11517_v12  ;;  %v6361_v20 = vmul.f32 %v8237_v25, %v6356_v10  ;;  %v11679_v25 = vmax.f32 %v11554_v22, %v11617_v61  ;;  %v11682_v49 = vmul.f32 -1e+09, %v11675_v42 }
0x26be   :  { %v6388_v23 = vsel %vm1404_vm8, %v6385_v45, %v6378_v31 }
0x26bf   :  { %6389 = vrot.lane.b32.xlu0 %v6388_v23, %s9493_s14  ;;  %v11646_v19 = vadd.f32 %v6361_v20, %v11522_v33  ;;  %v11685_v28 = vmul.f32 -1e+09, %v11679_v25 }
0x2731   :  { %v6390_v13 = vpop.permute.xlu0 %6389 }
0x2732   :  { %v6392_v63 = vsel %vm206_vm3, %v11142_v7, %v6390_v13 }
0x2733   :  { %v6393_v48 = vpack.c.bf16 %v6392_v63, %v6392_v63 }
0x2735   :  { %9001 = vmatmul.mubr.msk.bf16.vlgmr.msra.gmra.mrb[96].mxu1 %vm3735_vm0, %v6393_v48 }
0x2736   :  { %9021 = vmatpush3.bf16.msra.mxu1 %v11062_v26  ;;  %9024 = vmatprep.mubr.msk.bf16.mxu1 %vm9486_vm2, %v9485_v3 }
0x2737   :  { %9022 = vmatprep.subr.bf16.mxu1 %v9485_v3 }
0x273a   :  { %9023 = vmatpush3.bf16.msra.mxu1 %v11072_v57 }
0x273b   :  { %9165 = vmatprep.subr.msk.bf16.mxu1 %vm9659_vm10, %v12016_v15 }
0x2808   :  { %v6431_v12 = vpop.f32.mrb[96].mxu1 }
0x2809   :  { %v6437_v33 = vadd.f32 %v6431_v12, %v11032_v14  ;;  %v9002_v21 = vpop.f32.mrb[97].mxu1 }
0x280a   :  { %v6434_v52 = vpop.f32.mrb[98].mxu1 }
0x280b   :  { %v6438_v41 = vmul.f32 0.5, %v6437_v33  ;;  %v9003_v27 = vpop.f32.mrb[99].mxu1 }
0x280d   :  { %v6446_v46 = vrot.slane %v6438_v41, %v9681_v43 }
0x280f   :  { %v6447_v32 = vcombine.high %v6446_v46, %v6446_v46  ;;  %v6454_v62 = vrot.slane %v6446_v46, %v9681_v43 }
0x2811   :  { %v6461_v51 = vrot.slane %v6447_v32, %v9681_v43  ;;  %v6465_v40 = vrot.slane %v6454_v62, %v9689_v56 }
0x2813   :  { %v6469_v24 = vrot.slane %v6461_v51, %v9689_v56  ;;  %v6472_v59 = vmul.f32 %v6465_v40, %v11024_v17 }
0x2815   :  { %v6473_v6 = vmul.f32 %v6469_v24, %v11028_v55  ;;  %9012 = vmatprep.mubr.msk.f32.mxu0 %vm206_vm3, %v6472_v59 }
0x2817   :  { %9013 = vmatmul.mubr.msk.f32.vlgmr.msra.gmra.mrb[104].mxu0 %vm206_vm3, %v6473_v6 }
0x2818   :  { %9016 = vmatpush3.msk.msra.mxu0 %vm9740_vm6, %v12017_v30 }
0x2819   :  { %9028 = vmatprep.subr.bf16.mxu0 %v9485_v3 }
0x28ea   :  { %v9014_v1 = vpop.f32.mrb[104].mxu0 }
0x28eb   :  { %v6558_v36 = vadd.f32 %v9014_v1, %v11682_v49  ;;  %v6546_v44 = vpop.f32.mrb[105].mxu0 }
0x28ec   :  { %v6557_v4 = vadd.f32 %v11685_v28, %v6546_v44 }
0x28ed   :  { %v6566_v10 = vsel %vm728_vm7, %v6558_v36, -inf }
0x28ee   :  { %v6567_v11 = vrot.slane %v6566_v10, 4  ;;  %v6559_v53 = vsel %vm728_vm7, %v6557_v4, -inf }
0x28ef   :  { %v6560_v31 = vrot.slane %v6559_v53, 4 }
0x28f0   :  { %v6568_v22 = vmax.f32 %v6566_v10, %v6567_v11 }
0x28f1   :  { %v6561_v61 = vmax.f32 %v6559_v53, %v6560_v31 }
0x28f2   :  { %v6569_v45 = vrot.slane %v6568_v22, 2 }
0x28f3   :  { %v6562_v20 = vrot.slane %v6561_v61, 2 }
0x28f4   :  { %v6570_v23 = vmax.f32 %v6568_v22, %v6569_v45 }
0x28f5   :  { %v6563_v13 = vmax.f32 %v6561_v61, %v6562_v20 }
0x28f6   :  { %v6571_v63 = vrot.slane %v6570_v23, 1 }
0x28f7   :  { %v6564_v48 = vrot.slane %v6563_v13, 1 }
0x28f8   :  { %v6572_v12 = vmax.f32 %v6570_v23, %v6571_v63 }
0x28f9   :  { %v6565_v33 = vmax.f32 %v6563_v13, %v6564_v48 }
0x28fa   :  { %v6574_v21 = vsub.f32 %v6558_v36, %v6572_v12 }
0x28fb   :  { %v6573_v52 = vsub.f32 %v6557_v4, %v6565_v33 }
0x28fc   :  { %v6577_v41 = vmul.f32 1.442695, %v6574_v21 }
0x28fd   :  { %v6575_v27 = vmul.f32 1.442695, %v6573_v52 }
0x28fe   :  { %9425 = vpow2.f32 %v6577_v41 }
0x28ff   :  { %9427 = vpow2.f32 %v6575_v27 }
0x2908   :  { %v9426_v46 = vpop.eup %9425 }
0x2909   :  { %v9428_v32 = vpop.eup %9427  ;;  %v6586_v62 = vsel %vm728_vm7, %v9426_v46, 0.0 }
0x290a   :  { %v6587_v51 = vrot.slane %v6586_v62, 4  ;;  %v6579_v40 = vsel %vm728_vm7, %v9428_v32, 0.0 }
0x290b   :  { %v6580_v24 = vrot.slane %v6579_v40, 4 }
0x290c   :  { %v6588_v59 = vadd.f32 %v6587_v51, %v6586_v62 }
0x290d   :  { %v6581_v6 = vadd.f32 %v6580_v24, %v6579_v40 }
0x290e   :  { %v6589_v1 = vrot.slane %v6588_v59, 2 }
0x290f   :  { %v6582_v44 = vrot.slane %v6581_v6, 2 }
0x2910   :  { %v6590_v10 = vadd.f32 %v6589_v1, %v6588_v59 }
0x2911   :  { %v6583_v11 = vadd.f32 %v6582_v44, %v6581_v6 }
0x2912   :  { %v6591_v36 = vrot.slane %v6590_v10, 1 }
0x2913   :  { %v6584_v4 = vrot.slane %v6583_v11, 1 }
0x2914   :  { %v6592_v53 = vadd.f32 %v6591_v36, %v6590_v10 }
0x2915   :  { %v6585_v31 = vadd.f32 %v6584_v4, %v6583_v11 }
0x2916   :  { %9429 = vrcp.f32 %v6592_v53 }
0x2917   :  { %9431 = vrcp.f32 %v6585_v31 }
0x2920   :  { %v9430_v22 = vpop.eup %9429 }
0x2921   :  { %v9432_v61 = vpop.eup %9431  ;;  %v6596_v20 = vmul.f32 %v9430_v22, %v9426_v46 }
0x2922   :  { %v6595_v45 = vmul.f32 %v9432_v61, %v9428_v32 }
0x2924   :  { %9017 = vmatprep.mubr.msk.f32.mxu0 %vm728_vm7, %v6595_v45 }
0x2925   :  { %9018 = vmatmul.mubr.msk.f32.vlgmr.msra.gmra.mrb[106].mxu0 %vm728_vm7, %v6596_v20 }
0x2926   :  { %9029 = vmatpush3.bf16.msra.mxu0 %v10973_v47  ;;  %9036 = vmatprep.mubr.msk.bf16.mxu0 %vm9486_vm2, %v9485_v3 }
0x2927   :  { %9030 = vmatprep.subr.bf16.mxu0 %v9485_v3 }
0x292a   :  { %9031 = vmatpush3.bf16.msra.mxu0 %v10983_v34 }
0x292b   :  { %9032 = vmatprep.subr.bf16.mxu0 %v9485_v3 }
0x292e   :  { %9033 = vmatpush3.bf16.msra.mxu0 %v10995_v2 }
0x292f   :  { %9034 = vmatprep.subr.bf16.mxu0 %v9485_v3 }
0x2932   :  { %9035 = vmatpush3.bf16.msra.mxu0 %v11005_v18 }
0x2933   :  { %9056 = vmatprep.subr.bf16.mxu0 %v9485_v3 }
0x29f8   :  { %v9019_v23 = vpop.f32.mrb[106].mxu0 }
0x29f9   :  { %v6679_v13 = vmul.f32 %v9019_v23, %v11080_v16  ;;  %v6669_v63 = vpop.f32.mrb[107].mxu0 }
0x29fa   :  { %v6678_v48 = vmul.f32 %v6669_v63, %v11078_v35 }
0x29fb   :  { %v6687_v12 = vsel %vm206_vm3, %v6679_v13, 0.0 }
0x29fc   :  { %v6688_v33 = vrot.slane %v6687_v12, 4  ;;  %v6680_v21 = vsel %vm206_vm3, %v6678_v48, 0.0 }
0x29fd   :  { %v6681_v52 = vrot.slane %v6680_v21, 4 }
0x29fe   :  { %v6689_v41 = vadd.f32 %v6688_v33, %v6687_v12 }
0x29ff   :  { %v6682_v27 = vadd.f32 %v6681_v52, %v6680_v21 }
0x2a00   :  { %v6690_v46 = vrot.slane %v6689_v41, 2 }
0x2a01   :  { %v6683_v32 = vrot.slane %v6682_v27, 2 }
0x2a02   :  { %v6691_v62 = vadd.f32 %v6690_v46, %v6689_v41 }
0x2a03   :  { %v6684_v51 = vadd.f32 %v6683_v32, %v6682_v27 }
0x2a04   :  { %v6692_v40 = vrot.slane %v6691_v62, 1 }
0x2a05   :  { %v6685_v24 = vrot.slane %v6684_v51, 1 }
0x2a06   :  { %v6693_v59 = vadd.f32 %v6692_v40, %v6691_v62 }
0x2a07   :  { %v6686_v6 = vadd.f32 %v6685_v24, %v6684_v51 }
0x2a08   :  { %v6695_v1 = vpack.c.bf16 %v6693_v59, %v6693_v59 }
0x2a09   :  { %v6694_v44 = vpack.c.bf16 %v6686_v6, %v6686_v6 }
0x2a0a   :  { %v6699_v10 = vunpack.c.l.b16 %v6695_v1 }
0x2a0b   :  { %v6698_v11 = vunpack.c.l.b16 %v6694_v44 }
0x2a0d   :  { %v6700_v36 = vsel %vm1404_vm8, %v6699_v10, %v6698_v11 }
0x2a0e   :  { %v6701_v4 = vpack.c.b16 %v6700_v36, %v6700_v36 }
0x2a10   :  { %9025 = vmatmul.mubr.msk.bf16.vlgmr.msra.gmra.mrb[100].mxu1 %vm206_vm3, %v6701_v4 }
0x2a11   :  { %9167 = vmatpush3.bf16.msk.msra.mxu1 %vm9659_vm10, %v12016_v15 }
0x2a12   :  { %9169 = vmatprep.subr.msk.bf16.mxu1 %vm9669_vm1, %v12016_v15 }
0x2a15   :  { %9171 = vmatpush3.bf16.msk.msra.mxu1 %vm9669_vm1, %v12016_v15 }
0x2a16   :  { %9051 = vmatprep.subr.msk.mxu1 %vm9740_vm6, %v12017_v30 }
0x2ae3   :  { %v6739_v53 = vpop.f32.mrb[100].mxu1 }
0x2ae4   :  { %v6752_v31 = vrot.slane %v6739_v53, %v9681_v43  ;;  %v9026_v22 = vpop.f32.mrb[101].mxu1 }
0x2ae5   :  { %v6742_v61 = vpop.f32.mrb[102].mxu1 }
0x2ae6   :  { %v6753_v45 = vcombine.high %v6752_v31, %v6752_v31  ;;  %v6760_v20 = vrot.slane %v6752_v31, %v9681_v43  ;;  %v9027_v23 = vpop.f32.mrb[103].mxu1 }
0x2ae8   :  { %v6767_v13 = vrot.slane %v6753_v45, %v9681_v43  ;;  %v6771_v63 = vrot.slane %v6760_v20, %v9689_v56 }
0x2aea   :  { %v6778_v48 = vmul.f32 %v6771_v63, %v11101_v60  ;;  %v6775_v12 = vrot.slane %v6767_v13, %v9689_v56 }
0x2aec   :  { %v6780_v33 = vsel %vm206_vm3, %v6778_v48, 0.0  ;;  %v6779_v21 = vmul.f32 %v6775_v12, %v11108_v9 }
0x2aed   :  { %6781 = vadd.xlane.f32.xlu1 %v6780_v33 }
0x2aee   :  { %v6783_v52 = vsel %vm206_vm3, %v6779_v21, 0.0 }
0x2aef   :  { %6784 = vadd.xlane.f32.xlu0 %v6783_v52 }
0x2b7a   :  { %v6782_v41 = vpop.xlane.xlu1 %6781 }
0x2b7b   :  { %v6786_v27 = vmul.f32 0.17677669, %v6782_v41 }
0x2b7c   :  { %v6785_v46 = vpop.xlane.xlu0 %6784 }
0x2b7d   :  { %9433 = vtanh.f32 %v6786_v27  ;;  %v6787_v32 = vmul.f32 0.17677669, %v6785_v46 }
0x2b7f   :  { %9435 = vtanh.f32 %v6787_v32 }
0x2b87   :  { %v9434_v62 = vpop.eup %9433 }
0x2b88   :  { %v6790_v51 = vmul.f32 10.0, %v9434_v62 }
0x2b89   :  { %v9436_v40 = vpop.eup %9435 }
0x2b8a   :  { %v6792_v24 = vadd.f32 %v6790_v51, %v11685_v28  ;;  %v6791_v59 = vmul.f32 10.0, %v9436_v40 }
0x2b8c   :  { %v6794_v6 = vrot.slane %v6792_v24, 4  ;;  %v6793_v1 = vadd.f32 %v6791_v59, %v11682_v49 }
0x2b8e   :  { %v6795_v44 = vmax.f32 %v6792_v24, %v6794_v6  ;;  %v6800_v10 = vrot.slane %v6793_v1, 4 }
0x2b90   :  { %v6796_v11 = vrot.slane %v6795_v44, 2  ;;  %v6801_v36 = vmax.f32 %v6793_v1, %v6800_v10 }
0x2b92   :  { %v6797_v4 = vmax.f32 %v6795_v44, %v6796_v11  ;;  %v6802_v53 = vrot.slane %v6801_v36, 2 }
0x2b94   :  { %v6798_v31 = vrot.slane %v6797_v4, 1  ;;  %v6803_v22 = vmax.f32 %v6801_v36, %v6802_v53 }
0x2b96   :  { %v6799_v61 = vmax.f32 %v6797_v4, %v6798_v31  ;;  %v6804_v45 = vrot.slane %v6803_v22, 1 }
0x2b98   :  { %v6806_v20 = vsub.f32 %v6792_v24, %v6799_v61  ;;  %v6805_v23 = vmax.f32 %v6803_v22, %v6804_v45 }
0x2b9a   :  { %v6808_v13 = vmul.f32 1.442695, %v6806_v20  ;;  %v6807_v63 = vsub.f32 %v6793_v1, %v6805_v23 }
0x2b9c   :  { %9437 = vpow2.f32 %v6808_v13  ;;  %v6810_v28 = vmul.f32 1.442695, %v6807_v63 }
0x2b9e   :  { %9439 = vpow2.f32 %v6810_v28 }
0x2ba6   :  { %v9438_v48 = vpop.eup %9437 }
0x2ba7   :  { %v6812_v12 = vrot.slane %v9438_v48, 4 }
0x2ba8   :  { %v9440_v49 = vpop.eup %9439 }
0x2ba9   :  { %v6813_v33 = vadd.f32 %v9438_v48, %v6812_v12  ;;  %v6818_v21 = vrot.slane %v9440_v49, 4 }
0x2bab   :  { %v6814_v52 = vrot.slane %v6813_v33, 2  ;;  %v6819_v41 = vadd.f32 %v9440_v49, %v6818_v21 }
0x2bad   :  { %v6815_v27 = vadd.f32 %v6814_v52, %v6813_v33  ;;  %v6820_v46 = vrot.slane %v6819_v41, 2 }
0x2baf   :  { %v6816_v32 = vrot.slane %v6815_v27, 1  ;;  %v6821_v62 = vadd.f32 %v6820_v46, %v6819_v41 }
0x2bb1   :  { %v6817_v51 = vadd.f32 %v6816_v32, %v6815_v27  ;;  %v6822_v40 = vrot.slane %v6821_v62, 1 }
0x2bb3   :  { %9441 = vlog2.f32 %v6817_v51  ;;  %v6823_v59 = vadd.f32 %v6822_v40, %v6821_v62 }
0x2bb5   :  { %9443 = vlog2.f32 %v6823_v59  ;;  %v6887_v59 = vsel %vm6886_vm12, 1, %v9490_v8 }
0x2bbd   :  { %v9442_v6 = vpop.eup %9441 }
0x2bbe   :  { %v6825_v44 = vmul.f32 0.6931472, %v9442_v6 }
0x2bbf   :  { %v9444_v10 = vpop.eup %9443 }
0x2bc0   :  { %v6828_v11 = vadd.f32 %v6825_v44, %v6799_v61  ;;  %v6827_v36 = vmul.f32 0.6931472, %v9444_v10 }
0x2bc2   :  { %v6830_v4 = vsub.f32 %v6792_v24, %v6828_v11  ;;  %v6829_v53 = vadd.f32 %v6827_v36, %v6805_v23 }
0x2bc4   :  { %v6832_v31 = vrot.slane %v6830_v4, 4  ;;  %v6831_v22 = vsub.f32 %v6793_v1, %v6829_v53 }
0x2bc6   :  { %v6833_v45 = vmax.f32 %v6830_v4, %v6832_v31  ;;  %v6838_v20 = vrot.slane %v6831_v22, 4 }
0x2bc8   :  { %v6834_v13 = vrot.slane %v6833_v45, 2  ;;  %v6839_v63 = vmax.f32 %v6831_v22, %v6838_v20 }
0x2bca   :  { %v6835_v28 = vmax.f32 %v6833_v45, %v6834_v13  ;;  %v6840_v48 = vrot.slane %v6839_v63, 2 }
0x2bcc   :  { %v6836_v12 = vrot.slane %v6835_v28, 1  ;;  %v6841_v49 = vmax.f32 %v6839_v63, %v6840_v48 }
0x2bce   :  { %v6837_v33 = vmax.f32 %v6835_v28, %v6836_v12  ;;  %v6842_v21 = vrot.slane %v6841_v49, 1 }
0x2bd0   :  { %vm6844_vm15 = vcmp.ge.f32.partialorder %v6830_v4, %v6837_v33  ;;  %v6843_v52 = vmax.f32 %v6841_v49, %v6842_v21 }
0x2bd1   :  { %v6846_v41 = vsel %vm6844_vm15, %v9648_v29, 8 }
0x2bd2   :  { %v6848_v61 = vrot.slane %v6846_v41, 4  ;;  %vm6845_vm4 = vcmp.ge.f32.partialorder %v6831_v22, %v6843_v52 }
0x2bd3   :  { %v6847_v24 = vsel %vm6845_vm4, %v9648_v29, 8 }
0x2bd4   :  { %v6857_v23 = vrot.slane %v6847_v24, 4  ;;  %vm6849_vm5 = vcmp.lt.s32.totalorder %v6846_v41, %v6848_v61 }
0x2bd5   :  { %v6850_v1 = vsel %vm6849_vm5, %v6846_v41, %v6848_v61 }
0x2bd6   :  { %v6851_v27 = vrot.slane %v6850_v1, 2  ;;  %vm6858_vm9 = vcmp.lt.s32.totalorder %v6847_v24, %v6857_v23 }
0x2bd7   :  { %v6859_v46 = vsel %vm6858_vm9, %v6847_v24, %v6857_v23 }
0x2bd8   :  { %vm6852_vm11 = vcmp.lt.s32.totalorder %v6850_v1, %v6851_v27  ;;  %v6860_v32 = vrot.slane %v6859_v46, 2 }
0x2bd9   :  { %v6853_v62 = vsel %vm6852_vm11, %v6850_v1, %v6851_v27 }
0x2bda   :  { %v6854_v51 = vrot.slane %v6853_v62, 1  ;;  %vm6861_vm14 = vcmp.lt.s32.totalorder %v6859_v46, %v6860_v32 }
0x2bdb   :  { %v6862_v40 = vsel %vm6861_vm14, %v6859_v46, %v6860_v32  ;;  %vm7415_vm14 = vcmp.eq.s32.totalorder %v9648_v29, 6 }
0x2bdc   :  { %vm6855_vm13 = vcmp.lt.s32.totalorder %v6853_v62, %v6854_v51  ;;  %v6863_v6 = vrot.slane %v6862_v40, 1 }
0x2bdd   :  { %v6856_v44 = vsel %vm6855_vm13, %v6853_v62, %v6854_v51 }
0x2bde   :  { %vm6864_vm15 = vcmp.lt.s32.totalorder %v6862_v40, %v6863_v6  ;;  %vm6866_vm4 = vcmp.eq.s32.totalorder %v9648_v29, %v6856_v44  ;;  %v6893_v10 = vmul.u32 %v6887_v59, %v6856_v44 }
0x2bdf   :  { %v6865_v11 = vsel %vm6864_vm15, %v6862_v40, %v6863_v6  ;;  %v11742_v36 = vsel %vm6866_vm4, 1.0, %v9485_v3 }
0x2be0   :  { %vm6867_vm5 = vcmp.eq.s32.totalorder %v9648_v29, %v6865_v11  ;;  %v6872_v53 = vmul.f32 %v11742_v36, %v6830_v4  ;;  %v6894_v31 = vmul.u32 %v6887_v59, %v6865_v11  ;;  %v11747_v45 = vadd.s32 %v6893_v10, %v11622_v38 }
0x2be1   :  { %v11750_v20 = vsel %vm6867_vm5, 1.0, %v9485_v3  ;;  %v6899_v13 = vmul.f32 %v11742_v36, %v10943_v50 }
0x2be2   :  { %v6874_v63 = vrot.slane %v6872_v53, 4  ;;  %v11755_v28 = vadd.s32 %v6894_v31, %v11630_v0  ;;  %v6900_v48 = vmul.f32 %v11750_v20, %v10945_v54  ;;  %v6873_v12 = vmul.f32 %v11750_v20, %v6831_v22 }
0x2be3   :  { %v6901_v4 = vsel %vm206_vm3, %v6899_v13, 0.0  ;;  %v8251_v22 = vsel %vm6886_vm12, 1.0, %v9485_v3 }
0x2be4   :  { %v6875_v49 = vadd.f32 %v6874_v63, %v6872_v53  ;;  %v6902_v38 = vrot.slane %v6901_v4, 4  ;;  %v6908_v33 = vsel %vm206_vm3, %v6900_v48, 0.0  ;;  %v6880_v21 = vrot.slane %v6873_v12, 4 }
0x2be5   :  { %v6909_v52 = vrot.slane %v6908_v33, 4 }
0x2be6   :  { %v6876_v41 = vrot.slane %v6875_v49, 2  ;;  %v6903_v61 = vadd.f32 %v6902_v38, %v6901_v4  ;;  %v6881_v24 = vadd.f32 %v6880_v21, %v6873_v12 }
0x2be7   :  { %v6910_v23 = vadd.f32 %v6909_v52, %v6908_v33 }
0x2be8   :  { %v6877_v1 = vadd.f32 %v6876_v41, %v6875_v49  ;;  %v6904_v0 = vrot.slane %v6903_v61, 2  ;;  %v6882_v27 = vrot.slane %v6881_v24, 2 }
0x2be9   :  { %v6911_v46 = vrot.slane %v6910_v23, 2 }
0x2bea   :  { %v6878_v32 = vrot.slane %v6877_v1, 1  ;;  %v6905_v62 = vadd.f32 %v6904_v0, %v6903_v61  ;;  %v6883_v51 = vadd.f32 %v6882_v27, %v6881_v24 }
0x2beb   :  { %v6912_v40 = vadd.f32 %v6911_v46, %v6910_v23 }
0x2bec   :  { %v6879_v59 = vadd.f32 %v6878_v32, %v6877_v1  ;;  %v6906_v6 = vrot.slane %v6905_v62, 1  ;;  %v6884_v44 = vrot.slane %v6883_v51, 1 }
0x2bed   :  { %v6913_v10 = vrot.slane %v6912_v40, 1 }
0x2bee   :  { %v6889_v11 = vmul.f32 %v8251_v22, %v6879_v59  ;;  %v6885_v53 = vadd.f32 %v6884_v44, %v6883_v51  ;;  %v6907_v31 = vadd.f32 %v6906_v6, %v6905_v62  ;;  %v11800_v51 = vmax.f32 %v11675_v42, %v11750_v20 }
0x2bef   :  { %v6914_v13 = vadd.f32 %v6913_v10, %v6912_v40 }
0x2bf0   :  { %v11766_v63 = vadd.f32 %v6889_v11, %v11641_v58  ;;  %v6890_v48 = vmul.f32 %v8251_v22, %v6885_v53  ;;  %v11804_v22 = vmax.f32 %v11679_v25, %v11742_v36  ;;  %v11807_v40 = vmul.f32 -1e+09, %v11800_v51 }
0x2bf1   :  { %v6917_v12 = vsel %vm1404_vm8, %v6914_v13, %v6907_v31 }
0x2bf2   :  { %6918 = vrot.lane.b32.xlu1 %v6917_v12, %s9493_s14  ;;  %v11771_v4 = vadd.f32 %v6890_v48, %v11646_v19  ;;  %v11810_v6 = vmul.f32 -1e+09, %v11804_v22 }
0x2c64   :  { %v6919_v49 = vpop.permute.xlu1 %6918 }
0x2c65   :  { %v6921_v38 = vsel %vm206_vm3, %v11142_v7, %v6919_v49 }
0x2c66   :  { %v6922_v33 = vpack.c.bf16 %v6921_v38, %v6921_v38 }
0x2c68   :  { %9037 = vmatmul.mubr.msk.bf16.vlgmr.msra.gmra.mrb[108].mxu0 %vm3735_vm0, %v6922_v33 }
0x2c69   :  { %9057 = vmatpush3.bf16.msra.mxu0 %v11062_v26  ;;  %9060 = vmatprep.mubr.msk.bf16.mxu0 %vm9486_vm2, %v9485_v3 }
0x2c6a   :  { %9058 = vmatprep.subr.bf16.mxu0 %v9485_v3 }
0x2c6d   :  { %9059 = vmatpush3.bf16.msra.mxu0 %v11072_v57 }
0x2c6e   :  { %9173 = vmatprep.subr.msk.bf16.mxu0 %vm9659_vm10, %v12016_v15 }
0x2d3b   :  { %v6960_v58 = vpop.f32.mrb[108].mxu0 }
0x2d3c   :  { %v6966_v19 = vadd.f32 %v6960_v58, %v11032_v14  ;;  %v9038_v21 = vpop.f32.mrb[109].mxu0 }
0x2d3d   :  { %v6963_v52 = vpop.f32.mrb[110].mxu0 }
0x2d3e   :  { %v6967_v41 = vmul.f32 0.5, %v6966_v19  ;;  %v9039_v61 = vpop.f32.mrb[111].mxu0 }
0x2d40   :  { %v6975_v24 = vrot.slane %v6967_v41, %v9681_v43 }
0x2d42   :  { %v6976_v23 = vcombine.high %v6975_v24, %v6975_v24  ;;  %v6983_v1 = vrot.slane %v6975_v24, %v9681_v43 }
0x2d44   :  { %v6990_v0 = vrot.slane %v6976_v23, %v9681_v43  ;;  %v6994_v27 = vrot.slane %v6983_v1, %v9689_v56 }
0x2d46   :  { %v6998_v46 = vrot.slane %v6990_v0, %v9689_v56  ;;  %v7001_v32 = vmul.f32 %v6994_v27, %v11024_v17 }
0x2d48   :  { %v7002_v62 = vmul.f32 %v6998_v46, %v11028_v55  ;;  %9048 = vmatprep.mubr.msk.f32.mxu1 %vm206_vm3, %v7001_v32 }
0x2d4a   :  { %9049 = vmatmul.mubr.msk.f32.vlgmr.msra.gmra.mrb[94].mxu1 %vm206_vm3, %v7002_v62 }
0x2d4b   :  { %9052 = vmatpush3.msk.msra.mxu1 %vm9740_vm6, %v12017_v30 }
0x2d4c   :  { %9064 = vmatprep.subr.bf16.mxu1 %v9485_v3 }
0x2e1d   :  { %v9050_v59 = vpop.f32.mrb[94].mxu1 }
0x2e1e   :  { %v7087_v44 = vadd.f32 %v9050_v59, %v11807_v40  ;;  %v7075_v10 = vpop.f32.mrb[95].mxu1 }
0x2e1f   :  { %v7086_v11 = vadd.f32 %v11810_v6, %v7075_v10 }
0x2e20   :  { %v7095_v53 = vsel %vm728_vm7, %v7087_v44, -inf }
0x2e21   :  { %v7096_v42 = vrot.slane %v7095_v53, 4  ;;  %v7088_v20 = vsel %vm728_vm7, %v7086_v11, -inf }
0x2e22   :  { %v7089_v31 = vrot.slane %v7088_v20, 4 }
0x2e23   :  { %v7097_v25 = vmax.f32 %v7095_v53, %v7096_v42 }
0x2e24   :  { %v7090_v36 = vmax.f32 %v7088_v20, %v7089_v31 }
0x2e25   :  { %v7098_v13 = vrot.slane %v7097_v25, 2 }
0x2e26   :  { %v7091_v48 = vrot.slane %v7090_v36, 2 }
0x2e27   :  { %v7099_v12 = vmax.f32 %v7097_v25, %v7098_v13 }
0x2e28   :  { %v7092_v49 = vmax.f32 %v7090_v36, %v7091_v48 }
0x2e29   :  { %v7100_v38 = vrot.slane %v7099_v12, 1 }
0x2e2a   :  { %v7093_v33 = vrot.slane %v7092_v49, 1 }
0x2e2b   :  { %v7101_v58 = vmax.f32 %v7099_v12, %v7100_v38 }
0x2e2c   :  { %v7094_v19 = vmax.f32 %v7092_v49, %v7093_v33 }
0x2e2d   :  { %v7103_v21 = vsub.f32 %v7087_v44, %v7101_v58 }
0x2e2e   :  { %v7102_v52 = vsub.f32 %v7086_v11, %v7094_v19 }
0x2e2f   :  { %v7106_v41 = vmul.f32 1.442695, %v7103_v21 }
0x2e30   :  { %v7104_v61 = vmul.f32 1.442695, %v7102_v52 }
0x2e31   :  { %9445 = vpow2.f32 %v7106_v41 }
0x2e32   :  { %9447 = vpow2.f32 %v7104_v61 }
0x2e3b   :  { %v9446_v24 = vpop.eup %9445 }
0x2e3c   :  { %v9448_v23 = vpop.eup %9447  ;;  %v7115_v1 = vsel %vm728_vm7, %v9446_v24, 0.0 }
0x2e3d   :  { %v7116_v0 = vrot.slane %v7115_v1, 4  ;;  %v7108_v27 = vsel %vm728_vm7, %v9448_v23, 0.0 }
0x2e3e   :  { %v7109_v46 = vrot.slane %v7108_v27, 4 }
0x2e3f   :  { %v7117_v32 = vadd.f32 %v7116_v0, %v7115_v1 }
0x2e40   :  { %v7110_v62 = vadd.f32 %v7109_v46, %v7108_v27 }
0x2e41   :  { %v7118_v59 = vrot.slane %v7117_v32, 2 }
0x2e42   :  { %v7111_v10 = vrot.slane %v7110_v62, 2 }
0x2e43   :  { %v7119_v53 = vadd.f32 %v7118_v59, %v7117_v32 }
0x2e44   :  { %v7112_v42 = vadd.f32 %v7111_v10, %v7110_v62 }
0x2e45   :  { %v7120_v44 = vrot.slane %v7119_v53, 1 }
0x2e46   :  { %v7113_v11 = vrot.slane %v7112_v42, 1 }
0x2e47   :  { %v7121_v20 = vadd.f32 %v7120_v44, %v7119_v53 }
0x2e48   :  { %v7114_v31 = vadd.f32 %v7113_v11, %v7112_v42 }
0x2e49   :  { %9449 = vrcp.f32 %v7121_v20 }
0x2e4a   :  { %9451 = vrcp.f32 %v7114_v31 }
0x2e53   :  { %v9450_v25 = vpop.eup %9449 }
0x2e54   :  { %v9452_v36 = vpop.eup %9451  ;;  %v7125_v48 = vmul.f32 %v9450_v25, %v9446_v24 }
0x2e55   :  { %v7124_v13 = vmul.f32 %v9452_v36, %v9448_v23 }
0x2e57   :  { %9053 = vmatprep.mubr.msk.f32.mxu1 %vm728_vm7, %v7124_v13 }
0x2e58   :  { %9054 = vmatmul.mubr.msk.f32.vlgmr.msra.gmra.mrb[104].mxu1 %vm728_vm7, %v7125_v48 }
0x2e59   :  { %9065 = vmatpush3.bf16.msra.mxu1 %v10973_v47  ;;  %9072 = vmatprep.mubr.msk.bf16.mxu1 %vm9486_vm2, %v9485_v3 }
0x2e5a   :  { %9066 = vmatprep.subr.bf16.mxu1 %v9485_v3 }
0x2e5d   :  { %9067 = vmatpush3.bf16.msra.mxu1 %v10983_v34 }
0x2e5e   :  { %9068 = vmatprep.subr.bf16.mxu1 %v9485_v3 }
0x2e61   :  { %9069 = vmatpush3.bf16.msra.mxu1 %v10995_v2 }
0x2e62   :  { %9070 = vmatprep.subr.bf16.mxu1 %v9485_v3 }
0x2e65   :  { %9071 = vmatpush3.bf16.msra.mxu1 %v11005_v18 }
0x2e66   :  { %9092 = vmatprep.subr.bf16.mxu1 %v9485_v3 }
0x2f2b   :  { %v9055_v12 = vpop.f32.mrb[104].mxu1 }
0x2f2c   :  { %v7208_v47 = vmul.f32 %v9055_v12, %v11080_v16  ;;  %v7198_v49 = vpop.f32.mrb[105].mxu1 }
0x2f2d   :  { %v7207_v38 = vmul.f32 %v7198_v49, %v11078_v35 }
0x2f2e   :  { %v7216_v33 = vsel %vm206_vm3, %v7208_v47, 0.0 }
0x2f2f   :  { %v7217_v58 = vrot.slane %v7216_v33, 4  ;;  %v7209_v34 = vsel %vm206_vm3, %v7207_v38, 0.0 }
0x2f30   :  { %v7210_v19 = vrot.slane %v7209_v34, 4 }
0x2f31   :  { %v7218_v21 = vadd.f32 %v7217_v58, %v7216_v33 }
0x2f32   :  { %v7211_v2 = vadd.f32 %v7210_v19, %v7209_v34 }
0x2f33   :  { %v7219_v52 = vrot.slane %v7218_v21, 2 }
0x2f34   :  { %v7212_v41 = vrot.slane %v7211_v2, 2 }
0x2f35   :  { %v7220_v61 = vadd.f32 %v7219_v52, %v7218_v21 }
0x2f36   :  { %v7213_v18 = vadd.f32 %v7212_v41, %v7211_v2 }
0x2f37   :  { %v7221_v24 = vrot.slane %v7220_v61, 1 }
0x2f38   :  { %v7214_v23 = vrot.slane %v7213_v18, 1 }
0x2f39   :  { %v7222_v1 = vadd.f32 %v7221_v24, %v7220_v61 }
0x2f3a   :  { %v7215_v0 = vadd.f32 %v7214_v23, %v7213_v18 }
0x2f3b   :  { %v7224_v27 = vpack.c.bf16 %v7222_v1, %v7222_v1 }
0x2f3c   :  { %v7223_v46 = vpack.c.bf16 %v7215_v0, %v7215_v0 }
0x2f3d   :  { %v7228_v32 = vunpack.c.l.b16 %v7224_v27 }
0x2f3e   :  { %v7227_v62 = vunpack.c.l.b16 %v7223_v46 }
0x2f40   :  { %v7229_v59 = vsel %vm1404_vm8, %v7228_v32, %v7227_v62 }
0x2f41   :  { %v7230_v10 = vpack.c.b16 %v7229_v59, %v7229_v59 }
0x2f43   :  { %9061 = vmatmul.mubr.msk.bf16.vlgmr.msra.gmra.mrb[112].mxu0 %vm206_vm3, %v7230_v10 }
0x2f44   :  { %9175 = vmatpush3.bf16.msk.msra.mxu0 %vm9659_vm10, %v12016_v15 }
0x2f45   :  { %9177 = vmatprep.subr.msk.bf16.mxu0 %vm9669_vm1, %v12016_v15 }
0x2f48   :  { %9179 = vmatpush3.bf16.msk.msra.mxu0 %vm9669_vm1, %v12016_v15 }
0x2f49   :  { %9087 = vmatprep.subr.msk.mxu0 %vm9740_vm6, %v12017_v30 }
0x3016   :  { %v7268_v53 = vpop.f32.mrb[112].mxu0 }
0x3017   :  { %v7281_v42 = vrot.slane %v7268_v53, %v9681_v43  ;;  %v9062_v44 = vpop.f32.mrb[113].mxu0 }
0x3018   :  { %v7271_v11 = vpop.f32.mrb[114].mxu0 }
0x3019   :  { %v7282_v20 = vcombine.high %v7281_v42, %v7281_v42  ;;  %v7289_v37 = vrot.slane %v7281_v42, %v9681_v43  ;;  %v9063_v31 = vpop.f32.mrb[115].mxu0 }
0x301b   :  { %v7296_v25 = vrot.slane %v7282_v20, %v9681_v43  ;;  %v7300_v36 = vrot.slane %v7289_v37, %v9689_v56 }
0x301d   :  { %v7307_v39 = vmul.f32 %v7300_v36, %v11101_v60  ;;  %v7304_v15 = vrot.slane %v7296_v25, %v9689_v56 }
0x301f   :  { %v7309_v13 = vsel %vm206_vm3, %v7307_v39, 0.0  ;;  %v7308_v48 = vmul.f32 %v7304_v15, %v11108_v9 }
0x3020   :  { %7310 = vadd.xlane.f32.xlu1 %v7309_v13 }
0x3021   :  { %v7312_v12 = vsel %vm206_vm3, %v7308_v48, 0.0 }
0x3022   :  { %7313 = vadd.xlane.f32.xlu0 %v7312_v12 }
0x30ad   :  { %v7311_v47 = vpop.xlane.xlu1 %7310 }
0x30ae   :  { %v7315_v49 = vmul.f32 0.17677669, %v7311_v47 }
0x30af   :  { %v7314_v38 = vpop.xlane.xlu0 %7313 }
0x30b0   :  { %9453 = vtanh.f32 %v7315_v49  ;;  %v7316_v33 = vmul.f32 0.17677669, %v7314_v38 }
0x30b2   :  { %9455 = vtanh.f32 %v7316_v33 }
0x30ba   :  { %v9454_v58 = vpop.eup %9453 }
0x30bb   :  { %v7319_v34 = vmul.f32 10.0, %v9454_v58 }
0x30bc   :  { %v9456_v19 = vpop.eup %9455 }
0x30bd   :  { %v7321_v21 = vadd.f32 %v7319_v34, %v11810_v6  ;;  %v7320_v2 = vmul.f32 10.0, %v9456_v19 }
0x30bf   :  { %v7323_v52 = vrot.slane %v7321_v21, 4  ;;  %v7322_v41 = vadd.f32 %v7320_v2, %v11807_v40 }
0x30c1   :  { %v7324_v61 = vmax.f32 %v7321_v21, %v7323_v52  ;;  %v7329_v18 = vrot.slane %v7322_v41, 4 }
0x30c3   :  { %v7325_v24 = vrot.slane %v7324_v61, 2  ;;  %v7330_v23 = vmax.f32 %v7322_v41, %v7329_v18 }
0x30c5   :  { %v7326_v1 = vmax.f32 %v7324_v61, %v7325_v24  ;;  %v7331_v0 = vrot.slane %v7330_v23, 2 }
0x30c7   :  { %v7327_v27 = vrot.slane %v7326_v1, 1  ;;  %v7332_v46 = vmax.f32 %v7330_v23, %v7331_v0 }
0x30c9   :  { %v7328_v32 = vmax.f32 %v7326_v1, %v7327_v27  ;;  %v7333_v62 = vrot.slane %v7332_v46, 1 }
0x30cb   :  { %v7335_v59 = vsub.f32 %v7321_v21, %v7328_v32  ;;  %v7334_v10 = vmax.f32 %v7332_v46, %v7333_v62 }
0x30cd   :  { %v7337_v53 = vmul.f32 1.442695, %v7335_v59  ;;  %v7336_v42 = vsub.f32 %v7322_v41, %v7334_v10 }
0x30cf   :  { %9457 = vpow2.f32 %v7337_v53  ;;  %v7339_v6 = vmul.f32 1.442695, %v7336_v42 }
0x30d1   :  { %9459 = vpow2.f32 %v7339_v6 }
0x30d9   :  { %v9458_v44 = vpop.eup %9457 }
0x30da   :  { %v7341_v11 = vrot.slane %v9458_v44, 4 }
0x30db   :  { %v9460_v40 = vpop.eup %9459 }
0x30dc   :  { %v7342_v20 = vadd.f32 %v9458_v44, %v7341_v11  ;;  %v7347_v37 = vrot.slane %v9460_v40, 4 }
0x30de   :  { %v7343_v31 = vrot.slane %v7342_v20, 2  ;;  %v7348_v25 = vadd.f32 %v9460_v40, %v7347_v37 }
0x30e0   :  { %v7344_v36 = vadd.f32 %v7343_v31, %v7342_v20  ;;  %v7349_v39 = vrot.slane %v7348_v25, 2 }
0x30e2   :  { %v7345_v15 = vrot.slane %v7344_v36, 1  ;;  %v7350_v13 = vadd.f32 %v7349_v39, %v7348_v25  ;;  %v7416_v25 = vsel %vm7415_vm14, 1, %v9490_v8 }
0x30e4   :  { %v7346_v48 = vadd.f32 %v7345_v15, %v7344_v36  ;;  %v7351_v12 = vrot.slane %v7350_v13, 1 }
0x30e6   :  { %9461 = vlog2.f32 %v7346_v48  ;;  %v7352_v47 = vadd.f32 %v7351_v12, %v7350_v13 }
0x30e8   :  { %9463 = vlog2.f32 %v7352_v47 }
0x30f0   :  { %v9462_v49 = vpop.eup %9461 }
0x30f1   :  { %v7354_v38 = vmul.f32 0.6931472, %v9462_v49 }
0x30f2   :  { %v9464_v33 = vpop.eup %9463 }
0x30f3   :  { %v7357_v58 = vadd.f32 %v7354_v38, %v7328_v32  ;;  %v7356_v34 = vmul.f32 0.6931472, %v9464_v33 }
0x30f5   :  { %v7359_v19 = vsub.f32 %v7321_v21, %v7357_v58  ;;  %v7358_v2 = vadd.f32 %v7356_v34, %v7334_v10 }
0x30f7   :  { %v7361_v52 = vrot.slane %v7359_v19, 4  ;;  %v7360_v61 = vsub.f32 %v7322_v41, %v7358_v2 }
0x30f9   :  { %v7362_v18 = vmax.f32 %v7359_v19, %v7361_v52  ;;  %v7367_v24 = vrot.slane %v7360_v61, 4 }
0x30fb   :  { %v7363_v23 = vrot.slane %v7362_v18, 2  ;;  %v7368_v1 = vmax.f32 %v7360_v61, %v7367_v24 }
0x30fd   :  { %v7364_v0 = vmax.f32 %v7362_v18, %v7363_v23  ;;  %v7369_v27 = vrot.slane %v7368_v1, 2 }
0x30ff   :  { %v7365_v46 = vrot.slane %v7364_v0, 1  ;;  %v7370_v62 = vmax.f32 %v7368_v1, %v7369_v27 }
0x3101   :  { %v7366_v59 = vmax.f32 %v7364_v0, %v7365_v46  ;;  %v7371_v53 = vrot.slane %v7370_v62, 1 }
0x3103   :  { %vm7373_vm10 = vcmp.ge.f32.partialorder %v7359_v19, %v7366_v59  ;;  %v7372_v42 = vmax.f32 %v7370_v62, %v7371_v53 }
0x3104   :  { %v7375_v6 = vsel %vm7373_vm10, %v9648_v29, 8 }
0x3105   :  { %v7377_v32 = vrot.slane %v7375_v6, 4  ;;  %vm7374_vm1 = vcmp.ge.f32.partialorder %v7360_v61, %v7372_v42 }
0x3106   :  { %v7376_v21 = vsel %vm7374_vm1, %v9648_v29, 8 }
0x3107   :  { %v7386_v10 = vrot.slane %v7376_v21, 4  ;;  %vm7378_vm9 = vcmp.lt.s32.totalorder %v7375_v6, %v7377_v32 }
0x3108   :  { %v7379_v41 = vsel %vm7378_vm9, %v7375_v6, %v7377_v32 }
0x3109   :  { %v7380_v44 = vrot.slane %v7379_v41, 2  ;;  %vm7387_vm11 = vcmp.lt.s32.totalorder %v7376_v21, %v7386_v10 }
0x310a   :  { %v7388_v11 = vsel %vm7387_vm11, %v7376_v21, %v7386_v10 }
0x310b   :  { %vm7381_vm12 = vcmp.lt.s32.totalorder %v7379_v41, %v7380_v44  ;;  %v7389_v40 = vrot.slane %v7388_v11, 2 }
0x310c   :  { %v7382_v20 = vsel %vm7381_vm12, %v7379_v41, %v7380_v44 }
0x310d   :  { %v7383_v37 = vrot.slane %v7382_v20, 1  ;;  %vm7390_vm13 = vcmp.lt.s32.totalorder %v7388_v11, %v7389_v40 }
0x310e   :  { %v7391_v31 = vsel %vm7390_vm13, %v7388_v11, %v7389_v40 }
0x310f   :  { %vm7384_vm15 = vcmp.lt.s32.totalorder %v7382_v20, %v7383_v37  ;;  %v7392_v36 = vrot.slane %v7391_v31, 1 }
0x3110   :  { %v7385_v39 = vsel %vm7384_vm15, %v7382_v20, %v7383_v37 }
0x3111   :  { %vm7393_vm4 = vcmp.lt.s32.totalorder %v7391_v31, %v7392_v36  ;;  %vm7395_vm5 = vcmp.eq.s32.totalorder %v9648_v29, %v7385_v39  ;;  %v7422_v15 = vmul.u32 %v7416_v25, %v7385_v39 }
0x3112   :  { %v7394_v13 = vsel %vm7393_vm4, %v7391_v31, %v7392_v36  ;;  %v11867_v48 = vsel %vm7395_vm5, 1.0, %v9485_v3 }
0x3113   :  { %vm7396_vm10 = vcmp.eq.s32.totalorder %v9648_v29, %v7394_v13  ;;  %v7401_v12 = vmul.f32 %v11867_v48, %v7359_v19  ;;  %v7423_v47 = vmul.u32 %v7416_v25, %v7394_v13  ;;  %v11872_v49 = vadd.s32 %v7422_v15, %v11747_v45 }
0x3114   :  { %v11875_v38 = vsel %vm7396_vm10, 1.0, %v9485_v3  ;;  %v7428_v33 = vmul.f32 %v11867_v48, %v10943_v50 }
0x3115   :  { %v7403_v58 = vrot.slane %v7401_v12, 4  ;;  %v11880_v34 = vadd.s32 %v7423_v47, %v11755_v28  ;;  %v7429_v2 = vmul.f32 %v11875_v38, %v10945_v54  ;;  %v7402_v52 = vmul.f32 %v11875_v38, %v7360_v61 }
0x3116   :  { %v7430_v19 = vsel %vm206_vm3, %v7428_v33, 0.0  ;;  %v8265_v61 = vsel %vm7415_vm14, 1.0, %v9485_v3  ;;  %vm7955_vm14 = vcmask 7168  }
0x3117   :  { %v7404_v18 = vadd.f32 %v7403_v58, %v7401_v12  ;;  %v7431_v45 = vrot.slane %v7430_v19, 4  ;;  %v7437_v24 = vsel %vm206_vm3, %v7429_v2, 0.0  ;;  %v7409_v23 = vrot.slane %v7402_v52, 4 }
0x3118   :  { %v7438_v1 = vrot.slane %v7437_v24, 4 }
0x3119   :  { %v7405_v0 = vrot.slane %v7404_v18, 2  ;;  %v7432_v27 = vadd.f32 %v7431_v45, %v7430_v19  ;;  %v7410_v50 = vadd.f32 %v7409_v23, %v7402_v52  ;;  %v7426_v23 = vmax.f32 %v11804_v22, %v11867_v48 }
0x311a   :  { %v7439_v46 = vadd.f32 %v7438_v1, %v7437_v24 }
0x311b   :  { %v7406_v62 = vadd.f32 %v7405_v0, %v7404_v18  ;;  %v7433_v28 = vrot.slane %v7432_v27, 2  ;;  %v7411_v59 = vrot.slane %v7410_v50, 2 }
0x311c   :  { %v7440_v53 = vrot.slane %v7439_v46, 2 }
0x311d   :  { %v7407_v42 = vrot.slane %v7406_v62, 1  ;;  %v7434_v54 = vadd.f32 %v7433_v28, %v7432_v27  ;;  %v7412_v6 = vadd.f32 %v7411_v59, %v7410_v50 }
0x311e   :  { %v7441_v32 = vadd.f32 %v7440_v53, %v7439_v46 }
0x311f   :  { %v7408_v21 = vadd.f32 %v7407_v42, %v7406_v62  ;;  %v7435_v10 = vrot.slane %v7434_v54, 1  ;;  %v7413_v41 = vrot.slane %v7412_v6, 1 }
0x3120   :  { %v7442_v44 = vrot.slane %v7441_v32, 1 }
0x3121   :  { %v7418_v11 = vmul.f32 %v8265_v61, %v7408_v21  ;;  %v7414_v40 = vadd.f32 %v7413_v41, %v7412_v6  ;;  %v7436_v20 = vadd.f32 %v7435_v10, %v7434_v54 }
0x3122   :  { %v7443_v37 = vadd.f32 %v7442_v44, %v7441_v32 }
0x3123   :  { %v11891_v31 = vadd.f32 %v7418_v11, %v11766_v63  ;;  %v7419_v25 = vmul.f32 %v8265_v61, %v7414_v40 }
0x3124   :  { %v7446_v36 = vsel %vm1404_vm8, %v7443_v37, %v7436_v20 }
0x3125   :  { %7447 = vrot.lane.b32.xlu0 %v7446_v36, %s9493_s14  ;;  %v11896_v39 = vadd.f32 %v7419_v25, %v11771_v4 }
0x3197   :  { %v7448_v15 = vpop.permute.xlu0 %7447 }
0x3198   :  { %v7450_v13 = vsel %vm206_vm3, %v11142_v7, %v7448_v15 }
0x3199   :  { %v7451_v12 = vpack.c.bf16 %v7450_v13, %v7450_v13 }
0x319b   :  { %9073 = vmatmul.mubr.msk.bf16.vlgmr.msra.gmra.mrb[108].mxu1 %vm3735_vm0, %v7451_v12 }
0x319c   :  { %9093 = vmatpush3.bf16.msra.mxu1 %v11062_v26  ;;  %9096 = vmatprep.mubr.msk.bf16.mxu1 %vm9486_vm2, %v9485_v3 }
0x319d   :  { %9094 = vmatprep.subr.bf16.mxu1 %v9485_v3 }
0x31a0   :  { %9095 = vmatpush3.bf16.msra.mxu1 %v11072_v57 }
0x326e   :  { %v7489_v63 = vpop.f32.mrb[108].mxu1 }
0x326f   :  { %v7495_v4 = vadd.f32 %v7489_v63, %v11032_v14  ;;  %v9074_v47 = vpop.f32.mrb[109].mxu1  ;;  %v7427_v14 = vmax.f32 %v11800_v51, %v11875_v38 }
0x3270   :  { %v7492_v33 = vpop.f32.mrb[110].mxu1 }
0x3271   :  { %v7496_v58 = vmul.f32 0.5, %v7495_v4  ;;  %v9075_v2 = vpop.f32.mrb[111].mxu1  ;;  %v11923_v1 = vmul.f32 -1e+09, %v7427_v14 }
0x3273   :  { %v7504_v7 = vrot.slane %v7496_v58, %v9681_v43 }
0x3275   :  { %v7505_v52 = vcombine.high %v7504_v7, %v7504_v7  ;;  %v7512_v19 = vrot.slane %v7504_v7, %v9681_v43 }
0x3277   :  { %v7519_v26 = vrot.slane %v7505_v52, %v9681_v43  ;;  %v7523_v18 = vrot.slane %v7512_v19, %v9689_v56 }
0x3279   :  { %v7527_v45 = vrot.slane %v7519_v26, %v9689_v56  ;;  %v7530_v57 = vmul.f32 %v7523_v18, %v11024_v17  ;;  %v11925_v17 = vmul.f32 -1e+09, %v7426_v23 }
0x327b   :  { %v7531_v24 = vmul.f32 %v7527_v45, %v11028_v55  ;;  %9084 = vmatprep.mubr.msk.f32.mxu0 %vm206_vm3, %v7530_v57 }
0x327d   :  { %9085 = vmatmul.mubr.msk.f32.vlgmr.msra.gmra.mrb[116].mxu0 %vm206_vm3, %v7531_v24 }
0x327e   :  { %9088 = vmatpush3.msk.msra.mxu0 %vm9740_vm6, %v12017_v30 }
0x3350   :  { %v9086_v0 = vpop.f32.mrb[116].mxu0 }
0x3351   :  { %v7616_v55 = vadd.f32 %v9086_v0, %v11923_v1  ;;  %v7604_v27 = vpop.f32.mrb[117].mxu0 }
0x3352   :  { %v7615_v50 = vadd.f32 %v11925_v17, %v7604_v27 }
0x3353   :  { %v7624_v46 = vsel %vm728_vm7, %v7616_v55, -inf }
0x3354   :  { %v7625_v5 = vrot.slane %v7624_v46, 4  ;;  %v7617_v30 = vsel %vm728_vm7, %v7615_v50, -inf }
0x3355   :  { %v7618_v62 = vrot.slane %v7617_v30, 4 }
0x3356   :  { %v7626_v51 = vmax.f32 %v7624_v46, %v7625_v5 }
0x3357   :  { %v7619_v38 = vmax.f32 %v7617_v30, %v7618_v62 }
0x3358   :  { %v7627_v28 = vrot.slane %v7626_v51, 2 }
0x3359   :  { %v7620_v22 = vrot.slane %v7619_v38, 2 }
0x335a   :  { %v7628_v48 = vmax.f32 %v7626_v51, %v7627_v28 }
0x335b   :  { %v7621_v59 = vmax.f32 %v7619_v38, %v7620_v22 }
0x335c   :  { %v7629_v53 = vrot.slane %v7628_v48, 1 }
0x335d   :  { %v7622_v42 = vrot.slane %v7621_v59, 1 }
0x335e   :  { %v7630_v54 = vmax.f32 %v7628_v48, %v7629_v53 }
0x335f   :  { %v7623_v6 = vmax.f32 %v7621_v59, %v7622_v42 }
0x3360   :  { %v7632_v61 = vsub.f32 %v7616_v55, %v7630_v54 }
0x3361   :  { %v7631_v32 = vsub.f32 %v7615_v50, %v7623_v6 }
0x3362   :  { %v7635_v21 = vmul.f32 1.442695, %v7632_v61 }
0x3363   :  { %v7633_v10 = vmul.f32 1.442695, %v7631_v32 }
0x3364   :  { %9465 = vpow2.f32 %v7635_v21 }
0x3365   :  { %9467 = vpow2.f32 %v7633_v10 }
0x336e   :  { %v9466_v41 = vpop.eup %9465 }
0x336f   :  { %v9468_v44 = vpop.eup %9467  ;;  %v7644_v11 = vsel %vm728_vm7, %v9466_v41, 0.0 }
0x3370   :  { %v7645_v40 = vrot.slane %v7644_v11, 4  ;;  %v7637_v20 = vsel %vm728_vm7, %v9468_v44, 0.0 }
0x3371   :  { %v7638_v37 = vrot.slane %v7637_v20, 4 }
0x3372   :  { %v7646_v25 = vadd.f32 %v7645_v40, %v7644_v11 }
0x3373   :  { %v7639_v36 = vadd.f32 %v7638_v37, %v7637_v20 }
0x3374   :  { %v7647_v15 = vrot.slane %v7646_v25, 2 }
0x3375   :  { %v7640_v13 = vrot.slane %v7639_v36, 2 }
0x3376   :  { %v7648_v12 = vadd.f32 %v7647_v15, %v7646_v25 }
0x3377   :  { %v7641_v63 = vadd.f32 %v7640_v13, %v7639_v36 }
0x3378   :  { %v7649_v4 = vrot.slane %v7648_v12, 1 }
0x3379   :  { %v7642_v47 = vrot.slane %v7641_v63, 1 }
0x337a   :  { %v7650_v33 = vadd.f32 %v7649_v4, %v7648_v12 }
0x337b   :  { %v7643_v58 = vadd.f32 %v7642_v47, %v7641_v63 }
0x337c   :  { %9469 = vrcp.f32 %v7650_v33 }
0x337d   :  { %9471 = vrcp.f32 %v7643_v58 }
0x3386   :  { %v9470_v2 = vpop.eup %9469 }
0x3387   :  { %v9472_v7 = vpop.eup %9471  ;;  %v7654_v19 = vmul.f32 %v9470_v2, %v9466_v41 }
0x3388   :  { %v7653_v52 = vmul.f32 %v9472_v7, %v9468_v44 }
0x338a   :  { %9089 = vmatprep.mubr.msk.f32.mxu0 %vm728_vm7, %v7653_v52 }
0x338b   :  { %9090 = vmatmul.mubr.msk.f32.vlgmr.msra.gmra.mrb[118].mxu0 %vm728_vm7, %v7654_v19 }
0x345e   :  { %v9091_v26 = vpop.f32.mrb[118].mxu0 }
0x345f   :  { %v7737_v18 = vmul.f32 %v9091_v26, %v11080_v16  ;;  %v7727_v45 = vpop.f32.mrb[119].mxu0 }
0x3460   :  { %v7736_v57 = vmul.f32 %v7727_v45, %v11078_v35 }
0x3461   :  { %v7745_v24 = vsel %vm206_vm3, %v7737_v18, 0.0 }
0x3462   :  { %v7746_v14 = vrot.slane %v7745_v24, 4  ;;  %v7738_v23 = vsel %vm206_vm3, %v7736_v57, 0.0 }
0x3463   :  { %v7739_v0 = vrot.slane %v7738_v23, 4 }
0x3464   :  { %v7747_v55 = vadd.f32 %v7746_v14, %v7745_v24 }
0x3465   :  { %v7740_v27 = vadd.f32 %v7739_v0, %v7738_v23 }
0x3466   :  { %v7748_v50 = vrot.slane %v7747_v55, 2 }
0x3467   :  { %v7741_v46 = vrot.slane %v7740_v27, 2 }
0x3468   :  { %v7749_v5 = vadd.f32 %v7748_v50, %v7747_v55 }
0x3469   :  { %v7742_v30 = vadd.f32 %v7741_v46, %v7740_v27 }
0x346a   :  { %v7750_v62 = vrot.slane %v7749_v5, 1 }
0x346b   :  { %v7743_v51 = vrot.slane %v7742_v30, 1 }
0x346c   :  { %v7751_v38 = vadd.f32 %v7750_v62, %v7749_v5 }
0x346d   :  { %v7744_v28 = vadd.f32 %v7743_v51, %v7742_v30 }
0x346e   :  { %v7753_v16 = vpack.c.bf16 %v7751_v38, %v7751_v38 }
0x346f   :  { %v7752_v22 = vpack.c.bf16 %v7744_v28, %v7744_v28 }
0x3470   :  { %v7757_v48 = vunpack.c.l.b16 %v7753_v16 }
0x3471   :  { %v7756_v35 = vunpack.c.l.b16 %v7752_v22 }
0x3473   :  { %v7758_v59 = vsel %vm1404_vm8, %v7757_v48, %v7756_v35  ;;  %vm7944_vm8 = vcmp.eq.s32.totalorder %v9648_v29, 7 }
0x3474   :  { %v7759_v53 = vpack.c.b16 %v7758_v59, %v7758_v59 }
0x3476   :  { %9097 = vmatmul.mubr.msk.bf16.vlgmr.msra.gmra.mrb[112].mxu1 %vm206_vm3, %v7759_v53 }
0x3549   :  { %v7797_v42 = vpop.f32.mrb[112].mxu1 }
0x354a   :  { %v7810_v54 = vrot.slane %v7797_v42, %v9681_v43  ;;  %v9098_v6 = vpop.f32.mrb[113].mxu1 }
0x354b   :  { %v7800_v61 = vpop.f32.mrb[114].mxu1 }
0x354c   :  { %v7811_v32 = vcombine.high %v7810_v54, %v7810_v54  ;;  %v7818_v21 = vrot.slane %v7810_v54, %v9681_v43  ;;  %v9099_v10 = vpop.f32.mrb[115].mxu1 }
0x354e   :  { %v7825_v41 = vrot.slane %v7811_v32, %v9681_v43  ;;  %v7829_v44 = vrot.slane %v7818_v21, %v9689_v56 }
0x3550   :  { %v7836_v11 = vmul.f32 %v7829_v44, %v11101_v60  ;;  %v7833_v40 = vrot.slane %v7825_v41, %v9689_v56 }
0x3552   :  { %v7838_v20 = vsel %vm206_vm3, %v7836_v11, 0.0  ;;  %v7837_v37 = vmul.f32 %v7833_v40, %v11108_v9 }
0x3553   :  { %7839 = vadd.xlane.f32.xlu1 %v7838_v20 }
0x3554   :  { %v7841_v25 = vsel %vm206_vm3, %v7837_v37, 0.0 }
0x3555   :  { %7842 = vadd.xlane.f32.xlu0 %v7841_v25 }
0x35e0   :  { %v7840_v36 = vpop.xlane.xlu1 %7839 }
0x35e1   :  { %v7844_v15 = vmul.f32 0.17677669, %v7840_v36 }
0x35e2   :  { %v7843_v13 = vpop.xlane.xlu0 %7842 }
0x35e3   :  { %9473 = vtanh.f32 %v7844_v15  ;;  %v7845_v12 = vmul.f32 0.17677669, %v7843_v13 }
0x35e5   :  { %9475 = vtanh.f32 %v7845_v12 }
0x35ed   :  { %v9474_v43 = vpop.eup %9473 }
0x35ee   :  { %v7848_v63 = vmul.f32 10.0, %v9474_v43 }
0x35ef   :  { %v9476_v4 = vpop.eup %9475 }
0x35f0   :  { %v7850_v60 = vadd.f32 %v7848_v63, %v11925_v17  ;;  %v7849_v56 = vmul.f32 10.0, %v9476_v4 }
0x35f2   :  { %v7852_v47 = vrot.slane %v7850_v60, 4  ;;  %v7851_v33 = vadd.f32 %v7849_v56, %v11923_v1 }
0x35f4   :  { %v7853_v9 = vmax.f32 %v7850_v60, %v7852_v47  ;;  %v7858_v58 = vrot.slane %v7851_v33, 4 }
0x35f6   :  { %v7854_v2 = vrot.slane %v7853_v9, 2  ;;  %v7859_v7 = vmax.f32 %v7851_v33, %v7858_v58 }
0x35f8   :  { %v7855_v52 = vmax.f32 %v7853_v9, %v7854_v2  ;;  %v7860_v19 = vrot.slane %v7859_v7, 2  ;;  %v7945_v2 = vsel %vm7944_vm8, 1, %v9490_v8 }
0x35fa   :  { %v7856_v26 = vrot.slane %v7855_v52, 1  ;;  %v7861_v18 = vmax.f32 %v7859_v7, %v7860_v19 }
0x35fc   :  { %v7857_v45 = vmax.f32 %v7855_v52, %v7856_v26  ;;  %v7862_v57 = vrot.slane %v7861_v18, 1 }
0x35fe   :  { %v7864_v24 = vsub.f32 %v7850_v60, %v7857_v45  ;;  %v7863_v14 = vmax.f32 %v7861_v18, %v7862_v57 }
0x3600   :  { %v7866_v23 = vmul.f32 1.442695, %v7864_v24  ;;  %v7865_v0 = vsub.f32 %v7851_v33, %v7863_v14 }
0x3602   :  { %9477 = vpow2.f32 %v7866_v23  ;;  %v7868_v17 = vmul.f32 1.442695, %v7865_v0 }
0x3604   :  { %9479 = vpow2.f32 %v7868_v17 }
0x360c   :  { %v9478_v55 = vpop.eup %9477 }
0x360d   :  { %v7870_v27 = vrot.slane %v9478_v55, 4 }
0x360e   :  { %v9480_v1 = vpop.eup %9479 }
0x360f   :  { %v7871_v50 = vadd.f32 %v9478_v55, %v7870_v27  ;;  %v7876_v46 = vrot.slane %v9480_v1, 4 }
0x3611   :  { %v7872_v5 = vrot.slane %v7871_v50, 2  ;;  %v7877_v30 = vadd.f32 %v9480_v1, %v7876_v46 }
0x3613   :  { %v7873_v62 = vadd.f32 %v7872_v5, %v7871_v50  ;;  %v7878_v51 = vrot.slane %v7877_v30, 2 }
0x3615   :  { %v7874_v38 = vrot.slane %v7873_v62, 1  ;;  %v7879_v28 = vadd.f32 %v7878_v51, %v7877_v30 }
0x3617   :  { %v7875_v16 = vadd.f32 %v7874_v38, %v7873_v62  ;;  %v7880_v22 = vrot.slane %v7879_v28, 1  ;;  %v8279_v62 = vsel %vm7944_vm8, 1.0, %v9485_v3 }
0x3619   :  { %9481 = vlog2.f32 %v7875_v16  ;;  %v7881_v48 = vadd.f32 %v7880_v22, %v7879_v28 }
0x361b   :  { %9483 = vlog2.f32 %v7881_v48 }
0x3623   :  { %v9482_v35 = vpop.eup %9481 }
0x3624   :  { %v7883_v59 = vmul.f32 0.6931472, %v9482_v35 }
0x3625   :  { %v9484_v53 = vpop.eup %9483 }
0x3626   :  { %v7886_v42 = vadd.f32 %v7883_v59, %v7857_v45  ;;  %v7885_v54 = vmul.f32 0.6931472, %v9484_v53 }
0x3628   :  { %v7888_v6 = vsub.f32 %v7850_v60, %v7886_v42  ;;  %v7887_v61 = vadd.f32 %v7885_v54, %v7863_v14 }
0x362a   :  { %v7890_v32 = vrot.slane %v7888_v6, 4  ;;  %v7889_v21 = vsub.f32 %v7851_v33, %v7887_v61 }
0x362c   :  { %v7891_v10 = vmax.f32 %v7888_v6, %v7890_v32  ;;  %v7896_v41 = vrot.slane %v7889_v21, 4 }
0x362e   :  { %v7892_v44 = vrot.slane %v7891_v10, 2  ;;  %v7897_v11 = vmax.f32 %v7889_v21, %v7896_v41 }
0x3630   :  { %v7893_v40 = vmax.f32 %v7891_v10, %v7892_v44  ;;  %v7898_v20 = vrot.slane %v7897_v11, 2 }
0x3632   :  { %v7894_v37 = vrot.slane %v7893_v40, 1  ;;  %v7899_v25 = vmax.f32 %v7897_v11, %v7898_v20 }
0x3634   :  { %v7895_v36 = vmax.f32 %v7893_v40, %v7894_v37  ;;  %v7900_v15 = vrot.slane %v7899_v25, 1 }
0x3636   :  { %vm7902_vm2 = vcmp.ge.f32.partialorder %v7888_v6, %v7895_v36  ;;  %v7901_v13 = vmax.f32 %v7899_v25, %v7900_v15 }
0x3637   :  { %v7904_v12 = vsel %vm7902_vm2, %v9648_v29, 8 }
0x3638   :  { %v7906_v43 = vrot.slane %v7904_v12, 4  ;;  %vm7903_vm3 = vcmp.ge.f32.partialorder %v7889_v21, %v7901_v13 }
0x3639   :  { %v7905_v63 = vsel %vm7903_vm3, %v9648_v29, 8 }
0x363a   :  { %vm7907_vm6 = vcmp.lt.s32.totalorder %v7904_v12, %v7906_v43  ;;  %v7915_v4 = vrot.slane %v7905_v63, 4 }
0x363b   :  { %v7908_v60 = vsel %vm7907_vm6, %v7904_v12, %v7906_v43 }
0x363c   :  { %v7909_v56 = vrot.slane %v7908_v60, 2  ;;  %vm7916_vm7 = vcmp.lt.s32.totalorder %v7905_v63, %v7915_v4 }
0x363d   :  { %v7917_v47 = vsel %vm7916_vm7, %v7905_v63, %v7915_v4 }
0x363e   :  { %vm7910_vm0 = vcmp.lt.s32.totalorder %v7908_v60, %v7909_v56  ;;  %v7918_v33 = vrot.slane %v7917_v47, 2 }
0x363f   :  { %v7911_v9 = vsel %vm7910_vm0, %v7908_v60, %v7909_v56 }
0x3640   :  { %v7912_v58 = vrot.slane %v7911_v9, 1  ;;  %vm7919_vm1 = vcmp.lt.s32.totalorder %v7917_v47, %v7918_v33 }
0x3641   :  { %v7920_v7 = vsel %vm7919_vm1, %v7917_v47, %v7918_v33 }
0x3642   :  { %vm7913_vm9 = vcmp.lt.s32.totalorder %v7911_v9, %v7912_v58  ;;  %v7921_v52 = vrot.slane %v7920_v7, 1 }
0x3643   :  { %v7914_v19 = vsel %vm7913_vm9, %v7911_v9, %v7912_v58 }
0x3644   :  { %vm7924_vm11 = vcmp.eq.s32.totalorder %v9648_v29, %v7914_v19  ;;  %v7951_v26 = vmul.u32 %v7945_v2, %v7914_v19  ;;  %vm7922_vm12 = vcmp.lt.s32.totalorder %v7920_v7, %v7921_v52 }
0x3645   :  { %v8277_v18 = vsel %vm7924_vm11, 1.0, %v9485_v3  ;;  %v7923_v45 = vsel %vm7922_vm12, %v7920_v7, %v7921_v52 }
0x3646   :  { %v7930_v57 = vmul.f32 %v8277_v18, %v7888_v6  ;;  %v7953_v24 = vadd.s32 %v7951_v26, %v11872_v49  ;;  %vm7925_vm13 = vcmp.eq.s32.totalorder %v9648_v29, %v7923_v45  ;;  %v7952_v14 = vmul.u32 %v7945_v2, %v7923_v45 }
0x3647   :  { %v8278_v8 = vsel %vm7925_vm13, 1.0, %v9485_v3 }
0x3648   :  { %v7932_v23 = vrot.slane %v7930_v57, 4  ;;  %7958 = vst.msk [vmem:[%s12000_s16] sm:$0xff] %vm7955_vm14, %v7953_v24  ;;  %v7931_v0 = vmul.f32 %v8278_v8, %v7889_v21  ;;  %v7954_v17 = vadd.s32 %v7952_v14, %v11880_v34 }
0x364a   :  { %v7933_v55 = vadd.f32 %v7932_v23, %v7930_v57  ;;  %v7938_v27 = vrot.slane %v7931_v0, 4  ;;  %7959 = vst.msk [vmem:[%s12000_s16 + $0x8] sm:$0xff] %vm7955_vm14, %v7954_v17 }
0x364c   :  { %v7934_v49 = vrot.slane %v7933_v55, 2  ;;  %v7939_v1 = vadd.f32 %v7938_v27, %v7931_v0 }
0x364e   :  { %v7935_v50 = vadd.f32 %v7934_v49, %v7933_v55  ;;  %v7940_v46 = vrot.slane %v7939_v1, 2 }
0x3650   :  { %v7936_v5 = vrot.slane %v7935_v50, 1  ;;  %v7941_v30 = vadd.f32 %v7940_v46, %v7939_v1 }
0x3652   :  { %v7937_v51 = vadd.f32 %v7936_v5, %v7935_v50  ;;  %v7942_v38 = vrot.slane %v7941_v30, 1 }
0x3654   :  { %v7947_v34 = vmul.f32 %v8279_v62, %v7937_v51  ;;  %v7943_v28 = vadd.f32 %v7942_v38, %v7941_v30 }
0x3656   :  { %v7949_v16 = vadd.f32 %v7947_v34, %v11891_v31  ;;  %v7948_v22 = vmul.f32 %v8279_v62, %v7943_v28 }
0x3658   :  { %7956 = vst.msk [vmem:[%s12001_s15] sm:$0xff] %vm7955_vm14, %v7949_v16  ;;  %v7950_v48 = vadd.f32 %v7948_v22, %v11896_v39 }
0x365a   :  { %7957 = vst.msk [vmem:[%s12001_s15 + $0x8] sm:$0xff] %vm7955_vm14, %v7950_v48 }

</bundles_post_ra>
